<compile_context>
chip_gen: v7x
topology: tpu7x:2x2x1
jax: 0.10.0
libtpu: 0.0.40
codegen_flags: <defaults>
</compile_context>

<pallas_src>
import functools
import numpy as np

import jax
import jax.numpy as jnp
from jax.experimental import pallas as pl
from jax.experimental.pallas import tpu as pltpu  # noqa: F401  (TPU backend)


# ----------------------------------------------------------------------------
# Pallas kernels (grid-less: every operand is a whole-array VMEM block)
# ----------------------------------------------------------------------------
def conv_relu_kernel(p_ref, w_ref, b_ref, o_ref):
    """o = relu(patches @ w + b).  patches:(M,K) bf16, w:(K,Cout) bf16, b:(1,Cout) f32."""
    y = jnp.dot(p_ref[...], w_ref[...], preferred_element_type=jnp.float32)
    o_ref[...] = jnp.maximum(y + b_ref[...], 0.0)


def conv_relu_pool_kernel(p_ref, w_ref, b_ref, o_ref, *, batch):
    """relu(patches @ w + b) + fused global average pool.

    patches:(B*HW, K) bf16 -> o:(B, Cout) f32 (Cout lane-dense). The full
    (B*HW, Cout) pre-pool activation lives only in VMEM, never in HBM.
    """
    y = jnp.dot(p_ref[...], w_ref[...], preferred_element_type=jnp.float32)
    y = jnp.maximum(y + b_ref[...], 0.0)
    hw = y.shape[0] // batch
    inv = jnp.float32(1.0 / hw)
    for b in range(batch):  # static unroll; sublane-direction reduce per image
        o_ref[b:b + 1, :] = jnp.sum(y[b * hw:(b + 1) * hw, :], axis=0,
                                    keepdims=True) * inv


def head_kernel(rgb_ref, dep_ref,
                pwr_ref, pwd_ref, pb_ref,
                w1_ref, b1_ref, w2_ref, b2_ref,
                v1w_ref, v1b_ref, v2w_ref, v2b_ref,
                p1w_ref, p1b_ref, p2w_ref, p2b_ref,
                val_ref, pi_ref):
    """Entire head in one kernel: proj_fc -> ResidualBlock -> value & policy.

    cat([rgb, depth]) @ Wproj is folded into rgb @ Wr + depth @ Wd (no concat).
    MXU operands bf16; accumulation + bias/ReLU/softmax in f32.
    """
    bf16 = jnp.bfloat16
    rgb = rgb_ref[...].astype(bf16)
    dep = dep_ref[...].astype(bf16)

    # x = relu(proj_fc(cat([rgb_feat, depth_feat], -1)))
    x = jnp.dot(rgb, pwr_ref[...], preferred_element_type=jnp.float32)
    x = x + jnp.dot(dep, pwd_ref[...], preferred_element_type=jnp.float32)
    x = jnp.maximum(x + pb_ref[...], 0.0)

    # ResidualBlock: relu(fc2(relu(fc1(x))) + x)
    h = jnp.dot(x.astype(bf16), w1_ref[...], preferred_element_type=jnp.float32)
    h = jnp.maximum(h + b1_ref[...], 0.0)
    y = jnp.dot(h.astype(bf16), w2_ref[...], preferred_element_type=jnp.float32)
    x = jnp.maximum(y + b2_ref[...] + x, 0.0)
    xb = x.astype(bf16)

    # value head
    hv = jnp.dot(xb, v1w_ref[...], preferred_element_type=jnp.float32)
    hv = jnp.maximum(hv + v1b_ref[...], 0.0)
    val = jnp.dot(hv.astype(bf16), v2w_ref[...], preferred_element_type=jnp.float32)
    val_ref[...] = (val + v2b_ref[...]).astype(val_ref.dtype)

    # policy head (+ softmax, f32 throughout the epilogue)
    hp = jnp.dot(xb, p1w_ref[...], preferred_element_type=jnp.float32)
    hp = jnp.maximum(hp + p1b_ref[...], 0.0)
    logits = jnp.dot(hp.astype(bf16), p2w_ref[...],
                     preferred_element_type=jnp.float32) + p2b_ref[...]
    logits = logits - jnp.max(logits, axis=-1, keepdims=True)
    e = jnp.exp(logits)
    pi_ref[...] = (e / jnp.sum(e, axis=-1, keepdims=True)).astype(pi_ref.dtype)


# ----------------------------------------------------------------------------
# Wrappers (im2col / layout plumbing stays in XLA; matmuls + epilogues in Pallas)
# ----------------------------------------------------------------------------
def im2col_nhwc(x, kh, kw, stride, pad):
    """x: (B, H, W, C) NHWC -> rows (B*Ho*Wo, kh*kw*C), plus Ho, Wo."""
    B, H, W, C = x.shape
    xp = jnp.pad(x, ((0, 0), (pad, pad), (pad, pad), (0, 0)))
    Ho = (H + 2 * pad - kh) // stride + 1
    Wo = (W + 2 * pad - kw) // stride + 1
    cols = []
    for i in range(kh):
        for j in range(kw):
            cols.append(xp[:, i:i + stride * Ho:stride, j:j + stride * Wo:stride, :])
    patches = jnp.stack(cols, axis=3)          # (B, Ho, Wo, kh*kw, C)
    return patches.reshape(B * Ho * Wo, kh * kw * C), Ho, Wo


def pallas_conv_relu(x, wmat, b, kh, kw, stride, pad):
    """Conv2d + ReLU, NHWC in / NHWC out. wmat: (kh*kw*Cin, Cout) bf16."""
    B = x.shape[0]
    patches, Ho, Wo = im2col_nhwc(x, kh, kw, stride, pad)
    Cout = wmat.shape[1]
    y = pl.pallas_call(
        conv_relu_kernel,
        out_shape=jax.ShapeDtypeStruct((patches.shape[0], Cout), jnp.float32),
    )(patches.astype(jnp.bfloat16), wmat, b)
    return y.reshape(B, Ho, Wo, Cout)          # stays channels-last


def pallas_conv_relu_pool(x, wmat, b, kh, kw, stride, pad):
    """Conv2d + ReLU + AdaptiveAvgPool2d(1) fused. Returns (B, Cout)."""
    B = x.shape[0]
    patches, _, _ = im2col_nhwc(x, kh, kw, stride, pad)
    Cout = wmat.shape[1]
    return pl.pallas_call(
        functools.partial(conv_relu_pool_kernel, batch=B),
        out_shape=jax.ShapeDtypeStruct((B, Cout), jnp.float32),
    )(patches.astype(jnp.bfloat16), wmat, b)


def pallas_head(rgb_feat, depth_feat, p, action_dim):
    B = rgb_feat.shape[0]
    return pl.pallas_call(
        head_kernel,
        out_shape=(jax.ShapeDtypeStruct((B, 1), jnp.float32),
                   jax.ShapeDtypeStruct((B, action_dim), jnp.float32)),
    )(rgb_feat, depth_feat,
      p["proj_w_rgb"], p["proj_w_dep"], p["proj_b"],
      p["fc1_w"], p["fc1_b"], p["fc2_w"], p["fc2_b"],
      p["v1_w"], p["v1_b"], p["v2_w"], p["v2_b"],
      p["pi1_w"], p["pi1_b"], p["pi2_w"], p["pi2_b"])


# ----------------------------------------------------------------------------
# Parameter construction (deterministic, PyTorch-default-style uniform init)
# ----------------------------------------------------------------------------
def _uniform(key, shape, fan_in):
    bound = 1.0 / np.sqrt(fan_in)
    return jax.random.uniform(key, shape, jnp.float32, -bound, bound)


def init_params(key, action_dim):
    ks = jax.random.split(key, 32)
    p = {}
    # RGB backbone stand-in (see TODO(synk) above): 3 -> 1280 features.
    p["rgb_w"] = _uniform(ks[0], (1280, 3, 3, 3), 3 * 3 * 3)
    p["rgb_b"] = _uniform(ks[1], (1280,), 3 * 3 * 3)
    # Depth backbone (exactly as in the module).
    p["d1_w"] = _uniform(ks[2], (32, 1, 8, 8), 1 * 8 * 8)
    p["d1_b"] = _uniform(ks[3], (32,), 1 * 8 * 8)
    p["d2_w"] = _uniform(ks[4], (64, 32, 4, 4), 32 * 4 * 4)
    p["d2_b"] = _uniform(ks[5], (64,), 32 * 4 * 4)
    p["d3_w"] = _uniform(ks[6], (64, 64, 3, 3), 64 * 3 * 3)
    p["d3_b"] = _uniform(ks[7], (64,), 64 * 3 * 3)
    # Head.
    rgb_feat_dim, depth_feat_dim, proj_dim = 1280, 64, 512
    concat_dim = rgb_feat_dim + depth_feat_dim    # 1344
    p["proj_w"] = _uniform(ks[8], (concat_dim, proj_dim), concat_dim)
    p["proj_b"] = _uniform(ks[9], (proj_dim,), concat_dim)
    p["fc1_w"] = _uniform(ks[10], (proj_dim, proj_dim), proj_dim)
    p["fc1_b"] = _uniform(ks[11], (proj_dim,), proj_dim)
    p["fc2_w"] = _uniform(ks[12], (proj_dim, proj_dim), proj_dim)
    p["fc2_b"] = _uniform(ks[13], (proj_dim,), proj_dim)
    p["v1_w"] = _uniform(ks[14], (proj_dim, 256), proj_dim)
    p["v1_b"] = _uniform(ks[15], (256,), proj_dim)
    p["v2_w"] = _uniform(ks[16], (256, 1), 256)
    p["v2_b"] = _uniform(ks[17], (1,), 256)
    p["pi1_w"] = _uniform(ks[18], (proj_dim, 256), proj_dim)
    p["pi1_b"] = _uniform(ks[19], (256,), proj_dim)
    p["pi2_w"] = _uniform(ks[20], (256, action_dim), 256)
    p["pi2_b"] = _uniform(ks[21], (action_dim,), 256)
    return p


def pack_params(p):
    """One-time repack: conv weights -> (kh*kw*Cin, Cout) bf16 matmul layout,
    linear weights -> bf16, biases -> (1, N) f32, proj weight split rgb/depth."""
    def conv_w(w):
        cout, cin, kh, kw = w.shape
        return (jnp.transpose(w, (2, 3, 1, 0))
                .reshape(kh * kw * cin, cout).astype(jnp.bfloat16))

    def b2(b):
        return b.reshape(1, -1).astype(jnp.float32)

    q = {}
    for name in ("rgb", "d1", "d2", "d3"):
        q[name + "_w"] = conv_w(p[name + "_w"])
        q[name + "_b"] = b2(p[name + "_b"])
    q["proj_w_rgb"] = p["proj_w"][:1280].astype(jnp.bfloat16)
    q["proj_w_dep"] = p["proj_w"][1280:].astype(jnp.bfloat16)
    q["proj_b"] = b2(p["proj_b"])
    for name in ("fc1", "fc2", "v1", "v2", "pi1", "pi2"):
        q[name + "_w"] = p[name + "_w"].astype(jnp.bfloat16)
        q[name + "_b"] = b2(p[name + "_b"])
    return q


# ----------------------------------------------------------------------------
# Forward pass (mirrors Policy.forward)
# ----------------------------------------------------------------------------
@jax.jit
def policy_forward(params, segment, depth):
    seg = jnp.transpose(segment, (0, 2, 3, 1))   # NCHW -> NHWC, once at input
    dep = jnp.transpose(depth, (0, 2, 3, 1))

    # rgb_feat = rgb_backbone(segment).view(B, -1)   -- stand-in backbone
    rgb_feat = pallas_conv_relu_pool(seg, params["rgb_w"], params["rgb_b"],
                                     kh=3, kw=3, stride=2, pad=1)      # (B, 1280)

    # depth_feat = depth_backbone(depth).view(B, -1)
    d = pallas_conv_relu(dep, params["d1_w"], params["d1_b"],
                         kh=8, kw=8, stride=4, pad=2)                  # (B, 8, 8, 32)
    d = pallas_conv_relu(d, params["d2_w"], params["d2_b"],
                         kh=4, kw=4, stride=2, pad=1)                  # (B, 4, 4, 64)
    depth_feat = pallas_conv_relu_pool(d, params["d3_w"], params["d3_b"],
                                       kh=3, kw=3, stride=1, pad=1)    # (B, 64)

    # proj_fc + ResidualBlock + value + policy(+softmax), one fused kernel.
    action_dim = params["pi2_w"].shape[1]
    value, action_prob = pallas_head(rgb_feat, depth_feat, params, action_dim)
    return value, action_prob


# ----------------------------------------------------------------------------
if __name__ == "__main__":
    ACTION_DIM = 8
    key = jax.random.PRNGKey(0)
    k_params, k_seg, k_dep = jax.random.split(key, 3)

    params = pack_params(init_params(k_params, ACTION_DIM))
    segment = jax.random.normal(k_seg, (2, 3, 32, 32), jnp.float32)   # NCHW RGB
    depth = jax.random.normal(k_dep, (2, 1, 32, 32), jnp.float32)     # NCHW depth

    value, action_prob = policy_forward(params, segment, depth)
    value = jax.block_until_ready(value)
    action_prob = jax.block_until_ready(action_prob)

    assert value.shape == (2, 1)
    assert action_prob.shape == (2, ACTION_DIM)
    assert np.allclose(np.asarray(action_prob).sum(-1), 1.0, atol=1e-5)
    print("KERNEL_OK")
</pallas_src>

<mosaic_0001>
module attributes {stable_mosaic.version = 11 : i64} {
  func.func @conv_relu_kernel(%arg0: memref<128x64xbf16, #tpu.memory_space<vmem>>, %arg1: memref<64x32xbf16, #tpu.memory_space<vmem>>, %arg2: memref<1x32xf32, #tpu.memory_space<vmem>>, %arg3: memref<128x32xf32, #tpu.memory_space<vmem>>) attributes {dimension_semantics = [], scalar_prefetch = 0 : i64, scratch_operands = 0 : i64, tpu.core_type = #tpu.core_type<tc>} {
    %c0 = arith.constant 0 : index
    %c0_0 = arith.constant 0 : index
    %0 = vector.load %arg0[%c0, %c0_0] : memref<128x64xbf16, #tpu.memory_space<vmem>>, vector<128x64xbf16>
    %c0_1 = arith.constant 0 : index
    %c0_2 = arith.constant 0 : index
    %1 = vector.load %arg1[%c0_1, %c0_2] : memref<64x32xbf16, #tpu.memory_space<vmem>>, vector<64x32xbf16>
    %cst = arith.constant dense<0.000000e+00> : vector<128x32xf32>
    %2 = tpu.matmul %0, %1, %cst {dimension_numbers = #tpu.dot_dimension_numbers<[1], [0], [0], [1], [0, 0, 1, 1], [], []>} : vector<128x64xbf16>, vector<64x32xbf16>, vector<128x32xf32> -> vector<128x32xf32>
    %c0_3 = arith.constant 0 : index
    %c0_4 = arith.constant 0 : index
    %3 = vector.load %arg2[%c0_3, %c0_4] : memref<1x32xf32, #tpu.memory_space<vmem>>, vector<1x32xf32>
    %4 = vector.broadcast %3 : vector<1x32xf32> to vector<128x32xf32>
    %5 = arith.addf %2, %4 : vector<128x32xf32>
    %cst_5 = arith.constant 0.000000e+00 : f32
    %6 = vector.broadcast %cst_5 : f32 to vector<128x32xf32>
    %7 = arith.maximumf %5, %6 : vector<128x32xf32>
    %c0_6 = arith.constant 0 : index
    %c0_7 = arith.constant 0 : index
    %8 = vector.load %arg3[%c0_6, %c0_7] : memref<128x32xf32, #tpu.memory_space<vmem>>, vector<128x32xf32>
    tpu.vector_store %arg3[%c0_6, %c0_7], %7 {strides = array<i32>} : memref<128x32xf32, #tpu.memory_space<vmem>>, vector<128x32xf32>,
    return
  }
}

module attributes {stable_mosaic.version = 11 : i64} {
  func.func @conv_relu_kernel(%arg0: memref<32x512xbf16, #tpu.memory_space<vmem>>, %arg1: memref<512x64xbf16, #tpu.memory_space<vmem>>, %arg2: memref<1x64xf32, #tpu.memory_space<vmem>>, %arg3: memref<32x64xf32, #tpu.memory_space<vmem>>) attributes {dimension_semantics = [], scalar_prefetch = 0 : i64, scratch_operands = 0 : i64, tpu.core_type = #tpu.core_type<tc>} {
    %c0 = arith.constant 0 : index
    %c0_0 = arith.constant 0 : index
    %0 = vector.load %arg0[%c0, %c0_0] : memref<32x512xbf16, #tpu.memory_space<vmem>>, vector<32x512xbf16>
    %c0_1 = arith.constant 0 : index
    %c0_2 = arith.constant 0 : index
    %1 = vector.load %arg1[%c0_1, %c0_2] : memref<512x64xbf16, #tpu.memory_space<vmem>>, vector<512x64xbf16>
    %cst = arith.constant dense<0.000000e+00> : vector<32x64xf32>
    %2 = tpu.matmul %0, %1, %cst {dimension_numbers = #tpu.dot_dimension_numbers<[1], [0], [0], [1], [0, 0, 1, 1], [], []>} : vector<32x512xbf16>, vector<512x64xbf16>, vector<32x64xf32> -> vector<32x64xf32>
    %c0_3 = arith.constant 0 : index
    %c0_4 = arith.constant 0 : index
    %3 = vector.load %arg2[%c0_3, %c0_4] : memref<1x64xf32, #tpu.memory_space<vmem>>, vector<1x64xf32>
    %4 = vector.broadcast %3 : vector<1x64xf32> to vector<32x64xf32>
    %5 = arith.addf %2, %4 : vector<32x64xf32>
    %cst_5 = arith.constant 0.000000e+00 : f32
    %6 = vector.broadcast %cst_5 : f32 to vector<32x64xf32>
    %7 = arith.maximumf %5, %6 : vector<32x64xf32>
    %c0_6 = arith.constant 0 : index
    %c0_7 = arith.constant 0 : index
    %8 = vector.load %arg3[%c0_6, %c0_7] : memref<32x64xf32, #tpu.memory_space<vmem>>, vector<32x64xf32>
    tpu.vector_store %arg3[%c0_6, %c0_7], %7 {strides = array<i32>} : memref<32x64xf32, #tpu.memory_space<vmem>>, vector<32x64xf32>,
    return
  }
}

module attributes {stable_mosaic.version = 11 : i64} {
  func.func @conv_relu_pool_kernel(%arg0: memref<32x576xbf16, #tpu.memory_space<vmem>>, %arg1: memref<576x64xbf16, #tpu.memory_space<vmem>>, %arg2: memref<1x64xf32, #tpu.memory_space<vmem>>, %arg3: memref<2x64xf32, #tpu.memory_space<vmem>>) attributes {dimension_semantics = [], scalar_prefetch = 0 : i64, scratch_operands = 0 : i64, tpu.core_type = #tpu.core_type<tc>} {
    %c0 = arith.constant 0 : index
    %c0_0 = arith.constant 0 : index
    %0 = vector.load %arg0[%c0, %c0_0] : memref<32x576xbf16, #tpu.memory_space<vmem>>, vector<32x576xbf16>
    %c0_1 = arith.constant 0 : index
    %c0_2 = arith.constant 0 : index
    %1 = vector.load %arg1[%c0_1, %c0_2] : memref<576x64xbf16, #tpu.memory_space<vmem>>, vector<576x64xbf16>
    %cst = arith.constant dense<0.000000e+00> : vector<32x64xf32>
    %2 = tpu.matmul %0, %1, %cst {dimension_numbers = #tpu.dot_dimension_numbers<[1], [0], [0], [1], [0, 0, 1, 1], [], []>} : vector<32x576xbf16>, vector<576x64xbf16>, vector<32x64xf32> -> vector<32x64xf32>
    %c0_3 = arith.constant 0 : index
    %c0_4 = arith.constant 0 : index
    %3 = vector.load %arg2[%c0_3, %c0_4] : memref<1x64xf32, #tpu.memory_space<vmem>>, vector<1x64xf32>
    %4 = vector.broadcast %3 : vector<1x64xf32> to vector<32x64xf32>
    %5 = arith.addf %2, %4 : vector<32x64xf32>
    %cst_5 = arith.constant 0.000000e+00 : f32
    %6 = vector.broadcast %cst_5 : f32 to vector<32x64xf32>
    %7 = arith.maximumf %5, %6 : vector<32x64xf32>
    %8 = vector.extract_strided_slice %7 {offsets = [0, 0], sizes = [16, 64], strides = [1, 1]} : vector<32x64xf32> to vector<16x64xf32>
    %cst_6 = arith.constant dense<0.000000e+00> : vector<64xf32>
    %9 = vector.multi_reduction <add>, %8, %cst_6 [0] : vector<16x64xf32> to vector<64xf32>
    %10 = vector.shape_cast %9 : vector<64xf32> to vector<1x64xf32>
    %cst_7 = arith.constant 6.250000e-02 : f32
    %11 = vector.broadcast %cst_7 : f32 to vector<1x64xf32>
    %12 = arith.mulf %10, %11 : vector<1x64xf32>
    %c0_8 = arith.constant 0 : index
    %c0_9 = arith.constant 0 : index
    %13 = vector.load %arg3[%c0_8, %c0_9] : memref<2x64xf32, #tpu.memory_space<vmem>>, vector<1x64xf32>
    tpu.vector_store %arg3[%c0_8, %c0_9], %12 {strides = array<i32>} : memref<2x64xf32, #tpu.memory_space<vmem>>, vector<1x64xf32>,
    %14 = vector.extract_strided_slice %7 {offsets = [16, 0], sizes = [16, 64], strides = [1, 1]} : vector<32x64xf32> to vector<16x64xf32>
    %cst_10 = arith.constant dense<0.000000e+00> : vector<64xf32>
    %15 = vector.multi_reduction <add>, %14, %cst_10 [0] : vector<16x64xf32> to vector<64xf32>
    %16 = vector.shape_cast %15 : vector<64xf32> to vector<1x64xf32>
    %cst_11 = arith.constant 6.250000e-02 : f32
    %17 = vector.broadcast %cst_11 : f32 to vector<1x64xf32>
    %18 = arith.mulf %16, %17 : vector<1x64xf32>
    %c1 = arith.constant 1 : index
    %c0_12 = arith.constant 0 : index
    %19 = vector.load %arg3[%c1, %c0_12] : memref<2x64xf32, #tpu.memory_space<vmem>>, vector<1x64xf32>
    tpu.vector_store %arg3[%c1, %c0_12], %18 {strides = array<i32>} : memref<2x64xf32, #tpu.memory_space<vmem>>, vector<1x64xf32>,
    return
  }
}

module attributes {stable_mosaic.version = 11 : i64} {
  func.func @conv_relu_pool_kernel(%arg0: memref<512x27xbf16, #tpu.memory_space<vmem>>, %arg1: memref<27x1280xbf16, #tpu.memory_space<vmem>>, %arg2: memref<1x1280xf32, #tpu.memory_space<vmem>>, %arg3: memref<2x1280xf32, #tpu.memory_space<vmem>>) attributes {dimension_semantics = [], scalar_prefetch = 0 : i64, scratch_operands = 0 : i64, tpu.core_type = #tpu.core_type<tc>} {
    %c0 = arith.constant 0 : index
    %c0_0 = arith.constant 0 : index
    %0 = vector.load %arg0[%c0, %c0_0] : memref<512x27xbf16, #tpu.memory_space<vmem>>, vector<512x27xbf16>
    %c0_1 = arith.constant 0 : index
    %c0_2 = arith.constant 0 : index
    %1 = vector.load %arg1[%c0_1, %c0_2] : memref<27x1280xbf16, #tpu.memory_space<vmem>>, vector<27x1280xbf16>
    %cst = arith.constant dense<0.000000e+00> : vector<512x1280xf32>
    %2 = tpu.matmul %0, %1, %cst {dimension_numbers = #tpu.dot_dimension_numbers<[1], [0], [0], [1], [0, 0, 1, 1], [], []>} : vector<512x27xbf16>, vector<27x1280xbf16>, vector<512x1280xf32> -> vector<512x1280xf32>
    %c0_3 = arith.constant 0 : index
    %c0_4 = arith.constant 0 : index
    %3 = vector.load %arg2[%c0_3, %c0_4] : memref<1x1280xf32, #tpu.memory_space<vmem>>, vector<1x1280xf32>
    %4 = vector.broadcast %3 : vector<1x1280xf32> to vector<512x1280xf32>
    %5 = arith.addf %2, %4 : vector<512x1280xf32>
    %cst_5 = arith.constant 0.000000e+00 : f32
    %6 = vector.broadcast %cst_5 : f32 to vector<512x1280xf32>
    %7 = arith.maximumf %5, %6 : vector<512x1280xf32>
    %8 = vector.extract_strided_slice %7 {offsets = [0, 0], sizes = [256, 1280], strides = [1, 1]} : vector<512x1280xf32> to vector<256x1280xf32>
    %cst_6 = arith.constant dense<0.000000e+00> : vector<1280xf32>
    %9 = vector.multi_reduction <add>, %8, %cst_6 [0] : vector<256x1280xf32> to vector<1280xf32>
    %10 = vector.shape_cast %9 : vector<1280xf32> to vector<1x1280xf32>
    %cst_7 = arith.constant 3.906250e-03 : f32
    %11 = vector.broadcast %cst_7 : f32 to vector<1x1280xf32>
    %12 = arith.mulf %10, %11 : vector<1x1280xf32>
    %c0_8 = arith.constant 0 : index
    %c0_9 = arith.constant 0 : index
    %13 = vector.load %arg3[%c0_8, %c0_9] : memref<2x1280xf32, #tpu.memory_space<vmem>>, vector<1x1280xf32>
    tpu.vector_store %arg3[%c0_8, %c0_9], %12 {strides = array<i32>} : memref<2x1280xf32, #tpu.memory_space<vmem>>, vector<1x1280xf32>,
    %14 = vector.extract_strided_slice %7 {offsets = [256, 0], sizes = [256, 1280], strides = [1, 1]} : vector<512x1280xf32> to vector<256x1280xf32>
    %cst_10 = arith.constant dense<0.000000e+00> : vector<1280xf32>
    %15 = vector.multi_reduction <add>, %14, %cst_10 [0] : vector<256x1280xf32> to vector<1280xf32>
    %16 = vector.shape_cast %15 : vector<1280xf32> to vector<1x1280xf32>
    %cst_11 = arith.constant 3.906250e-03 : f32
    %17 = vector.broadcast %cst_11 : f32 to vector<1x1280xf32>
    %18 = arith.mulf %16, %17 : vector<1x1280xf32>
    %c1 = arith.constant 1 : index
    %c0_12 = arith.constant 0 : index
    %19 = vector.load %arg3[%c1, %c0_12] : memref<2x1280xf32, #tpu.memory_space<vmem>>, vector<1x1280xf32>
    tpu.vector_store %arg3[%c1, %c0_12], %18 {strides = array<i32>} : memref<2x1280xf32, #tpu.memory_space<vmem>>, vector<1x1280xf32>,
    return
  }
}

module attributes {stable_mosaic.version = 11 : i64} {
  func.func @head_kernel(%arg0: memref<2x1280xf32, #tpu.memory_space<vmem>>, %arg1: memref<2x64xf32, #tpu.memory_space<vmem>>, %arg2: memref<1280x512xbf16, #tpu.memory_space<vmem>>, %arg3: memref<64x512xbf16, #tpu.memory_space<vmem>>, %arg4: memref<1x512xf32, #tpu.memory_space<vmem>>, %arg5: memref<512x512xbf16, #tpu.memory_space<vmem>>, %arg6: memref<1x512xf32, #tpu.memory_space<vmem>>, %arg7: memref<512x512xbf16, #tpu.memory_space<vmem>>, %arg8: memref<1x512xf32, #tpu.memory_space<vmem>>, %arg9: memref<512x256xbf16, #tpu.memory_space<vmem>>, %arg10: memref<1x256xf32, #tpu.memory_space<vmem>>, %arg11: memref<256x1xbf16, #tpu.memory_space<vmem>>, %arg12: memref<1x1xf32, #tpu.memory_space<vmem>>, %arg13: memref<512x256xbf16, #tpu.memory_space<vmem>>, %arg14: memref<1x256xf32, #tpu.memory_space<vmem>>, %arg15: memref<256x8xbf16, #tpu.memory_space<vmem>>, %arg16: memref<1x8xf32, #tpu.memory_space<vmem>>, %arg17: memref<2x1xf32, #tpu.memory_space<vmem>>, %arg18: memref<2x8xf32, #tpu.memory_space<vmem>>) attributes {dimension_semantics = [], scalar_prefetch = 0 : i64, scratch_operands = 0 : i64, tpu.core_type = #tpu.core_type<tc>} {
    %c0 = arith.constant 0 : index
    %c0_0 = arith.constant 0 : index
    %0 = vector.load %arg0[%c0, %c0_0] : memref<2x1280xf32, #tpu.memory_space<vmem>>, vector<2x1280xf32>
    %1 = arith.truncf %0 : vector<2x1280xf32> to vector<2x1280xbf16>
    %c0_1 = arith.constant 0 : index
    %c0_2 = arith.constant 0 : index
    %2 = vector.load %arg1[%c0_1, %c0_2] : memref<2x64xf32, #tpu.memory_space<vmem>>, vector<2x64xf32>
    %3 = arith.truncf %2 : vector<2x64xf32> to vector<2x64xbf16>
    %c0_3 = arith.constant 0 : index
    %c0_4 = arith.constant 0 : index
    %4 = vector.load %arg2[%c0_3, %c0_4] : memref<1280x512xbf16, #tpu.memory_space<vmem>>, vector<1280x512xbf16>
    %cst = arith.constant dense<0.000000e+00> : vector<2x512xf32>
    %5 = tpu.matmul %1, %4, %cst {dimension_numbers = #tpu.dot_dimension_numbers<[1], [0], [0], [1], [0, 0, 1, 1], [], []>} : vector<2x1280xbf16>, vector<1280x512xbf16>, vector<2x512xf32> -> vector<2x512xf32>
    %c0_5 = arith.constant 0 : index
    %c0_6 = arith.constant 0 : index
    %6 = vector.load %arg3[%c0_5, %c0_6] : memref<64x512xbf16, #tpu.memory_space<vmem>>, vector<64x512xbf16>
    %cst_7 = arith.constant dense<0.000000e+00> : vector<2x512xf32>
    %7 = tpu.matmul %3, %6, %cst_7 {dimension_numbers = #tpu.dot_dimension_numbers<[1], [0], [0], [1], [0, 0, 1, 1], [], []>} : vector<2x64xbf16>, vector<64x512xbf16>, vector<2x512xf32> -> vector<2x512xf32>
    %8 = arith.addf %5, %7 : vector<2x512xf32>
    %c0_8 = arith.constant 0 : index
    %c0_9 = arith.constant 0 : index
    %9 = vector.load %arg4[%c0_8, %c0_9] : memref<1x512xf32, #tpu.memory_space<vmem>>, vector<1x512xf32>
    %10 = vector.broadcast %9 : vector<1x512xf32> to vector<2x512xf32>
    %11 = arith.addf %8, %10 : vector<2x512xf32>
    %cst_10 = arith.constant 0.000000e+00 : f32
    %12 = vector.broadcast %cst_10 : f32 to vector<2x512xf32>
    %13 = arith.maximumf %11, %12 : vector<2x512xf32>
    %14 = arith.truncf %13 : vector<2x512xf32> to vector<2x512xbf16>
    %c0_11 = arith.constant 0 : index
    %c0_12 = arith.constant 0 : index
    %15 = vector.load %arg5[%c0_11, %c0_12] : memref<512x512xbf16, #tpu.memory_space<vmem>>, vector<512x512xbf16>
    %cst_13 = arith.constant dense<0.000000e+00> : vector<2x512xf32>
    %16 = tpu.matmul %14, %15, %cst_13 {dimension_numbers = #tpu.dot_dimension_numbers<[1], [0], [0], [1], [0, 0, 1, 1], [], []>} : vector<2x512xbf16>, vector<512x512xbf16>, vector<2x512xf32> -> vector<2x512xf32>
    %c0_14 = arith.constant 0 : index
    %c0_15 = arith.constant 0 : index
    %17 = vector.load %arg6[%c0_14, %c0_15] : memref<1x512xf32, #tpu.memory_space<vmem>>, vector<1x512xf32>
    %18 = vector.broadcast %17 : vector<1x512xf32> to vector<2x512xf32>
    %19 = arith.addf %16, %18 : vector<2x512xf32>
    %cst_16 = arith.constant 0.000000e+00 : f32
    %20 = vector.broadcast %cst_16 : f32 to vector<2x512xf32>
    %21 = arith.maximumf %19, %20 : vector<2x512xf32>
    %22 = arith.truncf %21 : vector<2x512xf32> to vector<2x512xbf16>
    %c0_17 = arith.constant 0 : index
    %c0_18 = arith.constant 0 : index
    %23 = vector.load %arg7[%c0_17, %c0_18] : memref<512x512xbf16, #tpu.memory_space<vmem>>, vector<512x512xbf16>
    %cst_19 = arith.constant dense<0.000000e+00> : vector<2x512xf32>
    %24 = tpu.matmul %22, %23, %cst_19 {dimension_numbers = #tpu.dot_dimension_numbers<[1], [0], [0], [1], [0, 0, 1, 1], [], []>} : vector<2x512xbf16>, vector<512x512xbf16>, vector<2x512xf32> -> vector<2x512xf32>
    %c0_20 = arith.constant 0 : index
    %c0_21 = arith.constant 0 : index
    %25 = vector.load %arg8[%c0_20, %c0_21] : memref<1x512xf32, #tpu.memory_space<vmem>>, vector<1x512xf32>
    %26 = vector.broadcast %25 : vector<1x512xf32> to vector<2x512xf32>
    %27 = arith.addf %24, %26 : vector<2x512xf32>
    %28 = arith.addf %27, %13 : vector<2x512xf32>
    %cst_22 = arith.constant 0.000000e+00 : f32
    %29 = vector.broadcast %cst_22 : f32 to vector<2x512xf32>
    %30 = arith.maximumf %28, %29 : vector<2x512xf32>
    %31 = arith.truncf %30 : vector<2x512xf32> to vector<2x512xbf16>
    %c0_23 = arith.constant 0 : index
    %c0_24 = arith.constant 0 : index
    %32 = vector.load %arg9[%c0_23, %c0_24] : memref<512x256xbf16, #tpu.memory_space<vmem>>, vector<512x256xbf16>
    %cst_25 = arith.constant dense<0.000000e+00> : vector<2x256xf32>
    %33 = tpu.matmul %31, %32, %cst_25 {dimension_numbers = #tpu.dot_dimension_numbers<[1], [0], [0], [1], [0, 0, 1, 1], [], []>} : vector<2x512xbf16>, vector<512x256xbf16>, vector<2x256xf32> -> vector<2x256xf32>
    %c0_26 = arith.constant 0 : index
    %c0_27 = arith.constant 0 : index
    %34 = vector.load %arg10[%c0_26, %c0_27] : memref<1x256xf32, #tpu.memory_space<vmem>>, vector<1x256xf32>
    %35 = vector.broadcast %34 : vector<1x256xf32> to vector<2x256xf32>
    %36 = arith.addf %33, %35 : vector<2x256xf32>
    %cst_28 = arith.constant 0.000000e+00 : f32
    %37 = vector.broadcast %cst_28 : f32 to vector<2x256xf32>
    %38 = arith.maximumf %36, %37 : vector<2x256xf32>
    %39 = arith.truncf %38 : vector<2x256xf32> to vector<2x256xbf16>
    %c0_29 = arith.constant 0 : index
    %c0_30 = arith.constant 0 : index
    %40 = vector.load %arg11[%c0_29, %c0_30] : memref<256x1xbf16, #tpu.memory_space<vmem>>, vector<256x1xbf16>
    %cst_31 = arith.constant dense<0.000000e+00> : vector<2x1xf32>
    %41 = tpu.matmul %39, %40, %cst_31 {dimension_numbers = #tpu.dot_dimension_numbers<[1], [0], [0], [1], [0, 0, 1, 1], [], []>} : vector<2x256xbf16>, vector<256x1xbf16>, vector<2x1xf32> -> vector<2x1xf32>
    %c0_32 = arith.constant 0 : index
    %c0_33 = arith.constant 0 : index
    %42 = vector.load %arg12[%c0_32, %c0_33] : memref<1x1xf32, #tpu.memory_space<vmem>>, vector<1x1xf32>
    %43 = vector.broadcast %42 : vector<1x1xf32> to vector<2x1xf32>
    %44 = arith.addf %41, %43 : vector<2x1xf32>
    %c0_34 = arith.constant 0 : index
    %c0_35 = arith.constant 0 : index
    %45 = vector.load %arg17[%c0_34, %c0_35] : memref<2x1xf32, #tpu.memory_space<vmem>>, vector<2x1xf32>
    tpu.vector_store %arg17[%c0_34, %c0_35], %44 {strides = array<i32>} : memref<2x1xf32, #tpu.memory_space<vmem>>, vector<2x1xf32>,
    %c0_36 = arith.constant 0 : index
    %c0_37 = arith.constant 0 : index
    %46 = vector.load %arg13[%c0_36, %c0_37] : memref<512x256xbf16, #tpu.memory_space<vmem>>, vector<512x256xbf16>
    %cst_38 = arith.constant dense<0.000000e+00> : vector<2x256xf32>
    %47 = tpu.matmul %31, %46, %cst_38 {dimension_numbers = #tpu.dot_dimension_numbers<[1], [0], [0], [1], [0, 0, 1, 1], [], []>} : vector<2x512xbf16>, vector<512x256xbf16>, vector<2x256xf32> -> vector<2x256xf32>
    %c0_39 = arith.constant 0 : index
    %c0_40 = arith.constant 0 : index
    %48 = vector.load %arg14[%c0_39, %c0_40] : memref<1x256xf32, #tpu.memory_space<vmem>>, vector<1x256xf32>
    %49 = vector.broadcast %48 : vector<1x256xf32> to vector<2x256xf32>
    %50 = arith.addf %47, %49 : vector<2x256xf32>
    %cst_41 = arith.constant 0.000000e+00 : f32
    %51 = vector.broadcast %cst_41 : f32 to vector<2x256xf32>
    %52 = arith.maximumf %50, %51 : vector<2x256xf32>
    %53 = arith.truncf %52 : vector<2x256xf32> to vector<2x256xbf16>
    %c0_42 = arith.constant 0 : index
    %c0_43 = arith.constant 0 : index
    %54 = vector.load %arg15[%c0_42, %c0_43] : memref<256x8xbf16, #tpu.memory_space<vmem>>, vector<256x8xbf16>
    %cst_44 = arith.constant dense<0.000000e+00> : vector<2x8xf32>
    %55 = tpu.matmul %53, %54, %cst_44 {dimension_numbers = #tpu.dot_dimension_numbers<[1], [0], [0], [1], [0, 0, 1, 1], [], []>} : vector<2x256xbf16>, vector<256x8xbf16>, vector<2x8xf32> -> vector<2x8xf32>
    %c0_45 = arith.constant 0 : index
    %c0_46 = arith.constant 0 : index
    %56 = vector.load %arg16[%c0_45, %c0_46] : memref<1x8xf32, #tpu.memory_space<vmem>>, vector<1x8xf32>
    %57 = vector.broadcast %56 : vector<1x8xf32> to vector<2x8xf32>
    %58 = arith.addf %55, %57 : vector<2x8xf32>
    %cst_47 = arith.constant dense<0xFF800000> : vector<2xf32>
    %59 = vector.multi_reduction <maximumf>, %58, %cst_47 [1] : vector<2x8xf32> to vector<2xf32>
    %60 = vector.shape_cast %59 : vector<2xf32> to vector<2x1xf32>
    %61 = vector.broadcast %60 : vector<2x1xf32> to vector<2x8xf32>
    %62 = arith.subf %58, %61 : vector<2x8xf32>
    %63 = math.exp %62 : vector<2x8xf32>
    %cst_48 = arith.constant dense<0.000000e+00> : vector<2xf32>
    %64 = vector.multi_reduction <add>, %63, %cst_48 [1] : vector<2x8xf32> to vector<2xf32>
    %65 = vector.shape_cast %64 : vector<2xf32> to vector<2x1xf32>
    %66 = vector.broadcast %65 : vector<2x1xf32> to vector<2x8xf32>
    %67 = arith.divf %63, %66 : vector<2x8xf32>
    %c0_49 = arith.constant 0 : index
    %c0_50 = arith.constant 0 : index
    %68 = vector.load %arg18[%c0_49, %c0_50] : memref<2x8xf32, #tpu.memory_space<vmem>>, vector<2x8xf32>
    tpu.vector_store %arg18[%c0_49, %c0_50], %67 {strides = array<i32>} : memref<2x8xf32, #tpu.memory_space<vmem>>, vector<2x8xf32>,
    return
  }
}

</mosaic_0001>

<bundles_post_ra>
// kernel: policy_forward.6
= control target key start
LH: loop header
LB: loop body
LE: loop exit
PB: predicated region body
PF: predicated region fallthrough
CT: control target
= control target key end

     0   :  { %vm110_vm0 = vcmask 523264   ;;  %vm248_vm1 = vcmask 261120   ;;  %s477_s1 = inlined_call_operand.vmem [shape: bf16[64,32], index: 1, kind: input, shape index: {}]   ;;  %s478_s0 = inlined_call_operand.vmem [shape: bf16[128,64], index: 0, kind: input, shape index: {}]   ;;  %s479_s2 = inlined_call_operand.vmem [shape: f32[1,32], index: 2, kind: input, shape index: {}]   ;;  %s480_s3 = inlined_call_operand.vmem [shape: f32[128,32], index: 3, kind: output, shape index: {}]  }
   0x1   :  { %v334_v0 = vld [vmem:[%s477_s1] sm:$0xff]   ;;  %v335_v1 = vld [vmem:[%s477_s1 + $0x8] sm:$0xff]   ;;  %v336_v2 = vld [vmem:[%s477_s1 + $0x10] sm:$0xff]  }
   0x2   :  { %302 = vmatprep.subr.bf16.mxu0 %v334_v0  ;;  %326 = vmatprep.subr.bf16.mxu1 %v334_v0  ;;  %v338_v3 = vld [vmem:[%s478_s0] sm:$0xff]   ;;  %v337_v5 = vld [vmem:[%s477_s1 + $0x18] sm:$0xff]   ;;  %v340_v6 = vld [vmem:[%s478_s0 + $0x8] sm:$0xff]  }
   0x3   :  { %303 = vmatpush3.bf16.msra.mxu0 %v334_v0  ;;  %330 = vmatpush3.bf16.msra.mxu1 %v334_v0  ;;  %v339_v4 = vld [vmem:[%s478_s0 + $0x20] sm:$0xff]   ;;  %v341_v7 = vld [vmem:[%s478_s0 + $0x28] sm:$0xff]   ;;  %v342_v8 = vld [vmem:[%s478_s0 + $0x10] sm:$0xff]  }
   0x4   :  { %304 = vmatprep.subr.bf16.mxu0 %v335_v1  ;;  %327 = vmatprep.subr.bf16.mxu1 %v335_v1  ;;  %v343_v9 = vld [vmem:[%s478_s0 + $0x30] sm:$0xff]   ;;  %v344_v10 = vld [vmem:[%s478_s0 + $0x18] sm:$0xff]   ;;  %v269_v12 = vld [vmem:[%s479_s2] ss:$0 sm:$0xff] }
   0x5   :  { %310 = vmatprep.mubr.msk.bf16.mxu0 %vm110_vm0, %v338_v3  ;;  %318 = vmatprep.mubr.msk.bf16.mxu1 %vm110_vm0, %v339_v4  ;;  %v345_v11 = vld [vmem:[%s478_s0 + $0x38] sm:$0xff]  }
   0x7   :  { %305 = vmatpush3.bf16.msra.mxu0 %v335_v1  ;;  %331 = vmatpush3.bf16.msra.mxu1 %v335_v1 }
   0x8   :  { %306 = vmatprep.subr.bf16.mxu0 %v336_v2  ;;  %328 = vmatprep.subr.bf16.mxu1 %v336_v2 }
   0xb   :  { %307 = vmatpush3.bf16.msra.mxu0 %v336_v2  ;;  %332 = vmatpush3.bf16.msra.mxu1 %v336_v2 }
   0xc   :  { %308 = vmatprep.subr.bf16.mxu0 %v337_v5  ;;  %329 = vmatprep.subr.bf16.mxu1 %v337_v5 }
   0xf   :  { %309 = vmatpush3.bf16.msra.mxu0 %v337_v5  ;;  %333 = vmatpush3.bf16.msra.mxu1 %v337_v5 }
  0x12   :  { %311 = vmatmul.mubr.msk.bf16.vlgmr.msra.gmra.mrb[0].mxu0 %vm110_vm0, %v340_v6  ;;  %319 = vmatmul.mubr.msk.bf16.vlgmr.msra.gmra.mrb[0].mxu1 %vm110_vm0, %v341_v7 }
  0x13   :  { %314 = vmatprep.mubr.msk.bf16.mxu0 %vm110_vm0, %v342_v8  ;;  %322 = vmatprep.mubr.msk.bf16.mxu1 %vm110_vm0, %v343_v9 }
  0x1a   :  { %315 = vmatmul.mubr.msk.bf16.gmra.mrb[4].mxu0 %vm110_vm0, %v344_v10  ;;  %323 = vmatmul.mubr.msk.bf16.gmra.mrb[4].mxu1 %vm110_vm0, %v345_v11 }
  0xe5   :  { %v312_v13 = vpop.f32.mrb[0].mxu0  ;;  %v320_v14 = vpop.f32.mrb[0].mxu1 }
  0xe6   :  { %v178_v15 = vadd.f32 %v312_v13, %v269_v12  ;;  %v210_v16 = vadd.f32 %v320_v14, %v269_v12  ;;  %v169_v17 = vpop.f32.mrb[1].mxu0  ;;  %v201_v18 = vpop.f32.mrb[1].mxu1 }
  0xe7   :  { %v170_v19 = vadd.f32 %v269_v12, %v169_v17  ;;  %v202_v20 = vadd.f32 %v269_v12, %v201_v18  ;;  %v313_v21 = vpop.f32.mrb[2].mxu0  ;;  %v321_v22 = vpop.f32.mrb[2].mxu1 }
  0xe8   :  { %v234_v23 = vmax.f32 %v178_v15, 0.0  ;;  %v242_v24 = vmax.f32 %v210_v16, 0.0  ;;  %v181_v25 = vadd.f32 %v313_v21, %v269_v12  ;;  %v213_v26 = vadd.f32 %v321_v22, %v269_v12  ;;  %v172_v27 = vpop.f32.mrb[3].mxu0  ;;  %v204_v28 = vpop.f32.mrb[3].mxu1 }
  0xe9   :  { %v232_v29 = vmax.f32 %v170_v19, 0.0  ;;  %v240_v30 = vmax.f32 %v202_v20, 0.0  ;;  %v173_v31 = vadd.f32 %v269_v12, %v172_v27  ;;  %v205_v32 = vadd.f32 %v269_v12, %v204_v28 }
  0xea   :  { %251 = vst.msk [vmem:[%s480_s3 + $0x10] sm:$0xff] %vm248_vm1, %v234_v23  ;;  %259 = vst.msk [vmem:[%s480_s3 + $0x50] sm:$0xff] %vm248_vm1, %v242_v24  ;;  %v235_v33 = vmax.f32 %v181_v25, 0.0  ;;  %v243_v34 = vmax.f32 %v213_v26, 0.0 }
  0xeb   :  { %249 = vst.msk [vmem:[%s480_s3] sm:$0xff] %vm248_vm1, %v232_v29  ;;  %257 = vst.msk [vmem:[%s480_s3 + $0x40] sm:$0xff] %vm248_vm1, %v240_v30  ;;  %v233_v35 = vmax.f32 %v173_v31, 0.0  ;;  %v241_v36 = vmax.f32 %v205_v32, 0.0 }
  0xec   :  { %252 = vst.msk [vmem:[%s480_s3 + $0x18] sm:$0xff] %vm248_vm1, %v235_v33  ;;  %260 = vst.msk [vmem:[%s480_s3 + $0x58] sm:$0xff] %vm248_vm1, %v243_v34 }
  0xed   :  { %250 = vst.msk [vmem:[%s480_s3 + $0x8] sm:$0xff] %vm248_vm1, %v233_v35  ;;  %258 = vst.msk [vmem:[%s480_s3 + $0x48] sm:$0xff] %vm248_vm1, %v241_v36  ;;  %v316_v37 = vpop.f32.mrb[4].mxu0  ;;  %v324_v38 = vpop.f32.mrb[4].mxu1 }
  0xee   :  { %v194_v39 = vadd.f32 %v316_v37, %v269_v12  ;;  %v226_v40 = vadd.f32 %v324_v38, %v269_v12  ;;  %v185_v41 = vpop.f32.mrb[5].mxu0  ;;  %v217_v42 = vpop.f32.mrb[5].mxu1 }
  0xef   :  { %v186_v43 = vadd.f32 %v269_v12, %v185_v41  ;;  %v218_v44 = vadd.f32 %v269_v12, %v217_v42  ;;  %v317_v45 = vpop.f32.mrb[6].mxu0  ;;  %v325_v46 = vpop.f32.mrb[6].mxu1 }
  0xf0   :  { %v238_v47 = vmax.f32 %v194_v39, 0.0  ;;  %v246_v48 = vmax.f32 %v226_v40, 0.0  ;;  %v197_v49 = vadd.f32 %v317_v45, %v269_v12  ;;  %v229_v50 = vadd.f32 %v325_v46, %v269_v12  ;;  %v188_v51 = vpop.f32.mrb[7].mxu0  ;;  %v220_v52 = vpop.f32.mrb[7].mxu1 }
  0xf1   :  { %v236_v53 = vmax.f32 %v186_v43, 0.0  ;;  %v244_v54 = vmax.f32 %v218_v44, 0.0  ;;  %v189_v55 = vadd.f32 %v269_v12, %v188_v51  ;;  %v221_v56 = vadd.f32 %v269_v12, %v220_v52 }
  0xf2   :  { %255 = vst.msk [vmem:[%s480_s3 + $0x30] sm:$0xff] %vm248_vm1, %v238_v47  ;;  %263 = vst.msk [vmem:[%s480_s3 + $0x70] sm:$0xff] %vm248_vm1, %v246_v48  ;;  %v239_v57 = vmax.f32 %v197_v49, 0.0  ;;  %v247_v58 = vmax.f32 %v229_v50, 0.0 }
  0xf3   :  { %253 = vst.msk [vmem:[%s480_s3 + $0x20] sm:$0xff] %vm248_vm1, %v236_v53  ;;  %261 = vst.msk [vmem:[%s480_s3 + $0x60] sm:$0xff] %vm248_vm1, %v244_v54  ;;  %v237_v59 = vmax.f32 %v189_v55, 0.0  ;;  %v245_v60 = vmax.f32 %v221_v56, 0.0 }
  0xf4   :  { %256 = vst.msk [vmem:[%s480_s3 + $0x38] sm:$0xff] %vm248_vm1, %v239_v57  ;;  %264 = vst.msk [vmem:[%s480_s3 + $0x78] sm:$0xff] %vm248_vm1, %v247_v58 }
  0xf5   :  { %254 = vst.msk [vmem:[%s480_s3 + $0x28] sm:$0xff] %vm248_vm1, %v237_v59  ;;  %262 = vst.msk [vmem:[%s480_s3 + $0x68] sm:$0xff] %vm248_vm1, %v245_v60 }

// kernel: policy_forward.7
= control target key start
LH: loop header
LB: loop body
LE: loop exit
PB: predicated region body
PF: predicated region fallthrough
CT: control target
= control target key end

     0   :  { %vm428_vm0 = vcmask 523264   ;;  %s737_s1 = inlined_call_operand.vmem [shape: bf16[512,64], index: 1, kind: input, shape index: {}]   ;;  %s738_s0 = inlined_call_operand.vmem [shape: bf16[32,512], index: 0, kind: input, shape index: {}]   ;;  %s739_s2 = inlined_call_operand.vmem [shape: f32[1,64], index: 2, kind: input, shape index: {}]   ;;  %s740_s3 = inlined_call_operand.vmem [shape: f32[32,64], index: 3, kind: output, shape index: {}]  }
   0x1   :  { %v534_v0 = vld [vmem:[%s737_s1 + $0x40] sm:$0xff]   ;;  %v538_v4 = vld [vmem:[%s737_s1 + $0x48] sm:$0xff]   ;;  %v542_v8 = vld [vmem:[%s737_s1 + $0x50] sm:$0xff]  }
   0x2   :  { %v535_v1 = vld [vmem:[%s737_s1 + $0xc0] sm:$0xff]   ;;  %478 = vmatprep.subr.bf16.mxu0 %v534_v0  ;;  %v539_v5 = vld [vmem:[%s737_s1 + $0xc8] sm:$0xff]   ;;  %v543_v9 = vld [vmem:[%s737_s1 + $0xd0] sm:$0xff]  }
   0x3   :  { %v536_v2 = vld [vmem:[%s737_s1] sm:$0xff]   ;;  %506 = vmatprep.subr.bf16.mxu1 %v535_v1  ;;  %v540_v6 = vld [vmem:[%s737_s1 + $0x8] sm:$0xff]   ;;  %v544_v10 = vld [vmem:[%s737_s1 + $0x10] sm:$0xff]  }
   0x4   :  { %v537_v3 = vld [vmem:[%s737_s1 + $0x80] sm:$0xff]   ;;  %479 = vmatpush3.bf16.msra.mxu0 %v536_v2  ;;  %v541_v7 = vld [vmem:[%s737_s1 + $0x88] sm:$0xff]   ;;  %v545_v11 = vld [vmem:[%s737_s1 + $0x90] sm:$0xff]  }
   0x5   :  { %507 = vmatpush3.bf16.msra.mxu1 %v537_v3  ;;  %480 = vmatprep.subr.bf16.mxu0 %v538_v4  ;;  %v546_v12 = vld [vmem:[%s737_s1 + $0x58] sm:$0xff]   ;;  %v550_v16 = vld [vmem:[%s737_s1 + $0x60] sm:$0xff]   ;;  %v554_v20 = vld [vmem:[%s737_s1 + $0x68] sm:$0xff]  }
   0x6   :  { %508 = vmatprep.subr.bf16.mxu1 %v539_v5  ;;  %v547_v13 = vld [vmem:[%s737_s1 + $0xd8] sm:$0xff]   ;;  %v551_v17 = vld [vmem:[%s737_s1 + $0xe0] sm:$0xff]   ;;  %v555_v21 = vld [vmem:[%s737_s1 + $0xe8] sm:$0xff]  }
   0x7   :  { %v548_v14 = vld [vmem:[%s737_s1 + $0x18] sm:$0xff]   ;;  %v552_v18 = vld [vmem:[%s737_s1 + $0x20] sm:$0xff]   ;;  %v556_v22 = vld [vmem:[%s737_s1 + $0x28] sm:$0xff]  }
   0x8   :  { %481 = vmatpush3.bf16.msra.mxu0 %v540_v6  ;;  %v549_v15 = vld [vmem:[%s737_s1 + $0x98] sm:$0xff]   ;;  %v553_v19 = vld [vmem:[%s737_s1 + $0xa0] sm:$0xff]   ;;  %v557_v23 = vld [vmem:[%s737_s1 + $0xa8] sm:$0xff]  }
   0x9   :  { %509 = vmatpush3.bf16.msra.mxu1 %v541_v7  ;;  %482 = vmatprep.subr.bf16.mxu0 %v542_v8  ;;  %v558_v24 = vld [vmem:[%s737_s1 + $0x70] sm:$0xff]   ;;  %v562_v28 = vld [vmem:[%s737_s1 + $0x78] sm:$0xff]   ;;  %v437_v42 = vld [vmem:[%s739_s2] ss:$0 sm:$0xff] }
   0xa   :  { %510 = vmatprep.subr.bf16.mxu1 %v543_v9  ;;  %v559_v25 = vld [vmem:[%s737_s1 + $0xf0] sm:$0xff]   ;;  %v563_v29 = vld [vmem:[%s737_s1 + $0xf8] sm:$0xff]  }
   0xb   :  { %v560_v26 = vld [vmem:[%s737_s1 + $0x30] sm:$0xff]   ;;  %v564_v30 = vld [vmem:[%s737_s1 + $0x38] sm:$0xff]  }
   0xc   :  { %483 = vmatpush3.bf16.msra.mxu0 %v544_v10  ;;  %v561_v27 = vld [vmem:[%s737_s1 + $0xb0] sm:$0xff]   ;;  %v565_v31 = vld [vmem:[%s737_s1 + $0xb8] sm:$0xff]  }
   0xd   :  { %511 = vmatpush3.bf16.msra.mxu1 %v545_v11  ;;  %484 = vmatprep.subr.bf16.mxu0 %v546_v12  ;;  %v566_v32 = vld [vmem:[%s738_s0] ss:$16 sps:$4 sm:$0xff]   ;;  %v568_v33 = vld [vmem:[%s738_s0 + $0x4] ss:$16 sps:$4 sm:$0xff]   ;;  %v569_v34 = vld [vmem:[%s738_s0 + $0x8] ss:$16 sps:$4 sm:$0xff]  }
   0xe   :  { %512 = vmatprep.subr.bf16.mxu1 %v547_v13  ;;  %v571_v35 = vld [vmem:[%s738_s0 + $0xc] ss:$16 sps:$4 sm:$0xff]   ;;  %358 = vmatprep.mubr.bf16.mxu0 %v568_v33  ;;  %v572_v36 = vld [vmem:[%s738_s0 + $0x24] ss:$16 sps:$4 sm:$0xff]   ;;  %v576_v38 = vld [vmem:[%s738_s0 + $0x20] ss:$16 sps:$4 sm:$0xff]  }
   0xf   :  { %407 = vmatprep.mubr.bf16.mxu1 %v571_v35  ;;  %v574_v37 = vld [vmem:[%s738_s0 + $0x2c] ss:$16 sps:$4 sm:$0xff]   ;;  %v577_v39 = vld [vmem:[%s738_s0 + $0x28] ss:$16 sps:$4 sm:$0xff]  }
  0x10   :  { %485 = vmatpush3.bf16.msra.mxu0 %v548_v14 }
  0x11   :  { %513 = vmatpush3.bf16.msra.mxu1 %v549_v15  ;;  %486 = vmatprep.subr.bf16.mxu0 %v550_v16 }
  0x12   :  { %514 = vmatprep.subr.bf16.mxu1 %v551_v17 }
  0x14   :  { %487 = vmatpush3.bf16.msra.mxu0 %v552_v18 }
  0x15   :  { %515 = vmatpush3.bf16.msra.mxu1 %v553_v19  ;;  %488 = vmatprep.subr.bf16.mxu0 %v554_v20 }
  0x16   :  { %516 = vmatprep.subr.bf16.mxu1 %v555_v21 }
  0x18   :  { %489 = vmatpush3.bf16.msra.mxu0 %v556_v22 }
  0x19   :  { %517 = vmatpush3.bf16.msra.mxu1 %v557_v23  ;;  %490 = vmatprep.subr.bf16.mxu0 %v558_v24 }
  0x1a   :  { %518 = vmatprep.subr.bf16.mxu1 %v559_v25 }
  0x1c   :  { %491 = vmatpush3.bf16.msra.mxu0 %v560_v26 }
  0x1d   :  { %519 = vmatpush3.bf16.msra.mxu1 %v561_v27  ;;  %492 = vmatprep.subr.bf16.mxu0 %v562_v28 }
  0x1e   :  { %520 = vmatprep.subr.bf16.mxu1 %v563_v29 }
  0x20   :  { %493 = vmatpush3.bf16.msra.mxu0 %v564_v30 }
  0x21   :  { %521 = vmatpush3.bf16.msra.mxu1 %v565_v31 }
  0x23   :  { %359 = vmatmul.mubr.bf16.vlgmr.msra.gmra.mrb[0].mxu0 %v566_v32 }
  0x24   :  { %408 = vmatmul.mubr.bf16.vlgmr.msra.gmra.mrb[0].mxu1 %v569_v34  ;;  %366 = vmatprep.mubr.bf16.mxu0 %v572_v36 }
  0x25   :  { %415 = vmatprep.mubr.bf16.mxu1 %v574_v37 }
  0x2b   :  { %367 = vmatmul.mubr.bf16.gmra.mrb[4].mxu0 %v576_v38 }
  0x2c   :  { %416 = vmatmul.mubr.bf16.gmra.mrb[4].mxu1 %v577_v39 }
  0xf6   :  { %v494_v40 = vpop.f32.mrb[0].mxu0 }
  0xf7   :  { %v522_v41 = vpop.f32.mrb[0].mxu1  ;;  %v495_v43 = vpop.f32.mrb[1].mxu0 }
  0xf8   :  { %v496_v44 = vadd.f32 %v495_v43, %v494_v40  ;;  %v523_v45 = vpop.f32.mrb[1].mxu1  ;;  %v497_v46 = vpop.f32.mrb[2].mxu0 }
  0xf9   :  { %v524_v47 = vadd.f32 %v523_v45, %v522_v41  ;;  %v525_v48 = vpop.f32.mrb[2].mxu1  ;;  %v498_v49 = vpop.f32.mrb[3].mxu0 }
  0xfa   :  { %v361_v50 = vadd.f32 %v496_v44, %v437_v42  ;;  %v499_v51 = vadd.f32 %v498_v49, %v497_v46  ;;  %v526_v52 = vpop.f32.mrb[3].mxu1 }
  0xfb   :  { %v527_v53 = vadd.f32 %v526_v52, %v525_v48 }
  0xfc   :  { %v410_v54 = vadd.f32 %v524_v47, %v361_v50  ;;  %v364_v55 = vadd.f32 %v499_v51, %v437_v42 }
  0xfe   :  { %v424_v56 = vmax.f32 %v410_v54, 0.0  ;;  %v413_v57 = vadd.f32 %v527_v53, %v364_v55  ;;  %v500_v58 = vpop.f32.mrb[4].mxu0 }
  0xff   :  { %v528_v59 = vpop.f32.mrb[4].mxu1  ;;  %v501_v60 = vpop.f32.mrb[5].mxu0 }
 0x100   :  { %429 = vst.msk [vmem:[%s740_s3] sm:$0xff] %vm428_vm0, %v424_v56  ;;  %v425_v61 = vmax.f32 %v413_v57, 0.0  ;;  %v502_v62 = vadd.f32 %v501_v60, %v500_v58  ;;  %v529_v63 = vpop.f32.mrb[5].mxu1  ;;  %v503_v0 = vpop.f32.mrb[6].mxu0 }
 0x101   :  { %v530_v1 = vadd.f32 %v529_v63, %v528_v59  ;;  %v531_v2 = vpop.f32.mrb[6].mxu1  ;;  %v504_v3 = vpop.f32.mrb[7].mxu0 }
 0x102   :  { %430 = vst.msk [vmem:[%s740_s3 + $0x8] sm:$0xff] %vm428_vm0, %v425_v61  ;;  %v369_v4 = vadd.f32 %v502_v62, %v437_v42  ;;  %v505_v5 = vadd.f32 %v504_v3, %v503_v0  ;;  %v532_v6 = vpop.f32.mrb[7].mxu1 }
 0x103   :  { %v533_v7 = vadd.f32 %v532_v6, %v531_v2 }
 0x104   :  { %v418_v8 = vadd.f32 %v530_v1, %v369_v4  ;;  %v372_v9 = vadd.f32 %v505_v5, %v437_v42 }
 0x106   :  { %v426_v10 = vmax.f32 %v418_v8, 0.0  ;;  %v421_v11 = vadd.f32 %v533_v7, %v372_v9 }
 0x108   :  { %431 = vst.msk [vmem:[%s740_s3 + $0x10] sm:$0xff] %vm428_vm0, %v426_v10  ;;  %v427_v12 = vmax.f32 %v421_v11, 0.0 }
 0x10a   :  { %432 = vst.msk [vmem:[%s740_s3 + $0x18] sm:$0xff] %vm428_vm0, %v427_v12 }

// kernel: policy_forward.8
= control target key start
LH: loop header
LB: loop body
LE: loop exit
PB: predicated region body
PF: predicated region fallthrough
CT: control target
= control target key end

     0   :  { %vm372_vm0 = vcmask 523264   ;;  %vm540_vm1 = vcmask 516096   ;;  %s903_s1 = inlined_call_operand.vmem [shape: bf16[576,64], index: 1, kind: input, shape index: {}]   ;;  %s904_s0 = inlined_call_operand.vmem [shape: bf16[32,576], index: 0, kind: input, shape index: {}]   ;;  %s905_s2 = inlined_call_operand.vmem [shape: f32[1,64], index: 2, kind: input, shape index: {}]   ;;  %s906_s3 = inlined_call_operand.vmem [shape: f32[2,64], index: 3, kind: output, shape index: {}]  }
   0x1   :  { %v680_v0 = vld [vmem:[%s903_s1 + $0x40] sm:$0xff]   ;;  %v684_v4 = vld [vmem:[%s903_s1 + $0x48] sm:$0xff]   ;;  %v688_v8 = vld [vmem:[%s903_s1 + $0x50] sm:$0xff]  }
   0x2   :  { %v681_v1 = vld [vmem:[%s903_s1] sm:$0xff]   ;;  %606 = vmatprep.subr.bf16.mxu0 %v680_v0  ;;  %v685_v5 = vld [vmem:[%s903_s1 + $0x8] sm:$0xff]   ;;  %v689_v9 = vld [vmem:[%s903_s1 + $0x10] sm:$0xff]  }
   0x3   :  { %v682_v2 = vld [vmem:[%s903_s1 + $0xc0] sm:$0xff]   ;;  %607 = vmatpush3.bf16.msra.mxu0 %v681_v1  ;;  %v686_v6 = vld [vmem:[%s903_s1 + $0xc8] sm:$0xff]   ;;  %v690_v10 = vld [vmem:[%s903_s1 + $0xd0] sm:$0xff]  }
   0x4   :  { %v683_v3 = vld [vmem:[%s903_s1 + $0x80] sm:$0xff]   ;;  %634 = vmatprep.subr.bf16.mxu1 %v682_v2  ;;  %608 = vmatprep.subr.bf16.mxu0 %v684_v4  ;;  %v687_v7 = vld [vmem:[%s903_s1 + $0x88] sm:$0xff]   ;;  %v691_v11 = vld [vmem:[%s903_s1 + $0x90] sm:$0xff]  }
   0x5   :  { %635 = vmatpush3.bf16.msra.mxu1 %v683_v3  ;;  %v692_v12 = vld [vmem:[%s903_s1 + $0x58] sm:$0xff]   ;;  %v696_v16 = vld [vmem:[%s903_s1 + $0x60] sm:$0xff]   ;;  %v700_v20 = vld [vmem:[%s903_s1 + $0x68] sm:$0xff]  }
   0x6   :  { %636 = vmatprep.subr.bf16.mxu1 %v686_v6  ;;  %v693_v13 = vld [vmem:[%s903_s1 + $0x18] sm:$0xff]   ;;  %v697_v17 = vld [vmem:[%s903_s1 + $0x20] sm:$0xff]   ;;  %v701_v21 = vld [vmem:[%s903_s1 + $0x28] sm:$0xff]  }
   0x7   :  { %609 = vmatpush3.bf16.msra.mxu0 %v685_v5  ;;  %v694_v14 = vld [vmem:[%s903_s1 + $0xd8] sm:$0xff]   ;;  %v698_v18 = vld [vmem:[%s903_s1 + $0xe0] sm:$0xff]   ;;  %v702_v22 = vld [vmem:[%s903_s1 + $0xe8] sm:$0xff]  }
   0x8   :  { %610 = vmatprep.subr.bf16.mxu0 %v688_v8  ;;  %v695_v15 = vld [vmem:[%s903_s1 + $0x98] sm:$0xff]   ;;  %v699_v19 = vld [vmem:[%s903_s1 + $0xa0] sm:$0xff]   ;;  %v703_v23 = vld [vmem:[%s903_s1 + $0xa8] sm:$0xff]  }
   0x9   :  { %637 = vmatpush3.bf16.msra.mxu1 %v687_v7  ;;  %v704_v24 = vld [vmem:[%s903_s1 + $0x70] sm:$0xff]   ;;  %v708_v28 = vld [vmem:[%s903_s1 + $0x78] sm:$0xff]   ;;  %v715_v34 = vld [vmem:[%s903_s1 + $0x100] sm:$0xff]  }
   0xa   :  { %638 = vmatprep.subr.bf16.mxu1 %v690_v10  ;;  %v705_v25 = vld [vmem:[%s903_s1 + $0x30] sm:$0xff]   ;;  %v709_v29 = vld [vmem:[%s903_s1 + $0x38] sm:$0xff]   ;;  %v718_v36 = vld [vmem:[%s904_s0 + $0xc] ss:$20 sps:$4 sm:$0xff]  }
   0xb   :  { %611 = vmatpush3.bf16.msra.mxu0 %v689_v9  ;;  %v706_v26 = vld [vmem:[%s903_s1 + $0xf0] sm:$0xff]   ;;  %v710_v30 = vld [vmem:[%s903_s1 + $0xf8] sm:$0xff]   ;;  %v719_v37 = vld [vmem:[%s903_s1 + $0x108] sm:$0xff]   ;;  %460 = vmatprep.mubr.bf16.mxu1 %v718_v36 }
   0xc   :  { %612 = vmatprep.subr.bf16.mxu0 %v692_v12  ;;  %v707_v27 = vld [vmem:[%s903_s1 + $0xb0] sm:$0xff]   ;;  %v713_v32 = vld [vmem:[%s904_s0 + $0x4] ss:$20 sps:$4 sm:$0xff]   ;;  %v716_v35 = vld [vmem:[%s904_s0 + $0x8] ss:$20 sps:$4 sm:$0xff]  }
   0xd   :  { %639 = vmatpush3.bf16.msra.mxu1 %v691_v11  ;;  %v711_v31 = vld [vmem:[%s904_s0] ss:$20 sps:$4 sm:$0xff]   ;;  %v714_v33 = vld [vmem:[%s903_s1 + $0xb8] sm:$0xff]   ;;  %411 = vmatprep.mubr.bf16.mxu0 %v713_v32  ;;  %v726_v42 = vld [vmem:[%s904_s0 + $0x30] ss:$20 sps:$4 sm:$0xff]  }
   0xe   :  { %640 = vmatprep.subr.bf16.mxu1 %v694_v14  ;;  %v720_v38 = vld [vmem:[%s904_s0 + $0x2c] ss:$20 sps:$4 sm:$0xff]   ;;  %v722_v39 = vld [vmem:[%s904_s0 + $0x28] ss:$20 sps:$4 sm:$0xff]   ;;  %v723_v40 = vld [vmem:[%s903_s1 + $0x110] sm:$0xff]  }
   0xf   :  { %613 = vmatpush3.bf16.msra.mxu0 %v693_v13  ;;  %v724_v41 = vld [vmem:[%s904_s0 + $0x34] ss:$20 sps:$4 sm:$0xff]   ;;  %v727_v43 = vld [vmem:[%s903_s1 + $0x118] sm:$0xff]   ;;  %v728_v44 = vld [vmem:[%s904_s0 + $0x10] ss:$20 sps:$4 sm:$0xff]  }
  0x10   :  { %614 = vmatprep.subr.bf16.mxu0 %v696_v16  ;;  %v729_v45 = vld [vmem:[%s904_s0 + $0x38] ss:$20 sps:$4 sm:$0xff]   ;;  %v557_v47 = vld [vmem:[%s905_s2] ss:$0 sm:$0xff] }
  0x11   :  { %641 = vmatpush3.bf16.msra.mxu1 %v695_v15 }
  0x12   :  { %642 = vmatprep.subr.bf16.mxu1 %v698_v18 }
  0x13   :  { %615 = vmatpush3.bf16.msra.mxu0 %v697_v17 }
  0x14   :  { %616 = vmatprep.subr.bf16.mxu0 %v700_v20 }
  0x15   :  { %643 = vmatpush3.bf16.msra.mxu1 %v699_v19 }
  0x16   :  { %644 = vmatprep.subr.bf16.mxu1 %v702_v22 }
  0x17   :  { %617 = vmatpush3.bf16.msra.mxu0 %v701_v21 }
  0x18   :  { %618 = vmatprep.subr.bf16.mxu0 %v704_v24 }
  0x19   :  { %645 = vmatpush3.bf16.msra.mxu1 %v703_v23 }
  0x1a   :  { %646 = vmatprep.subr.bf16.mxu1 %v706_v26 }
  0x1b   :  { %619 = vmatpush3.bf16.msra.mxu0 %v705_v25 }
  0x1c   :  { %620 = vmatprep.subr.bf16.mxu0 %v708_v28 }
  0x1d   :  { %647 = vmatpush3.bf16.msra.mxu1 %v707_v27 }
  0x1e   :  { %648 = vmatprep.subr.bf16.mxu1 %v710_v30 }
  0x1f   :  { %621 = vmatpush3.bf16.msra.mxu0 %v709_v29 }
  0x20   :  { %668 = vmatprep.subr.bf16.mxu0 %v715_v34 }
  0x21   :  { %649 = vmatpush3.bf16.msra.mxu1 %v714_v33 }
  0x22   :  { %412 = vmatmul.mubr.bf16.vlgmr.msra.gmra.mrb[0].mxu0 %v711_v31 }
  0x23   :  { %669 = vmatpush3.bf16.msra.mxu0 %v715_v34  ;;  %419 = vmatprep.mubr.bf16.mxu0 %v720_v38 }
  0x24   :  { %461 = vmatmul.mubr.bf16.vlgmr.msra.gmra.mrb[0].mxu1 %v716_v35  ;;  %670 = vmatprep.subr.bf16.mxu0 %v719_v37 }
  0x25   :  { %468 = vmatprep.mubr.bf16.mxu1 %v724_v41 }
  0x27   :  { %671 = vmatpush3.bf16.msra.mxu0 %v719_v37 }
  0x28   :  { %672 = vmatprep.subr.bf16.mxu0 %v723_v40 }
  0x2a   :  { %420 = vmatmul.mubr.bf16.gmra.mrb[4].mxu0 %v722_v39 }
  0x2b   :  { %676 = vmatprep.mubr.msk.bf16.mxu0 %vm372_vm0, %v728_v44  ;;  %673 = vmatpush3.bf16.msra.mxu0 %v723_v40 }
  0x2c   :  { %469 = vmatmul.mubr.bf16.gmra.mrb[4].mxu1 %v726_v42  ;;  %674 = vmatprep.subr.bf16.mxu0 %v727_v43 }
  0x2f   :  { %675 = vmatpush3.bf16.msra.mxu0 %v727_v43 }
  0x32   :  { %677 = vmatmul.mubr.msk.bf16.vlgmr.msra.gmra.mrb[8].mxu0 %vm372_vm0, %v729_v45 }
  0xf5   :  { %v622_v46 = vpop.f32.mrb[0].mxu0 }
  0xf6   :  { %v623_v48 = vpop.f32.mrb[1].mxu0 }
  0xf7   :  { %v624_v49 = vadd.f32 %v623_v48, %v622_v46  ;;  %v625_v50 = vpop.f32.mrb[2].mxu0  ;;  %v650_v51 = vpop.f32.mrb[0].mxu1 }
  0xf8   :  { %v626_v52 = vpop.f32.mrb[3].mxu0  ;;  %v651_v55 = vpop.f32.mrb[1].mxu1 }
  0xf9   :  { %v414_v53 = vadd.f32 %v624_v49, %v557_v47  ;;  %v627_v54 = vadd.f32 %v626_v52, %v625_v50  ;;  %v652_v56 = vadd.f32 %v651_v55, %v650_v51  ;;  %v653_v57 = vpop.f32.mrb[2].mxu1 }
  0xfa   :  { %v654_v59 = vpop.f32.mrb[3].mxu1 }
  0xfb   :  { %v417_v58 = vadd.f32 %v627_v54, %v557_v47  ;;  %v655_v60 = vadd.f32 %v654_v59, %v653_v57  ;;  %v463_v61 = vadd.f32 %v652_v56, %v414_v53 }
  0xfd   :  { %v628_v62 = vpop.f32.mrb[4].mxu0  ;;  %v466_v0 = vadd.f32 %v655_v60, %v417_v58 }
  0xfe   :  { %v629_v63 = vpop.f32.mrb[5].mxu0 }
  0xff   :  { %v630_v1 = vadd.f32 %v629_v63, %v628_v62  ;;  %v631_v2 = vpop.f32.mrb[6].mxu0  ;;  %v656_v3 = vpop.f32.mrb[4].mxu1 }
 0x100   :  { %v632_v4 = vpop.f32.mrb[7].mxu0  ;;  %v657_v7 = vpop.f32.mrb[5].mxu1 }
 0x101   :  { %v422_v5 = vadd.f32 %v630_v1, %v557_v47  ;;  %v633_v6 = vadd.f32 %v632_v4, %v631_v2  ;;  %v658_v8 = vadd.f32 %v657_v7, %v656_v3  ;;  %v659_v9 = vpop.f32.mrb[6].mxu1 }
 0x102   :  { %v660_v11 = vpop.f32.mrb[7].mxu1 }
 0x103   :  { %v425_v10 = vadd.f32 %v633_v6, %v557_v47  ;;  %v661_v12 = vadd.f32 %v660_v11, %v659_v9  ;;  %v471_v13 = vadd.f32 %v658_v8, %v422_v5 }
 0x105   :  { %v678_v14 = vpop.f32.mrb[8].mxu0  ;;  %v474_v15 = vadd.f32 %v661_v12, %v425_v10 }
 0x106   :  { %v520_v16 = vadd.f32 %v678_v14, %v471_v13  ;;  %v511_v17 = vpop.f32.mrb[9].mxu0 }
 0x107   :  { %v512_v18 = vadd.f32 %v511_v17, %v463_v61  ;;  %v679_v19 = vpop.f32.mrb[10].mxu0 }
 0x108   :  { %v528_v20 = vmax.f32 %v520_v16, 0.0  ;;  %v523_v21 = vadd.f32 %v679_v19, %v474_v15  ;;  %v514_v22 = vpop.f32.mrb[11].mxu0 }
 0x109   :  { %v526_v23 = vmax.f32 %v512_v18, 0.0  ;;  %v515_v24 = vadd.f32 %v514_v22, %v466_v0 }
 0x10a   :  { %v529_v25 = vmax.f32 %v523_v21, 0.0  ;;  %v542_v27 = vsel %vm372_vm0, %v528_v20, 0.0 }
 0x10b   :  { %v527_v26 = vmax.f32 %v515_v24, 0.0  ;;  %v530_v29 = vsel %vm372_vm0, %v526_v23, 0.0 }
 0x10c   :  { %v543_v28 = vsel %vm372_vm0, %v529_v25, 0.0 }
 0x10d   :  { %v544_v30 = vadd.f32 %v543_v28, %v542_v27  ;;  %v531_v31 = vsel %vm372_vm0, %v527_v26, 0.0 }
 0x10e   :  { %v532_v32 = vadd.f32 %v531_v31, %v530_v29 }
 0x10f   :  { %v545_v33 = vrot.slane %v544_v30, 4 }
 0x110   :  { %v533_v34 = vrot.slane %v532_v32, 4 }
 0x111   :  { %v546_v35 = vadd.f32 %v545_v33, %v544_v30 }
 0x112   :  { %v534_v36 = vadd.f32 %v533_v34, %v532_v32 }
 0x113   :  { %v547_v37 = vrot.slane %v546_v35, 2 }
 0x114   :  { %v535_v38 = vrot.slane %v534_v36, 2 }
 0x115   :  { %v548_v39 = vadd.f32 %v547_v37, %v546_v35 }
 0x116   :  { %v536_v40 = vadd.f32 %v535_v38, %v534_v36 }
 0x117   :  { %v549_v41 = vrot.slane %v548_v39, 1 }
 0x118   :  { %v537_v42 = vrot.slane %v536_v40, 1 }
 0x119   :  { %v550_v43 = vadd.f32 %v549_v41, %v548_v39 }
 0x11a   :  { %v538_v44 = vadd.f32 %v537_v42, %v536_v40 }
 0x11b   :  { %v551_v45 = vmul.f32 0.0625, %v550_v43 }
 0x11c   :  { %v539_v46 = vmul.f32 0.0625, %v538_v44 }
 0x11d   :  { %552 = vst.msk [vmem:[%s906_s3 + $0x1] sm:$0x1] %vm540_vm1, %v551_v45 }
 0x11e   :  { %541 = vst.msk [vmem:[%s906_s3] sm:$0x1] %vm540_vm1, %v539_v46 }

// kernel: policy_forward.5
= control target key start
LH: loop header
LB: loop body
LE: loop exit
PB: predicated region body
PF: predicated region fallthrough
CT: control target
= control target key end

     0   :  { %vm500_vm0 = vcmask 1044480   ;;  %vm501_vm1 = vcmask 1045504   ;;  %v4195_v1 = vmov 65535   ;;  %v4196_v3 = vmov 0   ;;  %s5734_s1 = inlined_call_operand.vmem [shape: bf16[27,1280], index: 1, kind: input, shape index: {}]   ;;  %s5735_s0 = inlined_call_operand.vmem [shape: bf16[512,27], index: 0, kind: input, shape index: {}]   ;;  %s5736_s2 = inlined_call_operand.vmem [shape: f32[1,1280], index: 2, kind: input, shape index: {}]   ;;  %s5737_s3 = inlined_call_operand.vmem [shape: f32[2,1280], index: 3, kind: output, shape index: {}]  }
   0x1   :  { %v4088_v0 = vld [vmem:[%s5734_s1 + $0x4] ss:$40 sps:$4 sm:$0xff]   ;;  %v502_v2 = vsel %vm500_vm0, 4294967295, %v4195_v1  ;;  %566 = vmatprep.mubr.bf16.mxu0 %v4196_v3  ;;  %726 = vmatprep.mubr.bf16.mxu1 %v4196_v3  ;;  %v4090_v4 = vld [vmem:[%s5734_s1] ss:$40 sps:$4 sm:$0xff]   ;;  %vm403_vm2 = vcmask 220160  }
   0x2   :  { %v4226_v5 = vsel %vm501_vm1, %v502_v2, 0  ;;  %534 = vmatprep.subr.bf16.mxu0 %v4088_v0  ;;  %4081 = vmatprep.subr.bf16.mxu1 %v4088_v0  ;;  %v4091_v6 = vld [vmem:[%s5734_s1 + $0x54] ss:$40 sps:$4 sm:$0x3f]   ;;  %v4239_v10 = vld [vmem:[%s5735_s0] sm:$0xff]   ;;  %v4267_v16 = vld [vmem:[%s5735_s0 + $0x8] sm:$0xff]   ;;  %v103_v2 = vlaneseq }
   0x3   :  { %v4093_v7 = vld [vmem:[%s5734_s1 + $0x50] ss:$40 sps:$4 sm:$0x3f]   ;;  %535 = vmatpush1.bf16.msra.mxu0 %v4090_v4  ;;  %4083 = vmatpush1.bf16.msra.mxu1 %v4090_v4  ;;  %v508_v8 = vand.u32 %v4091_v6, %v4226_v5  ;;  %v4244_v11 = vld [vmem:[%s5735_s0 + $0x80] sm:$0xff]   ;;  %v4098_v13 = vld [vmem:[%s5734_s1 + $0xc] ss:$40 sps:$4 sm:$0xff]  }
   0x4   :  { %v505_v9 = vand.u32 %v4093_v7, %v4226_v5  ;;  %v4096_v12 = vld [vmem:[%s5734_s1 + $0x8] ss:$40 sps:$4 sm:$0xff]   ;;  %v4101_v15 = vld [vmem:[%s5734_s1 + $0x14] ss:$40 sps:$4 sm:$0xff]   ;;  %v4331_v30 = vld [vmem:[%s5735_s0 + $0x20] sm:$0xff]   ;;  %v4574_v4 = vshrl.u32 %v103_v2, 7 }
   0x5   :  { %536 = vmatprep.subr.bf16.mxu0 %v508_v8  ;;  %4082 = vmatprep.subr.bf16.mxu1 %v508_v8  ;;  %v4099_v14 = vld [vmem:[%s5734_s1 + $0x10] ss:$40 sps:$4 sm:$0xff]   ;;  %v4272_v17 = vld [vmem:[%s5735_s0 + $0x88] sm:$0xff]   ;;  %v4120_v21 = vld [vmem:[%s5734_s1 + $0x5c] ss:$40 sps:$4 sm:$0x3f]  }
   0x6   :  { %v4283_v18 = vld [vmem:[%s5735_s0 + $0x10] sm:$0xff]   ;;  %v4118_v20 = vld [vmem:[%s5734_s1 + $0x58] ss:$40 sps:$4 sm:$0x3f]   ;;  %v514_v25 = vand.u32 %v4120_v21, %v4226_v5  ;;  %v4140_v32 = vld [vmem:[%s5734_s1 + $0x1c] ss:$40 sps:$4 sm:$0xff]  }
   0x7   :  { %537 = vmatpush1.bf16.msra.mxu0 %v505_v9  ;;  %4084 = vmatpush1.bf16.msra.mxu1 %v505_v9  ;;  %v4288_v19 = vld [vmem:[%s5735_s0 + $0x90] sm:$0xff]   ;;  %v511_v22 = vand.u32 %v4118_v20, %v4226_v5  ;;  %v4121_v23 = vld [vmem:[%s5734_s1 + $0x60] ss:$40 sps:$4 sm:$0x3f]   ;;  %v4315_v28 = vld [vmem:[%s5735_s0 + $0x18] sm:$0xff]   ;;  %v109_v7 = vsub.s32 1, %v4574_v4 }
   0x8   :  { %887 = vmatprep.subr.bf16.mxu1 %v4098_v13  ;;  %1240 = vmatprep.subr.bf16.mxu0 %v4101_v15  ;;  %v4123_v24 = vld [vmem:[%s5734_s1 + $0x64] ss:$40 sps:$4 sm:$0x3f]   ;;  %v517_v27 = vand.u32 %v4121_v23, %v4226_v5  ;;  %v4320_v29 = vld [vmem:[%s5735_s0 + $0x98] sm:$0xff]   ;;  %v4366_v36 = vld [vmem:[%s5735_s0 + $0x30] sm:$0xff]   ;;  %vm5578_vm3 = vcmp.lt.s32.totalorder %v103_v2, 256 }
   0x9   :  { %v520_v26 = vand.u32 %v4123_v24, %v4226_v5  ;;  %v4336_v31 = vld [vmem:[%s5735_s0 + $0xa0] sm:$0xff]   ;;  %v4353_v34 = vld [vmem:[%s5735_s0 + $0x28] sm:$0xff]   ;;  %v4113_v37 = vld [vmem:[%s5735_s0 + $0xb0] sm:$0xff]  }
   0xa   :  { %3918 = vmatmul.mubr.msk.bf16.vlgmr.msra.gmra.mrb[0].mxu0 %vm403_vm2, %v4239_v10  ;;  %3934 = vmatmul.mubr.msk.bf16.vlgmr.msra.gmra.mrb[0].mxu1 %vm403_vm2, %v4244_v11  ;;  %v4143_v33 = vld [vmem:[%s5734_s1 + $0x24] ss:$40 sps:$4 sm:$0xff]   ;;  %v4379_v38 = vld [vmem:[%s5735_s0 + $0x38] sm:$0xff]   ;;  %v4418_v44 = vld [vmem:[%s5735_s0 + $0x50] sm:$0xff]  }
   0xb   :  { %888 = vmatpush1.bf16.msra.mxu1 %v4096_v12  ;;  %1241 = vmatpush1.bf16.msra.mxu0 %v4099_v14  ;;  %v4111_v35 = vld [vmem:[%s5735_s0 + $0xa8] sm:$0xff]   ;;  %v4115_v39 = vld [vmem:[%s5735_s0 + $0xb8] sm:$0xff]   ;;  %v4392_v40 = vld [vmem:[%s5735_s0 + $0x40] sm:$0xff]  }
   0xc   :  { %576 = vmatprep.mubr.bf16.mxu0 %v4196_v3  ;;  %736 = vmatprep.mubr.bf16.mxu1 %v4196_v3  ;;  %v4117_v41 = vld [vmem:[%s5735_s0 + $0xc0] sm:$0xff]   ;;  %v4405_v42 = vld [vmem:[%s5735_s0 + $0x48] sm:$0xff]   ;;  %v4127_v45 = vld [vmem:[%s5735_s0 + $0xd0] sm:$0xff]  }
   0xd   :  { %889 = vmatprep.subr.bf16.mxu1 %v514_v25  ;;  %1242 = vmatprep.subr.bf16.mxu0 %v520_v26  ;;  %v4125_v43 = vld [vmem:[%s5735_s0 + $0xc8] sm:$0xff]   ;;  %v4431_v46 = vld [vmem:[%s5735_s0 + $0x58] sm:$0xff]   ;;  %v4444_v48 = vld [vmem:[%s5735_s0 + $0x60] sm:$0xff]  }
   0xe   :  { %v4129_v47 = vld [vmem:[%s5735_s0 + $0xd8] sm:$0xff]   ;;  %v4131_v49 = vld [vmem:[%s5735_s0 + $0xe0] sm:$0xff]   ;;  %v4457_v50 = vld [vmem:[%s5735_s0 + $0x68] sm:$0xff]  }
   0xf   :  { %890 = vmatpush1.bf16.msra.mxu1 %v511_v22  ;;  %1243 = vmatpush1.bf16.msra.mxu0 %v517_v27  ;;  %v4133_v51 = vld [vmem:[%s5735_s0 + $0xe8] sm:$0xff]   ;;  %v4470_v52 = vld [vmem:[%s5735_s0 + $0x70] sm:$0xff]   ;;  %v4483_v54 = vld [vmem:[%s5735_s0 + $0x78] sm:$0xff]  }
  0x10   :  { %1593 = vmatprep.subr.bf16.mxu1 %v4140_v32  ;;  %1946 = vmatprep.subr.bf16.mxu0 %v4143_v33  ;;  %v4135_v53 = vld [vmem:[%s5735_s0 + $0xf0] sm:$0xff]   ;;  %v4137_v55 = vld [vmem:[%s5735_s0 + $0xf8] sm:$0xff]   ;;  %v4141_v57 = vld [vmem:[%s5734_s1 + $0x20] ss:$40 sps:$4 sm:$0xff]  }
  0x11   :  { %v4138_v56 = vld [vmem:[%s5734_s1 + $0x18] ss:$40 sps:$4 sm:$0xff]   ;;  %v4144_v58 = vld [vmem:[%s5734_s1 + $0x68] ss:$40 sps:$4 sm:$0x3f]  }
  0x12   :  { %3919 = vmatmul.mubr.msk.bf16.gmra.mrb[4].mxu0 %vm403_vm2, %v4267_v16  ;;  %3935 = vmatmul.mubr.msk.bf16.gmra.mrb[4].mxu1 %vm403_vm2, %v4272_v17  ;;  %v4146_v59 = vld [vmem:[%s5734_s1 + $0x6c] ss:$40 sps:$4 sm:$0x3f]   ;;  %v523_v61 = vand.u32 %v4144_v58, %v4226_v5  ;;  %v4147_v62 = vld [vmem:[%s5734_s1 + $0x70] ss:$40 sps:$4 sm:$0x3f]  }
  0x13   :  { %586 = vmatprep.mubr.bf16.mxu0 %v4196_v3  ;;  %746 = vmatprep.mubr.bf16.mxu1 %v4196_v3  ;;  %v526_v60 = vand.u32 %v4146_v59, %v4226_v5  ;;  %v4149_v63 = vld [vmem:[%s5734_s1 + $0x74] ss:$40 sps:$4 sm:$0x3f]   ;;  %v529_v1 = vand.u32 %v4147_v62, %v4226_v5  ;;  %v99_v6 = vld [vmem:[%s5736_s2] sm:$0xff] }
  0x14   :  { %v532_v0 = vand.u32 %v4149_v63, %v4226_v5  ;;  %v105_v5 = vsub.s32 0, %v4574_v4  ;;  %v4593_v9 = vrot.slane %v99_v6, %v109_v7 }
  0x16   :  { %v4589_v8 = vrot.slane %v99_v6, %v105_v5 }
  0x1a   :  { %3920 = vmatmul.mubr.msk.bf16.gmra.mrb[8].mxu0 %vm403_vm2, %v4283_v18  ;;  %3936 = vmatmul.mubr.msk.bf16.gmra.mrb[8].mxu1 %vm403_vm2, %v4288_v19 }
  0x1b   :  { %596 = vmatprep.mubr.bf16.mxu0 %v4196_v3  ;;  %756 = vmatprep.mubr.bf16.mxu1 %v4196_v3 }
  0x22   :  { %3921 = vmatmul.mubr.msk.bf16.gmra.mrb[12].mxu0 %vm403_vm2, %v4315_v28  ;;  %3937 = vmatmul.mubr.msk.bf16.gmra.mrb[12].mxu1 %vm403_vm2, %v4320_v29 }
  0x23   :  { %606 = vmatprep.mubr.bf16.mxu0 %v4196_v3  ;;  %766 = vmatprep.mubr.bf16.mxu1 %v4196_v3 }
  0x2a   :  { %3922 = vmatmul.mubr.msk.bf16.gmra.mrb[16].mxu0 %vm403_vm2, %v4331_v30  ;;  %3938 = vmatmul.mubr.msk.bf16.gmra.mrb[16].mxu1 %vm403_vm2, %v4336_v31 }
  0x2b   :  { %616 = vmatprep.mubr.bf16.mxu0 %v4196_v3  ;;  %776 = vmatprep.mubr.bf16.mxu1 %v4196_v3 }
  0x32   :  { %3923 = vmatmul.mubr.msk.bf16.gmra.mrb[20].mxu0 %vm403_vm2, %v4353_v34  ;;  %3939 = vmatmul.mubr.msk.bf16.gmra.mrb[20].mxu1 %vm403_vm2, %v4111_v35 }
  0x33   :  { %626 = vmatprep.mubr.bf16.mxu0 %v4196_v3  ;;  %786 = vmatprep.mubr.bf16.mxu1 %v4196_v3 }
  0x3a   :  { %3924 = vmatmul.mubr.msk.bf16.gmra.mrb[24].mxu0 %vm403_vm2, %v4366_v36  ;;  %3940 = vmatmul.mubr.msk.bf16.gmra.mrb[24].mxu1 %vm403_vm2, %v4113_v37 }
  0x3b   :  { %636 = vmatprep.mubr.bf16.mxu0 %v4196_v3  ;;  %796 = vmatprep.mubr.bf16.mxu1 %v4196_v3 }
  0x42   :  { %3925 = vmatmul.mubr.msk.bf16.gmra.mrb[28].mxu0 %vm403_vm2, %v4379_v38  ;;  %3941 = vmatmul.mubr.msk.bf16.gmra.mrb[28].mxu1 %vm403_vm2, %v4115_v39 }
  0x43   :  { %646 = vmatprep.mubr.bf16.mxu0 %v4196_v3  ;;  %806 = vmatprep.mubr.bf16.mxu1 %v4196_v3 }
  0x4a   :  { %3926 = vmatmul.mubr.msk.bf16.gmra.mrb[32].mxu0 %vm403_vm2, %v4392_v40  ;;  %3942 = vmatmul.mubr.msk.bf16.gmra.mrb[32].mxu1 %vm403_vm2, %v4117_v41 }
  0x4b   :  { %656 = vmatprep.mubr.bf16.mxu0 %v4196_v3  ;;  %816 = vmatprep.mubr.bf16.mxu1 %v4196_v3 }
  0x52   :  { %3927 = vmatmul.mubr.msk.bf16.gmra.mrb[36].mxu0 %vm403_vm2, %v4405_v42  ;;  %3943 = vmatmul.mubr.msk.bf16.gmra.mrb[36].mxu1 %vm403_vm2, %v4125_v43 }
  0x53   :  { %666 = vmatprep.mubr.bf16.mxu0 %v4196_v3  ;;  %826 = vmatprep.mubr.bf16.mxu1 %v4196_v3 }
  0x5a   :  { %3928 = vmatmul.mubr.msk.bf16.gmra.mrb[40].mxu0 %vm403_vm2, %v4418_v44  ;;  %3944 = vmatmul.mubr.msk.bf16.gmra.mrb[40].mxu1 %vm403_vm2, %v4127_v45 }
  0x5b   :  { %676 = vmatprep.mubr.bf16.mxu0 %v4196_v3  ;;  %836 = vmatprep.mubr.bf16.mxu1 %v4196_v3 }
  0x62   :  { %3929 = vmatmul.mubr.msk.bf16.gmra.mrb[44].mxu0 %vm403_vm2, %v4431_v46  ;;  %3945 = vmatmul.mubr.msk.bf16.gmra.mrb[44].mxu1 %vm403_vm2, %v4129_v47 }
  0x63   :  { %686 = vmatprep.mubr.bf16.mxu0 %v4196_v3  ;;  %846 = vmatprep.mubr.bf16.mxu1 %v4196_v3 }
  0x6a   :  { %3930 = vmatmul.mubr.msk.bf16.gmra.mrb[48].mxu0 %vm403_vm2, %v4444_v48  ;;  %3946 = vmatmul.mubr.msk.bf16.gmra.mrb[48].mxu1 %vm403_vm2, %v4131_v49 }
  0x6b   :  { %696 = vmatprep.mubr.bf16.mxu0 %v4196_v3  ;;  %856 = vmatprep.mubr.bf16.mxu1 %v4196_v3 }
  0x72   :  { %3931 = vmatmul.mubr.msk.bf16.gmra.mrb[52].mxu0 %vm403_vm2, %v4457_v50  ;;  %3947 = vmatmul.mubr.msk.bf16.gmra.mrb[52].mxu1 %vm403_vm2, %v4133_v51 }
  0x73   :  { %706 = vmatprep.mubr.bf16.mxu0 %v4196_v3  ;;  %866 = vmatprep.mubr.bf16.mxu1 %v4196_v3 }
  0x7a   :  { %3932 = vmatmul.mubr.msk.bf16.gmra.mrb[56].mxu0 %vm403_vm2, %v4470_v52  ;;  %3948 = vmatmul.mubr.msk.bf16.gmra.mrb[56].mxu1 %vm403_vm2, %v4135_v53 }
  0x7b   :  { %716 = vmatprep.mubr.bf16.mxu0 %v4196_v3  ;;  %876 = vmatprep.mubr.bf16.mxu1 %v4196_v3 }
  0x82   :  { %3933 = vmatmul.mubr.msk.bf16.gmra.mrb[60].mxu0 %vm403_vm2, %v4483_v54  ;;  %3949 = vmatmul.mubr.msk.bf16.gmra.mrb[60].mxu1 %vm403_vm2, %v4137_v55 }
  0x83   :  { %919 = vmatprep.mubr.bf16.mxu1 %v4196_v3  ;;  %1272 = vmatprep.mubr.bf16.mxu0 %v4196_v3 }
  0x8a   :  { %3950 = vmatmul.mubr.msk.bf16.vlgmr.msra.gmra.mrb[64].mxu1 %vm403_vm2, %v4239_v10  ;;  %3982 = vmatmul.mubr.msk.bf16.vlgmr.msra.gmra.mrb[64].mxu0 %vm403_vm2, %v4239_v10 }
  0x8b   :  { %1594 = vmatpush1.bf16.msra.mxu1 %v4138_v56  ;;  %1947 = vmatpush1.bf16.msra.mxu0 %v4141_v57 }
  0x8c   :  { %929 = vmatprep.mubr.bf16.mxu1 %v4196_v3  ;;  %1282 = vmatprep.mubr.bf16.mxu0 %v4196_v3 }
  0x8d   :  { %1595 = vmatprep.subr.bf16.mxu1 %v526_v60  ;;  %1948 = vmatprep.subr.bf16.mxu0 %v532_v0 }
  0x8f   :  { %1596 = vmatpush1.bf16.msra.mxu1 %v523_v61  ;;  %1949 = vmatpush1.bf16.msra.mxu0 %v529_v1 }
  0x92   :  { %3951 = vmatmul.mubr.msk.bf16.gmra.mrb[68].mxu1 %vm403_vm2, %v4267_v16  ;;  %3983 = vmatmul.mubr.msk.bf16.gmra.mrb[68].mxu0 %vm403_vm2, %v4267_v16 }
  0x93   :  { %939 = vmatprep.mubr.bf16.mxu1 %v4196_v3  ;;  %1292 = vmatprep.mubr.bf16.mxu0 %v4196_v3 }
  0x9a   :  { %3952 = vmatmul.mubr.msk.bf16.gmra.mrb[72].mxu1 %vm403_vm2, %v4283_v18  ;;  %3984 = vmatmul.mubr.msk.bf16.gmra.mrb[72].mxu0 %vm403_vm2, %v4283_v18 }
  0x9b   :  { %949 = vmatprep.mubr.bf16.mxu1 %v4196_v3  ;;  %1302 = vmatprep.mubr.bf16.mxu0 %v4196_v3 }
  0xa2   :  { %3953 = vmatmul.mubr.msk.bf16.gmra.mrb[76].mxu1 %vm403_vm2, %v4315_v28  ;;  %3985 = vmatmul.mubr.msk.bf16.gmra.mrb[76].mxu0 %vm403_vm2, %v4315_v28 }
  0xa3   :  { %959 = vmatprep.mubr.bf16.mxu1 %v4196_v3  ;;  %1312 = vmatprep.mubr.bf16.mxu0 %v4196_v3 }
  0xaa   :  { %3954 = vmatmul.mubr.msk.bf16.gmra.mrb[80].mxu1 %vm403_vm2, %v4331_v30  ;;  %3986 = vmatmul.mubr.msk.bf16.gmra.mrb[80].mxu0 %vm403_vm2, %v4331_v30 }
  0xab   :  { %969 = vmatprep.mubr.bf16.mxu1 %v4196_v3  ;;  %1322 = vmatprep.mubr.bf16.mxu0 %v4196_v3 }
  0xb2   :  { %3955 = vmatmul.mubr.msk.bf16.gmra.mrb[84].mxu1 %vm403_vm2, %v4353_v34  ;;  %3987 = vmatmul.mubr.msk.bf16.gmra.mrb[84].mxu0 %vm403_vm2, %v4353_v34 }
  0xb3   :  { %979 = vmatprep.mubr.bf16.mxu1 %v4196_v3  ;;  %1332 = vmatprep.mubr.bf16.mxu0 %v4196_v3 }
  0xba   :  { %3956 = vmatmul.mubr.msk.bf16.gmra.mrb[88].mxu1 %vm403_vm2, %v4366_v36  ;;  %3988 = vmatmul.mubr.msk.bf16.gmra.mrb[88].mxu0 %vm403_vm2, %v4366_v36 }
  0xbb   :  { %989 = vmatprep.mubr.bf16.mxu1 %v4196_v3  ;;  %1342 = vmatprep.mubr.bf16.mxu0 %v4196_v3 }
  0xc2   :  { %3957 = vmatmul.mubr.msk.bf16.gmra.mrb[92].mxu1 %vm403_vm2, %v4379_v38  ;;  %3989 = vmatmul.mubr.msk.bf16.gmra.mrb[92].mxu0 %vm403_vm2, %v4379_v38 }
  0xc3   :  { %999 = vmatprep.mubr.bf16.mxu1 %v4196_v3  ;;  %1352 = vmatprep.mubr.bf16.mxu0 %v4196_v3 }
  0xca   :  { %3958 = vmatmul.mubr.msk.bf16.gmra.mrb[96].mxu1 %vm403_vm2, %v4392_v40  ;;  %3990 = vmatmul.mubr.msk.bf16.gmra.mrb[96].mxu0 %vm403_vm2, %v4392_v40 }
  0xcb   :  { %1009 = vmatprep.mubr.bf16.mxu1 %v4196_v3  ;;  %1362 = vmatprep.mubr.bf16.mxu0 %v4196_v3 }
  0xd2   :  { %3959 = vmatmul.mubr.msk.bf16.gmra.mrb[100].mxu1 %vm403_vm2, %v4405_v42  ;;  %3991 = vmatmul.mubr.msk.bf16.gmra.mrb[100].mxu0 %vm403_vm2, %v4405_v42 }
  0xd3   :  { %1019 = vmatprep.mubr.bf16.mxu1 %v4196_v3  ;;  %1372 = vmatprep.mubr.bf16.mxu0 %v4196_v3 }
  0xda   :  { %3960 = vmatmul.mubr.msk.bf16.gmra.mrb[104].mxu1 %vm403_vm2, %v4418_v44  ;;  %3992 = vmatmul.mubr.msk.bf16.gmra.mrb[104].mxu0 %vm403_vm2, %v4418_v44 }
  0xdb   :  { %1029 = vmatprep.mubr.bf16.mxu1 %v4196_v3  ;;  %1382 = vmatprep.mubr.bf16.mxu0 %v4196_v3 }
  0xdd   :  { %v728_v10 = vpop.f32.mrb[0].mxu1  ;;  %v568_v12 = vpop.f32.mrb[0].mxu0 }
  0xde   :  { %v729_v13 = vadd.f32 %v728_v10, %v4589_v8  ;;  %v730_v14 = vpop.f32.mrb[1].mxu1  ;;  %v569_v15 = vadd.f32 %v568_v12, %v4589_v8  ;;  %v570_v16 = vpop.f32.mrb[1].mxu0 }
  0xdf   :  { %v731_v18 = vadd.f32 %v730_v14, %v4593_v9  ;;  %v732_v20 = vpop.f32.mrb[2].mxu1  ;;  %v571_v21 = vadd.f32 %v570_v16, %v4593_v9  ;;  %v572_v22 = vpop.f32.mrb[2].mxu0 }
  0xe0   :  { %v2299_v23 = vmax.f32 %v569_v15, 0.0  ;;  %v733_v24 = vadd.f32 %v732_v20, %v4589_v8  ;;  %v734_v25 = vpop.f32.mrb[3].mxu1  ;;  %v573_v26 = vadd.f32 %v572_v22, %v4589_v8  ;;  %v574_v27 = vpop.f32.mrb[3].mxu0  ;;  %v2619_v33 = vmax.f32 %v729_v13, 0.0 }
  0xe1   :  { %v2300_v28 = vmax.f32 %v571_v21, 0.0  ;;  %v735_v30 = vadd.f32 %v734_v25, %v4593_v9  ;;  %v575_v32 = vadd.f32 %v574_v27, %v4593_v9  ;;  %v2620_v36 = vmax.f32 %v731_v18, 0.0 }
  0xe2   :  { %v2629_v34 = vmax.f32 %v733_v24, 0.0  ;;  %v2309_v35 = vmax.f32 %v573_v26, 0.0  ;;  %3961 = vmatmul.mubr.msk.bf16.gmra.mrb[108].mxu1 %vm403_vm2, %v4431_v46  ;;  %3993 = vmatmul.mubr.msk.bf16.gmra.mrb[108].mxu0 %vm403_vm2, %v4431_v46 }
  0xe3   :  { %v2630_v37 = vmax.f32 %v735_v30, 0.0  ;;  %v2310_v38 = vmax.f32 %v575_v32, 0.0  ;;  %1039 = vmatprep.mubr.bf16.mxu1 %v4196_v3  ;;  %1392 = vmatprep.mubr.bf16.mxu0 %v4196_v3 }
  0xe4   :  { %v3402_v39 = vadd.f32 %v2629_v34, %v2619_v33  ;;  %v2939_v40 = vadd.f32 %v2309_v35, %v2299_v23 }
  0xe5   :  { %v3439_v41 = vadd.f32 %v2630_v37, %v2620_v36  ;;  %v2976_v42 = vadd.f32 %v2310_v38, %v2300_v28  ;;  %v578_v43 = vpop.f32.mrb[4].mxu0  ;;  %v738_v44 = vpop.f32.mrb[4].mxu1 }
  0xe6   :  { %v579_v45 = vadd.f32 %v578_v43, %v4589_v8  ;;  %v739_v47 = vadd.f32 %v738_v44, %v4589_v8  ;;  %v580_v49 = vpop.f32.mrb[5].mxu0  ;;  %v740_v51 = vpop.f32.mrb[5].mxu1 }
  0xe7   :  { %v581_v46 = vadd.f32 %v580_v49, %v4593_v9  ;;  %v741_v53 = vadd.f32 %v740_v51, %v4593_v9  ;;  %v582_v55 = vpop.f32.mrb[6].mxu0  ;;  %v742_v56 = vpop.f32.mrb[6].mxu1 }
  0xe8   :  { %v2319_v57 = vmax.f32 %v579_v45, 0.0  ;;  %v2639_v58 = vmax.f32 %v739_v47, 0.0  ;;  %v583_v59 = vadd.f32 %v582_v55, %v4589_v8  ;;  %v743_v60 = vadd.f32 %v742_v56, %v4589_v8  ;;  %v584_v61 = vpop.f32.mrb[7].mxu0  ;;  %v744_v62 = vpop.f32.mrb[7].mxu1 }
  0xe9   :  { %v2320_v63 = vmax.f32 %v581_v46, 0.0  ;;  %v2640_v0 = vmax.f32 %v741_v53, 0.0  ;;  %v585_v1 = vadd.f32 %v584_v61, %v4593_v9  ;;  %v745_v6 = vadd.f32 %v744_v62, %v4593_v9 }
  0xea   :  { %v2940_v10 = vadd.f32 %v2939_v40, %v2319_v57  ;;  %v3403_v12 = vadd.f32 %v3402_v39, %v2639_v58  ;;  %v2329_v13 = vmax.f32 %v583_v59, 0.0  ;;  %v2649_v14 = vmax.f32 %v743_v60, 0.0  ;;  %3962 = vmatmul.mubr.msk.bf16.gmra.mrb[112].mxu1 %vm403_vm2, %v4444_v48  ;;  %3994 = vmatmul.mubr.msk.bf16.gmra.mrb[112].mxu0 %vm403_vm2, %v4444_v48 }
  0xeb   :  { %v2977_v15 = vadd.f32 %v2976_v42, %v2320_v63  ;;  %v3440_v16 = vadd.f32 %v3439_v41, %v2640_v0  ;;  %v2330_v18 = vmax.f32 %v585_v1, 0.0  ;;  %v2650_v20 = vmax.f32 %v745_v6, 0.0  ;;  %1049 = vmatprep.mubr.bf16.mxu1 %v4196_v3  ;;  %1402 = vmatprep.mubr.bf16.mxu0 %v4196_v3 }
  0xec   :  { %v2941_v21 = vadd.f32 %v2940_v10, %v2329_v13  ;;  %v3404_v22 = vadd.f32 %v3403_v12, %v2649_v14 }
  0xed   :  { %v2978_v23 = vadd.f32 %v2977_v15, %v2330_v18  ;;  %v3441_v24 = vadd.f32 %v3440_v16, %v2650_v20  ;;  %v588_v25 = vpop.f32.mrb[8].mxu0  ;;  %v748_v26 = vpop.f32.mrb[8].mxu1 }
  0xee   :  { %v589_v27 = vadd.f32 %v588_v25, %v4589_v8  ;;  %v749_v28 = vadd.f32 %v748_v26, %v4589_v8  ;;  %v590_v30 = vpop.f32.mrb[9].mxu0  ;;  %v750_v48 = vpop.f32.mrb[9].mxu1 }
  0xef   :  { %v591_v32 = vadd.f32 %v590_v30, %v4593_v9  ;;  %v751_v33 = vadd.f32 %v750_v48, %v4593_v9  ;;  %v592_v34 = vpop.f32.mrb[10].mxu0  ;;  %v752_v35 = vpop.f32.mrb[10].mxu1 }
  0xf0   :  { %v2339_v36 = vmax.f32 %v589_v27, 0.0  ;;  %v2659_v37 = vmax.f32 %v749_v28, 0.0  ;;  %v593_v38 = vadd.f32 %v592_v34, %v4589_v8  ;;  %v753_v39 = vadd.f32 %v752_v35, %v4589_v8  ;;  %v594_v40 = vpop.f32.mrb[11].mxu0  ;;  %v754_v41 = vpop.f32.mrb[11].mxu1 }
  0xf1   :  { %v2340_v42 = vmax.f32 %v591_v32, 0.0  ;;  %v2660_v43 = vmax.f32 %v751_v33, 0.0  ;;  %v595_v44 = vadd.f32 %v594_v40, %v4593_v9  ;;  %v755_v45 = vadd.f32 %v754_v41, %v4593_v9 }
  0xf2   :  { %v2942_v47 = vadd.f32 %v2941_v21, %v2339_v36  ;;  %v3405_v49 = vadd.f32 %v3404_v22, %v2659_v37  ;;  %v2349_v51 = vmax.f32 %v593_v38, 0.0  ;;  %v2669_v46 = vmax.f32 %v753_v39, 0.0  ;;  %3963 = vmatmul.mubr.msk.bf16.gmra.mrb[116].mxu1 %vm403_vm2, %v4457_v50  ;;  %3995 = vmatmul.mubr.msk.bf16.gmra.mrb[116].mxu0 %vm403_vm2, %v4457_v50 }
  0xf3   :  { %v2979_v53 = vadd.f32 %v2978_v23, %v2340_v42  ;;  %v3442_v55 = vadd.f32 %v3441_v24, %v2660_v43  ;;  %v2350_v56 = vmax.f32 %v595_v44, 0.0  ;;  %v2670_v57 = vmax.f32 %v755_v45, 0.0  ;;  %1059 = vmatprep.mubr.bf16.mxu1 %v4196_v3  ;;  %1412 = vmatprep.mubr.bf16.mxu0 %v4196_v3 }
  0xf4   :  { %v2943_v58 = vadd.f32 %v2942_v47, %v2349_v51  ;;  %v3406_v59 = vadd.f32 %v3405_v49, %v2669_v46 }
  0xf5   :  { %v2980_v60 = vadd.f32 %v2979_v53, %v2350_v56  ;;  %v3443_v61 = vadd.f32 %v3442_v55, %v2670_v57  ;;  %v598_v62 = vpop.f32.mrb[12].mxu0  ;;  %v758_v63 = vpop.f32.mrb[12].mxu1 }
  0xf6   :  { %v599_v0 = vadd.f32 %v598_v62, %v4589_v8  ;;  %v759_v1 = vadd.f32 %v758_v63, %v4589_v8  ;;  %v600_v6 = vpop.f32.mrb[13].mxu0  ;;  %v760_v50 = vpop.f32.mrb[13].mxu1 }
  0xf7   :  { %v601_v10 = vadd.f32 %v600_v6, %v4593_v9  ;;  %v761_v12 = vadd.f32 %v760_v50, %v4593_v9  ;;  %v602_v13 = vpop.f32.mrb[14].mxu0  ;;  %v762_v14 = vpop.f32.mrb[14].mxu1 }
  0xf8   :  { %v2359_v15 = vmax.f32 %v599_v0, 0.0  ;;  %v2679_v16 = vmax.f32 %v759_v1, 0.0  ;;  %v603_v18 = vadd.f32 %v602_v13, %v4589_v8  ;;  %v763_v20 = vadd.f32 %v762_v14, %v4589_v8  ;;  %v604_v21 = vpop.f32.mrb[15].mxu0  ;;  %v764_v22 = vpop.f32.mrb[15].mxu1 }
  0xf9   :  { %v2360_v23 = vmax.f32 %v601_v10, 0.0  ;;  %v2680_v24 = vmax.f32 %v761_v12, 0.0  ;;  %v605_v25 = vadd.f32 %v604_v21, %v4593_v9  ;;  %v765_v26 = vadd.f32 %v764_v22, %v4593_v9 }
  0xfa   :  { %v2944_v27 = vadd.f32 %v2943_v58, %v2359_v15  ;;  %v3407_v28 = vadd.f32 %v3406_v59, %v2679_v16  ;;  %v2369_v30 = vmax.f32 %v603_v18, 0.0  ;;  %v2689_v48 = vmax.f32 %v763_v20, 0.0  ;;  %3964 = vmatmul.mubr.msk.bf16.gmra.mrb[120].mxu1 %vm403_vm2, %v4470_v52  ;;  %3996 = vmatmul.mubr.msk.bf16.gmra.mrb[120].mxu0 %vm403_vm2, %v4470_v52 }
  0xfb   :  { %v2981_v32 = vadd.f32 %v2980_v60, %v2360_v23  ;;  %v3444_v33 = vadd.f32 %v3443_v61, %v2680_v24  ;;  %v2370_v34 = vmax.f32 %v605_v25, 0.0  ;;  %v2690_v35 = vmax.f32 %v765_v26, 0.0  ;;  %1069 = vmatprep.mubr.bf16.mxu1 %v4196_v3  ;;  %1422 = vmatprep.mubr.bf16.mxu0 %v4196_v3 }
  0xfc   :  { %v2945_v36 = vadd.f32 %v2944_v27, %v2369_v30  ;;  %v3408_v37 = vadd.f32 %v3407_v28, %v2689_v48 }
  0xfd   :  { %v2982_v38 = vadd.f32 %v2981_v32, %v2370_v34  ;;  %v3445_v39 = vadd.f32 %v3444_v33, %v2690_v35  ;;  %v608_v40 = vpop.f32.mrb[16].mxu0  ;;  %v768_v41 = vpop.f32.mrb[16].mxu1 }
  0xfe   :  { %v609_v42 = vadd.f32 %v608_v40, %v4589_v8  ;;  %v769_v43 = vadd.f32 %v768_v41, %v4589_v8  ;;  %v610_v44 = vpop.f32.mrb[17].mxu0  ;;  %v770_v52 = vpop.f32.mrb[17].mxu1 }
  0xff   :  { %v611_v45 = vadd.f32 %v610_v44, %v4593_v9  ;;  %v771_v47 = vadd.f32 %v770_v52, %v4593_v9  ;;  %v612_v49 = vpop.f32.mrb[18].mxu0  ;;  %v772_v51 = vpop.f32.mrb[18].mxu1 }
 0x100   :  { %v2379_v46 = vmax.f32 %v609_v42, 0.0  ;;  %v2699_v53 = vmax.f32 %v769_v43, 0.0  ;;  %v613_v55 = vadd.f32 %v612_v49, %v4589_v8  ;;  %v773_v56 = vadd.f32 %v772_v51, %v4589_v8  ;;  %v614_v57 = vpop.f32.mrb[19].mxu0  ;;  %v774_v58 = vpop.f32.mrb[19].mxu1 }
 0x101   :  { %v2380_v59 = vmax.f32 %v611_v45, 0.0  ;;  %v2700_v60 = vmax.f32 %v771_v47, 0.0  ;;  %v615_v61 = vadd.f32 %v614_v57, %v4593_v9  ;;  %v775_v62 = vadd.f32 %v774_v58, %v4593_v9 }
 0x102   :  { %v2946_v63 = vadd.f32 %v2945_v36, %v2379_v46  ;;  %v3409_v0 = vadd.f32 %v3408_v37, %v2699_v53  ;;  %v2389_v1 = vmax.f32 %v613_v55, 0.0  ;;  %v2709_v6 = vmax.f32 %v773_v56, 0.0  ;;  %3965 = vmatmul.mubr.msk.bf16.gmra.mrb[124].mxu1 %vm403_vm2, %v4483_v54  ;;  %3997 = vmatmul.mubr.msk.bf16.gmra.mrb[124].mxu0 %vm403_vm2, %v4483_v54 }
 0x103   :  { %v2983_v50 = vadd.f32 %v2982_v38, %v2380_v59  ;;  %v3446_v10 = vadd.f32 %v3445_v39, %v2700_v60  ;;  %v2390_v12 = vmax.f32 %v615_v61, 0.0  ;;  %v2710_v13 = vmax.f32 %v775_v62, 0.0  ;;  %1079 = vmatprep.mubr.bf16.mxu1 %v4196_v3  ;;  %1432 = vmatprep.mubr.bf16.mxu0 %v4196_v3 }
 0x104   :  { %v2947_v14 = vadd.f32 %v2946_v63, %v2389_v1  ;;  %v3410_v15 = vadd.f32 %v3409_v0, %v2709_v6 }
 0x105   :  { %v2984_v16 = vadd.f32 %v2983_v50, %v2390_v12  ;;  %v3447_v18 = vadd.f32 %v3446_v10, %v2710_v13  ;;  %v618_v20 = vpop.f32.mrb[20].mxu0  ;;  %v778_v21 = vpop.f32.mrb[20].mxu1 }
 0x106   :  { %v619_v22 = vadd.f32 %v618_v20, %v4589_v8  ;;  %v779_v23 = vadd.f32 %v778_v21, %v4589_v8  ;;  %v620_v24 = vpop.f32.mrb[21].mxu0  ;;  %v780_v54 = vpop.f32.mrb[21].mxu1 }
 0x107   :  { %v621_v25 = vadd.f32 %v620_v24, %v4593_v9  ;;  %v781_v26 = vadd.f32 %v780_v54, %v4593_v9  ;;  %v622_v27 = vpop.f32.mrb[22].mxu0  ;;  %v782_v28 = vpop.f32.mrb[22].mxu1 }
 0x108   :  { %v2399_v30 = vmax.f32 %v619_v22, 0.0  ;;  %v2719_v48 = vmax.f32 %v779_v23, 0.0  ;;  %v623_v32 = vadd.f32 %v622_v27, %v4589_v8  ;;  %v783_v33 = vadd.f32 %v782_v28, %v4589_v8  ;;  %v624_v34 = vpop.f32.mrb[23].mxu0  ;;  %v784_v35 = vpop.f32.mrb[23].mxu1 }
 0x109   :  { %v2400_v36 = vmax.f32 %v621_v25, 0.0  ;;  %v2720_v37 = vmax.f32 %v781_v26, 0.0  ;;  %v625_v38 = vadd.f32 %v624_v34, %v4593_v9  ;;  %v785_v39 = vadd.f32 %v784_v35, %v4593_v9 }
 0x10a   :  { %v2948_v40 = vadd.f32 %v2947_v14, %v2399_v30  ;;  %v3411_v41 = vadd.f32 %v3410_v15, %v2719_v48  ;;  %v2409_v42 = vmax.f32 %v623_v32, 0.0  ;;  %v2729_v43 = vmax.f32 %v783_v33, 0.0  ;;  %3966 = vmatmul.mubr.msk.bf16.gmra.mrb[128].mxu1 %vm403_vm2, %v4244_v11  ;;  %3998 = vmatmul.mubr.msk.bf16.gmra.mrb[128].mxu0 %vm403_vm2, %v4244_v11 }
 0x10b   :  { %v2985_v44 = vadd.f32 %v2984_v16, %v2400_v36  ;;  %v3448_v52 = vadd.f32 %v3447_v18, %v2720_v37  ;;  %v2410_v45 = vmax.f32 %v625_v38, 0.0  ;;  %v2730_v47 = vmax.f32 %v785_v39, 0.0  ;;  %1089 = vmatprep.mubr.bf16.mxu1 %v4196_v3  ;;  %1442 = vmatprep.mubr.bf16.mxu0 %v4196_v3 }
 0x10c   :  { %v2949_v49 = vadd.f32 %v2948_v40, %v2409_v42  ;;  %v3412_v51 = vadd.f32 %v3411_v41, %v2729_v43 }
 0x10d   :  { %v2986_v46 = vadd.f32 %v2985_v44, %v2410_v45  ;;  %v3449_v53 = vadd.f32 %v3448_v52, %v2730_v47  ;;  %v628_v55 = vpop.f32.mrb[24].mxu0  ;;  %v788_v56 = vpop.f32.mrb[24].mxu1 }
 0x10e   :  { %v629_v57 = vadd.f32 %v628_v55, %v4589_v8  ;;  %v789_v58 = vadd.f32 %v788_v56, %v4589_v8  ;;  %v630_v59 = vpop.f32.mrb[25].mxu0  ;;  %v790_v11 = vpop.f32.mrb[25].mxu1 }
 0x10f   :  { %v631_v60 = vadd.f32 %v630_v59, %v4593_v9  ;;  %v791_v61 = vadd.f32 %v790_v11, %v4593_v9  ;;  %v632_v62 = vpop.f32.mrb[26].mxu0  ;;  %v792_v63 = vpop.f32.mrb[26].mxu1 }
 0x110   :  { %v2419_v0 = vmax.f32 %v629_v57, 0.0  ;;  %v2739_v1 = vmax.f32 %v789_v58, 0.0  ;;  %v633_v6 = vadd.f32 %v632_v62, %v4589_v8  ;;  %v793_v50 = vadd.f32 %v792_v63, %v4589_v8  ;;  %v634_v10 = vpop.f32.mrb[27].mxu0  ;;  %v794_v12 = vpop.f32.mrb[27].mxu1 }
 0x111   :  { %v2420_v13 = vmax.f32 %v631_v60, 0.0  ;;  %v2740_v14 = vmax.f32 %v791_v61, 0.0  ;;  %v635_v15 = vadd.f32 %v634_v10, %v4593_v9  ;;  %v795_v16 = vadd.f32 %v794_v12, %v4593_v9 }
 0x112   :  { %v2950_v18 = vadd.f32 %v2949_v49, %v2419_v0  ;;  %v3413_v20 = vadd.f32 %v3412_v51, %v2739_v1  ;;  %v2429_v21 = vmax.f32 %v633_v6, 0.0  ;;  %v2749_v22 = vmax.f32 %v793_v50, 0.0  ;;  %3967 = vmatmul.mubr.msk.bf16.gmra.mrb[132].mxu1 %vm403_vm2, %v4272_v17  ;;  %3999 = vmatmul.mubr.msk.bf16.gmra.mrb[132].mxu0 %vm403_vm2, %v4272_v17 }
 0x113   :  { %v2987_v23 = vadd.f32 %v2986_v46, %v2420_v13  ;;  %v3450_v24 = vadd.f32 %v3449_v53, %v2740_v14  ;;  %v2430_v54 = vmax.f32 %v635_v15, 0.0  ;;  %v2750_v25 = vmax.f32 %v795_v16, 0.0  ;;  %1099 = vmatprep.mubr.bf16.mxu1 %v4196_v3  ;;  %1452 = vmatprep.mubr.bf16.mxu0 %v4196_v3 }
 0x114   :  { %v2951_v26 = vadd.f32 %v2950_v18, %v2429_v21  ;;  %v3414_v27 = vadd.f32 %v3413_v20, %v2749_v22 }
 0x115   :  { %v2988_v28 = vadd.f32 %v2987_v23, %v2430_v54  ;;  %v3451_v30 = vadd.f32 %v3450_v24, %v2750_v25  ;;  %v638_v48 = vpop.f32.mrb[28].mxu0  ;;  %v798_v32 = vpop.f32.mrb[28].mxu1 }
 0x116   :  { %v639_v33 = vadd.f32 %v638_v48, %v4589_v8  ;;  %v799_v34 = vadd.f32 %v798_v32, %v4589_v8  ;;  %v640_v35 = vpop.f32.mrb[29].mxu0  ;;  %v800_v17 = vpop.f32.mrb[29].mxu1 }
 0x117   :  { %v641_v36 = vadd.f32 %v640_v35, %v4593_v9  ;;  %v801_v37 = vadd.f32 %v800_v17, %v4593_v9  ;;  %v642_v38 = vpop.f32.mrb[30].mxu0  ;;  %v802_v39 = vpop.f32.mrb[30].mxu1 }
 0x118   :  { %v2439_v40 = vmax.f32 %v639_v33, 0.0  ;;  %v2759_v41 = vmax.f32 %v799_v34, 0.0  ;;  %v643_v42 = vadd.f32 %v642_v38, %v4589_v8  ;;  %v803_v43 = vadd.f32 %v802_v39, %v4589_v8  ;;  %v644_v44 = vpop.f32.mrb[31].mxu0  ;;  %v804_v52 = vpop.f32.mrb[31].mxu1 }
 0x119   :  { %v2440_v45 = vmax.f32 %v641_v36, 0.0  ;;  %v2760_v47 = vmax.f32 %v801_v37, 0.0  ;;  %v645_v49 = vadd.f32 %v644_v44, %v4593_v9  ;;  %v805_v51 = vadd.f32 %v804_v52, %v4593_v9 }
 0x11a   :  { %v2952_v46 = vadd.f32 %v2951_v26, %v2439_v40  ;;  %v3415_v53 = vadd.f32 %v3414_v27, %v2759_v41  ;;  %v2449_v55 = vmax.f32 %v643_v42, 0.0  ;;  %v2769_v56 = vmax.f32 %v803_v43, 0.0  ;;  %3968 = vmatmul.mubr.msk.bf16.gmra.mrb[136].mxu1 %vm403_vm2, %v4288_v19  ;;  %4000 = vmatmul.mubr.msk.bf16.gmra.mrb[136].mxu0 %vm403_vm2, %v4288_v19 }
 0x11b   :  { %v2989_v57 = vadd.f32 %v2988_v28, %v2440_v45  ;;  %v3452_v58 = vadd.f32 %v3451_v30, %v2760_v47  ;;  %v2450_v59 = vmax.f32 %v645_v49, 0.0  ;;  %v2770_v11 = vmax.f32 %v805_v51, 0.0  ;;  %1109 = vmatprep.mubr.bf16.mxu1 %v4196_v3  ;;  %1462 = vmatprep.mubr.bf16.mxu0 %v4196_v3 }
 0x11c   :  { %v2953_v60 = vadd.f32 %v2952_v46, %v2449_v55  ;;  %v3416_v61 = vadd.f32 %v3415_v53, %v2769_v56 }
 0x11d   :  { %v2990_v62 = vadd.f32 %v2989_v57, %v2450_v59  ;;  %v3453_v63 = vadd.f32 %v3452_v58, %v2770_v11  ;;  %v648_v0 = vpop.f32.mrb[32].mxu0  ;;  %v808_v1 = vpop.f32.mrb[32].mxu1 }
 0x11e   :  { %v649_v6 = vadd.f32 %v648_v0, %v4589_v8  ;;  %v809_v50 = vadd.f32 %v808_v1, %v4589_v8  ;;  %v650_v10 = vpop.f32.mrb[33].mxu0  ;;  %v810_v19 = vpop.f32.mrb[33].mxu1 }
 0x11f   :  { %v651_v12 = vadd.f32 %v650_v10, %v4593_v9  ;;  %v811_v13 = vadd.f32 %v810_v19, %v4593_v9  ;;  %v652_v14 = vpop.f32.mrb[34].mxu0  ;;  %v812_v15 = vpop.f32.mrb[34].mxu1 }
 0x120   :  { %v2459_v16 = vmax.f32 %v649_v6, 0.0  ;;  %v2779_v18 = vmax.f32 %v809_v50, 0.0  ;;  %v653_v20 = vadd.f32 %v652_v14, %v4589_v8  ;;  %v813_v21 = vadd.f32 %v812_v15, %v4589_v8  ;;  %v654_v22 = vpop.f32.mrb[35].mxu0  ;;  %v814_v23 = vpop.f32.mrb[35].mxu1 }
 0x121   :  { %v2460_v24 = vmax.f32 %v651_v12, 0.0  ;;  %v2780_v54 = vmax.f32 %v811_v13, 0.0  ;;  %v655_v25 = vadd.f32 %v654_v22, %v4593_v9  ;;  %v815_v26 = vadd.f32 %v814_v23, %v4593_v9 }
 0x122   :  { %v2954_v27 = vadd.f32 %v2953_v60, %v2459_v16  ;;  %v3417_v28 = vadd.f32 %v3416_v61, %v2779_v18  ;;  %v2469_v30 = vmax.f32 %v653_v20, 0.0  ;;  %v2789_v48 = vmax.f32 %v813_v21, 0.0  ;;  %3969 = vmatmul.mubr.msk.bf16.gmra.mrb[140].mxu1 %vm403_vm2, %v4320_v29  ;;  %4001 = vmatmul.mubr.msk.bf16.gmra.mrb[140].mxu0 %vm403_vm2, %v4320_v29 }
 0x123   :  { %v2991_v32 = vadd.f32 %v2990_v62, %v2460_v24  ;;  %v3454_v33 = vadd.f32 %v3453_v63, %v2780_v54  ;;  %v2470_v34 = vmax.f32 %v655_v25, 0.0  ;;  %v2790_v35 = vmax.f32 %v815_v26, 0.0  ;;  %1119 = vmatprep.mubr.bf16.mxu1 %v4196_v3  ;;  %1472 = vmatprep.mubr.bf16.mxu0 %v4196_v3 }
 0x124   :  { %v2955_v17 = vadd.f32 %v2954_v27, %v2469_v30  ;;  %v3418_v36 = vadd.f32 %v3417_v28, %v2789_v48 }
 0x125   :  { %v2992_v37 = vadd.f32 %v2991_v32, %v2470_v34  ;;  %v3455_v38 = vadd.f32 %v3454_v33, %v2790_v35  ;;  %v658_v39 = vpop.f32.mrb[36].mxu0  ;;  %v818_v40 = vpop.f32.mrb[36].mxu1 }
 0x126   :  { %v659_v41 = vadd.f32 %v658_v39, %v4589_v8  ;;  %v819_v42 = vadd.f32 %v818_v40, %v4589_v8  ;;  %v660_v43 = vpop.f32.mrb[37].mxu0  ;;  %v820_v29 = vpop.f32.mrb[37].mxu1 }
 0x127   :  { %v661_v44 = vadd.f32 %v660_v43, %v4593_v9  ;;  %v821_v52 = vadd.f32 %v820_v29, %v4593_v9  ;;  %v662_v45 = vpop.f32.mrb[38].mxu0  ;;  %v822_v47 = vpop.f32.mrb[38].mxu1 }
 0x128   :  { %v2479_v49 = vmax.f32 %v659_v41, 0.0  ;;  %v2799_v51 = vmax.f32 %v819_v42, 0.0  ;;  %v663_v46 = vadd.f32 %v662_v45, %v4589_v8  ;;  %v823_v53 = vadd.f32 %v822_v47, %v4589_v8  ;;  %v664_v55 = vpop.f32.mrb[39].mxu0  ;;  %v824_v56 = vpop.f32.mrb[39].mxu1 }
 0x129   :  { %v2480_v57 = vmax.f32 %v661_v44, 0.0  ;;  %v2800_v58 = vmax.f32 %v821_v52, 0.0  ;;  %v665_v59 = vadd.f32 %v664_v55, %v4593_v9  ;;  %v825_v11 = vadd.f32 %v824_v56, %v4593_v9 }
 0x12a   :  { %v2956_v60 = vadd.f32 %v2955_v17, %v2479_v49  ;;  %v3419_v61 = vadd.f32 %v3418_v36, %v2799_v51  ;;  %v2489_v62 = vmax.f32 %v663_v46, 0.0  ;;  %v2809_v63 = vmax.f32 %v823_v53, 0.0  ;;  %3970 = vmatmul.mubr.msk.bf16.gmra.mrb[144].mxu1 %vm403_vm2, %v4336_v31  ;;  %4002 = vmatmul.mubr.msk.bf16.gmra.mrb[144].mxu0 %vm403_vm2, %v4336_v31 }
 0x12b   :  { %v2993_v0 = vadd.f32 %v2992_v37, %v2480_v57  ;;  %v3456_v1 = vadd.f32 %v3455_v38, %v2800_v58  ;;  %v2490_v6 = vmax.f32 %v665_v59, 0.0  ;;  %v2810_v50 = vmax.f32 %v825_v11, 0.0  ;;  %1129 = vmatprep.mubr.bf16.mxu1 %v4196_v3  ;;  %1482 = vmatprep.mubr.bf16.mxu0 %v4196_v3  ;;  %v4150_v38 = vld [vmem:[%s5735_s0 + $0xa8] sm:$0xff]  }
 0x12c   :  { %v2957_v10 = vadd.f32 %v2956_v60, %v2489_v62  ;;  %v3420_v19 = vadd.f32 %v3419_v61, %v2809_v63 }
 0x12d   :  { %v2994_v12 = vadd.f32 %v2993_v0, %v2490_v6  ;;  %v3457_v13 = vadd.f32 %v3456_v1, %v2810_v50  ;;  %v668_v14 = vpop.f32.mrb[40].mxu0  ;;  %v828_v15 = vpop.f32.mrb[40].mxu1 }
 0x12e   :  { %v669_v16 = vadd.f32 %v668_v14, %v4589_v8  ;;  %v829_v18 = vadd.f32 %v828_v15, %v4589_v8  ;;  %v670_v20 = vpop.f32.mrb[41].mxu0  ;;  %v830_v31 = vpop.f32.mrb[41].mxu1  ;;  %v4151_v14 = vld [vmem:[%s5735_s0 + $0xb0] sm:$0xff]  }
 0x12f   :  { %v671_v21 = vadd.f32 %v670_v20, %v4593_v9  ;;  %v831_v22 = vadd.f32 %v830_v31, %v4593_v9  ;;  %v672_v23 = vpop.f32.mrb[42].mxu0  ;;  %v832_v24 = vpop.f32.mrb[42].mxu1 }
 0x130   :  { %v2499_v54 = vmax.f32 %v669_v16, 0.0  ;;  %v2819_v25 = vmax.f32 %v829_v18, 0.0  ;;  %v673_v26 = vadd.f32 %v672_v23, %v4589_v8  ;;  %v833_v27 = vadd.f32 %v832_v24, %v4589_v8  ;;  %v674_v28 = vpop.f32.mrb[43].mxu0  ;;  %v834_v30 = vpop.f32.mrb[43].mxu1 }
 0x131   :  { %v2500_v48 = vmax.f32 %v671_v21, 0.0  ;;  %v2820_v32 = vmax.f32 %v831_v22, 0.0  ;;  %v675_v33 = vadd.f32 %v674_v28, %v4593_v9  ;;  %v835_v34 = vadd.f32 %v834_v30, %v4593_v9 }
 0x132   :  { %v2958_v35 = vadd.f32 %v2957_v10, %v2499_v54  ;;  %v3421_v17 = vadd.f32 %v3420_v19, %v2819_v25  ;;  %v2509_v36 = vmax.f32 %v673_v26, 0.0  ;;  %v2829_v37 = vmax.f32 %v833_v27, 0.0  ;;  %3971 = vmatmul.mubr.msk.bf16.gmra.mrb[148].mxu1 %vm403_vm2, %v4150_v38  ;;  %4003 = vmatmul.mubr.msk.bf16.gmra.mrb[148].mxu0 %vm403_vm2, %v4150_v38 }
 0x133   :  { %v2995_v39 = vadd.f32 %v2994_v12, %v2500_v48  ;;  %v3458_v40 = vadd.f32 %v3457_v13, %v2820_v32  ;;  %v2510_v41 = vmax.f32 %v675_v33, 0.0  ;;  %v2830_v42 = vmax.f32 %v835_v34, 0.0  ;;  %1139 = vmatprep.mubr.bf16.mxu1 %v4196_v3  ;;  %1492 = vmatprep.mubr.bf16.mxu0 %v4196_v3 }
 0x134   :  { %v2959_v43 = vadd.f32 %v2958_v35, %v2509_v36  ;;  %v3422_v29 = vadd.f32 %v3421_v17, %v2829_v37 }
 0x135   :  { %v2996_v44 = vadd.f32 %v2995_v39, %v2510_v41  ;;  %v3459_v52 = vadd.f32 %v3458_v40, %v2830_v42  ;;  %v678_v45 = vpop.f32.mrb[44].mxu0  ;;  %v838_v47 = vpop.f32.mrb[44].mxu1 }
 0x136   :  { %v679_v49 = vadd.f32 %v678_v45, %v4589_v8  ;;  %v839_v51 = vadd.f32 %v838_v47, %v4589_v8  ;;  %v680_v46 = vpop.f32.mrb[45].mxu0  ;;  %v840_v53 = vpop.f32.mrb[45].mxu1  ;;  %v4152_v45 = vld [vmem:[%s5735_s0 + $0xb8] sm:$0xff]  }
 0x137   :  { %v681_v55 = vadd.f32 %v680_v46, %v4593_v9  ;;  %v841_v56 = vadd.f32 %v840_v53, %v4593_v9  ;;  %v682_v57 = vpop.f32.mrb[46].mxu0  ;;  %v842_v58 = vpop.f32.mrb[46].mxu1 }
 0x138   :  { %v2519_v59 = vmax.f32 %v679_v49, 0.0  ;;  %v2839_v11 = vmax.f32 %v839_v51, 0.0  ;;  %v683_v60 = vadd.f32 %v682_v57, %v4589_v8  ;;  %v843_v61 = vadd.f32 %v842_v58, %v4589_v8  ;;  %v684_v62 = vpop.f32.mrb[47].mxu0  ;;  %v844_v63 = vpop.f32.mrb[47].mxu1 }
 0x139   :  { %v2520_v0 = vmax.f32 %v681_v55, 0.0  ;;  %v2840_v1 = vmax.f32 %v841_v56, 0.0  ;;  %v685_v6 = vadd.f32 %v684_v62, %v4593_v9  ;;  %v845_v50 = vadd.f32 %v844_v63, %v4593_v9 }
 0x13a   :  { %v2960_v10 = vadd.f32 %v2959_v43, %v2519_v59  ;;  %v3423_v19 = vadd.f32 %v3422_v29, %v2839_v11  ;;  %v2529_v12 = vmax.f32 %v683_v60, 0.0  ;;  %v2849_v13 = vmax.f32 %v843_v61, 0.0  ;;  %3972 = vmatmul.mubr.msk.bf16.gmra.mrb[152].mxu1 %vm403_vm2, %v4151_v14  ;;  %4004 = vmatmul.mubr.msk.bf16.gmra.mrb[152].mxu0 %vm403_vm2, %v4151_v14 }
 0x13b   :  { %v2997_v15 = vadd.f32 %v2996_v44, %v2520_v0  ;;  %v3460_v16 = vadd.f32 %v3459_v52, %v2840_v1  ;;  %v2530_v18 = vmax.f32 %v685_v6, 0.0  ;;  %v2850_v20 = vmax.f32 %v845_v50, 0.0  ;;  %1149 = vmatprep.mubr.bf16.mxu1 %v4196_v3  ;;  %1502 = vmatprep.mubr.bf16.mxu0 %v4196_v3 }
 0x13c   :  { %v2961_v31 = vadd.f32 %v2960_v10, %v2529_v12  ;;  %v3424_v21 = vadd.f32 %v3423_v19, %v2849_v13 }
 0x13d   :  { %v2998_v22 = vadd.f32 %v2997_v15, %v2530_v18  ;;  %v3461_v23 = vadd.f32 %v3460_v16, %v2850_v20  ;;  %v688_v24 = vpop.f32.mrb[48].mxu0  ;;  %v848_v54 = vpop.f32.mrb[48].mxu1 }
 0x13e   :  { %v689_v25 = vadd.f32 %v688_v24, %v4589_v8  ;;  %v849_v26 = vadd.f32 %v848_v54, %v4589_v8  ;;  %v690_v27 = vpop.f32.mrb[49].mxu0  ;;  %v850_v28 = vpop.f32.mrb[49].mxu1  ;;  %v4153_v24 = vld [vmem:[%s5735_s0 + $0xc0] sm:$0xff]  }
 0x13f   :  { %v691_v30 = vadd.f32 %v690_v27, %v4593_v9  ;;  %v851_v48 = vadd.f32 %v850_v28, %v4593_v9  ;;  %v692_v32 = vpop.f32.mrb[50].mxu0  ;;  %v852_v33 = vpop.f32.mrb[50].mxu1 }
 0x140   :  { %v2539_v34 = vmax.f32 %v689_v25, 0.0  ;;  %v2859_v35 = vmax.f32 %v849_v26, 0.0  ;;  %v693_v17 = vadd.f32 %v692_v32, %v4589_v8  ;;  %v853_v36 = vadd.f32 %v852_v33, %v4589_v8  ;;  %v694_v37 = vpop.f32.mrb[51].mxu0  ;;  %v854_v38 = vpop.f32.mrb[51].mxu1 }
 0x141   :  { %v2540_v39 = vmax.f32 %v691_v30, 0.0  ;;  %v2860_v40 = vmax.f32 %v851_v48, 0.0  ;;  %v695_v41 = vadd.f32 %v694_v37, %v4593_v9  ;;  %v855_v42 = vadd.f32 %v854_v38, %v4593_v9 }
 0x142   :  { %v2962_v43 = vadd.f32 %v2961_v31, %v2539_v34  ;;  %v3425_v29 = vadd.f32 %v3424_v21, %v2859_v35  ;;  %v2549_v44 = vmax.f32 %v693_v17, 0.0  ;;  %v2869_v52 = vmax.f32 %v853_v36, 0.0  ;;  %3973 = vmatmul.mubr.msk.bf16.gmra.mrb[156].mxu1 %vm403_vm2, %v4152_v45  ;;  %4005 = vmatmul.mubr.msk.bf16.gmra.mrb[156].mxu0 %vm403_vm2, %v4152_v45 }
 0x143   :  { %v2999_v47 = vadd.f32 %v2998_v22, %v2540_v39  ;;  %v3462_v49 = vadd.f32 %v3461_v23, %v2860_v40  ;;  %v2550_v51 = vmax.f32 %v695_v41, 0.0  ;;  %v2870_v46 = vmax.f32 %v855_v42, 0.0  ;;  %1159 = vmatprep.mubr.bf16.mxu1 %v4196_v3  ;;  %1512 = vmatprep.mubr.bf16.mxu0 %v4196_v3 }
 0x144   :  { %v2963_v53 = vadd.f32 %v2962_v43, %v2549_v44  ;;  %v3426_v55 = vadd.f32 %v3425_v29, %v2869_v52  ;;  %v113_v38 = vsub.s32 2, %v4574_v4  ;;  %v117_v39 = vsub.s32 3, %v4574_v4 }
 0x145   :  { %v3000_v56 = vadd.f32 %v2999_v47, %v2550_v51  ;;  %v3463_v57 = vadd.f32 %v3462_v49, %v2870_v46  ;;  %v698_v58 = vpop.f32.mrb[52].mxu0  ;;  %v858_v59 = vpop.f32.mrb[52].mxu1  ;;  %v121_v29 = vsub.s32 4, %v4574_v4  ;;  %v125_v44 = vsub.s32 5, %v4574_v4 }
 0x146   :  { %v699_v11 = vadd.f32 %v698_v58, %v4589_v8  ;;  %v859_v60 = vadd.f32 %v858_v59, %v4589_v8  ;;  %v700_v61 = vpop.f32.mrb[53].mxu0  ;;  %v860_v62 = vpop.f32.mrb[53].mxu1 }
 0x147   :  { %v701_v63 = vadd.f32 %v700_v61, %v4593_v9  ;;  %v861_v0 = vadd.f32 %v860_v62, %v4593_v9  ;;  %v702_v1 = vpop.f32.mrb[54].mxu0  ;;  %v862_v6 = vpop.f32.mrb[54].mxu1  ;;  %v4154_v61 = vld [vmem:[%s5735_s0 + $0xc8] sm:$0xff]  }
 0x148   :  { %v2559_v50 = vmax.f32 %v699_v11, 0.0  ;;  %v2879_v10 = vmax.f32 %v859_v60, 0.0  ;;  %v703_v19 = vadd.f32 %v702_v1, %v4589_v8  ;;  %v863_v12 = vadd.f32 %v862_v6, %v4589_v8  ;;  %v704_v13 = vpop.f32.mrb[55].mxu0  ;;  %v864_v14 = vpop.f32.mrb[55].mxu1 }
 0x149   :  { %v2560_v15 = vmax.f32 %v701_v63, 0.0  ;;  %v2880_v16 = vmax.f32 %v861_v0, 0.0  ;;  %v705_v18 = vadd.f32 %v704_v13, %v4593_v9  ;;  %v865_v20 = vadd.f32 %v864_v14, %v4593_v9 }
 0x14a   :  { %v2964_v31 = vadd.f32 %v2963_v53, %v2559_v50  ;;  %v3427_v21 = vadd.f32 %v3426_v55, %v2879_v10  ;;  %v2569_v22 = vmax.f32 %v703_v19, 0.0  ;;  %v2889_v23 = vmax.f32 %v863_v12, 0.0  ;;  %3974 = vmatmul.mubr.msk.bf16.gmra.mrb[160].mxu1 %vm403_vm2, %v4153_v24  ;;  %4006 = vmatmul.mubr.msk.bf16.gmra.mrb[160].mxu0 %vm403_vm2, %v4153_v24 }
 0x14b   :  { %v3001_v54 = vadd.f32 %v3000_v56, %v2560_v15  ;;  %v3464_v25 = vadd.f32 %v3463_v57, %v2880_v16  ;;  %v2570_v26 = vmax.f32 %v705_v18, 0.0  ;;  %v2890_v27 = vmax.f32 %v865_v20, 0.0  ;;  %1169 = vmatprep.mubr.bf16.mxu1 %v4196_v3  ;;  %1522 = vmatprep.mubr.bf16.mxu0 %v4196_v3  ;;  %v4155_v20 = vld [vmem:[%s5736_s2] sm:$0xff] }
 0x14c   :  { %v2965_v28 = vadd.f32 %v2964_v31, %v2569_v22  ;;  %v3428_v30 = vadd.f32 %v3427_v21, %v2889_v23  ;;  %v4821_v31 = vrot.slane %v4155_v20, %v113_v38  ;;  %v4823_v21 = vrot.slane %v4155_v20, %v117_v39 }
 0x14d   :  { %v3002_v48 = vadd.f32 %v3001_v54, %v2570_v26  ;;  %v3465_v32 = vadd.f32 %v3464_v25, %v2890_v27  ;;  %v708_v33 = vpop.f32.mrb[56].mxu0  ;;  %v868_v34 = vpop.f32.mrb[56].mxu1  ;;  %v4827_v25 = vrot.slane %v4155_v20, %v121_v29  ;;  %v4829_v26 = vrot.slane %v4155_v20, %v125_v44 }
 0x14e   :  { %v709_v35 = vadd.f32 %v708_v33, %v4589_v8  ;;  %v869_v17 = vadd.f32 %v868_v34, %v4589_v8  ;;  %v710_v36 = vpop.f32.mrb[57].mxu0  ;;  %v870_v37 = vpop.f32.mrb[57].mxu1 }
 0x14f   :  { %v711_v40 = vadd.f32 %v710_v36, %v4593_v9  ;;  %v871_v41 = vadd.f32 %v870_v37, %v4593_v9  ;;  %v712_v42 = vpop.f32.mrb[58].mxu0  ;;  %v872_v43 = vpop.f32.mrb[58].mxu1 }
 0x150   :  { %v2579_v52 = vmax.f32 %v709_v35, 0.0  ;;  %v2899_v45 = vmax.f32 %v869_v17, 0.0  ;;  %v713_v47 = vadd.f32 %v712_v42, %v4589_v8  ;;  %v873_v49 = vadd.f32 %v872_v43, %v4589_v8  ;;  %v714_v51 = vpop.f32.mrb[59].mxu0  ;;  %v874_v46 = vpop.f32.mrb[59].mxu1 }
 0x151   :  { %v2580_v53 = vmax.f32 %v711_v40, 0.0  ;;  %v2900_v55 = vmax.f32 %v871_v41, 0.0  ;;  %v715_v56 = vadd.f32 %v714_v51, %v4593_v9  ;;  %v875_v57 = vadd.f32 %v874_v46, %v4593_v9  ;;  %v4156_v41 = vld [vmem:[%s5735_s0 + $0xd0] sm:$0xff]  }
 0x152   :  { %v2966_v58 = vadd.f32 %v2965_v28, %v2579_v52  ;;  %v3429_v59 = vadd.f32 %v3428_v30, %v2899_v45  ;;  %v2589_v11 = vmax.f32 %v713_v47, 0.0  ;;  %v2909_v60 = vmax.f32 %v873_v49, 0.0  ;;  %3975 = vmatmul.mubr.msk.bf16.gmra.mrb[164].mxu1 %vm403_vm2, %v4154_v61  ;;  %4007 = vmatmul.mubr.msk.bf16.gmra.mrb[164].mxu0 %vm403_vm2, %v4154_v61 }
 0x153   :  { %v3003_v62 = vadd.f32 %v3002_v48, %v2580_v53  ;;  %v3466_v63 = vadd.f32 %v3465_v32, %v2900_v55  ;;  %v2590_v0 = vmax.f32 %v715_v56, 0.0  ;;  %v2910_v1 = vmax.f32 %v875_v57, 0.0  ;;  %1179 = vmatprep.mubr.bf16.mxu1 %v4196_v3  ;;  %1532 = vmatprep.mubr.bf16.mxu0 %v4196_v3 }
 0x154   :  { %v2967_v6 = vadd.f32 %v2966_v58, %v2589_v11  ;;  %v3430_v50 = vadd.f32 %v3429_v59, %v2909_v60 }
 0x155   :  { %v3004_v10 = vadd.f32 %v3003_v62, %v2590_v0  ;;  %v3467_v19 = vadd.f32 %v3466_v63, %v2910_v1  ;;  %v718_v12 = vpop.f32.mrb[60].mxu0  ;;  %v878_v13 = vpop.f32.mrb[60].mxu1 }
 0x156   :  { %v719_v14 = vadd.f32 %v718_v12, %v4589_v8  ;;  %v879_v15 = vadd.f32 %v878_v13, %v4589_v8  ;;  %v720_v16 = vpop.f32.mrb[61].mxu0  ;;  %v880_v18 = vpop.f32.mrb[61].mxu1 }
 0x157   :  { %v721_v22 = vadd.f32 %v720_v16, %v4593_v9  ;;  %v881_v23 = vadd.f32 %v880_v18, %v4593_v9  ;;  %v722_v24 = vpop.f32.mrb[62].mxu0  ;;  %v882_v54 = vpop.f32.mrb[62].mxu1 }
 0x158   :  { %v2599_v27 = vmax.f32 %v719_v14, 0.0  ;;  %v2919_v28 = vmax.f32 %v879_v15, 0.0  ;;  %v723_v30 = vadd.f32 %v722_v24, %v4589_v8  ;;  %v883_v48 = vadd.f32 %v882_v54, %v4589_v8  ;;  %v724_v32 = vpop.f32.mrb[63].mxu0  ;;  %v884_v33 = vpop.f32.mrb[63].mxu1 }
 0x159   :  { %v2600_v34 = vmax.f32 %v721_v22, 0.0  ;;  %v2920_v35 = vmax.f32 %v881_v23, 0.0  ;;  %v725_v17 = vadd.f32 %v724_v32, %v4593_v9  ;;  %v885_v36 = vadd.f32 %v884_v33, %v4593_v9  ;;  %v4157_v22 = vld [vmem:[%s5735_s0 + $0xd8] sm:$0xff]  }
 0x15a   :  { %v2968_v37 = vadd.f32 %v2967_v6, %v2599_v27  ;;  %v3431_v38 = vadd.f32 %v3430_v50, %v2919_v28  ;;  %v2609_v39 = vmax.f32 %v723_v30, 0.0  ;;  %v2929_v40 = vmax.f32 %v883_v48, 0.0  ;;  %3976 = vmatmul.mubr.msk.bf16.gmra.mrb[168].mxu1 %vm403_vm2, %v4156_v41  ;;  %4008 = vmatmul.mubr.msk.bf16.gmra.mrb[168].mxu0 %vm403_vm2, %v4156_v41 }
 0x15b   :  { %v3005_v8 = vadd.f32 %v3004_v10, %v2600_v34  ;;  %v3468_v42 = vadd.f32 %v3467_v19, %v2920_v35  ;;  %v2610_v43 = vmax.f32 %v725_v17, 0.0  ;;  %v2930_v29 = vmax.f32 %v885_v36, 0.0  ;;  %1189 = vmatprep.mubr.bf16.mxu1 %v4196_v3  ;;  %1542 = vmatprep.mubr.bf16.mxu0 %v4196_v3 }
 0x15c   :  { %v2969_v9 = vadd.f32 %v2968_v37, %v2609_v39  ;;  %v3432_v44 = vadd.f32 %v3431_v38, %v2929_v40 }
 0x15d   :  { %v3006_v52 = vadd.f32 %v3005_v8, %v2610_v43  ;;  %v3469_v45 = vadd.f32 %v3468_v42, %v2930_v29  ;;  %v921_v47 = vpop.f32.mrb[64].mxu1  ;;  %v1274_v49 = vpop.f32.mrb[64].mxu0 }
 0x15e   :  { %v2970_v51 = vrot.slane %v2969_v9, 4  ;;  %v3433_v46 = vrot.slane %v3432_v44, 4  ;;  %v922_v53 = vadd.f32 %v921_v47, %v4821_v31  ;;  %v923_v55 = vpop.f32.mrb[65].mxu1  ;;  %v1275_v56 = vadd.f32 %v1274_v49, %v4827_v25  ;;  %v1276_v57 = vpop.f32.mrb[65].mxu0 }
 0x15f   :  { %v3007_v58 = vrot.slane %v3006_v52, 4  ;;  %v3470_v59 = vrot.slane %v3469_v45, 4  ;;  %v924_v11 = vadd.f32 %v923_v55, %v4823_v21  ;;  %v925_v60 = vpop.f32.mrb[66].mxu1  ;;  %v1277_v61 = vadd.f32 %v1276_v57, %v4829_v26  ;;  %v1278_v62 = vpop.f32.mrb[66].mxu0 }
 0x160   :  { %v2971_v63 = vadd.f32 %v2970_v51, %v2969_v9  ;;  %v3434_v0 = vadd.f32 %v3433_v46, %v3432_v44  ;;  %v2301_v1 = vmax.f32 %v922_v53, 0.0  ;;  %v926_v6 = vadd.f32 %v925_v60, %v4821_v31  ;;  %v927_v50 = vpop.f32.mrb[67].mxu1  ;;  %v1280_v10 = vpop.f32.mrb[67].mxu0 }
 0x161   :  { %v3008_v19 = vadd.f32 %v3007_v58, %v3006_v52  ;;  %v3471_v12 = vadd.f32 %v3470_v59, %v3469_v45  ;;  %v2302_v13 = vmax.f32 %v924_v11, 0.0  ;;  %v2303_v14 = vmax.f32 %v1275_v56, 0.0 }
 0x162   :  { %v2972_v15 = vrot.slane %v2971_v63, 2  ;;  %v3435_v16 = vrot.slane %v3434_v0, 2  ;;  %v2311_v18 = vmax.f32 %v926_v6, 0.0  ;;  %v928_v20 = vadd.f32 %v927_v50, %v4823_v21  ;;  %3977 = vmatmul.mubr.msk.bf16.gmra.mrb[172].mxu1 %vm403_vm2, %v4157_v22  ;;  %4009 = vmatmul.mubr.msk.bf16.gmra.mrb[172].mxu0 %vm403_vm2, %v4157_v22 }
 0x163   :  { %v3009_v23 = vrot.slane %v3008_v19, 2  ;;  %v3472_v24 = vrot.slane %v3471_v12, 2  ;;  %v2304_v54 = vmax.f32 %v1277_v61, 0.0  ;;  %v1279_v27 = vadd.f32 %v1278_v62, %v4827_v25  ;;  %1199 = vmatprep.mubr.bf16.mxu1 %v4196_v3  ;;  %1552 = vmatprep.mubr.bf16.mxu0 %v4196_v3 }
 0x164   :  { %v2973_v28 = vadd.f32 %v2972_v15, %v2971_v63  ;;  %v3436_v30 = vadd.f32 %v3435_v16, %v3434_v0  ;;  %v3013_v48 = vadd.f32 %v2311_v18, %v2301_v1  ;;  %v2312_v32 = vmax.f32 %v928_v20, 0.0  ;;  %v4158_v63 = vld [vmem:[%s5735_s0 + $0xe0] sm:$0xff]  }
 0x165   :  { %v3010_v33 = vadd.f32 %v3009_v23, %v3008_v19  ;;  %v3473_v34 = vadd.f32 %v3472_v24, %v3471_v12  ;;  %v2313_v35 = vmax.f32 %v1279_v27, 0.0  ;;  %v1281_v17 = vadd.f32 %v1280_v10, %v4829_v26  ;;  %v931_v36 = vpop.f32.mrb[68].mxu1  ;;  %v1284_v37 = vpop.f32.mrb[68].mxu0 }
 0x166   :  { %v2974_v38 = vrot.slane %v2973_v28, 1  ;;  %v3437_v39 = vrot.slane %v3436_v30, 1  ;;  %v3050_v40 = vadd.f32 %v2312_v32, %v2302_v13  ;;  %v932_v41 = vadd.f32 %v931_v36, %v4821_v31  ;;  %v933_v8 = vpop.f32.mrb[69].mxu1  ;;  %v1286_v42 = vpop.f32.mrb[69].mxu0 }
 0x167   :  { %v3011_v43 = vrot.slane %v3010_v33, 1  ;;  %v3474_v29 = vrot.slane %v3473_v34, 1  ;;  %v3087_v9 = vadd.f32 %v2313_v35, %v2303_v14  ;;  %v2314_v44 = vmax.f32 %v1281_v17, 0.0  ;;  %v935_v52 = vpop.f32.mrb[70].mxu1  ;;  %v1288_v45 = vpop.f32.mrb[70].mxu0 }
 0x168   :  { %v2975_v47 = vadd.f32 %v2974_v38, %v2973_v28  ;;  %v3438_v49 = vadd.f32 %v3437_v39, %v3436_v30  ;;  %v2321_v51 = vmax.f32 %v932_v41, 0.0  ;;  %v1285_v46 = vadd.f32 %v1284_v37, %v4827_v25  ;;  %v937_v53 = vpop.f32.mrb[71].mxu1  ;;  %v1290_v55 = vpop.f32.mrb[71].mxu0 }
 0x169   :  { %v3012_v56 = vadd.f32 %v3011_v43, %v3010_v33  ;;  %v3475_v57 = vadd.f32 %v3474_v29, %v3473_v34  ;;  %v3124_v58 = vadd.f32 %v2314_v44, %v2304_v54  ;;  %v934_v59 = vadd.f32 %v933_v8, %v4823_v21 }
 0x16a   :  { %v4860_v11 = vmul.f32 0.00390625, %v2975_v47  ;;  %v4862_v60 = vmul.f32 0.00390625, %v3438_v49  ;;  %v3014_v61 = vadd.f32 %v3013_v48, %v2321_v51  ;;  %v2323_v62 = vmax.f32 %v1285_v46, 0.0  ;;  %3978 = vmatmul.mubr.msk.bf16.gmra.mrb[176].mxu1 %vm403_vm2, %v4158_v63  ;;  %4010 = vmatmul.mubr.msk.bf16.gmra.mrb[176].mxu0 %vm403_vm2, %v4158_v63 }
 0x16b   :  { %v4869_v0 = vmul.f32 0.00390625, %v3012_v56  ;;  %v4871_v1 = vmul.f32 0.00390625, %v3475_v57  ;;  %v2322_v6 = vmax.f32 %v934_v59, 0.0  ;;  %v1287_v50 = vadd.f32 %v1286_v42, %v4829_v26  ;;  %1209 = vmatprep.mubr.bf16.mxu1 %v4196_v3  ;;  %1562 = vmatprep.mubr.bf16.mxu0 %v4196_v3 }
 0x16c   :  { %v3088_v10 = vadd.f32 %v3087_v9, %v2323_v62  ;;  %v936_v19 = vadd.f32 %v935_v52, %v4821_v31  ;;  %v1289_v12 = vadd.f32 %v1288_v45, %v4827_v25  ;;  %v938_v13 = vadd.f32 %v937_v53, %v4823_v21  ;;  %v4159_v52 = vld [vmem:[%s5735_s0 + $0xe8] sm:$0xff]  }
 0x16d   :  { %v3329_v14 = vcombine.low %v4860_v11, %v4869_v0  ;;  %v3792_v15 = vcombine.low %v4862_v60, %v4871_v1  ;;  %v3051_v16 = vadd.f32 %v3050_v40, %v2322_v6  ;;  %v2324_v18 = vmax.f32 %v1287_v50, 0.0  ;;  %v941_v20 = vpop.f32.mrb[72].mxu1  ;;  %v1294_v22 = vpop.f32.mrb[72].mxu0 }
 0x16e   :  { %v2331_v23 = vmax.f32 %v936_v19, 0.0  ;;  %v2333_v24 = vmax.f32 %v1289_v12, 0.0  ;;  %v2332_v54 = vmax.f32 %v938_v13, 0.0  ;;  %v1291_v27 = vadd.f32 %v1290_v55, %v4829_v26  ;;  %v943_v28 = vpop.f32.mrb[73].mxu1  ;;  %v1296_v30 = vpop.f32.mrb[73].mxu0 }
 0x16f   :  { %v3125_v48 = vadd.f32 %v3124_v58, %v2324_v18  ;;  %v942_v32 = vadd.f32 %v941_v20, %v4821_v31  ;;  %v945_v33 = vpop.f32.mrb[74].mxu1  ;;  %v1298_v34 = vpop.f32.mrb[74].mxu0  ;;  %v1295_v41 = vadd.f32 %v1294_v22, %v4827_v25  ;;  %v944_v8 = vadd.f32 %v943_v28, %v4823_v21 }
 0x170   :  { %v3015_v35 = vadd.f32 %v3014_v61, %v2331_v23  ;;  %v3089_v17 = vadd.f32 %v3088_v10, %v2333_v24  ;;  %v3052_v36 = vadd.f32 %v3051_v16, %v2332_v54  ;;  %v2334_v37 = vmax.f32 %v1291_v27, 0.0  ;;  %v947_v38 = vpop.f32.mrb[75].mxu1  ;;  %v1300_v39 = vpop.f32.mrb[75].mxu0 }
 0x171   :  { %v2341_v40 = vmax.f32 %v942_v32, 0.0  ;;  %v1297_v42 = vadd.f32 %v1296_v30, %v4829_v26  ;;  %v946_v29 = vadd.f32 %v945_v33, %v4821_v31  ;;  %v1299_v9 = vadd.f32 %v1298_v34, %v4827_v25 }
 0x172   :  { %v3126_v43 = vadd.f32 %v3125_v48, %v2334_v37  ;;  %v948_v44 = vadd.f32 %v947_v38, %v4823_v21  ;;  %3979 = vmatmul.mubr.msk.bf16.gmra.mrb[180].mxu1 %vm403_vm2, %v4159_v52  ;;  %v2343_v47 = vmax.f32 %v1295_v41, 0.0  ;;  %v2342_v49 = vmax.f32 %v944_v8, 0.0  ;;  %4011 = vmatmul.mubr.msk.bf16.gmra.mrb[180].mxu0 %vm403_vm2, %v4159_v52 }
 0x173   :  { %v3016_v45 = vadd.f32 %v3015_v35, %v2341_v40  ;;  %v2344_v51 = vmax.f32 %v1297_v42, 0.0  ;;  %1219 = vmatprep.mubr.bf16.mxu1 %v4196_v3  ;;  %v2351_v46 = vmax.f32 %v946_v29, 0.0  ;;  %v2353_v53 = vmax.f32 %v1299_v9, 0.0  ;;  %1572 = vmatprep.mubr.bf16.mxu0 %v4196_v3 }
 0x174   :  { %v2352_v55 = vmax.f32 %v948_v44, 0.0  ;;  %v1301_v56 = vadd.f32 %v1300_v39, %v4829_v26  ;;  %v3090_v57 = vadd.f32 %v3089_v17, %v2343_v47  ;;  %v3053_v58 = vadd.f32 %v3052_v36, %v2342_v49  ;;  %v4160_v39 = vld [vmem:[%s5735_s0 + $0xf0] sm:$0xff]  }
 0x175   :  { %v3127_v59 = vadd.f32 %v3126_v43, %v2344_v51  ;;  %v951_v61 = vpop.f32.mrb[76].mxu1  ;;  %v1304_v62 = vpop.f32.mrb[76].mxu0  ;;  %v3017_v63 = vadd.f32 %v3016_v45, %v2351_v46 }
 0x176   :  { %v2354_v6 = vmax.f32 %v1301_v56, 0.0  ;;  %v952_v50 = vadd.f32 %v951_v61, %v4821_v31  ;;  %v1305_v10 = vadd.f32 %v1304_v62, %v4827_v25  ;;  %v953_v19 = vpop.f32.mrb[77].mxu1  ;;  %v1306_v12 = vpop.f32.mrb[77].mxu0  ;;  %v3091_v13 = vadd.f32 %v3090_v57, %v2353_v53 }
 0x177   :  { %v3054_v16 = vadd.f32 %v3053_v58, %v2352_v55  ;;  %v954_v18 = vadd.f32 %v953_v19, %v4823_v21  ;;  %v1307_v20 = vadd.f32 %v1306_v12, %v4829_v26  ;;  %v955_v22 = vpop.f32.mrb[78].mxu1  ;;  %v1308_v23 = vpop.f32.mrb[78].mxu0 }
 0x178   :  { %v3128_v24 = vadd.f32 %v3127_v59, %v2354_v6  ;;  %v2361_v54 = vmax.f32 %v952_v50, 0.0  ;;  %v2363_v27 = vmax.f32 %v1305_v10, 0.0  ;;  %v956_v28 = vadd.f32 %v955_v22, %v4821_v31  ;;  %v957_v30 = vpop.f32.mrb[79].mxu1  ;;  %v1310_v48 = vpop.f32.mrb[79].mxu0 }
 0x179   :  { %v2362_v32 = vmax.f32 %v954_v18, 0.0  ;;  %v2364_v33 = vmax.f32 %v1307_v20, 0.0  ;;  %v1309_v34 = vadd.f32 %v1308_v23, %v4827_v25  ;;  %v958_v35 = vadd.f32 %v957_v30, %v4823_v21  ;;  %v4161_v23 = vld [vmem:[%s5735_s0 + $0xf8] sm:$0xff]  }
 0x17a   :  { %v3018_v17 = vadd.f32 %v3017_v63, %v2361_v54  ;;  %v3092_v36 = vadd.f32 %v3091_v13, %v2363_v27  ;;  %v2371_v37 = vmax.f32 %v956_v28, 0.0  ;;  %v1311_v38 = vadd.f32 %v1310_v48, %v4829_v26  ;;  %3980 = vmatmul.mubr.msk.bf16.gmra.mrb[184].mxu1 %vm403_vm2, %v4160_v39  ;;  %4012 = vmatmul.mubr.msk.bf16.gmra.mrb[184].mxu0 %vm403_vm2, %v4160_v39 }
 0x17b   :  { %v3055_v40 = vadd.f32 %v3054_v16, %v2362_v32  ;;  %v3129_v41 = vadd.f32 %v3128_v24, %v2364_v33  ;;  %v2373_v8 = vmax.f32 %v1309_v34, 0.0  ;;  %v2372_v42 = vmax.f32 %v958_v35, 0.0  ;;  %1229 = vmatprep.mubr.bf16.mxu1 %v4196_v3  ;;  %1582 = vmatprep.mubr.bf16.mxu0 %v4196_v3 }
 0x17c   :  { %v3019_v43 = vadd.f32 %v3018_v17, %v2371_v37  ;;  %v2374_v29 = vmax.f32 %v1311_v38, 0.0 }
 0x17d   :  { %v3093_v9 = vadd.f32 %v3092_v36, %v2373_v8  ;;  %v3056_v44 = vadd.f32 %v3055_v40, %v2372_v42  ;;  %v961_v52 = vpop.f32.mrb[80].mxu1  ;;  %v1314_v45 = vpop.f32.mrb[80].mxu0 }
 0x17e   :  { %v3130_v47 = vadd.f32 %v3129_v41, %v2374_v29  ;;  %v962_v49 = vadd.f32 %v961_v52, %v4821_v31  ;;  %v1315_v51 = vadd.f32 %v1314_v45, %v4827_v25  ;;  %v963_v46 = vpop.f32.mrb[81].mxu1  ;;  %v1316_v53 = vpop.f32.mrb[81].mxu0 }
 0x17f   :  { %v964_v55 = vadd.f32 %v963_v46, %v4823_v21  ;;  %v1317_v56 = vadd.f32 %v1316_v53, %v4829_v26  ;;  %v965_v57 = vpop.f32.mrb[82].mxu1  ;;  %v1318_v58 = vpop.f32.mrb[82].mxu0 }
 0x180   :  { %v2381_v59 = vmax.f32 %v962_v49, 0.0  ;;  %v2383_v61 = vmax.f32 %v1315_v51, 0.0  ;;  %v966_v62 = vadd.f32 %v965_v57, %v4821_v31  ;;  %v1319_v63 = vadd.f32 %v1318_v58, %v4827_v25  ;;  %v967_v6 = vpop.f32.mrb[83].mxu1  ;;  %v1320_v50 = vpop.f32.mrb[83].mxu0  ;;  %v4162_v57 = vld [vmem:[%s5735_s0] sm:$0xff]  }
 0x181   :  { %v2382_v10 = vmax.f32 %v964_v55, 0.0  ;;  %v2384_v19 = vmax.f32 %v1317_v56, 0.0  ;;  %v968_v12 = vadd.f32 %v967_v6, %v4823_v21  ;;  %v1321_v13 = vadd.f32 %v1320_v50, %v4829_v26 }
 0x182   :  { %v3020_v16 = vadd.f32 %v3019_v43, %v2381_v59  ;;  %v3094_v18 = vadd.f32 %v3093_v9, %v2383_v61  ;;  %v2391_v20 = vmax.f32 %v966_v62, 0.0  ;;  %v2393_v22 = vmax.f32 %v1319_v63, 0.0  ;;  %3981 = vmatmul.mubr.msk.bf16.gmra.mrb[188].mxu1 %vm403_vm2, %v4161_v23  ;;  %4013 = vmatmul.mubr.msk.bf16.gmra.mrb[188].mxu0 %vm403_vm2, %v4161_v23 }
 0x183   :  { %v3057_v24 = vadd.f32 %v3056_v44, %v2382_v10  ;;  %v3131_v54 = vadd.f32 %v3130_v47, %v2384_v19  ;;  %v2392_v27 = vmax.f32 %v968_v12, 0.0  ;;  %v2394_v28 = vmax.f32 %v1321_v13, 0.0  ;;  %1625 = vmatprep.mubr.bf16.mxu1 %v4196_v3  ;;  %1978 = vmatprep.mubr.bf16.mxu0 %v4196_v3 }
 0x184   :  { %v3021_v30 = vadd.f32 %v3020_v16, %v2391_v20  ;;  %v3095_v48 = vadd.f32 %v3094_v18, %v2393_v22 }
 0x185   :  { %v3058_v32 = vadd.f32 %v3057_v24, %v2392_v27  ;;  %v3132_v33 = vadd.f32 %v3131_v54, %v2394_v28  ;;  %v971_v34 = vpop.f32.mrb[84].mxu1  ;;  %v1324_v35 = vpop.f32.mrb[84].mxu0 }
 0x186   :  { %v972_v17 = vadd.f32 %v971_v34, %v4821_v31  ;;  %v1325_v36 = vadd.f32 %v1324_v35, %v4827_v25  ;;  %v973_v37 = vpop.f32.mrb[85].mxu1  ;;  %v1326_v38 = vpop.f32.mrb[85].mxu0 }
 0x187   :  { %v974_v39 = vadd.f32 %v973_v37, %v4823_v21  ;;  %v1327_v40 = vadd.f32 %v1326_v38, %v4829_v26  ;;  %v975_v41 = vpop.f32.mrb[86].mxu1  ;;  %v1328_v8 = vpop.f32.mrb[86].mxu0 }
 0x188   :  { %v2401_v42 = vmax.f32 %v972_v17, 0.0  ;;  %v2403_v43 = vmax.f32 %v1325_v36, 0.0  ;;  %v976_v29 = vadd.f32 %v975_v41, %v4821_v31  ;;  %v1329_v9 = vadd.f32 %v1328_v8, %v4827_v25  ;;  %v977_v44 = vpop.f32.mrb[87].mxu1  ;;  %v1330_v52 = vpop.f32.mrb[87].mxu0  ;;  %v4163_v41 = vld [vmem:[%s5735_s0 + $0x8] sm:$0xff]  }
 0x189   :  { %v2402_v45 = vmax.f32 %v974_v39, 0.0  ;;  %v2404_v47 = vmax.f32 %v1327_v40, 0.0  ;;  %v978_v49 = vadd.f32 %v977_v44, %v4823_v21  ;;  %v1331_v51 = vadd.f32 %v1330_v52, %v4829_v26 }
 0x18a   :  { %v3022_v46 = vadd.f32 %v3021_v30, %v2401_v42  ;;  %v3096_v53 = vadd.f32 %v3095_v48, %v2403_v43  ;;  %v2411_v55 = vmax.f32 %v976_v29, 0.0  ;;  %v2413_v56 = vmax.f32 %v1329_v9, 0.0  ;;  %4014 = vmatmul.mubr.msk.bf16.vlgmr.msra.gmra.mrb[192].mxu1 %vm403_vm2, %v4162_v57  ;;  %4046 = vmatmul.mubr.msk.bf16.vlgmr.msra.gmra.mrb[192].mxu0 %vm403_vm2, %v4162_v57 }
 0x18b   :  { %v3059_v58 = vadd.f32 %v3058_v32, %v2402_v45  ;;  %v3133_v59 = vadd.f32 %v3132_v33, %v2404_v47  ;;  %v2412_v61 = vmax.f32 %v978_v49, 0.0  ;;  %v2414_v62 = vmax.f32 %v1331_v51, 0.0  ;;  %1635 = vmatprep.mubr.bf16.mxu1 %v4196_v3  ;;  %1988 = vmatprep.mubr.bf16.mxu0 %v4196_v3 }
 0x18c   :  { %v3023_v63 = vadd.f32 %v3022_v46, %v2411_v55  ;;  %v3097_v6 = vadd.f32 %v3096_v53, %v2413_v56 }
 0x18d   :  { %v3060_v50 = vadd.f32 %v3059_v58, %v2412_v61  ;;  %v3134_v10 = vadd.f32 %v3133_v59, %v2414_v62  ;;  %v981_v19 = vpop.f32.mrb[88].mxu1  ;;  %v1334_v12 = vpop.f32.mrb[88].mxu0 }
 0x18e   :  { %v982_v13 = vadd.f32 %v981_v19, %v4821_v31  ;;  %v1335_v16 = vadd.f32 %v1334_v12, %v4827_v25  ;;  %v983_v18 = vpop.f32.mrb[89].mxu1  ;;  %v1336_v20 = vpop.f32.mrb[89].mxu0 }
 0x18f   :  { %v984_v22 = vadd.f32 %v983_v18, %v4823_v21  ;;  %v1337_v23 = vadd.f32 %v1336_v20, %v4829_v26  ;;  %v985_v24 = vpop.f32.mrb[90].mxu1  ;;  %v1338_v54 = vpop.f32.mrb[90].mxu0 }
 0x190   :  { %v2421_v27 = vmax.f32 %v982_v13, 0.0  ;;  %v2423_v28 = vmax.f32 %v1335_v16, 0.0  ;;  %v986_v30 = vadd.f32 %v985_v24, %v4821_v31  ;;  %v1339_v48 = vadd.f32 %v1338_v54, %v4827_v25  ;;  %v987_v32 = vpop.f32.mrb[91].mxu1  ;;  %v1340_v33 = vpop.f32.mrb[91].mxu0  ;;  %v4164_v24 = vld [vmem:[%s5735_s0 + $0x10] sm:$0xff]  }
 0x191   :  { %v2422_v34 = vmax.f32 %v984_v22, 0.0  ;;  %v2424_v35 = vmax.f32 %v1337_v23, 0.0  ;;  %v988_v17 = vadd.f32 %v987_v32, %v4823_v21  ;;  %v1341_v36 = vadd.f32 %v1340_v33, %v4829_v26 }
 0x192   :  { %v3024_v37 = vadd.f32 %v3023_v63, %v2421_v27  ;;  %v3098_v38 = vadd.f32 %v3097_v6, %v2423_v28  ;;  %v2431_v39 = vmax.f32 %v986_v30, 0.0  ;;  %v2433_v40 = vmax.f32 %v1339_v48, 0.0  ;;  %4015 = vmatmul.mubr.msk.bf16.gmra.mrb[196].mxu1 %vm403_vm2, %v4163_v41  ;;  %4047 = vmatmul.mubr.msk.bf16.gmra.mrb[196].mxu0 %vm403_vm2, %v4163_v41 }
 0x193   :  { %v3061_v8 = vadd.f32 %v3060_v50, %v2422_v34  ;;  %v3135_v42 = vadd.f32 %v3134_v10, %v2424_v35  ;;  %v2432_v43 = vmax.f32 %v988_v17, 0.0  ;;  %v2434_v29 = vmax.f32 %v1341_v36, 0.0  ;;  %1645 = vmatprep.mubr.bf16.mxu1 %v4196_v3  ;;  %1998 = vmatprep.mubr.bf16.mxu0 %v4196_v3 }
 0x194   :  { %v3025_v9 = vadd.f32 %v3024_v37, %v2431_v39  ;;  %v3099_v44 = vadd.f32 %v3098_v38, %v2433_v40 }
 0x195   :  { %v3062_v52 = vadd.f32 %v3061_v8, %v2432_v43  ;;  %v3136_v45 = vadd.f32 %v3135_v42, %v2434_v29  ;;  %v991_v47 = vpop.f32.mrb[92].mxu1  ;;  %v1344_v49 = vpop.f32.mrb[92].mxu0 }
 0x196   :  { %v992_v51 = vadd.f32 %v991_v47, %v4821_v31  ;;  %v1345_v46 = vadd.f32 %v1344_v49, %v4827_v25  ;;  %v993_v53 = vpop.f32.mrb[93].mxu1  ;;  %v1346_v55 = vpop.f32.mrb[93].mxu0 }
 0x197   :  { %v994_v56 = vadd.f32 %v993_v53, %v4823_v21  ;;  %v1347_v57 = vadd.f32 %v1346_v55, %v4829_v26  ;;  %v995_v58 = vpop.f32.mrb[94].mxu1  ;;  %v1348_v59 = vpop.f32.mrb[94].mxu0 }
 0x198   :  { %v2441_v61 = vmax.f32 %v992_v51, 0.0  ;;  %v2443_v62 = vmax.f32 %v1345_v46, 0.0  ;;  %v996_v63 = vadd.f32 %v995_v58, %v4821_v31  ;;  %v1349_v6 = vadd.f32 %v1348_v59, %v4827_v25  ;;  %v997_v50 = vpop.f32.mrb[95].mxu1  ;;  %v1350_v10 = vpop.f32.mrb[95].mxu0  ;;  %v4165_v58 = vld [vmem:[%s5735_s0 + $0x18] sm:$0xff]  }
 0x199   :  { %v2442_v19 = vmax.f32 %v994_v56, 0.0  ;;  %v2444_v12 = vmax.f32 %v1347_v57, 0.0  ;;  %v998_v13 = vadd.f32 %v997_v50, %v4823_v21  ;;  %v1351_v16 = vadd.f32 %v1350_v10, %v4829_v26 }
 0x19a   :  { %v3026_v18 = vadd.f32 %v3025_v9, %v2441_v61  ;;  %v3100_v20 = vadd.f32 %v3099_v44, %v2443_v62  ;;  %v2451_v22 = vmax.f32 %v996_v63, 0.0  ;;  %v2453_v23 = vmax.f32 %v1349_v6, 0.0  ;;  %4016 = vmatmul.mubr.msk.bf16.gmra.mrb[200].mxu1 %vm403_vm2, %v4164_v24  ;;  %4048 = vmatmul.mubr.msk.bf16.gmra.mrb[200].mxu0 %vm403_vm2, %v4164_v24 }
 0x19b   :  { %v3063_v54 = vadd.f32 %v3062_v52, %v2442_v19  ;;  %v3137_v27 = vadd.f32 %v3136_v45, %v2444_v12  ;;  %v2452_v28 = vmax.f32 %v998_v13, 0.0  ;;  %v2454_v30 = vmax.f32 %v1351_v16, 0.0  ;;  %1655 = vmatprep.mubr.bf16.mxu1 %v4196_v3  ;;  %2008 = vmatprep.mubr.bf16.mxu0 %v4196_v3 }
 0x19c   :  { %v3027_v48 = vadd.f32 %v3026_v18, %v2451_v22  ;;  %v3101_v32 = vadd.f32 %v3100_v20, %v2453_v23 }
 0x19d   :  { %v3064_v33 = vadd.f32 %v3063_v54, %v2452_v28  ;;  %v3138_v34 = vadd.f32 %v3137_v27, %v2454_v30  ;;  %v1001_v35 = vpop.f32.mrb[96].mxu1  ;;  %v1354_v17 = vpop.f32.mrb[96].mxu0 }
 0x19e   :  { %v1002_v36 = vadd.f32 %v1001_v35, %v4821_v31  ;;  %v1355_v37 = vadd.f32 %v1354_v17, %v4827_v25  ;;  %v1003_v38 = vpop.f32.mrb[97].mxu1  ;;  %v1356_v39 = vpop.f32.mrb[97].mxu0 }
 0x19f   :  { %v1004_v40 = vadd.f32 %v1003_v38, %v4823_v21  ;;  %v1357_v41 = vadd.f32 %v1356_v39, %v4829_v26  ;;  %v1005_v8 = vpop.f32.mrb[98].mxu1  ;;  %v1358_v42 = vpop.f32.mrb[98].mxu0 }
 0x1a0   :  { %v2461_v43 = vmax.f32 %v1002_v36, 0.0  ;;  %v2463_v29 = vmax.f32 %v1355_v37, 0.0  ;;  %v1006_v9 = vadd.f32 %v1005_v8, %v4821_v31  ;;  %v1359_v44 = vadd.f32 %v1358_v42, %v4827_v25  ;;  %v1007_v52 = vpop.f32.mrb[99].mxu1  ;;  %v1360_v45 = vpop.f32.mrb[99].mxu0  ;;  %v4166_v8 = vld [vmem:[%s5735_s0 + $0x20] sm:$0xff]  }
 0x1a1   :  { %v2462_v47 = vmax.f32 %v1004_v40, 0.0  ;;  %v2464_v49 = vmax.f32 %v1357_v41, 0.0  ;;  %v1008_v51 = vadd.f32 %v1007_v52, %v4823_v21  ;;  %v1361_v46 = vadd.f32 %v1360_v45, %v4829_v26 }
 0x1a2   :  { %v3028_v53 = vadd.f32 %v3027_v48, %v2461_v43  ;;  %v3102_v55 = vadd.f32 %v3101_v32, %v2463_v29  ;;  %v2471_v56 = vmax.f32 %v1006_v9, 0.0  ;;  %v2473_v57 = vmax.f32 %v1359_v44, 0.0  ;;  %4017 = vmatmul.mubr.msk.bf16.gmra.mrb[204].mxu1 %vm403_vm2, %v4165_v58  ;;  %4049 = vmatmul.mubr.msk.bf16.gmra.mrb[204].mxu0 %vm403_vm2, %v4165_v58 }
 0x1a3   :  { %v3065_v59 = vadd.f32 %v3064_v33, %v2462_v47  ;;  %v3139_v61 = vadd.f32 %v3138_v34, %v2464_v49  ;;  %v2472_v62 = vmax.f32 %v1008_v51, 0.0  ;;  %v2474_v63 = vmax.f32 %v1361_v46, 0.0  ;;  %1665 = vmatprep.mubr.bf16.mxu1 %v4196_v3  ;;  %2018 = vmatprep.mubr.bf16.mxu0 %v4196_v3 }
 0x1a4   :  { %v3029_v6 = vadd.f32 %v3028_v53, %v2471_v56  ;;  %v3103_v50 = vadd.f32 %v3102_v55, %v2473_v57 }
 0x1a5   :  { %v3066_v10 = vadd.f32 %v3065_v59, %v2472_v62  ;;  %v3140_v19 = vadd.f32 %v3139_v61, %v2474_v63  ;;  %v1011_v12 = vpop.f32.mrb[100].mxu1  ;;  %v1364_v13 = vpop.f32.mrb[100].mxu0 }
 0x1a6   :  { %v1012_v16 = vadd.f32 %v1011_v12, %v4821_v31  ;;  %v1365_v18 = vadd.f32 %v1364_v13, %v4827_v25  ;;  %v1013_v20 = vpop.f32.mrb[101].mxu1  ;;  %v1366_v22 = vpop.f32.mrb[101].mxu0 }
 0x1a7   :  { %v1014_v23 = vadd.f32 %v1013_v20, %v4823_v21  ;;  %v1367_v24 = vadd.f32 %v1366_v22, %v4829_v26  ;;  %v1015_v54 = vpop.f32.mrb[102].mxu1  ;;  %v1368_v27 = vpop.f32.mrb[102].mxu0 }
 0x1a8   :  { %v2481_v28 = vmax.f32 %v1012_v16, 0.0  ;;  %v2483_v30 = vmax.f32 %v1365_v18, 0.0  ;;  %v1016_v48 = vadd.f32 %v1015_v54, %v4821_v31  ;;  %v1369_v32 = vadd.f32 %v1368_v27, %v4827_v25  ;;  %v1017_v33 = vpop.f32.mrb[103].mxu1  ;;  %v1370_v34 = vpop.f32.mrb[103].mxu0  ;;  %v4167_v54 = vld [vmem:[%s5735_s0 + $0x28] sm:$0xff]  }
 0x1a9   :  { %v2482_v35 = vmax.f32 %v1014_v23, 0.0  ;;  %v2484_v17 = vmax.f32 %v1367_v24, 0.0  ;;  %v1018_v36 = vadd.f32 %v1017_v33, %v4823_v21  ;;  %v1371_v37 = vadd.f32 %v1370_v34, %v4829_v26 }
 0x1aa   :  { %v3030_v38 = vadd.f32 %v3029_v6, %v2481_v28  ;;  %v3104_v39 = vadd.f32 %v3103_v50, %v2483_v30  ;;  %v2491_v40 = vmax.f32 %v1016_v48, 0.0  ;;  %v2493_v41 = vmax.f32 %v1369_v32, 0.0  ;;  %4018 = vmatmul.mubr.msk.bf16.gmra.mrb[208].mxu1 %vm403_vm2, %v4166_v8  ;;  %4050 = vmatmul.mubr.msk.bf16.gmra.mrb[208].mxu0 %vm403_vm2, %v4166_v8 }
 0x1ab   :  { %v3067_v42 = vadd.f32 %v3066_v10, %v2482_v35  ;;  %v3141_v43 = vadd.f32 %v3140_v19, %v2484_v17  ;;  %v2492_v29 = vmax.f32 %v1018_v36, 0.0  ;;  %v2494_v9 = vmax.f32 %v1371_v37, 0.0  ;;  %1675 = vmatprep.mubr.bf16.mxu1 %v4196_v3  ;;  %2028 = vmatprep.mubr.bf16.mxu0 %v4196_v3 }
 0x1ac   :  { %v3031_v44 = vadd.f32 %v3030_v38, %v2491_v40  ;;  %v3105_v52 = vadd.f32 %v3104_v39, %v2493_v41 }
 0x1ad   :  { %v3068_v45 = vadd.f32 %v3067_v42, %v2492_v29  ;;  %v3142_v47 = vadd.f32 %v3141_v43, %v2494_v9  ;;  %v1021_v49 = vpop.f32.mrb[104].mxu1  ;;  %v1374_v51 = vpop.f32.mrb[104].mxu0 }
 0x1ae   :  { %v1022_v46 = vadd.f32 %v1021_v49, %v4821_v31  ;;  %v1375_v53 = vadd.f32 %v1374_v51, %v4827_v25  ;;  %v1023_v55 = vpop.f32.mrb[105].mxu1  ;;  %v1376_v56 = vpop.f32.mrb[105].mxu0 }
 0x1af   :  { %v1024_v57 = vadd.f32 %v1023_v55, %v4823_v21  ;;  %v1377_v58 = vadd.f32 %v1376_v56, %v4829_v26  ;;  %v1025_v59 = vpop.f32.mrb[106].mxu1  ;;  %v1378_v61 = vpop.f32.mrb[106].mxu0 }
 0x1b0   :  { %v2501_v62 = vmax.f32 %v1022_v46, 0.0  ;;  %v2503_v63 = vmax.f32 %v1375_v53, 0.0  ;;  %v1026_v6 = vadd.f32 %v1025_v59, %v4821_v31  ;;  %v1379_v50 = vadd.f32 %v1378_v61, %v4827_v25  ;;  %v1027_v10 = vpop.f32.mrb[107].mxu1  ;;  %v1380_v19 = vpop.f32.mrb[107].mxu0  ;;  %v4168_v59 = vld [vmem:[%s5735_s0 + $0x30] sm:$0xff]  }
 0x1b1   :  { %v2502_v12 = vmax.f32 %v1024_v57, 0.0  ;;  %v2504_v13 = vmax.f32 %v1377_v58, 0.0  ;;  %v1028_v16 = vadd.f32 %v1027_v10, %v4823_v21  ;;  %v1381_v18 = vadd.f32 %v1380_v19, %v4829_v26 }
 0x1b2   :  { %v3032_v20 = vadd.f32 %v3031_v44, %v2501_v62  ;;  %v3106_v22 = vadd.f32 %v3105_v52, %v2503_v63  ;;  %v2511_v23 = vmax.f32 %v1026_v6, 0.0  ;;  %v2513_v24 = vmax.f32 %v1379_v50, 0.0  ;;  %4019 = vmatmul.mubr.msk.bf16.gmra.mrb[212].mxu1 %vm403_vm2, %v4167_v54  ;;  %4051 = vmatmul.mubr.msk.bf16.gmra.mrb[212].mxu0 %vm403_vm2, %v4167_v54 }
 0x1b3   :  { %v3069_v27 = vadd.f32 %v3068_v45, %v2502_v12  ;;  %v3143_v28 = vadd.f32 %v3142_v47, %v2504_v13  ;;  %v2512_v30 = vmax.f32 %v1028_v16, 0.0  ;;  %v2514_v48 = vmax.f32 %v1381_v18, 0.0  ;;  %1685 = vmatprep.mubr.bf16.mxu1 %v4196_v3  ;;  %2038 = vmatprep.mubr.bf16.mxu0 %v4196_v3 }
 0x1b4   :  { %v3033_v32 = vadd.f32 %v3032_v20, %v2511_v23  ;;  %v3107_v33 = vadd.f32 %v3106_v22, %v2513_v24 }
 0x1b5   :  { %v3070_v34 = vadd.f32 %v3069_v27, %v2512_v30  ;;  %v3144_v35 = vadd.f32 %v3143_v28, %v2514_v48  ;;  %v1031_v17 = vpop.f32.mrb[108].mxu1  ;;  %v1384_v36 = vpop.f32.mrb[108].mxu0 }
 0x1b6   :  { %v1032_v37 = vadd.f32 %v1031_v17, %v4821_v31  ;;  %v1385_v38 = vadd.f32 %v1384_v36, %v4827_v25  ;;  %v1033_v39 = vpop.f32.mrb[109].mxu1  ;;  %v1386_v40 = vpop.f32.mrb[109].mxu0 }
 0x1b7   :  { %v1034_v41 = vadd.f32 %v1033_v39, %v4823_v21  ;;  %v1387_v8 = vadd.f32 %v1386_v40, %v4829_v26  ;;  %v1035_v42 = vpop.f32.mrb[110].mxu1  ;;  %v1388_v43 = vpop.f32.mrb[110].mxu0 }
 0x1b8   :  { %v2521_v29 = vmax.f32 %v1032_v37, 0.0  ;;  %v2523_v9 = vmax.f32 %v1385_v38, 0.0  ;;  %v1036_v44 = vadd.f32 %v1035_v42, %v4821_v31  ;;  %v1389_v52 = vadd.f32 %v1388_v43, %v4827_v25  ;;  %v1037_v45 = vpop.f32.mrb[111].mxu1  ;;  %v1390_v47 = vpop.f32.mrb[111].mxu0  ;;  %v4169_v42 = vld [vmem:[%s5735_s0 + $0x38] sm:$0xff]  }
 0x1b9   :  { %v2522_v49 = vmax.f32 %v1034_v41, 0.0  ;;  %v2524_v51 = vmax.f32 %v1387_v8, 0.0  ;;  %v1038_v46 = vadd.f32 %v1037_v45, %v4823_v21  ;;  %v1391_v53 = vadd.f32 %v1390_v47, %v4829_v26 }
 0x1ba   :  { %v3034_v55 = vadd.f32 %v3033_v32, %v2521_v29  ;;  %v3108_v56 = vadd.f32 %v3107_v33, %v2523_v9  ;;  %v2531_v57 = vmax.f32 %v1036_v44, 0.0  ;;  %v2533_v58 = vmax.f32 %v1389_v52, 0.0  ;;  %4020 = vmatmul.mubr.msk.bf16.gmra.mrb[216].mxu1 %vm403_vm2, %v4168_v59  ;;  %4052 = vmatmul.mubr.msk.bf16.gmra.mrb[216].mxu0 %vm403_vm2, %v4168_v59 }
 0x1bb   :  { %v3071_v61 = vadd.f32 %v3070_v34, %v2522_v49  ;;  %v3145_v62 = vadd.f32 %v3144_v35, %v2524_v51  ;;  %v2532_v63 = vmax.f32 %v1038_v46, 0.0  ;;  %v2534_v6 = vmax.f32 %v1391_v53, 0.0  ;;  %1695 = vmatprep.mubr.bf16.mxu1 %v4196_v3  ;;  %2048 = vmatprep.mubr.bf16.mxu0 %v4196_v3 }
 0x1bc   :  { %v3035_v50 = vadd.f32 %v3034_v55, %v2531_v57  ;;  %v3109_v10 = vadd.f32 %v3108_v56, %v2533_v58 }
 0x1bd   :  { %v3072_v19 = vadd.f32 %v3071_v61, %v2532_v63  ;;  %v3146_v12 = vadd.f32 %v3145_v62, %v2534_v6  ;;  %v1041_v13 = vpop.f32.mrb[112].mxu1  ;;  %v1394_v16 = vpop.f32.mrb[112].mxu0 }
 0x1be   :  { %v1042_v18 = vadd.f32 %v1041_v13, %v4821_v31  ;;  %v1395_v20 = vadd.f32 %v1394_v16, %v4827_v25  ;;  %v1043_v22 = vpop.f32.mrb[113].mxu1  ;;  %v1396_v23 = vpop.f32.mrb[113].mxu0 }
 0x1bf   :  { %v1044_v24 = vadd.f32 %v1043_v22, %v4823_v21  ;;  %v1397_v54 = vadd.f32 %v1396_v23, %v4829_v26  ;;  %v1045_v27 = vpop.f32.mrb[114].mxu1  ;;  %v1398_v28 = vpop.f32.mrb[114].mxu0 }
 0x1c0   :  { %v2541_v30 = vmax.f32 %v1042_v18, 0.0  ;;  %v2543_v48 = vmax.f32 %v1395_v20, 0.0  ;;  %v1046_v32 = vadd.f32 %v1045_v27, %v4821_v31  ;;  %v1399_v33 = vadd.f32 %v1398_v28, %v4827_v25  ;;  %v1047_v34 = vpop.f32.mrb[115].mxu1  ;;  %v1400_v35 = vpop.f32.mrb[115].mxu0  ;;  %v4170_v27 = vld [vmem:[%s5735_s0 + $0x40] sm:$0xff]  }
 0x1c1   :  { %v2542_v17 = vmax.f32 %v1044_v24, 0.0  ;;  %v2544_v36 = vmax.f32 %v1397_v54, 0.0  ;;  %v1048_v37 = vadd.f32 %v1047_v34, %v4823_v21  ;;  %v1401_v38 = vadd.f32 %v1400_v35, %v4829_v26 }
 0x1c2   :  { %v3036_v39 = vadd.f32 %v3035_v50, %v2541_v30  ;;  %v3110_v40 = vadd.f32 %v3109_v10, %v2543_v48  ;;  %v2551_v41 = vmax.f32 %v1046_v32, 0.0  ;;  %v2553_v8 = vmax.f32 %v1399_v33, 0.0  ;;  %4021 = vmatmul.mubr.msk.bf16.gmra.mrb[220].mxu1 %vm403_vm2, %v4169_v42  ;;  %4053 = vmatmul.mubr.msk.bf16.gmra.mrb[220].mxu0 %vm403_vm2, %v4169_v42 }
 0x1c3   :  { %v3073_v43 = vadd.f32 %v3072_v19, %v2542_v17  ;;  %v3147_v29 = vadd.f32 %v3146_v12, %v2544_v36  ;;  %v2552_v9 = vmax.f32 %v1048_v37, 0.0  ;;  %v2554_v44 = vmax.f32 %v1401_v38, 0.0  ;;  %1705 = vmatprep.mubr.bf16.mxu1 %v4196_v3  ;;  %2058 = vmatprep.mubr.bf16.mxu0 %v4196_v3 }
 0x1c4   :  { %v3037_v52 = vadd.f32 %v3036_v39, %v2551_v41  ;;  %v3111_v45 = vadd.f32 %v3110_v40, %v2553_v8  ;;  %v4197_v8 = vmov 1966171168  }
 0x1c5   :  { %v3074_v47 = vadd.f32 %v3073_v43, %v2552_v9  ;;  %v3148_v49 = vadd.f32 %v3147_v29, %v2554_v44  ;;  %v1051_v51 = vpop.f32.mrb[116].mxu1  ;;  %v1404_v46 = vpop.f32.mrb[116].mxu0  ;;  %v5066_v42 = vunpack.c.l.s4 %v4197_v8 }
 0x1c6   :  { %v1052_v53 = vadd.f32 %v1051_v51, %v4821_v31  ;;  %v1405_v55 = vadd.f32 %v1404_v46, %v4827_v25  ;;  %v1053_v56 = vpop.f32.mrb[117].mxu1  ;;  %v1406_v57 = vpop.f32.mrb[117].mxu0 }
 0x1c7   :  { %v1054_v58 = vadd.f32 %v1053_v56, %v4823_v21  ;;  %v1407_v59 = vadd.f32 %v1406_v57, %v4829_v26  ;;  %v1055_v61 = vpop.f32.mrb[118].mxu1  ;;  %v1408_v62 = vpop.f32.mrb[118].mxu0 }
 0x1c8   :  { %v2561_v63 = vmax.f32 %v1052_v53, 0.0  ;;  %v2563_v6 = vmax.f32 %v1405_v55, 0.0  ;;  %v1056_v50 = vadd.f32 %v1055_v61, %v4821_v31  ;;  %v1409_v10 = vadd.f32 %v1408_v62, %v4827_v25  ;;  %v1057_v19 = vpop.f32.mrb[119].mxu1  ;;  %v1410_v12 = vpop.f32.mrb[119].mxu0 }
 0x1c9   :  { %v2562_v13 = vmax.f32 %v1054_v58, 0.0  ;;  %v2564_v16 = vmax.f32 %v1407_v59, 0.0  ;;  %v1058_v18 = vadd.f32 %v1057_v19, %v4823_v21  ;;  %v1411_v20 = vadd.f32 %v1410_v12, %v4829_v26 }
 0x1ca   :  { %v3038_v22 = vadd.f32 %v3037_v52, %v2561_v63  ;;  %v3112_v23 = vadd.f32 %v3111_v45, %v2563_v6  ;;  %v2571_v24 = vmax.f32 %v1056_v50, 0.0  ;;  %v2573_v54 = vmax.f32 %v1409_v10, 0.0  ;;  %4022 = vmatmul.mubr.msk.bf16.gmra.mrb[224].mxu1 %vm403_vm2, %v4170_v27  ;;  %4054 = vmatmul.mubr.msk.bf16.gmra.mrb[224].mxu0 %vm403_vm2, %v4170_v27  ;;  %v4171_v63 = vld [vmem:[%s5735_s0 + $0x48] sm:$0xff]  }
 0x1cb   :  { %v3075_v28 = vadd.f32 %v3074_v47, %v2562_v13  ;;  %v3149_v30 = vadd.f32 %v3148_v49, %v2564_v16  ;;  %v2572_v48 = vmax.f32 %v1058_v18, 0.0  ;;  %v2574_v32 = vmax.f32 %v1411_v20, 0.0  ;;  %1715 = vmatprep.mubr.bf16.mxu1 %v4196_v3  ;;  %2068 = vmatprep.mubr.bf16.mxu0 %v4196_v3 }
 0x1cc   :  { %v3039_v33 = vadd.f32 %v3038_v22, %v2571_v24  ;;  %v3113_v34 = vadd.f32 %v3112_v23, %v2573_v54 }
 0x1cd   :  { %v3076_v35 = vadd.f32 %v3075_v28, %v2572_v48  ;;  %v3150_v17 = vadd.f32 %v3149_v30, %v2574_v32  ;;  %v1061_v36 = vpop.f32.mrb[120].mxu1  ;;  %v1414_v37 = vpop.f32.mrb[120].mxu0  ;;  %v3335_v28 = vunpack.c.0.s8 %v5066_v42 }
 0x1ce   :  { %v1062_v38 = vadd.f32 %v1061_v36, %v4821_v31  ;;  %v1415_v39 = vadd.f32 %v1414_v37, %v4827_v25  ;;  %v1063_v40 = vpop.f32.mrb[121].mxu1  ;;  %v1416_v41 = vpop.f32.mrb[121].mxu0 }
 0x1cf   :  { %v1064_v43 = vadd.f32 %v1063_v40, %v4823_v21  ;;  %v1417_v29 = vadd.f32 %v1416_v41, %v4829_v26  ;;  %v1065_v9 = vpop.f32.mrb[122].mxu1  ;;  %v1418_v44 = vpop.f32.mrb[122].mxu0 }
 0x1d0   :  { %v2581_v52 = vmax.f32 %v1062_v38, 0.0  ;;  %v2583_v45 = vmax.f32 %v1415_v39, 0.0  ;;  %v1066_v47 = vadd.f32 %v1065_v9, %v4821_v31  ;;  %v1419_v49 = vadd.f32 %v1418_v44, %v4827_v25  ;;  %v1067_v51 = vpop.f32.mrb[123].mxu1  ;;  %v1420_v46 = vpop.f32.mrb[123].mxu0  ;;  %v4172_v44 = vld [vmem:[%s5735_s0 + $0x50] sm:$0xff]  }
 0x1d1   :  { %v2582_v53 = vmax.f32 %v1064_v43, 0.0  ;;  %v2584_v55 = vmax.f32 %v1417_v29, 0.0  ;;  %v1068_v56 = vadd.f32 %v1067_v51, %v4823_v21  ;;  %v1421_v57 = vadd.f32 %v1420_v46, %v4829_v26 }
 0x1d2   :  { %v3040_v58 = vadd.f32 %v3039_v33, %v2581_v52  ;;  %v3114_v59 = vadd.f32 %v3113_v34, %v2583_v45  ;;  %v2591_v61 = vmax.f32 %v1066_v47, 0.0  ;;  %v2593_v62 = vmax.f32 %v1419_v49, 0.0  ;;  %4023 = vmatmul.mubr.msk.bf16.gmra.mrb[228].mxu1 %vm403_vm2, %v4171_v63  ;;  %4055 = vmatmul.mubr.msk.bf16.gmra.mrb[228].mxu0 %vm403_vm2, %v4171_v63 }
 0x1d3   :  { %v3077_v6 = vadd.f32 %v3076_v35, %v2582_v53  ;;  %v3151_v50 = vadd.f32 %v3150_v17, %v2584_v55  ;;  %v2592_v10 = vmax.f32 %v1068_v56, 0.0  ;;  %v2594_v19 = vmax.f32 %v1421_v57, 0.0  ;;  %1725 = vmatprep.mubr.bf16.mxu1 %v4196_v3  ;;  %2078 = vmatprep.mubr.bf16.mxu0 %v4196_v3 }
 0x1d4   :  { %v3041_v12 = vadd.f32 %v3040_v58, %v2591_v61  ;;  %v3115_v13 = vadd.f32 %v3114_v59, %v2593_v62  ;;  %v5098_v53 = vsub.s32 %v3335_v28, %v4574_v4 }
 0x1d5   :  { %v3078_v16 = vadd.f32 %v3077_v6, %v2592_v10  ;;  %v3152_v18 = vadd.f32 %v3151_v50, %v2594_v19  ;;  %v1071_v20 = vpop.f32.mrb[124].mxu1  ;;  %v1424_v22 = vpop.f32.mrb[124].mxu0 }
 0x1d6   :  { %v1072_v23 = vadd.f32 %v1071_v20, %v4821_v31  ;;  %v1425_v24 = vadd.f32 %v1424_v22, %v4827_v25  ;;  %v1073_v54 = vpop.f32.mrb[125].mxu1  ;;  %v1426_v27 = vpop.f32.mrb[125].mxu0 }
 0x1d7   :  { %v1074_v30 = vadd.f32 %v1073_v54, %v4823_v21  ;;  %v1427_v48 = vadd.f32 %v1426_v27, %v4829_v26  ;;  %v1075_v32 = vpop.f32.mrb[126].mxu1  ;;  %v1428_v33 = vpop.f32.mrb[126].mxu0 }
 0x1d8   :  { %v2601_v34 = vmax.f32 %v1072_v23, 0.0  ;;  %v2603_v35 = vmax.f32 %v1425_v24, 0.0  ;;  %v1076_v17 = vadd.f32 %v1075_v32, %v4821_v31  ;;  %v1429_v36 = vadd.f32 %v1428_v33, %v4827_v25  ;;  %v1077_v37 = vpop.f32.mrb[127].mxu1  ;;  %v1430_v38 = vpop.f32.mrb[127].mxu0 }
 0x1d9   :  { %v2602_v39 = vmax.f32 %v1074_v30, 0.0  ;;  %v2604_v40 = vmax.f32 %v1427_v48, 0.0  ;;  %v1078_v41 = vadd.f32 %v1077_v37, %v4823_v21  ;;  %v1431_v8 = vadd.f32 %v1430_v38, %v4829_v26 }
 0x1da   :  { %v3042_v42 = vadd.f32 %v3041_v12, %v2601_v34  ;;  %v3116_v43 = vadd.f32 %v3115_v13, %v2603_v35  ;;  %v2611_v29 = vmax.f32 %v1076_v17, 0.0  ;;  %v2613_v9 = vmax.f32 %v1429_v36, 0.0  ;;  %4024 = vmatmul.mubr.msk.bf16.gmra.mrb[232].mxu1 %vm403_vm2, %v4172_v44  ;;  %4056 = vmatmul.mubr.msk.bf16.gmra.mrb[232].mxu0 %vm403_vm2, %v4172_v44  ;;  %v4173_v36 = vld [vmem:[%s5735_s0 + $0x58] sm:$0xff]  }
 0x1db   :  { %v3079_v52 = vadd.f32 %v3078_v16, %v2602_v39  ;;  %v3153_v45 = vadd.f32 %v3152_v18, %v2604_v40  ;;  %v2612_v47 = vmax.f32 %v1078_v41, 0.0  ;;  %v2614_v49 = vmax.f32 %v1431_v8, 0.0  ;;  %1735 = vmatprep.mubr.bf16.mxu1 %v4196_v3  ;;  %2088 = vmatprep.mubr.bf16.mxu0 %v4196_v3 }
 0x1dc   :  { %v3043_v51 = vadd.f32 %v3042_v42, %v2611_v29  ;;  %v3117_v46 = vadd.f32 %v3116_v43, %v2613_v9 }
 0x1dd   :  { %v3080_v55 = vadd.f32 %v3079_v52, %v2612_v47  ;;  %v3154_v56 = vadd.f32 %v3153_v45, %v2614_v49  ;;  %v1081_v57 = vpop.f32.mrb[128].mxu1  ;;  %v1434_v58 = vpop.f32.mrb[128].mxu0 }
 0x1de   :  { %v3044_v59 = vrot.slane %v3043_v51, 4  ;;  %v3118_v61 = vrot.slane %v3117_v46, 4  ;;  %v1082_v62 = vadd.f32 %v1081_v57, %v4821_v31  ;;  %v1083_v63 = vpop.f32.mrb[129].mxu1  ;;  %v1435_v6 = vadd.f32 %v1434_v58, %v4827_v25  ;;  %v1436_v50 = vpop.f32.mrb[129].mxu0 }
 0x1df   :  { %v3081_v10 = vrot.slane %v3080_v55, 4  ;;  %v3155_v19 = vrot.slane %v3154_v56, 4  ;;  %v1084_v12 = vadd.f32 %v1083_v63, %v4823_v21  ;;  %v1085_v13 = vpop.f32.mrb[130].mxu1  ;;  %v1437_v16 = vadd.f32 %v1436_v50, %v4829_v26  ;;  %v1438_v18 = vpop.f32.mrb[130].mxu0 }
 0x1e0   :  { %v3045_v20 = vadd.f32 %v3044_v59, %v3043_v51  ;;  %v3119_v22 = vadd.f32 %v3118_v61, %v3117_v46  ;;  %v2621_v23 = vmax.f32 %v1082_v62, 0.0  ;;  %v1086_v24 = vadd.f32 %v1085_v13, %v4821_v31  ;;  %v1087_v54 = vpop.f32.mrb[131].mxu1  ;;  %v1440_v27 = vpop.f32.mrb[131].mxu0 }
 0x1e1   :  { %v3082_v28 = vadd.f32 %v3081_v10, %v3080_v55  ;;  %v3156_v30 = vadd.f32 %v3155_v19, %v3154_v56  ;;  %v2622_v48 = vmax.f32 %v1084_v12, 0.0  ;;  %v2623_v32 = vmax.f32 %v1435_v6, 0.0 }
 0x1e2   :  { %v3046_v33 = vrot.slane %v3045_v20, 2  ;;  %v3120_v34 = vrot.slane %v3119_v22, 2  ;;  %v2631_v35 = vmax.f32 %v1086_v24, 0.0  ;;  %v1088_v17 = vadd.f32 %v1087_v54, %v4823_v21  ;;  %4025 = vmatmul.mubr.msk.bf16.gmra.mrb[236].mxu1 %vm403_vm2, %v4173_v36  ;;  %4057 = vmatmul.mubr.msk.bf16.gmra.mrb[236].mxu0 %vm403_vm2, %v4173_v36 }
 0x1e3   :  { %v3083_v37 = vrot.slane %v3082_v28, 2  ;;  %v3157_v38 = vrot.slane %v3156_v30, 2  ;;  %v2624_v39 = vmax.f32 %v1437_v16, 0.0  ;;  %v1439_v40 = vadd.f32 %v1438_v18, %v4827_v25  ;;  %1745 = vmatprep.mubr.bf16.mxu1 %v4196_v3  ;;  %2098 = vmatprep.mubr.bf16.mxu0 %v4196_v3 }
 0x1e4   :  { %v3047_v41 = vadd.f32 %v3046_v33, %v3045_v20  ;;  %v3121_v8 = vadd.f32 %v3120_v34, %v3119_v22  ;;  %v3476_v42 = vadd.f32 %v2631_v35, %v2621_v23  ;;  %v2632_v43 = vmax.f32 %v1088_v17, 0.0 }
 0x1e5   :  { %v3084_v29 = vadd.f32 %v3083_v37, %v3082_v28  ;;  %v3158_v9 = vadd.f32 %v3157_v38, %v3156_v30  ;;  %v2633_v44 = vmax.f32 %v1439_v40, 0.0  ;;  %v1441_v52 = vadd.f32 %v1440_v27, %v4829_v26  ;;  %v1091_v45 = vpop.f32.mrb[132].mxu1  ;;  %v1444_v47 = vpop.f32.mrb[132].mxu0  ;;  %v4174_v30 = vld [vmem:[%s5735_s0 + $0x60] sm:$0xff]  }
 0x1e6   :  { %v3048_v49 = vrot.slane %v3047_v41, 1  ;;  %v3122_v51 = vrot.slane %v3121_v8, 1  ;;  %v3513_v46 = vadd.f32 %v2632_v43, %v2622_v48  ;;  %v1092_v55 = vadd.f32 %v1091_v45, %v4821_v31  ;;  %v1093_v56 = vpop.f32.mrb[133].mxu1  ;;  %v1446_v57 = vpop.f32.mrb[133].mxu0 }
 0x1e7   :  { %v3085_v58 = vrot.slane %v3084_v29, 1  ;;  %v3159_v59 = vrot.slane %v3158_v9, 1  ;;  %v3550_v61 = vadd.f32 %v2633_v44, %v2623_v32  ;;  %v2634_v62 = vmax.f32 %v1441_v52, 0.0  ;;  %v1095_v63 = vpop.f32.mrb[134].mxu1  ;;  %v1448_v6 = vpop.f32.mrb[134].mxu0 }
 0x1e8   :  { %v3049_v50 = vadd.f32 %v3048_v49, %v3047_v41  ;;  %v3123_v10 = vadd.f32 %v3122_v51, %v3121_v8  ;;  %v2641_v19 = vmax.f32 %v1092_v55, 0.0  ;;  %v1445_v12 = vadd.f32 %v1444_v47, %v4827_v25  ;;  %v1097_v13 = vpop.f32.mrb[135].mxu1  ;;  %v1450_v16 = vpop.f32.mrb[135].mxu0 }
 0x1e9   :  { %v3086_v18 = vadd.f32 %v3085_v58, %v3084_v29  ;;  %v3160_v20 = vadd.f32 %v3159_v59, %v3158_v9  ;;  %v3587_v22 = vadd.f32 %v2634_v62, %v2624_v39  ;;  %v1094_v23 = vadd.f32 %v1093_v56, %v4823_v21 }
 0x1ea   :  { %v3311_v24 = vmul.f32 0.00390625, %v3049_v50  ;;  %v5118_v54 = vmul.f32 0.00390625, %v3123_v10  ;;  %v3477_v27 = vadd.f32 %v3476_v42, %v2641_v19  ;;  %v2643_v28 = vmax.f32 %v1445_v12, 0.0  ;;  %4026 = vmatmul.mubr.msk.bf16.gmra.mrb[240].mxu1 %vm403_vm2, %v4174_v30  ;;  %4058 = vmatmul.mubr.msk.bf16.gmra.mrb[240].mxu0 %vm403_vm2, %v4174_v30 }
 0x1eb   :  { %v3312_v48 = vmul.f32 0.00390625, %v3086_v18  ;;  %v5124_v32 = vmul.f32 0.00390625, %v3160_v20  ;;  %v2642_v33 = vmax.f32 %v1094_v23, 0.0  ;;  %v1447_v34 = vadd.f32 %v1446_v57, %v4829_v26  ;;  %1755 = vmatprep.mubr.bf16.mxu1 %v4196_v3  ;;  %2108 = vmatprep.mubr.bf16.mxu0 %v4196_v3 }
 0x1ec   :  { %v3551_v35 = vadd.f32 %v3550_v61, %v2643_v28  ;;  %v1096_v17 = vadd.f32 %v1095_v63, %v4821_v31  ;;  %v1449_v36 = vadd.f32 %v1448_v6, %v4827_v25  ;;  %v1098_v37 = vadd.f32 %v1097_v13, %v4823_v21  ;;  %v4175_v13 = vld [vmem:[%s5735_s0 + $0x68] sm:$0xff]  }
 0x1ed   :  { %v3330_v38 = vcombine.low %v3311_v24, %v3312_v48  ;;  %v3331_v39 = vcombine.low %v5118_v54, %v5124_v32  ;;  %v3514_v40 = vadd.f32 %v3513_v46, %v2642_v33  ;;  %v2644_v41 = vmax.f32 %v1447_v34, 0.0  ;;  %v1101_v8 = vpop.f32.mrb[136].mxu1  ;;  %v1454_v42 = vpop.f32.mrb[136].mxu0 }
 0x1ee   :  { %v2651_v43 = vmax.f32 %v1096_v17, 0.0  ;;  %v2653_v29 = vmax.f32 %v1449_v36, 0.0  ;;  %v2652_v9 = vmax.f32 %v1098_v37, 0.0  ;;  %v1451_v44 = vadd.f32 %v1450_v16, %v4829_v26  ;;  %v1103_v52 = vpop.f32.mrb[137].mxu1  ;;  %v1456_v45 = vpop.f32.mrb[137].mxu0 }
 0x1ef   :  { %v5140_v47 = vrot.slane %v3329_v14, %v5098_v53  ;;  %v5143_v49 = vrot.slane %v3330_v38, %v5098_v53  ;;  %v3588_v51 = vadd.f32 %v3587_v22, %v2644_v41  ;;  %v1102_v46 = vadd.f32 %v1101_v8, %v4821_v31  ;;  %v1105_v55 = vpop.f32.mrb[138].mxu1  ;;  %v1458_v56 = vpop.f32.mrb[138].mxu0 }
 0x1f0   :  { %v3478_v57 = vadd.f32 %v3477_v27, %v2651_v43  ;;  %v3552_v58 = vadd.f32 %v3551_v35, %v2653_v29  ;;  %v3515_v59 = vadd.f32 %v3514_v40, %v2652_v9  ;;  %v2654_v61 = vmax.f32 %v1451_v44, 0.0  ;;  %v1107_v62 = vpop.f32.mrb[139].mxu1  ;;  %v1460_v63 = vpop.f32.mrb[139].mxu0 }
 0x1f1   :  { %v3361_v6 = vcombine.low %v5140_v47, %v5143_v49  ;;  %v2661_v11 = vmax.f32 %v1102_v46, 0.0  ;;  %v1455_v0 = vadd.f32 %v1454_v42, %v4827_v25  ;;  %v1104_v14 = vadd.f32 %v1103_v52, %v4823_v21 }
 0x1f2   :  { %v3589_v50 = vadd.f32 %v3588_v51, %v2654_v61  ;;  %v1457_v10 = vadd.f32 %v1456_v45, %v4829_v26  ;;  %v1106_v19 = vadd.f32 %v1105_v55, %v4821_v31  ;;  %v1459_v12 = vadd.f32 %v1458_v56, %v4827_v25  ;;  %4027 = vmatmul.mubr.msk.bf16.gmra.mrb[244].mxu1 %vm403_vm2, %v4175_v13 }
 0x1f3   :  { %v3479_v16 = vadd.f32 %v3478_v57, %v2661_v11  ;;  %v2663_v18 = vmax.f32 %v1455_v0, 0.0  ;;  %v2662_v20 = vmax.f32 %v1104_v14, 0.0  ;;  %4059 = vmatmul.mubr.msk.bf16.gmra.mrb[244].mxu0 %vm403_vm2, %v4175_v13  ;;  %1765 = vmatprep.mubr.bf16.mxu1 %v4196_v3  ;;  %v1108_v27 = vadd.f32 %v1107_v62, %v4823_v21  ;;  %v4176_v0 = vld [vmem:[%s5735_s0 + $0x70] sm:$0xff]  }
 0x1f4   :  { %v2664_v22 = vmax.f32 %v1457_v10, 0.0  ;;  %v2671_v23 = vmax.f32 %v1106_v19, 0.0  ;;  %v2673_v24 = vmax.f32 %v1459_v12, 0.0  ;;  %2118 = vmatprep.mubr.bf16.mxu0 %v4196_v3  ;;  %v1461_v48 = vadd.f32 %v1460_v63, %v4829_v26 }
 0x1f5   :  { %v3553_v28 = vadd.f32 %v3552_v58, %v2663_v18  ;;  %v3516_v30 = vadd.f32 %v3515_v59, %v2662_v20  ;;  %v1111_v33 = vpop.f32.mrb[140].mxu1  ;;  %v1464_v34 = vpop.f32.mrb[140].mxu0  ;;  %v2672_v36 = vmax.f32 %v1108_v27, 0.0 }
 0x1f6   :  { %v3590_v35 = vadd.f32 %v3589_v50, %v2664_v22  ;;  %v3480_v17 = vadd.f32 %v3479_v16, %v2671_v23  ;;  %v1112_v37 = vadd.f32 %v1111_v33, %v4821_v31  ;;  %v1113_v38 = vpop.f32.mrb[141].mxu1  ;;  %v1466_v40 = vpop.f32.mrb[141].mxu0  ;;  %v2674_v8 = vmax.f32 %v1461_v48, 0.0 }
 0x1f7   :  { %v3554_v41 = vadd.f32 %v3553_v28, %v2673_v24  ;;  %v1465_v42 = vadd.f32 %v1464_v34, %v4827_v25  ;;  %v1114_v43 = vadd.f32 %v1113_v38, %v4823_v21  ;;  %v1115_v29 = vpop.f32.mrb[142].mxu1  ;;  %v1468_v9 = vpop.f32.mrb[142].mxu0  ;;  %v3517_v44 = vadd.f32 %v3516_v30, %v2672_v36 }
 0x1f8   :  { %v2681_v52 = vmax.f32 %v1112_v37, 0.0  ;;  %v1467_v45 = vadd.f32 %v1466_v40, %v4829_v26  ;;  %v1116_v51 = vadd.f32 %v1115_v29, %v4821_v31  ;;  %v1117_v46 = vpop.f32.mrb[143].mxu1  ;;  %v1470_v55 = vpop.f32.mrb[143].mxu0  ;;  %v3591_v56 = vadd.f32 %v3590_v35, %v2674_v8 }
 0x1f9   :  { %v2683_v57 = vmax.f32 %v1465_v42, 0.0  ;;  %v2682_v58 = vmax.f32 %v1114_v43, 0.0  ;;  %v1469_v59 = vadd.f32 %v1468_v9, %v4827_v25  ;;  %v1118_v11 = vadd.f32 %v1117_v46, %v4823_v21 }
 0x1fa   :  { %v3481_v61 = vadd.f32 %v3480_v17, %v2681_v52  ;;  %v2684_v62 = vmax.f32 %v1467_v45, 0.0  ;;  %v2691_v63 = vmax.f32 %v1116_v51, 0.0  ;;  %4028 = vmatmul.mubr.msk.bf16.gmra.mrb[248].mxu1 %vm403_vm2, %v4176_v0  ;;  %v1471_v19 = vadd.f32 %v1470_v55, %v4829_v26  ;;  %v4177_v55 = vld [vmem:[%s5735_s0 + $0x78] sm:$0xff]  }
 0x1fb   :  { %v3555_v14 = vadd.f32 %v3554_v41, %v2683_v57  ;;  %v3518_v50 = vadd.f32 %v3517_v44, %v2682_v58  ;;  %v2693_v10 = vmax.f32 %v1469_v59, 0.0  ;;  %4060 = vmatmul.mubr.msk.bf16.gmra.mrb[248].mxu0 %vm403_vm2, %v4176_v0  ;;  %1775 = vmatprep.mubr.bf16.mxu1 %v4196_v3  ;;  %v2692_v16 = vmax.f32 %v1118_v11, 0.0 }
 0x1fc   :  { %v3592_v12 = vadd.f32 %v3591_v56, %v2684_v62  ;;  %v3482_v13 = vadd.f32 %v3481_v61, %v2691_v63  ;;  %2128 = vmatprep.mubr.bf16.mxu0 %v4196_v3  ;;  %v2694_v20 = vmax.f32 %v1471_v19, 0.0 }
 0x1fd   :  { %v3556_v18 = vadd.f32 %v3555_v14, %v2693_v10  ;;  %v1121_v22 = vpop.f32.mrb[144].mxu1  ;;  %v1474_v23 = vpop.f32.mrb[144].mxu0  ;;  %v3519_v24 = vadd.f32 %v3518_v50, %v2692_v16 }
 0x1fe   :  { %v1122_v27 = vadd.f32 %v1121_v22, %v4821_v31  ;;  %v1475_v28 = vadd.f32 %v1474_v23, %v4827_v25  ;;  %v1123_v30 = vpop.f32.mrb[145].mxu1  ;;  %v1476_v48 = vpop.f32.mrb[145].mxu0  ;;  %v3593_v33 = vadd.f32 %v3592_v12, %v2694_v20 }
 0x1ff   :  { %v1124_v34 = vadd.f32 %v1123_v30, %v4823_v21  ;;  %v1477_v35 = vadd.f32 %v1476_v48, %v4829_v26  ;;  %v1125_v17 = vpop.f32.mrb[146].mxu1  ;;  %v1478_v36 = vpop.f32.mrb[146].mxu0 }
 0x200   :  { %v2701_v37 = vmax.f32 %v1122_v27, 0.0  ;;  %v2703_v38 = vmax.f32 %v1475_v28, 0.0  ;;  %v1126_v40 = vadd.f32 %v1125_v17, %v4821_v31  ;;  %v1479_v41 = vadd.f32 %v1478_v36, %v4827_v25  ;;  %v1127_v8 = vpop.f32.mrb[147].mxu1  ;;  %v1480_v42 = vpop.f32.mrb[147].mxu0 }
 0x201   :  { %v2702_v43 = vmax.f32 %v1124_v34, 0.0  ;;  %v2704_v29 = vmax.f32 %v1477_v35, 0.0  ;;  %v1128_v9 = vadd.f32 %v1127_v8, %v4823_v21  ;;  %v1481_v44 = vadd.f32 %v1480_v42, %v4829_v26 }
 0x202   :  { %v3483_v52 = vadd.f32 %v3482_v13, %v2701_v37  ;;  %v3557_v45 = vadd.f32 %v3556_v18, %v2703_v38  ;;  %v2711_v51 = vmax.f32 %v1126_v40, 0.0  ;;  %v2713_v46 = vmax.f32 %v1479_v41, 0.0  ;;  %4029 = vmatmul.mubr.msk.bf16.gmra.mrb[252].mxu1 %vm403_vm2, %v4177_v55  ;;  %v4178_v40 = vld [vmem:[%s5735_s0 + $0x80] sm:$0xff]  }
 0x203   :  { %v3520_v56 = vadd.f32 %v3519_v24, %v2702_v43  ;;  %v3594_v57 = vadd.f32 %v3593_v33, %v2704_v29  ;;  %v2712_v58 = vmax.f32 %v1128_v9, 0.0  ;;  %v2714_v59 = vmax.f32 %v1481_v44, 0.0  ;;  %4061 = vmatmul.mubr.msk.bf16.gmra.mrb[252].mxu0 %vm403_vm2, %v4177_v55  ;;  %1785 = vmatprep.mubr.bf16.mxu1 %v4196_v3 }
 0x204   :  { %v3484_v61 = vadd.f32 %v3483_v52, %v2711_v51  ;;  %v3558_v62 = vadd.f32 %v3557_v45, %v2713_v46  ;;  %2138 = vmatprep.mubr.bf16.mxu0 %v4196_v3 }
 0x205   :  { %v3521_v63 = vadd.f32 %v3520_v56, %v2712_v58  ;;  %v3595_v11 = vadd.f32 %v3594_v57, %v2714_v59  ;;  %v1131_v0 = vpop.f32.mrb[148].mxu1  ;;  %v1484_v14 = vpop.f32.mrb[148].mxu0 }
 0x206   :  { %v1132_v50 = vadd.f32 %v1131_v0, %v4821_v31  ;;  %v1485_v10 = vadd.f32 %v1484_v14, %v4827_v25  ;;  %v1133_v19 = vpop.f32.mrb[149].mxu1  ;;  %v1486_v12 = vpop.f32.mrb[149].mxu0 }
 0x207   :  { %v1134_v13 = vadd.f32 %v1133_v19, %v4823_v21  ;;  %v1487_v16 = vadd.f32 %v1486_v12, %v4829_v26  ;;  %v1135_v18 = vpop.f32.mrb[150].mxu1  ;;  %v1488_v20 = vpop.f32.mrb[150].mxu0 }
 0x208   :  { %v2721_v22 = vmax.f32 %v1132_v50, 0.0  ;;  %v2723_v23 = vmax.f32 %v1485_v10, 0.0  ;;  %v1136_v24 = vadd.f32 %v1135_v18, %v4821_v31  ;;  %v1489_v27 = vadd.f32 %v1488_v20, %v4827_v25  ;;  %v1137_v28 = vpop.f32.mrb[151].mxu1  ;;  %v1490_v30 = vpop.f32.mrb[151].mxu0 }
 0x209   :  { %v2722_v48 = vmax.f32 %v1134_v13, 0.0  ;;  %v2724_v33 = vmax.f32 %v1487_v16, 0.0  ;;  %v1138_v34 = vadd.f32 %v1137_v28, %v4823_v21  ;;  %v1491_v35 = vadd.f32 %v1490_v30, %v4829_v26 }
 0x20a   :  { %v3485_v17 = vadd.f32 %v3484_v61, %v2721_v22  ;;  %v3559_v36 = vadd.f32 %v3558_v62, %v2723_v23  ;;  %v2731_v37 = vmax.f32 %v1136_v24, 0.0  ;;  %v2733_v38 = vmax.f32 %v1489_v27, 0.0  ;;  %4030 = vmatmul.mubr.msk.bf16.gmra.mrb[0].mxu1 %vm403_vm2, %v4178_v40  ;;  %v4179_v24 = vld [vmem:[%s5735_s0 + $0x88] sm:$0xff]  }
 0x20b   :  { %v3522_v41 = vadd.f32 %v3521_v63, %v2722_v48  ;;  %v3596_v8 = vadd.f32 %v3595_v11, %v2724_v33  ;;  %v2732_v42 = vmax.f32 %v1138_v34, 0.0  ;;  %v2734_v43 = vmax.f32 %v1491_v35, 0.0  ;;  %4062 = vmatmul.mubr.msk.bf16.gmra.mrb[0].mxu0 %vm403_vm2, %v4178_v40  ;;  %1795 = vmatprep.mubr.bf16.mxu1 %v4196_v3 }
 0x20c   :  { %v3486_v29 = vadd.f32 %v3485_v17, %v2731_v37  ;;  %v3560_v9 = vadd.f32 %v3559_v36, %v2733_v38  ;;  %2148 = vmatprep.mubr.bf16.mxu0 %v4196_v3 }
 0x20d   :  { %v3523_v44 = vadd.f32 %v3522_v41, %v2732_v42  ;;  %v3597_v52 = vadd.f32 %v3596_v8, %v2734_v43  ;;  %v1141_v45 = vpop.f32.mrb[152].mxu1  ;;  %v1494_v51 = vpop.f32.mrb[152].mxu0 }
 0x20e   :  { %v1142_v46 = vadd.f32 %v1141_v45, %v4821_v31  ;;  %v1495_v55 = vadd.f32 %v1494_v51, %v4827_v25  ;;  %v1143_v56 = vpop.f32.mrb[153].mxu1  ;;  %v1496_v57 = vpop.f32.mrb[153].mxu0 }
 0x20f   :  { %v1144_v58 = vadd.f32 %v1143_v56, %v4823_v21  ;;  %v1497_v59 = vadd.f32 %v1496_v57, %v4829_v26  ;;  %v1145_v61 = vpop.f32.mrb[154].mxu1  ;;  %v1498_v62 = vpop.f32.mrb[154].mxu0 }
 0x210   :  { %v2741_v63 = vmax.f32 %v1142_v46, 0.0  ;;  %v2743_v11 = vmax.f32 %v1495_v55, 0.0  ;;  %v1146_v0 = vadd.f32 %v1145_v61, %v4821_v31  ;;  %v1499_v14 = vadd.f32 %v1498_v62, %v4827_v25  ;;  %v1147_v50 = vpop.f32.mrb[155].mxu1  ;;  %v1500_v10 = vpop.f32.mrb[155].mxu0 }
 0x211   :  { %v2742_v19 = vmax.f32 %v1144_v58, 0.0  ;;  %v2744_v12 = vmax.f32 %v1497_v59, 0.0  ;;  %v1148_v13 = vadd.f32 %v1147_v50, %v4823_v21  ;;  %v1501_v16 = vadd.f32 %v1500_v10, %v4829_v26 }
 0x212   :  { %v3487_v18 = vadd.f32 %v3486_v29, %v2741_v63  ;;  %v3561_v20 = vadd.f32 %v3560_v9, %v2743_v11  ;;  %v2751_v22 = vmax.f32 %v1146_v0, 0.0  ;;  %v2753_v23 = vmax.f32 %v1499_v14, 0.0  ;;  %4031 = vmatmul.mubr.msk.bf16.gmra.mrb[4].mxu1 %vm403_vm2, %v4179_v24  ;;  %v4180_v0 = vld [vmem:[%s5735_s0 + $0x90] sm:$0xff]  }
 0x213   :  { %v3524_v27 = vadd.f32 %v3523_v44, %v2742_v19  ;;  %v3598_v28 = vadd.f32 %v3597_v52, %v2744_v12  ;;  %v2752_v30 = vmax.f32 %v1148_v13, 0.0  ;;  %v2754_v48 = vmax.f32 %v1501_v16, 0.0  ;;  %4063 = vmatmul.mubr.msk.bf16.gmra.mrb[4].mxu0 %vm403_vm2, %v4179_v24  ;;  %1805 = vmatprep.mubr.bf16.mxu1 %v4196_v3 }
 0x214   :  { %v3488_v33 = vadd.f32 %v3487_v18, %v2751_v22  ;;  %v3562_v34 = vadd.f32 %v3561_v20, %v2753_v23  ;;  %2158 = vmatprep.mubr.bf16.mxu0 %v4196_v3 }
 0x215   :  { %v3525_v35 = vadd.f32 %v3524_v27, %v2752_v30  ;;  %v3599_v17 = vadd.f32 %v3598_v28, %v2754_v48  ;;  %v1151_v36 = vpop.f32.mrb[156].mxu1  ;;  %v1504_v37 = vpop.f32.mrb[156].mxu0 }
 0x216   :  { %v1152_v38 = vadd.f32 %v1151_v36, %v4821_v31  ;;  %v1505_v40 = vadd.f32 %v1504_v37, %v4827_v25  ;;  %v1153_v41 = vpop.f32.mrb[157].mxu1  ;;  %v1506_v8 = vpop.f32.mrb[157].mxu0 }
 0x217   :  { %v1154_v42 = vadd.f32 %v1153_v41, %v4823_v21  ;;  %v1507_v43 = vadd.f32 %v1506_v8, %v4829_v26  ;;  %v1155_v29 = vpop.f32.mrb[158].mxu1  ;;  %v1508_v9 = vpop.f32.mrb[158].mxu0 }
 0x218   :  { %v2761_v44 = vmax.f32 %v1152_v38, 0.0  ;;  %v2763_v52 = vmax.f32 %v1505_v40, 0.0  ;;  %v1156_v45 = vadd.f32 %v1155_v29, %v4821_v31  ;;  %v1509_v51 = vadd.f32 %v1508_v9, %v4827_v25  ;;  %v1157_v46 = vpop.f32.mrb[159].mxu1  ;;  %v1510_v55 = vpop.f32.mrb[159].mxu0 }
 0x219   :  { %v2762_v56 = vmax.f32 %v1154_v42, 0.0  ;;  %v2764_v57 = vmax.f32 %v1507_v43, 0.0  ;;  %v1158_v58 = vadd.f32 %v1157_v46, %v4823_v21  ;;  %v1511_v59 = vadd.f32 %v1510_v55, %v4829_v26 }
 0x21a   :  { %v3489_v61 = vadd.f32 %v3488_v33, %v2761_v44  ;;  %v3563_v62 = vadd.f32 %v3562_v34, %v2763_v52  ;;  %v2771_v63 = vmax.f32 %v1156_v45, 0.0  ;;  %v2773_v11 = vmax.f32 %v1509_v51, 0.0  ;;  %4032 = vmatmul.mubr.msk.bf16.gmra.mrb[8].mxu1 %vm403_vm2, %v4180_v0  ;;  %v4181_v45 = vld [vmem:[%s5735_s0 + $0x98] sm:$0xff]  }
 0x21b   :  { %v3526_v14 = vadd.f32 %v3525_v35, %v2762_v56  ;;  %v3600_v50 = vadd.f32 %v3599_v17, %v2764_v57  ;;  %v2772_v10 = vmax.f32 %v1158_v58, 0.0  ;;  %v2774_v19 = vmax.f32 %v1511_v59, 0.0  ;;  %4064 = vmatmul.mubr.msk.bf16.gmra.mrb[8].mxu0 %vm403_vm2, %v4180_v0  ;;  %1815 = vmatprep.mubr.bf16.mxu1 %v4196_v3 }
 0x21c   :  { %v3490_v12 = vadd.f32 %v3489_v61, %v2771_v63  ;;  %v3564_v13 = vadd.f32 %v3563_v62, %v2773_v11  ;;  %2168 = vmatprep.mubr.bf16.mxu0 %v4196_v3 }
 0x21d   :  { %v3527_v16 = vadd.f32 %v3526_v14, %v2772_v10  ;;  %v3601_v18 = vadd.f32 %v3600_v50, %v2774_v19  ;;  %v1161_v20 = vpop.f32.mrb[160].mxu1  ;;  %v1514_v22 = vpop.f32.mrb[160].mxu0 }
 0x21e   :  { %v1162_v23 = vadd.f32 %v1161_v20, %v4821_v31  ;;  %v1515_v24 = vadd.f32 %v1514_v22, %v4827_v25  ;;  %v1163_v27 = vpop.f32.mrb[161].mxu1  ;;  %v1516_v28 = vpop.f32.mrb[161].mxu0 }
 0x21f   :  { %v1164_v30 = vadd.f32 %v1163_v27, %v4823_v21  ;;  %v1517_v48 = vadd.f32 %v1516_v28, %v4829_v26  ;;  %v1165_v33 = vpop.f32.mrb[162].mxu1  ;;  %v1518_v34 = vpop.f32.mrb[162].mxu0 }
 0x220   :  { %v2781_v35 = vmax.f32 %v1162_v23, 0.0  ;;  %v2783_v17 = vmax.f32 %v1515_v24, 0.0  ;;  %v1166_v36 = vadd.f32 %v1165_v33, %v4821_v31  ;;  %v1519_v37 = vadd.f32 %v1518_v34, %v4827_v25  ;;  %v1167_v38 = vpop.f32.mrb[163].mxu1  ;;  %v1520_v40 = vpop.f32.mrb[163].mxu0 }
 0x221   :  { %v2782_v41 = vmax.f32 %v1164_v30, 0.0  ;;  %v2784_v8 = vmax.f32 %v1517_v48, 0.0  ;;  %v1168_v42 = vadd.f32 %v1167_v38, %v4823_v21  ;;  %v1521_v43 = vadd.f32 %v1520_v40, %v4829_v26 }
 0x222   :  { %v3491_v29 = vadd.f32 %v3490_v12, %v2781_v35  ;;  %v3565_v9 = vadd.f32 %v3564_v13, %v2783_v17  ;;  %v2791_v44 = vmax.f32 %v1166_v36, 0.0  ;;  %v2793_v52 = vmax.f32 %v1519_v37, 0.0  ;;  %4033 = vmatmul.mubr.msk.bf16.gmra.mrb[12].mxu1 %vm403_vm2, %v4181_v45  ;;  %v4182_v36 = vld [vmem:[%s5735_s0 + $0xa0] sm:$0xff]  }
 0x223   :  { %v3528_v51 = vadd.f32 %v3527_v16, %v2782_v41  ;;  %v3602_v46 = vadd.f32 %v3601_v18, %v2784_v8  ;;  %v2792_v55 = vmax.f32 %v1168_v42, 0.0  ;;  %v2794_v56 = vmax.f32 %v1521_v43, 0.0  ;;  %4065 = vmatmul.mubr.msk.bf16.gmra.mrb[12].mxu0 %vm403_vm2, %v4181_v45  ;;  %1825 = vmatprep.mubr.bf16.mxu1 %v4196_v3 }
 0x224   :  { %v3492_v57 = vadd.f32 %v3491_v29, %v2791_v44  ;;  %v3566_v58 = vadd.f32 %v3565_v9, %v2793_v52  ;;  %2178 = vmatprep.mubr.bf16.mxu0 %v4196_v3 }
 0x225   :  { %v3529_v59 = vadd.f32 %v3528_v51, %v2792_v55  ;;  %v3603_v61 = vadd.f32 %v3602_v46, %v2794_v56  ;;  %v1171_v62 = vpop.f32.mrb[164].mxu1  ;;  %v1524_v63 = vpop.f32.mrb[164].mxu0 }
 0x226   :  { %v1172_v11 = vadd.f32 %v1171_v62, %v4821_v31  ;;  %v1525_v0 = vadd.f32 %v1524_v63, %v4827_v25  ;;  %v1173_v14 = vpop.f32.mrb[165].mxu1  ;;  %v1526_v50 = vpop.f32.mrb[165].mxu0 }
 0x227   :  { %v1174_v10 = vadd.f32 %v1173_v14, %v4823_v21  ;;  %v1527_v19 = vadd.f32 %v1526_v50, %v4829_v26  ;;  %v1175_v12 = vpop.f32.mrb[166].mxu1  ;;  %v1528_v13 = vpop.f32.mrb[166].mxu0 }
 0x228   :  { %v2801_v16 = vmax.f32 %v1172_v11, 0.0  ;;  %v2803_v18 = vmax.f32 %v1525_v0, 0.0  ;;  %v1176_v20 = vadd.f32 %v1175_v12, %v4821_v31  ;;  %v1529_v22 = vadd.f32 %v1528_v13, %v4827_v25  ;;  %v1177_v23 = vpop.f32.mrb[167].mxu1  ;;  %v1530_v24 = vpop.f32.mrb[167].mxu0 }
 0x229   :  { %v2802_v27 = vmax.f32 %v1174_v10, 0.0  ;;  %v2804_v28 = vmax.f32 %v1527_v19, 0.0  ;;  %v1178_v30 = vadd.f32 %v1177_v23, %v4823_v21  ;;  %v1531_v48 = vadd.f32 %v1530_v24, %v4829_v26 }
 0x22a   :  { %v3493_v33 = vadd.f32 %v3492_v57, %v2801_v16  ;;  %v3567_v34 = vadd.f32 %v3566_v58, %v2803_v18  ;;  %v2811_v35 = vmax.f32 %v1176_v20, 0.0  ;;  %v2813_v17 = vmax.f32 %v1529_v22, 0.0  ;;  %4034 = vmatmul.mubr.msk.bf16.gmra.mrb[16].mxu1 %vm403_vm2, %v4182_v36  ;;  %v4183_v20 = vld [vmem:[%s5735_s0 + $0xa8] sm:$0xff]  }
 0x22b   :  { %v3530_v37 = vadd.f32 %v3529_v59, %v2802_v27  ;;  %v3604_v38 = vadd.f32 %v3603_v61, %v2804_v28  ;;  %v2812_v40 = vmax.f32 %v1178_v30, 0.0  ;;  %v2814_v41 = vmax.f32 %v1531_v48, 0.0  ;;  %4066 = vmatmul.mubr.msk.bf16.gmra.mrb[16].mxu0 %vm403_vm2, %v4182_v36  ;;  %1835 = vmatprep.mubr.bf16.mxu1 %v4196_v3 }
 0x22c   :  { %v3494_v8 = vadd.f32 %v3493_v33, %v2811_v35  ;;  %v3568_v42 = vadd.f32 %v3567_v34, %v2813_v17  ;;  %2188 = vmatprep.mubr.bf16.mxu0 %v4196_v3 }
 0x22d   :  { %v3531_v43 = vadd.f32 %v3530_v37, %v2812_v40  ;;  %v3605_v29 = vadd.f32 %v3604_v38, %v2814_v41  ;;  %v1181_v9 = vpop.f32.mrb[168].mxu1  ;;  %v1534_v44 = vpop.f32.mrb[168].mxu0 }
 0x22e   :  { %v1182_v52 = vadd.f32 %v1181_v9, %v4821_v31  ;;  %v1535_v45 = vadd.f32 %v1534_v44, %v4827_v25  ;;  %v1183_v51 = vpop.f32.mrb[169].mxu1  ;;  %v1536_v46 = vpop.f32.mrb[169].mxu0 }
 0x22f   :  { %v1184_v55 = vadd.f32 %v1183_v51, %v4823_v21  ;;  %v1537_v56 = vadd.f32 %v1536_v46, %v4829_v26  ;;  %v1185_v57 = vpop.f32.mrb[170].mxu1  ;;  %v1538_v58 = vpop.f32.mrb[170].mxu0 }
 0x230   :  { %v2821_v59 = vmax.f32 %v1182_v52, 0.0  ;;  %v2823_v61 = vmax.f32 %v1535_v45, 0.0  ;;  %v1186_v62 = vadd.f32 %v1185_v57, %v4821_v31  ;;  %v1539_v63 = vadd.f32 %v1538_v58, %v4827_v25  ;;  %v1187_v11 = vpop.f32.mrb[171].mxu1  ;;  %v1540_v0 = vpop.f32.mrb[171].mxu0 }
 0x231   :  { %v2822_v14 = vmax.f32 %v1184_v55, 0.0  ;;  %v2824_v50 = vmax.f32 %v1537_v56, 0.0  ;;  %v1188_v10 = vadd.f32 %v1187_v11, %v4823_v21  ;;  %v1541_v19 = vadd.f32 %v1540_v0, %v4829_v26 }
 0x232   :  { %v3495_v12 = vadd.f32 %v3494_v8, %v2821_v59  ;;  %v3569_v13 = vadd.f32 %v3568_v42, %v2823_v61  ;;  %v2831_v16 = vmax.f32 %v1186_v62, 0.0  ;;  %v2833_v18 = vmax.f32 %v1539_v63, 0.0  ;;  %4035 = vmatmul.mubr.msk.bf16.gmra.mrb[20].mxu1 %vm403_vm2, %v4183_v20  ;;  %v4184_v62 = vld [vmem:[%s5735_s0 + $0xb0] sm:$0xff]  }
 0x233   :  { %v3532_v22 = vadd.f32 %v3531_v43, %v2822_v14  ;;  %v3606_v23 = vadd.f32 %v3605_v29, %v2824_v50  ;;  %v2832_v24 = vmax.f32 %v1188_v10, 0.0  ;;  %v2834_v27 = vmax.f32 %v1541_v19, 0.0  ;;  %4067 = vmatmul.mubr.msk.bf16.gmra.mrb[20].mxu0 %vm403_vm2, %v4183_v20  ;;  %1845 = vmatprep.mubr.bf16.mxu1 %v4196_v3 }
 0x234   :  { %v3496_v28 = vadd.f32 %v3495_v12, %v2831_v16  ;;  %v3570_v30 = vadd.f32 %v3569_v13, %v2833_v18  ;;  %2198 = vmatprep.mubr.bf16.mxu0 %v4196_v3 }
 0x235   :  { %v3533_v48 = vadd.f32 %v3532_v22, %v2832_v24  ;;  %v3607_v33 = vadd.f32 %v3606_v23, %v2834_v27  ;;  %v1191_v34 = vpop.f32.mrb[172].mxu1  ;;  %v1544_v35 = vpop.f32.mrb[172].mxu0 }
 0x236   :  { %v1192_v17 = vadd.f32 %v1191_v34, %v4821_v31  ;;  %v1545_v36 = vadd.f32 %v1544_v35, %v4827_v25  ;;  %v1193_v37 = vpop.f32.mrb[173].mxu1  ;;  %v1546_v38 = vpop.f32.mrb[173].mxu0 }
 0x237   :  { %v1194_v40 = vadd.f32 %v1193_v37, %v4823_v21  ;;  %v1547_v41 = vadd.f32 %v1546_v38, %v4829_v26  ;;  %v1195_v8 = vpop.f32.mrb[174].mxu1  ;;  %v1548_v42 = vpop.f32.mrb[174].mxu0 }
 0x238   :  { %v2841_v43 = vmax.f32 %v1192_v17, 0.0  ;;  %v2843_v29 = vmax.f32 %v1545_v36, 0.0  ;;  %v1196_v9 = vadd.f32 %v1195_v8, %v4821_v31  ;;  %v1549_v44 = vadd.f32 %v1548_v42, %v4827_v25  ;;  %v1197_v52 = vpop.f32.mrb[175].mxu1  ;;  %v1550_v45 = vpop.f32.mrb[175].mxu0 }
 0x239   :  { %v2842_v51 = vmax.f32 %v1194_v40, 0.0  ;;  %v2844_v46 = vmax.f32 %v1547_v41, 0.0  ;;  %v1198_v55 = vadd.f32 %v1197_v52, %v4823_v21  ;;  %v1551_v56 = vadd.f32 %v1550_v45, %v4829_v26 }
 0x23a   :  { %v3497_v57 = vadd.f32 %v3496_v28, %v2841_v43  ;;  %v3571_v58 = vadd.f32 %v3570_v30, %v2843_v29  ;;  %v2851_v59 = vmax.f32 %v1196_v9, 0.0  ;;  %v2853_v61 = vmax.f32 %v1549_v44, 0.0  ;;  %4036 = vmatmul.mubr.msk.bf16.gmra.mrb[24].mxu1 %vm403_vm2, %v4184_v62  ;;  %v4185_v9 = vld [vmem:[%s5735_s0 + $0xb8] sm:$0xff]  }
 0x23b   :  { %v3534_v63 = vadd.f32 %v3533_v48, %v2842_v51  ;;  %v3608_v11 = vadd.f32 %v3607_v33, %v2844_v46  ;;  %v2852_v0 = vmax.f32 %v1198_v55, 0.0  ;;  %v2854_v14 = vmax.f32 %v1551_v56, 0.0  ;;  %4068 = vmatmul.mubr.msk.bf16.gmra.mrb[24].mxu0 %vm403_vm2, %v4184_v62  ;;  %1855 = vmatprep.mubr.bf16.mxu1 %v4196_v3 }
 0x23c   :  { %v3498_v50 = vadd.f32 %v3497_v57, %v2851_v59  ;;  %v3572_v10 = vadd.f32 %v3571_v58, %v2853_v61  ;;  %2208 = vmatprep.mubr.bf16.mxu0 %v4196_v3 }
 0x23d   :  { %v3535_v19 = vadd.f32 %v3534_v63, %v2852_v0  ;;  %v3609_v12 = vadd.f32 %v3608_v11, %v2854_v14  ;;  %v1201_v13 = vpop.f32.mrb[176].mxu1  ;;  %v1554_v16 = vpop.f32.mrb[176].mxu0 }
 0x23e   :  { %v1202_v18 = vadd.f32 %v1201_v13, %v4821_v31  ;;  %v1555_v20 = vadd.f32 %v1554_v16, %v4827_v25  ;;  %v1203_v22 = vpop.f32.mrb[177].mxu1  ;;  %v1556_v23 = vpop.f32.mrb[177].mxu0 }
 0x23f   :  { %v1204_v24 = vadd.f32 %v1203_v22, %v4823_v21  ;;  %v1557_v27 = vadd.f32 %v1556_v23, %v4829_v26  ;;  %v1205_v28 = vpop.f32.mrb[178].mxu1  ;;  %v1558_v30 = vpop.f32.mrb[178].mxu0 }
 0x240   :  { %v2861_v48 = vmax.f32 %v1202_v18, 0.0  ;;  %v2863_v33 = vmax.f32 %v1555_v20, 0.0  ;;  %v1206_v34 = vadd.f32 %v1205_v28, %v4821_v31  ;;  %v1559_v35 = vadd.f32 %v1558_v30, %v4827_v25  ;;  %v1207_v17 = vpop.f32.mrb[179].mxu1  ;;  %v1560_v36 = vpop.f32.mrb[179].mxu0 }
 0x241   :  { %v2862_v37 = vmax.f32 %v1204_v24, 0.0  ;;  %v2864_v38 = vmax.f32 %v1557_v27, 0.0  ;;  %v1208_v40 = vadd.f32 %v1207_v17, %v4823_v21  ;;  %v1561_v41 = vadd.f32 %v1560_v36, %v4829_v26 }
 0x242   :  { %v3499_v8 = vadd.f32 %v3498_v50, %v2861_v48  ;;  %v3573_v42 = vadd.f32 %v3572_v10, %v2863_v33  ;;  %v2871_v43 = vmax.f32 %v1206_v34, 0.0  ;;  %v2873_v29 = vmax.f32 %v1559_v35, 0.0  ;;  %4037 = vmatmul.mubr.msk.bf16.gmra.mrb[28].mxu1 %vm403_vm2, %v4185_v9  ;;  %v4186_v48 = vld [vmem:[%s5735_s0 + $0xc0] sm:$0xff]  }
 0x243   :  { %v3536_v44 = vadd.f32 %v3535_v19, %v2862_v37  ;;  %v3610_v52 = vadd.f32 %v3609_v12, %v2864_v38  ;;  %v2872_v45 = vmax.f32 %v1208_v40, 0.0  ;;  %v2874_v51 = vmax.f32 %v1561_v41, 0.0  ;;  %4069 = vmatmul.mubr.msk.bf16.gmra.mrb[28].mxu0 %vm403_vm2, %v4185_v9  ;;  %1865 = vmatprep.mubr.bf16.mxu1 %v4196_v3 }
 0x244   :  { %v3500_v46 = vadd.f32 %v3499_v8, %v2871_v43  ;;  %v3574_v55 = vadd.f32 %v3573_v42, %v2873_v29  ;;  %2218 = vmatprep.mubr.bf16.mxu0 %v4196_v3 }
 0x245   :  { %v3537_v56 = vadd.f32 %v3536_v44, %v2872_v45  ;;  %v3611_v57 = vadd.f32 %v3610_v52, %v2874_v51  ;;  %v1211_v58 = vpop.f32.mrb[180].mxu1  ;;  %v1564_v61 = vpop.f32.mrb[180].mxu0 }
 0x246   :  { %v1212_v59 = vadd.f32 %v1211_v58, %v4821_v31  ;;  %v1213_v62 = vpop.f32.mrb[181].mxu1  ;;  %v1565_v63 = vadd.f32 %v1564_v61, %v4827_v25  ;;  %v1566_v0 = vpop.f32.mrb[181].mxu0 }
 0x247   :  { %v1214_v11 = vadd.f32 %v1213_v62, %v4823_v21  ;;  %v1215_v14 = vpop.f32.mrb[182].mxu1  ;;  %v1567_v10 = vadd.f32 %v1566_v0, %v4829_v26  ;;  %v1568_v12 = vpop.f32.mrb[182].mxu0 }
 0x248   :  { %v2881_v50 = vmax.f32 %v1212_v59, 0.0  ;;  %v1216_v19 = vadd.f32 %v1215_v14, %v4821_v31  ;;  %v1217_v13 = vpop.f32.mrb[183].mxu1  ;;  %v2883_v16 = vmax.f32 %v1565_v63, 0.0  ;;  %v1569_v20 = vadd.f32 %v1568_v12, %v4827_v25  ;;  %v1570_v23 = vpop.f32.mrb[183].mxu0  ;;  %v4187_v12 = vld [vmem:[%s5735_s0 + $0xc8] sm:$0xff]  }
 0x249   :  { %v2882_v18 = vmax.f32 %v1214_v11, 0.0  ;;  %v1218_v22 = vadd.f32 %v1217_v13, %v4823_v21  ;;  %v2884_v27 = vmax.f32 %v1567_v10, 0.0  ;;  %v1571_v30 = vadd.f32 %v1570_v23, %v4829_v26 }
 0x24a   :  { %v3501_v24 = vadd.f32 %v3500_v46, %v2881_v50  ;;  %v2891_v28 = vmax.f32 %v1216_v19, 0.0  ;;  %4038 = vmatmul.mubr.msk.bf16.gmra.mrb[32].mxu1 %vm403_vm2, %v4186_v48  ;;  %v3575_v33 = vadd.f32 %v3574_v55, %v2883_v16  ;;  %v2893_v35 = vmax.f32 %v1569_v20, 0.0 }
 0x24b   :  { %v3538_v34 = vadd.f32 %v3537_v56, %v2882_v18  ;;  %v2892_v17 = vmax.f32 %v1218_v22, 0.0  ;;  %4070 = vmatmul.mubr.msk.bf16.gmra.mrb[32].mxu0 %vm403_vm2, %v4186_v48  ;;  %1875 = vmatprep.mubr.bf16.mxu1 %v4196_v3  ;;  %v3612_v36 = vadd.f32 %v3611_v57, %v2884_v27  ;;  %v2894_v38 = vmax.f32 %v1571_v30, 0.0 }
 0x24c   :  { %v3502_v37 = vadd.f32 %v3501_v24, %v2891_v28  ;;  %2228 = vmatprep.mubr.bf16.mxu0 %v4196_v3  ;;  %v3576_v40 = vadd.f32 %v3575_v33, %v2893_v35  ;;  %v129_v59 = vsub.s32 6, %v4574_v4  ;;  %v133_v27 = vsub.s32 7, %v4574_v4  ;;  %v100_v28 = vld [vmem:[%s5736_s2 + $0x8] sm:$0x3] }
 0x24d   :  { %v3539_v41 = vadd.f32 %v3538_v34, %v2892_v17  ;;  %v1221_v8 = vpop.f32.mrb[184].mxu1  ;;  %v3613_v42 = vadd.f32 %v3612_v36, %v2894_v38  ;;  %v1574_v29 = vpop.f32.mrb[184].mxu0 }
 0x24e   :  { %v1222_v43 = vadd.f32 %v1221_v8, %v4821_v31  ;;  %v1223_v9 = vpop.f32.mrb[185].mxu1  ;;  %v1575_v44 = vadd.f32 %v1574_v29, %v4827_v25  ;;  %v1576_v45 = vpop.f32.mrb[185].mxu0  ;;  %v4188_v8 = vld [vmem:[%s5736_s2] sm:$0xff] }
 0x24f   :  { %v1224_v52 = vadd.f32 %v1223_v9, %v4823_v21  ;;  %v1225_v51 = vpop.f32.mrb[186].mxu1  ;;  %v1577_v55 = vadd.f32 %v1576_v45, %v4829_v26  ;;  %v1578_v57 = vpop.f32.mrb[186].mxu0 }
 0x250   :  { %v2901_v46 = vmax.f32 %v1222_v43, 0.0  ;;  %v1226_v56 = vadd.f32 %v1225_v51, %v4821_v31  ;;  %v1227_v58 = vpop.f32.mrb[187].mxu1  ;;  %v2903_v61 = vmax.f32 %v1575_v44, 0.0  ;;  %v1579_v63 = vadd.f32 %v1578_v57, %v4827_v25  ;;  %v1580_v0 = vpop.f32.mrb[187].mxu0 }
 0x251   :  { %v2902_v62 = vmax.f32 %v1224_v52, 0.0  ;;  %v1228_v11 = vadd.f32 %v1227_v58, %v4823_v21  ;;  %v2904_v50 = vmax.f32 %v1577_v55, 0.0  ;;  %v1581_v19 = vadd.f32 %v1580_v0, %v4829_v26 }
 0x252   :  { %v3503_v14 = vadd.f32 %v3502_v37, %v2901_v46  ;;  %v2911_v10 = vmax.f32 %v1226_v56, 0.0  ;;  %4039 = vmatmul.mubr.msk.bf16.gmra.mrb[36].mxu1 %vm403_vm2, %v4187_v12  ;;  %v3577_v13 = vadd.f32 %v3576_v40, %v2903_v61  ;;  %v2913_v18 = vmax.f32 %v1579_v63, 0.0 }
 0x253   :  { %v3540_v16 = vadd.f32 %v3539_v41, %v2902_v62  ;;  %v2912_v20 = vmax.f32 %v1228_v11, 0.0  ;;  %4071 = vmatmul.mubr.msk.bf16.gmra.mrb[36].mxu0 %vm403_vm2, %v4187_v12  ;;  %1885 = vmatprep.mubr.bf16.mxu1 %v4196_v3  ;;  %v3614_v22 = vadd.f32 %v3613_v42, %v2904_v50  ;;  %v2914_v24 = vmax.f32 %v1581_v19, 0.0 }
 0x254   :  { %v3504_v23 = vadd.f32 %v3503_v14, %v2911_v10  ;;  %2238 = vmatprep.mubr.bf16.mxu0 %v4196_v3  ;;  %v3578_v30 = vadd.f32 %v3577_v13, %v2913_v18  ;;  %v5353_v42 = vrot.slane %v4188_v8, %v129_v59  ;;  %v5357_v43 = vrot.slane %v100_v28, %v105_v5 }
 0x255   :  { %v3541_v48 = vadd.f32 %v3540_v16, %v2912_v20  ;;  %v1231_v33 = vpop.f32.mrb[188].mxu1  ;;  %v3615_v34 = vadd.f32 %v3614_v22, %v2914_v24  ;;  %v1584_v17 = vpop.f32.mrb[188].mxu0  ;;  %v5361_v51 = vrot.slane %v4188_v8, %v133_v27 }
 0x256   :  { %v1232_v35 = vadd.f32 %v1231_v33, %v4821_v31  ;;  %v1233_v36 = vpop.f32.mrb[189].mxu1  ;;  %v1585_v37 = vadd.f32 %v1584_v17, %v4827_v25  ;;  %v1586_v40 = vpop.f32.mrb[189].mxu0 }
 0x257   :  { %v1234_v38 = vadd.f32 %v1233_v36, %v4823_v21  ;;  %v1235_v41 = vpop.f32.mrb[190].mxu1  ;;  %v1587_v9 = vadd.f32 %v1586_v40, %v4829_v26  ;;  %v1588_v52 = vpop.f32.mrb[190].mxu0 }
 0x258   :  { %v2921_v29 = vmax.f32 %v1232_v35, 0.0  ;;  %v1236_v44 = vadd.f32 %v1235_v41, %v4821_v31  ;;  %v1237_v45 = vpop.f32.mrb[191].mxu1  ;;  %v2923_v46 = vmax.f32 %v1585_v37, 0.0  ;;  %v1589_v56 = vadd.f32 %v1588_v52, %v4827_v25  ;;  %v1590_v58 = vpop.f32.mrb[191].mxu0  ;;  %v4189_v31 = vld [vmem:[%s5735_s0 + $0xd0] sm:$0xff]  }
 0x259   :  { %v2922_v55 = vmax.f32 %v1234_v38, 0.0  ;;  %v1238_v57 = vadd.f32 %v1237_v45, %v4823_v21  ;;  %v2924_v61 = vmax.f32 %v1587_v9, 0.0  ;;  %v1591_v62 = vadd.f32 %v1590_v58, %v4829_v26  ;;  %v4190_v9 = vld [vmem:[%s5735_s0 + $0xd8] sm:$0xff]  }
 0x25a   :  { %v3505_v59 = vadd.f32 %v3504_v23, %v2921_v29  ;;  %v2931_v5 = vmax.f32 %v1236_v44, 0.0  ;;  %4040 = vmatmul.mubr.msk.bf16.gmra.mrb[40].mxu1 %vm403_vm2, %v4189_v31  ;;  %v3579_v63 = vadd.f32 %v3578_v30, %v2923_v46  ;;  %v2933_v0 = vmax.f32 %v1589_v56, 0.0 }
 0x25b   :  { %v3542_v11 = vadd.f32 %v3541_v48, %v2922_v55  ;;  %v2932_v14 = vmax.f32 %v1238_v57, 0.0  ;;  %4072 = vmatmul.mubr.msk.bf16.gmra.mrb[40].mxu0 %vm403_vm2, %v4189_v31  ;;  %1895 = vmatprep.mubr.bf16.mxu1 %v4196_v3  ;;  %v3616_v21 = vadd.f32 %v3615_v34, %v2924_v61  ;;  %v2934_v50 = vmax.f32 %v1591_v62, 0.0 }
 0x25c   :  { %v3506_v25 = vadd.f32 %v3505_v59, %v2931_v5  ;;  %2248 = vmatprep.mubr.bf16.mxu0 %v4196_v3  ;;  %v5377_v26 = vrot.slane %v3792_v15, %v5098_v53  ;;  %v3580_v10 = vadd.f32 %v3579_v63, %v2933_v0  ;;  %v5382_v23 = vrot.slane %v100_v28, %v109_v7 }
 0x25d   :  { %v3543_v19 = vadd.f32 %v3542_v11, %v2932_v14  ;;  %v1627_v12 = vpop.f32.mrb[192].mxu1  ;;  %v3617_v16 = vadd.f32 %v3616_v21, %v2934_v50  ;;  %v1980_v22 = vpop.f32.mrb[192].mxu0 }
 0x25e   :  { %v3507_v13 = vrot.slane %v3506_v25, 4  ;;  %v1628_v18 = vadd.f32 %v1627_v12, %v5353_v42  ;;  %v1629_v20 = vpop.f32.mrb[193].mxu1  ;;  %v3581_v24 = vrot.slane %v3580_v10, 4  ;;  %v1981_v1 = vadd.f32 %v1980_v22, %v5357_v43  ;;  %v1982_v15 = vpop.f32.mrb[193].mxu0 }
 0x25f   :  { %v3544_v27 = vrot.slane %v3543_v19, 4  ;;  %v1630_v30 = vadd.f32 %v1629_v20, %v5361_v51  ;;  %v1631_v60 = vpop.f32.mrb[194].mxu1  ;;  %v3618_v33 = vrot.slane %v3617_v16, 4  ;;  %v1984_v36 = vpop.f32.mrb[194].mxu0  ;;  %v1983_v45 = vadd.f32 %v1982_v15, %v5382_v23 }
 0x260   :  { %v3508_v48 = vadd.f32 %v3507_v13, %v3506_v25  ;;  %v2305_v34 = vmax.f32 %v1628_v18, 0.0  ;;  %v1632_v35 = vadd.f32 %v1631_v60, %v5353_v42  ;;  %v1633_v17 = vpop.f32.mrb[195].mxu1  ;;  %v3582_v37 = vadd.f32 %v3581_v24, %v3580_v10  ;;  %v1986_v28 = vpop.f32.mrb[195].mxu0 }
 0x261   :  { %v3545_v38 = vadd.f32 %v3544_v27, %v3543_v19  ;;  %v2306_v4 = vmax.f32 %v1630_v30, 0.0  ;;  %v2307_v7 = vmax.f32 %v1981_v1, 0.0  ;;  %v3619_v41 = vadd.f32 %v3618_v33, %v3617_v16 }
 0x262   :  { %v3509_v40 = vrot.slane %v3508_v48, 2  ;;  %v2315_v8 = vmax.f32 %v1632_v35, 0.0  ;;  %v1634_v29 = vadd.f32 %v1633_v17, %v5361_v51  ;;  %4041 = vmatmul.mubr.msk.bf16.gmra.mrb[44].mxu1 %vm403_vm2, %v4190_v9  ;;  %v3583_v44 = vrot.slane %v3582_v37, 2 }
 0x263   :  { %v3546_v52 = vrot.slane %v3545_v38, 2  ;;  %v1985_v46 = vadd.f32 %v1984_v36, %v5357_v43  ;;  %4073 = vmatmul.mubr.msk.bf16.gmra.mrb[44].mxu0 %vm403_vm2, %v4190_v9  ;;  %1905 = vmatprep.mubr.bf16.mxu1 %v4196_v3  ;;  %v3620_v56 = vrot.slane %v3619_v41, 2  ;;  %v2308_v5 = vmax.f32 %v1983_v45, 0.0 }
 0x264   :  { %v3510_v55 = vadd.f32 %v3509_v40, %v3508_v48  ;;  %v3161_v57 = vadd.f32 %v2315_v8, %v2305_v34  ;;  %v2316_v58 = vmax.f32 %v1634_v29, 0.0  ;;  %2258 = vmatprep.mubr.bf16.mxu0 %v4196_v3  ;;  %v3584_v59 = vadd.f32 %v3583_v44, %v3582_v37  ;;  %v4191_v37 = vld [vmem:[%s5735_s0 + $0xe0] sm:$0xff]  }
 0x265   :  { %v3547_v61 = vadd.f32 %v3546_v52, %v3545_v38  ;;  %v2317_v62 = vmax.f32 %v1985_v46, 0.0  ;;  %v1637_v31 = vpop.f32.mrb[196].mxu1  ;;  %v3621_v11 = vadd.f32 %v3620_v56, %v3619_v41  ;;  %v1987_v14 = vadd.f32 %v1986_v28, %v5382_v23  ;;  %v1990_v21 = vpop.f32.mrb[196].mxu0 }
 0x266   :  { %v3511_v63 = vrot.slane %v3510_v55, 1  ;;  %v3198_v0 = vadd.f32 %v2316_v58, %v2306_v4  ;;  %v1639_v25 = vpop.f32.mrb[197].mxu1  ;;  %v3585_v50 = vrot.slane %v3584_v59, 1  ;;  %v1638_v12 = vadd.f32 %v1637_v31, %v5353_v42  ;;  %v1992_v13 = vpop.f32.mrb[197].mxu0 }
 0x267   :  { %v3548_v10 = vrot.slane %v3547_v61, 1  ;;  %v3235_v19 = vadd.f32 %v2317_v62, %v2307_v7  ;;  %v1641_v16 = vpop.f32.mrb[198].mxu1  ;;  %v3622_v20 = vrot.slane %v3621_v11, 1  ;;  %v2318_v22 = vmax.f32 %v1987_v14, 0.0  ;;  %v1994_v27 = vpop.f32.mrb[198].mxu0 }
 0x268   :  { %v3512_v18 = vadd.f32 %v3511_v63, %v3510_v55  ;;  %v1991_v24 = vadd.f32 %v1990_v21, %v5357_v43  ;;  %v1643_v30 = vpop.f32.mrb[199].mxu1  ;;  %v3586_v60 = vadd.f32 %v3585_v50, %v3584_v59  ;;  %v2325_v15 = vmax.f32 %v1638_v12, 0.0  ;;  %v1996_v33 = vpop.f32.mrb[199].mxu0 }
 0x269   :  { %v3549_v1 = vadd.f32 %v3548_v10, %v3547_v61  ;;  %v1640_v48 = vadd.f32 %v1639_v25, %v5361_v51  ;;  %v3623_v35 = vadd.f32 %v3622_v20, %v3621_v11  ;;  %v3272_v17 = vadd.f32 %v2318_v22, %v2308_v5 }
 0x26a   :  { %v3774_v34 = vmul.f32 0.00390625, %v3512_v18  ;;  %v2327_v36 = vmax.f32 %v1991_v24, 0.0  ;;  %4042 = vmatmul.mubr.msk.bf16.gmra.mrb[48].mxu1 %vm403_vm2, %v4191_v37  ;;  %v5405_v38 = vmul.f32 0.00390625, %v3586_v60  ;;  %v3162_v7 = vadd.f32 %v3161_v57, %v2325_v15 }
 0x26b   :  { %v3775_v4 = vmul.f32 0.00390625, %v3549_v1  ;;  %v2326_v28 = vmax.f32 %v1640_v48, 0.0  ;;  %4074 = vmatmul.mubr.msk.bf16.gmra.mrb[48].mxu0 %vm403_vm2, %v4191_v37  ;;  %1915 = vmatprep.mubr.bf16.mxu1 %v4196_v3  ;;  %v5409_v40 = vmul.f32 0.00390625, %v3623_v35  ;;  %v1993_v8 = vadd.f32 %v1992_v13, %v5382_v23 }
 0x26c   :  { %v3236_v41 = vadd.f32 %v3235_v19, %v2327_v36  ;;  %v1642_v29 = vadd.f32 %v1641_v16, %v5353_v42  ;;  %2268 = vmatprep.mubr.bf16.mxu0 %v4196_v3  ;;  %v1995_v52 = vadd.f32 %v1994_v27, %v5357_v43  ;;  %v1644_v45 = vadd.f32 %v1643_v30, %v5361_v51  ;;  %v4192_v30 = vld [vmem:[%s5735_s0 + $0xe8] sm:$0xff]  }
 0x26d   :  { %v3793_v9 = vcombine.low %v3774_v34, %v3775_v4  ;;  %v3199_v44 = vadd.f32 %v3198_v0, %v2326_v28  ;;  %v1647_v46 = vpop.f32.mrb[200].mxu1  ;;  %v3794_v55 = vcombine.low %v5405_v38, %v5409_v40  ;;  %v2328_v56 = vmax.f32 %v1993_v8, 0.0  ;;  %v2000_v59 = vpop.f32.mrb[200].mxu0 }
 0x26e   :  { %v2335_v57 = vmax.f32 %v1642_v29, 0.0  ;;  %v1997_v58 = vadd.f32 %v1996_v33, %v5382_v23  ;;  %v1649_v61 = vpop.f32.mrb[201].mxu1  ;;  %v2337_v62 = vmax.f32 %v1995_v52, 0.0  ;;  %v2336_v31 = vmax.f32 %v1644_v45, 0.0  ;;  %v2002_v11 = vpop.f32.mrb[201].mxu0 }
 0x26f   :  { %v5420_v5 = vrot.slane %v3793_v9, %v5098_v53  ;;  %v1648_v63 = vadd.f32 %v1647_v46, %v5353_v42  ;;  %v1651_v0 = vpop.f32.mrb[202].mxu1  ;;  %v3273_v14 = vadd.f32 %v3272_v17, %v2328_v56  ;;  %v2004_v50 = vpop.f32.mrb[202].mxu0  ;;  %v2001_v22 = vadd.f32 %v2000_v59, %v5357_v43 }
 0x270   :  { %v3163_v21 = vadd.f32 %v3162_v7, %v2335_v57  ;;  %v2338_v25 = vmax.f32 %v1997_v58, 0.0  ;;  %v1653_v10 = vpop.f32.mrb[203].mxu1  ;;  %v3237_v12 = vadd.f32 %v3236_v41, %v2337_v62  ;;  %v3200_v13 = vadd.f32 %v3199_v44, %v2336_v31  ;;  %v2006_v18 = vpop.f32.mrb[203].mxu0 }
 0x271   :  { %v3824_v19 = vcombine.low %v5377_v26, %v5420_v5  ;;  %v2345_v16 = vmax.f32 %v1648_v63, 0.0  ;;  %v1650_v24 = vadd.f32 %v1649_v61, %v5361_v51  ;;  %v2003_v27 = vadd.f32 %v2002_v11, %v5382_v23 }
 0x272   :  { %v3274_v20 = vadd.f32 %v3273_v14, %v2338_v25  ;;  %4043 = vmatmul.mubr.msk.bf16.gmra.mrb[52].mxu1 %vm403_vm2, %v4192_v30  ;;  %v1652_v1 = vadd.f32 %v1651_v0, %v5353_v42  ;;  %v2005_v15 = vadd.f32 %v2004_v50, %v5357_v43  ;;  %v2347_v48 = vmax.f32 %v2001_v22, 0.0 }
 0x273   :  { %v3164_v60 = vadd.f32 %v3163_v21, %v2345_v16  ;;  %4075 = vmatmul.mubr.msk.bf16.gmra.mrb[52].mxu0 %vm403_vm2, %v4192_v30  ;;  %v2346_v33 = vmax.f32 %v1650_v24, 0.0  ;;  %v2348_v34 = vmax.f32 %v2003_v27, 0.0  ;;  %v1654_v35 = vadd.f32 %v1653_v10, %v5361_v51  ;;  %1925 = vmatprep.mubr.bf16.mxu1 %v4196_v3  ;;  %v4193_v16 = vld [vmem:[%s5735_s0 + $0xf0] sm:$0xff]  }
 0x274   :  { %2278 = vmatprep.mubr.bf16.mxu0 %v4196_v3  ;;  %v2355_v17 = vmax.f32 %v1652_v1, 0.0  ;;  %v2357_v36 = vmax.f32 %v2005_v15, 0.0  ;;  %v2007_v37 = vadd.f32 %v2006_v18, %v5382_v23  ;;  %v3238_v7 = vadd.f32 %v3237_v12, %v2347_v48 }
 0x275   :  { %v1657_v4 = vpop.f32.mrb[204].mxu1  ;;  %v3201_v28 = vadd.f32 %v3200_v13, %v2346_v33  ;;  %v3275_v41 = vadd.f32 %v3274_v20, %v2348_v34  ;;  %v2356_v8 = vmax.f32 %v1654_v35, 0.0  ;;  %v2010_v29 = vpop.f32.mrb[204].mxu0 }
 0x276   :  { %v1659_v9 = vpop.f32.mrb[205].mxu1  ;;  %v3165_v44 = vadd.f32 %v3164_v60, %v2355_v17  ;;  %v2358_v52 = vmax.f32 %v2007_v37, 0.0  ;;  %v1658_v45 = vadd.f32 %v1657_v4, %v5353_v42  ;;  %v2011_v46 = vadd.f32 %v2010_v29, %v5357_v43  ;;  %v2012_v56 = vpop.f32.mrb[205].mxu0 }
 0x277   :  { %v1661_v57 = vpop.f32.mrb[206].mxu1  ;;  %v3239_v58 = vadd.f32 %v3238_v7, %v2357_v36  ;;  %v3202_v59 = vadd.f32 %v3201_v28, %v2356_v8  ;;  %v1660_v61 = vadd.f32 %v1659_v9, %v5361_v51  ;;  %v2013_v62 = vadd.f32 %v2012_v56, %v5382_v23  ;;  %v2014_v31 = vpop.f32.mrb[206].mxu0 }
 0x278   :  { %v1663_v63 = vpop.f32.mrb[207].mxu1  ;;  %v3276_v11 = vadd.f32 %v3275_v41, %v2358_v52  ;;  %v2365_v0 = vmax.f32 %v1658_v45, 0.0  ;;  %v2367_v14 = vmax.f32 %v2011_v46, 0.0  ;;  %v1662_v21 = vadd.f32 %v1661_v57, %v5353_v42  ;;  %v2016_v25 = vpop.f32.mrb[207].mxu0 }
 0x279   :  { %v2366_v50 = vmax.f32 %v1660_v61, 0.0  ;;  %v2368_v10 = vmax.f32 %v2013_v62, 0.0  ;;  %v2015_v12 = vadd.f32 %v2014_v31, %v5357_v43  ;;  %v1664_v13 = vadd.f32 %v1663_v63, %v5361_v51  ;;  %v4194_v63 = vld [vmem:[%s5735_s0 + $0xf8] sm:$0xff]  }
 0x27a   :  { %4044 = vmatmul.mubr.msk.bf16.gmra.mrb[56].mxu1 %vm403_vm2, %v4193_v16  ;;  %v3166_v18 = vadd.f32 %v3165_v44, %v2365_v0  ;;  %v3240_v20 = vadd.f32 %v3239_v58, %v2367_v14  ;;  %v2375_v22 = vmax.f32 %v1662_v21, 0.0  ;;  %v2017_v24 = vadd.f32 %v2016_v25, %v5382_v23 }
 0x27b   :  { %4076 = vmatmul.mubr.msk.bf16.gmra.mrb[56].mxu0 %vm403_vm2, %v4193_v16  ;;  %1935 = vmatprep.mubr.bf16.mxu1 %v4196_v3  ;;  %v3203_v27 = vadd.f32 %v3202_v59, %v2366_v50  ;;  %v3277_v30 = vadd.f32 %v3276_v11, %v2368_v10  ;;  %v2377_v60 = vmax.f32 %v2015_v12, 0.0  ;;  %v2376_v1 = vmax.f32 %v1664_v13, 0.0 }
 0x27c   :  { %2288 = vmatprep.mubr.bf16.mxu0 %v4196_v3  ;;  %v3167_v15 = vadd.f32 %v3166_v18, %v2375_v22  ;;  %v2378_v48 = vmax.f32 %v2017_v24, 0.0 }
 0x27d   :  { %v1667_v33 = vpop.f32.mrb[208].mxu1  ;;  %v3241_v34 = vadd.f32 %v3240_v20, %v2377_v60  ;;  %v3204_v35 = vadd.f32 %v3203_v27, %v2376_v1  ;;  %v2020_v36 = vpop.f32.mrb[208].mxu0 }
 0x27e   :  { %v1668_v17 = vadd.f32 %v1667_v33, %v5353_v42  ;;  %v1669_v37 = vpop.f32.mrb[209].mxu1  ;;  %v3278_v4 = vadd.f32 %v3277_v30, %v2378_v48  ;;  %v2021_v7 = vadd.f32 %v2020_v36, %v5357_v43  ;;  %v2022_v41 = vpop.f32.mrb[209].mxu0 }
 0x27f   :  { %v1670_v28 = vadd.f32 %v1669_v37, %v5361_v51  ;;  %v1671_v8 = vpop.f32.mrb[210].mxu1  ;;  %v2023_v9 = vadd.f32 %v2022_v41, %v5382_v23  ;;  %v2024_v44 = vpop.f32.mrb[210].mxu0 }
 0x280   :  { %v2385_v29 = vmax.f32 %v1668_v17, 0.0  ;;  %v1672_v3 = vadd.f32 %v1671_v8, %v5353_v42  ;;  %v1673_v52 = vpop.f32.mrb[211].mxu1  ;;  %v2387_v45 = vmax.f32 %v2021_v7, 0.0  ;;  %v2025_v56 = vadd.f32 %v2024_v44, %v5357_v43  ;;  %v2026_v58 = vpop.f32.mrb[211].mxu0 }
 0x281   :  { %v2386_v46 = vmax.f32 %v1670_v28, 0.0  ;;  %v1674_v57 = vadd.f32 %v1673_v52, %v5361_v51  ;;  %v2388_v61 = vmax.f32 %v2023_v9, 0.0  ;;  %v2027_v31 = vadd.f32 %v2026_v58, %v5382_v23 }
 0x282   :  { %v3168_v59 = vadd.f32 %v3167_v15, %v2385_v29  ;;  %v2395_v62 = vmax.f32 %v1672_v3, 0.0  ;;  %4045 = vmatmul.mubr.msk.bf16.gmra.mrb[60].mxu1 %vm403_vm2, %v4194_v63  ;;  %v3242_v11 = vadd.f32 %v3241_v34, %v2387_v45  ;;  %v2397_v14 = vmax.f32 %v2025_v56, 0.0 }
 0x283   :  { %v3205_v0 = vadd.f32 %v3204_v35, %v2386_v46  ;;  %v2396_v21 = vmax.f32 %v1674_v57, 0.0  ;;  %4077 = vmatmul.mubr.msk.bf16.gmra.mrb[60].mxu0 %vm403_vm2, %v4194_v63  ;;  %v3279_v25 = vadd.f32 %v3278_v4, %v2388_v61  ;;  %v2398_v10 = vmax.f32 %v2027_v31, 0.0 }
 0x284   :  { %v3169_v50 = vadd.f32 %v3168_v59, %v2395_v62  ;;  %v3243_v12 = vadd.f32 %v3242_v11, %v2397_v14 }
 0x285   :  { %v3206_v13 = vadd.f32 %v3205_v0, %v2396_v21  ;;  %v1677_v16 = vpop.f32.mrb[212].mxu1  ;;  %v3280_v18 = vadd.f32 %v3279_v25, %v2398_v10  ;;  %v2030_v22 = vpop.f32.mrb[212].mxu0 }
 0x286   :  { %v1678_v20 = vadd.f32 %v1677_v16, %v5353_v42  ;;  %v1679_v24 = vpop.f32.mrb[213].mxu1  ;;  %v2031_v27 = vadd.f32 %v2030_v22, %v5357_v43  ;;  %v2032_v60 = vpop.f32.mrb[213].mxu0 }
 0x287   :  { %v1680_v30 = vadd.f32 %v1679_v24, %v5361_v51  ;;  %v1681_v1 = vpop.f32.mrb[214].mxu1  ;;  %v2033_v48 = vadd.f32 %v2032_v60, %v5382_v23  ;;  %v2034_v34 = vpop.f32.mrb[214].mxu0 }
 0x288   :  { %v2405_v15 = vmax.f32 %v1678_v20, 0.0  ;;  %v1682_v33 = vadd.f32 %v1681_v1, %v5353_v42  ;;  %v1683_v35 = vpop.f32.mrb[215].mxu1  ;;  %v2407_v17 = vmax.f32 %v2031_v27, 0.0  ;;  %v2035_v37 = vadd.f32 %v2034_v34, %v5357_v43  ;;  %v2036_v7 = vpop.f32.mrb[215].mxu0 }
 0x289   :  { %v2406_v36 = vmax.f32 %v1680_v30, 0.0  ;;  %v1684_v4 = vadd.f32 %v1683_v35, %v5361_v51  ;;  %v2408_v41 = vmax.f32 %v2033_v48, 0.0  ;;  %v2037_v29 = vadd.f32 %v2036_v7, %v5382_v23 }
 0x28a   :  { %v3170_v28 = vadd.f32 %v3169_v50, %v2405_v15  ;;  %v2415_v8 = vmax.f32 %v1682_v33, 0.0  ;;  %v3244_v9 = vadd.f32 %v3243_v12, %v2407_v17  ;;  %v2417_v44 = vmax.f32 %v2035_v37, 0.0 }
 0x28b   :  { %v3207_v3 = vadd.f32 %v3206_v13, %v2406_v36  ;;  %v2416_v52 = vmax.f32 %v1684_v4, 0.0  ;;  %v3281_v45 = vadd.f32 %v3280_v18, %v2408_v41  ;;  %v2418_v56 = vmax.f32 %v2037_v29, 0.0 }
 0x28c   :  { %v3171_v46 = vadd.f32 %v3170_v28, %v2415_v8  ;;  %v3245_v57 = vadd.f32 %v3244_v9, %v2417_v44 }
 0x28d   :  { %v3208_v58 = vadd.f32 %v3207_v3, %v2416_v52  ;;  %v1687_v59 = vpop.f32.mrb[216].mxu1  ;;  %v3282_v61 = vadd.f32 %v3281_v45, %v2418_v56  ;;  %v2040_v31 = vpop.f32.mrb[216].mxu0 }
 0x28e   :  { %v1688_v62 = vadd.f32 %v1687_v59, %v5353_v42  ;;  %v1689_v63 = vpop.f32.mrb[217].mxu1  ;;  %v2041_v11 = vadd.f32 %v2040_v31, %v5357_v43  ;;  %v2042_v14 = vpop.f32.mrb[217].mxu0 }
 0x28f   :  { %v1690_v0 = vadd.f32 %v1689_v63, %v5361_v51  ;;  %v1691_v21 = vpop.f32.mrb[218].mxu1  ;;  %v2043_v50 = vadd.f32 %v2042_v14, %v5382_v23  ;;  %v2044_v12 = vpop.f32.mrb[218].mxu0 }
 0x290   :  { %v2425_v25 = vmax.f32 %v1688_v62, 0.0  ;;  %v1692_v10 = vadd.f32 %v1691_v21, %v5353_v42  ;;  %v1693_v13 = vpop.f32.mrb[219].mxu1  ;;  %v2427_v16 = vmax.f32 %v2041_v11, 0.0  ;;  %v2045_v20 = vadd.f32 %v2044_v12, %v5357_v43  ;;  %v2046_v24 = vpop.f32.mrb[219].mxu0 }
 0x291   :  { %v2426_v18 = vmax.f32 %v1690_v0, 0.0  ;;  %v1694_v22 = vadd.f32 %v1693_v13, %v5361_v51  ;;  %v2428_v30 = vmax.f32 %v2043_v50, 0.0  ;;  %v2047_v1 = vadd.f32 %v2046_v24, %v5382_v23 }
 0x292   :  { %v3172_v27 = vadd.f32 %v3171_v46, %v2425_v25  ;;  %v2435_v60 = vmax.f32 %v1692_v10, 0.0  ;;  %v3246_v15 = vadd.f32 %v3245_v57, %v2427_v16  ;;  %v2437_v33 = vmax.f32 %v2045_v20, 0.0 }
 0x293   :  { %v3209_v48 = vadd.f32 %v3208_v58, %v2426_v18  ;;  %v2436_v34 = vmax.f32 %v1694_v22, 0.0  ;;  %v3283_v35 = vadd.f32 %v3282_v61, %v2428_v30  ;;  %v2438_v36 = vmax.f32 %v2047_v1, 0.0 }
 0x294   :  { %v3173_v17 = vadd.f32 %v3172_v27, %v2435_v60  ;;  %v3247_v37 = vadd.f32 %v3246_v15, %v2437_v33 }
 0x295   :  { %v3210_v4 = vadd.f32 %v3209_v48, %v2436_v34  ;;  %v1697_v7 = vpop.f32.mrb[220].mxu1  ;;  %v3284_v28 = vadd.f32 %v3283_v35, %v2438_v36  ;;  %v2050_v8 = vpop.f32.mrb[220].mxu0 }
 0x296   :  { %v1698_v41 = vadd.f32 %v1697_v7, %v5353_v42  ;;  %v1699_v29 = vpop.f32.mrb[221].mxu1  ;;  %v2051_v9 = vadd.f32 %v2050_v8, %v5357_v43  ;;  %v2052_v44 = vpop.f32.mrb[221].mxu0 }
 0x297   :  { %v1700_v3 = vadd.f32 %v1699_v29, %v5361_v51  ;;  %v1701_v52 = vpop.f32.mrb[222].mxu1  ;;  %v2053_v46 = vadd.f32 %v2052_v44, %v5382_v23  ;;  %v2054_v57 = vpop.f32.mrb[222].mxu0 }
 0x298   :  { %v2445_v45 = vmax.f32 %v1698_v41, 0.0  ;;  %v1702_v56 = vadd.f32 %v1701_v52, %v5353_v42  ;;  %v1703_v58 = vpop.f32.mrb[223].mxu1  ;;  %v2447_v59 = vmax.f32 %v2051_v9, 0.0  ;;  %v2055_v62 = vadd.f32 %v2054_v57, %v5357_v43  ;;  %v2056_v63 = vpop.f32.mrb[223].mxu0 }
 0x299   :  { %v2446_v61 = vmax.f32 %v1700_v3, 0.0  ;;  %v1704_v31 = vadd.f32 %v1703_v58, %v5361_v51  ;;  %v2448_v0 = vmax.f32 %v2053_v46, 0.0  ;;  %v2057_v21 = vadd.f32 %v2056_v63, %v5382_v23 }
 0x29a   :  { %v3174_v11 = vadd.f32 %v3173_v17, %v2445_v45  ;;  %v2455_v14 = vmax.f32 %v1702_v56, 0.0  ;;  %v3248_v25 = vadd.f32 %v3247_v37, %v2447_v59  ;;  %v2457_v10 = vmax.f32 %v2055_v62, 0.0 }
 0x29b   :  { %v3211_v50 = vadd.f32 %v3210_v4, %v2446_v61  ;;  %v2456_v12 = vmax.f32 %v1704_v31, 0.0  ;;  %v3285_v13 = vadd.f32 %v3284_v28, %v2448_v0  ;;  %v2458_v18 = vmax.f32 %v2057_v21, 0.0 }
 0x29c   :  { %v3175_v16 = vadd.f32 %v3174_v11, %v2455_v14  ;;  %v3249_v20 = vadd.f32 %v3248_v25, %v2457_v10 }
 0x29d   :  { %v3212_v22 = vadd.f32 %v3211_v50, %v2456_v12  ;;  %v1707_v24 = vpop.f32.mrb[224].mxu1  ;;  %v3286_v27 = vadd.f32 %v3285_v13, %v2458_v18  ;;  %v2060_v60 = vpop.f32.mrb[224].mxu0 }
 0x29e   :  { %v1708_v30 = vadd.f32 %v1707_v24, %v5353_v42  ;;  %v1709_v1 = vpop.f32.mrb[225].mxu1  ;;  %v2061_v15 = vadd.f32 %v2060_v60, %v5357_v43  ;;  %v2062_v33 = vpop.f32.mrb[225].mxu0 }
 0x29f   :  { %v1710_v48 = vadd.f32 %v1709_v1, %v5361_v51  ;;  %v1711_v34 = vpop.f32.mrb[226].mxu1  ;;  %v2063_v17 = vadd.f32 %v2062_v33, %v5382_v23  ;;  %v2064_v37 = vpop.f32.mrb[226].mxu0 }
 0x2a0   :  { %v2465_v35 = vmax.f32 %v1708_v30, 0.0  ;;  %v1712_v36 = vadd.f32 %v1711_v34, %v5353_v42  ;;  %v1713_v4 = vpop.f32.mrb[227].mxu1  ;;  %v2467_v7 = vmax.f32 %v2061_v15, 0.0  ;;  %v2065_v41 = vadd.f32 %v2064_v37, %v5357_v43  ;;  %v2066_v29 = vpop.f32.mrb[227].mxu0 }
 0x2a1   :  { %v2466_v28 = vmax.f32 %v1710_v48, 0.0  ;;  %v1714_v8 = vadd.f32 %v1713_v4, %v5361_v51  ;;  %v2468_v3 = vmax.f32 %v2063_v17, 0.0  ;;  %v2067_v52 = vadd.f32 %v2066_v29, %v5382_v23 }
 0x2a2   :  { %v3176_v9 = vadd.f32 %v3175_v16, %v2465_v35  ;;  %v2475_v44 = vmax.f32 %v1712_v36, 0.0  ;;  %v3250_v45 = vadd.f32 %v3249_v20, %v2467_v7  ;;  %v2477_v56 = vmax.f32 %v2065_v41, 0.0 }
 0x2a3   :  { %v3213_v46 = vadd.f32 %v3212_v22, %v2466_v28  ;;  %v2476_v57 = vmax.f32 %v1714_v8, 0.0  ;;  %v3287_v58 = vadd.f32 %v3286_v27, %v2468_v3  ;;  %v2478_v61 = vmax.f32 %v2067_v52, 0.0 }
 0x2a4   :  { %v3177_v59 = vadd.f32 %v3176_v9, %v2475_v44  ;;  %v3251_v62 = vadd.f32 %v3250_v45, %v2477_v56 }
 0x2a5   :  { %v3214_v31 = vadd.f32 %v3213_v46, %v2476_v57  ;;  %v1717_v63 = vpop.f32.mrb[228].mxu1  ;;  %v3288_v11 = vadd.f32 %v3287_v58, %v2478_v61  ;;  %v2070_v14 = vpop.f32.mrb[228].mxu0 }
 0x2a6   :  { %v1718_v0 = vadd.f32 %v1717_v63, %v5353_v42  ;;  %v1719_v21 = vpop.f32.mrb[229].mxu1  ;;  %v2071_v25 = vadd.f32 %v2070_v14, %v5357_v43  ;;  %v2072_v10 = vpop.f32.mrb[229].mxu0 }
 0x2a7   :  { %v1720_v50 = vadd.f32 %v1719_v21, %v5361_v51  ;;  %v1721_v12 = vpop.f32.mrb[230].mxu1  ;;  %v2073_v16 = vadd.f32 %v2072_v10, %v5382_v23  ;;  %v2074_v20 = vpop.f32.mrb[230].mxu0 }
 0x2a8   :  { %v2485_v13 = vmax.f32 %v1718_v0, 0.0  ;;  %v1722_v18 = vadd.f32 %v1721_v12, %v5353_v42  ;;  %v1723_v22 = vpop.f32.mrb[231].mxu1  ;;  %v2487_v24 = vmax.f32 %v2071_v25, 0.0  ;;  %v2075_v30 = vadd.f32 %v2074_v20, %v5357_v43  ;;  %v2076_v1 = vpop.f32.mrb[231].mxu0 }
 0x2a9   :  { %v2486_v27 = vmax.f32 %v1720_v50, 0.0  ;;  %v1724_v60 = vadd.f32 %v1723_v22, %v5361_v51  ;;  %v2488_v48 = vmax.f32 %v2073_v16, 0.0  ;;  %v2077_v34 = vadd.f32 %v2076_v1, %v5382_v23 }
 0x2aa   :  { %v3178_v15 = vadd.f32 %v3177_v59, %v2485_v13  ;;  %v2495_v33 = vmax.f32 %v1722_v18, 0.0  ;;  %v3252_v35 = vadd.f32 %v3251_v62, %v2487_v24  ;;  %v2497_v36 = vmax.f32 %v2075_v30, 0.0 }
 0x2ab   :  { %v3215_v17 = vadd.f32 %v3214_v31, %v2486_v27  ;;  %v2496_v37 = vmax.f32 %v1724_v60, 0.0  ;;  %v3289_v4 = vadd.f32 %v3288_v11, %v2488_v48  ;;  %v2498_v28 = vmax.f32 %v2077_v34, 0.0 }
 0x2ac   :  { %v3179_v7 = vadd.f32 %v3178_v15, %v2495_v33  ;;  %v3253_v41 = vadd.f32 %v3252_v35, %v2497_v36 }
 0x2ad   :  { %v3216_v8 = vadd.f32 %v3215_v17, %v2496_v37  ;;  %v1727_v29 = vpop.f32.mrb[232].mxu1  ;;  %v3290_v9 = vadd.f32 %v3289_v4, %v2498_v28  ;;  %v2080_v44 = vpop.f32.mrb[232].mxu0 }
 0x2ae   :  { %v1728_v3 = vadd.f32 %v1727_v29, %v5353_v42  ;;  %v1729_v52 = vpop.f32.mrb[233].mxu1  ;;  %v2081_v45 = vadd.f32 %v2080_v44, %v5357_v43  ;;  %v2082_v56 = vpop.f32.mrb[233].mxu0 }
 0x2af   :  { %v1730_v46 = vadd.f32 %v1729_v52, %v5361_v51  ;;  %v1731_v57 = vpop.f32.mrb[234].mxu1  ;;  %v2083_v59 = vadd.f32 %v2082_v56, %v5382_v23  ;;  %v2084_v62 = vpop.f32.mrb[234].mxu0 }
 0x2b0   :  { %v2505_v58 = vmax.f32 %v1728_v3, 0.0  ;;  %v1732_v61 = vadd.f32 %v1731_v57, %v5353_v42  ;;  %v1733_v31 = vpop.f32.mrb[235].mxu1  ;;  %v2507_v63 = vmax.f32 %v2081_v45, 0.0  ;;  %v2085_v0 = vadd.f32 %v2084_v62, %v5357_v43  ;;  %v2086_v21 = vpop.f32.mrb[235].mxu0 }
 0x2b1   :  { %v2506_v11 = vmax.f32 %v1730_v46, 0.0  ;;  %v1734_v14 = vadd.f32 %v1733_v31, %v5361_v51  ;;  %v2508_v50 = vmax.f32 %v2083_v59, 0.0  ;;  %v2087_v12 = vadd.f32 %v2086_v21, %v5382_v23 }
 0x2b2   :  { %v3180_v25 = vadd.f32 %v3179_v7, %v2505_v58  ;;  %v2515_v10 = vmax.f32 %v1732_v61, 0.0  ;;  %v3254_v13 = vadd.f32 %v3253_v41, %v2507_v63  ;;  %v2517_v18 = vmax.f32 %v2085_v0, 0.0 }
 0x2b3   :  { %v3217_v16 = vadd.f32 %v3216_v8, %v2506_v11  ;;  %v2516_v20 = vmax.f32 %v1734_v14, 0.0  ;;  %v3291_v22 = vadd.f32 %v3290_v9, %v2508_v50  ;;  %v2518_v27 = vmax.f32 %v2087_v12, 0.0 }
 0x2b4   :  { %v3181_v24 = vadd.f32 %v3180_v25, %v2515_v10  ;;  %v3255_v30 = vadd.f32 %v3254_v13, %v2517_v18 }
 0x2b5   :  { %v3218_v60 = vadd.f32 %v3217_v16, %v2516_v20  ;;  %v1737_v1 = vpop.f32.mrb[236].mxu1  ;;  %v3292_v15 = vadd.f32 %v3291_v22, %v2518_v27  ;;  %v2090_v33 = vpop.f32.mrb[236].mxu0 }
 0x2b6   :  { %v1738_v48 = vadd.f32 %v1737_v1, %v5353_v42  ;;  %v1739_v34 = vpop.f32.mrb[237].mxu1  ;;  %v2091_v35 = vadd.f32 %v2090_v33, %v5357_v43  ;;  %v2092_v36 = vpop.f32.mrb[237].mxu0 }
 0x2b7   :  { %v1740_v17 = vadd.f32 %v1739_v34, %v5361_v51  ;;  %v1741_v37 = vpop.f32.mrb[238].mxu1  ;;  %v2093_v7 = vadd.f32 %v2092_v36, %v5382_v23  ;;  %v2094_v41 = vpop.f32.mrb[238].mxu0 }
 0x2b8   :  { %v2525_v4 = vmax.f32 %v1738_v48, 0.0  ;;  %v1742_v28 = vadd.f32 %v1741_v37, %v5353_v42  ;;  %v1743_v8 = vpop.f32.mrb[239].mxu1  ;;  %v2527_v29 = vmax.f32 %v2091_v35, 0.0  ;;  %v2095_v3 = vadd.f32 %v2094_v41, %v5357_v43  ;;  %v2096_v52 = vpop.f32.mrb[239].mxu0 }
 0x2b9   :  { %v2526_v9 = vmax.f32 %v1740_v17, 0.0  ;;  %v1744_v44 = vadd.f32 %v1743_v8, %v5361_v51  ;;  %v2528_v46 = vmax.f32 %v2093_v7, 0.0  ;;  %v2097_v57 = vadd.f32 %v2096_v52, %v5382_v23 }
 0x2ba   :  { %v3182_v45 = vadd.f32 %v3181_v24, %v2525_v4  ;;  %v2535_v56 = vmax.f32 %v1742_v28, 0.0  ;;  %v3256_v58 = vadd.f32 %v3255_v30, %v2527_v29  ;;  %v2537_v61 = vmax.f32 %v2095_v3, 0.0 }
 0x2bb   :  { %v3219_v59 = vadd.f32 %v3218_v60, %v2526_v9  ;;  %v2536_v62 = vmax.f32 %v1744_v44, 0.0  ;;  %v3293_v31 = vadd.f32 %v3292_v15, %v2528_v46  ;;  %v2538_v11 = vmax.f32 %v2097_v57, 0.0 }
 0x2bc   :  { %v3183_v63 = vadd.f32 %v3182_v45, %v2535_v56  ;;  %v3257_v0 = vadd.f32 %v3256_v58, %v2537_v61 }
 0x2bd   :  { %v3220_v14 = vadd.f32 %v3219_v59, %v2536_v62  ;;  %v1747_v21 = vpop.f32.mrb[240].mxu1  ;;  %v3294_v25 = vadd.f32 %v3293_v31, %v2538_v11  ;;  %v2100_v10 = vpop.f32.mrb[240].mxu0 }
 0x2be   :  { %v1748_v50 = vadd.f32 %v1747_v21, %v5353_v42  ;;  %v1749_v12 = vpop.f32.mrb[241].mxu1  ;;  %v2101_v13 = vadd.f32 %v2100_v10, %v5357_v43  ;;  %v2102_v18 = vpop.f32.mrb[241].mxu0 }
 0x2bf   :  { %v1750_v16 = vadd.f32 %v1749_v12, %v5361_v51  ;;  %v1751_v20 = vpop.f32.mrb[242].mxu1  ;;  %v2103_v24 = vadd.f32 %v2102_v18, %v5382_v23  ;;  %v2104_v30 = vpop.f32.mrb[242].mxu0 }
 0x2c0   :  { %v2545_v22 = vmax.f32 %v1748_v50, 0.0  ;;  %v1752_v27 = vadd.f32 %v1751_v20, %v5353_v42  ;;  %v1753_v60 = vpop.f32.mrb[243].mxu1  ;;  %v2547_v1 = vmax.f32 %v2101_v13, 0.0  ;;  %v2105_v48 = vadd.f32 %v2104_v30, %v5357_v43  ;;  %v2106_v34 = vpop.f32.mrb[243].mxu0 }
 0x2c1   :  { %v2546_v15 = vmax.f32 %v1750_v16, 0.0  ;;  %v1754_v33 = vadd.f32 %v1753_v60, %v5361_v51  ;;  %v2548_v17 = vmax.f32 %v2103_v24, 0.0  ;;  %v2107_v37 = vadd.f32 %v2106_v34, %v5382_v23 }
 0x2c2   :  { %v3184_v35 = vadd.f32 %v3183_v63, %v2545_v22  ;;  %v2555_v36 = vmax.f32 %v1752_v27, 0.0  ;;  %v3258_v4 = vadd.f32 %v3257_v0, %v2547_v1  ;;  %v2557_v28 = vmax.f32 %v2105_v48, 0.0 }
 0x2c3   :  { %v3221_v7 = vadd.f32 %v3220_v14, %v2546_v15  ;;  %v2556_v41 = vmax.f32 %v1754_v33, 0.0  ;;  %v3295_v8 = vadd.f32 %v3294_v25, %v2548_v17  ;;  %v2558_v9 = vmax.f32 %v2107_v37, 0.0 }
 0x2c4   :  { %v3185_v29 = vadd.f32 %v3184_v35, %v2555_v36  ;;  %v3259_v3 = vadd.f32 %v3258_v4, %v2557_v28 }
 0x2c5   :  { %v3222_v44 = vadd.f32 %v3221_v7, %v2556_v41  ;;  %v1757_v52 = vpop.f32.mrb[244].mxu1  ;;  %v3296_v45 = vadd.f32 %v3295_v8, %v2558_v9 }
 0x2c6   :  { %v1758_v46 = vadd.f32 %v1757_v52, %v5353_v42  ;;  %v2110_v56 = vpop.f32.mrb[244].mxu0  ;;  %v1759_v57 = vpop.f32.mrb[245].mxu1 }
 0x2c7   :  { %v2111_v58 = vadd.f32 %v2110_v56, %v5357_v43  ;;  %v1760_v59 = vadd.f32 %v1759_v57, %v5361_v51  ;;  %v2112_v61 = vpop.f32.mrb[245].mxu0  ;;  %v1761_v62 = vpop.f32.mrb[246].mxu1 }
 0x2c8   :  { %v2565_v31 = vmax.f32 %v1758_v46, 0.0  ;;  %v2113_v63 = vadd.f32 %v2112_v61, %v5382_v23  ;;  %v1762_v11 = vadd.f32 %v1761_v62, %v5353_v42  ;;  %v2114_v0 = vpop.f32.mrb[246].mxu0  ;;  %v1763_v14 = vpop.f32.mrb[247].mxu1 }
 0x2c9   :  { %v2567_v21 = vmax.f32 %v2111_v58, 0.0  ;;  %v2566_v25 = vmax.f32 %v1760_v59, 0.0  ;;  %v2115_v50 = vadd.f32 %v2114_v0, %v5357_v43  ;;  %v1764_v10 = vadd.f32 %v1763_v14, %v5361_v51  ;;  %v2116_v12 = vpop.f32.mrb[247].mxu0 }
 0x2ca   :  { %v3186_v13 = vadd.f32 %v3185_v29, %v2565_v31  ;;  %v2568_v16 = vmax.f32 %v2113_v63, 0.0  ;;  %v2575_v18 = vmax.f32 %v1762_v11, 0.0  ;;  %v2117_v20 = vadd.f32 %v2116_v12, %v5382_v23 }
 0x2cb   :  { %v3260_v22 = vadd.f32 %v3259_v3, %v2567_v21  ;;  %v3223_v24 = vadd.f32 %v3222_v44, %v2566_v25  ;;  %v2577_v27 = vmax.f32 %v2115_v50, 0.0  ;;  %v2576_v30 = vmax.f32 %v1764_v10, 0.0 }
 0x2cc   :  { %v3297_v60 = vadd.f32 %v3296_v45, %v2568_v16  ;;  %v3187_v1 = vadd.f32 %v3186_v13, %v2575_v18  ;;  %v2578_v15 = vmax.f32 %v2117_v20, 0.0 }
 0x2cd   :  { %v3261_v48 = vadd.f32 %v3260_v22, %v2577_v27  ;;  %v3224_v33 = vadd.f32 %v3223_v24, %v2576_v30  ;;  %v1767_v34 = vpop.f32.mrb[248].mxu1 }
 0x2ce   :  { %v3298_v35 = vadd.f32 %v3297_v60, %v2578_v15  ;;  %v1768_v17 = vadd.f32 %v1767_v34, %v5353_v42  ;;  %v2120_v36 = vpop.f32.mrb[248].mxu0  ;;  %v1769_v37 = vpop.f32.mrb[249].mxu1 }
 0x2cf   :  { %v2121_v4 = vadd.f32 %v2120_v36, %v5357_v43  ;;  %v1770_v7 = vadd.f32 %v1769_v37, %v5361_v51  ;;  %v2122_v28 = vpop.f32.mrb[249].mxu0  ;;  %v1771_v41 = vpop.f32.mrb[250].mxu1 }
 0x2d0   :  { %v2585_v8 = vmax.f32 %v1768_v17, 0.0  ;;  %v2123_v29 = vadd.f32 %v2122_v28, %v5382_v23  ;;  %v1772_v9 = vadd.f32 %v1771_v41, %v5353_v42  ;;  %v2124_v3 = vpop.f32.mrb[250].mxu0  ;;  %v1773_v44 = vpop.f32.mrb[251].mxu1 }
 0x2d1   :  { %v2587_v52 = vmax.f32 %v2121_v4, 0.0  ;;  %v2586_v45 = vmax.f32 %v1770_v7, 0.0  ;;  %v2125_v46 = vadd.f32 %v2124_v3, %v5357_v43  ;;  %v1774_v56 = vadd.f32 %v1773_v44, %v5361_v51  ;;  %v2126_v57 = vpop.f32.mrb[251].mxu0 }
 0x2d2   :  { %v3188_v58 = vadd.f32 %v3187_v1, %v2585_v8  ;;  %v2588_v59 = vmax.f32 %v2123_v29, 0.0  ;;  %v2595_v61 = vmax.f32 %v1772_v9, 0.0  ;;  %v2127_v62 = vadd.f32 %v2126_v57, %v5382_v23 }
 0x2d3   :  { %v3262_v31 = vadd.f32 %v3261_v48, %v2587_v52  ;;  %v3225_v63 = vadd.f32 %v3224_v33, %v2586_v45  ;;  %v2597_v11 = vmax.f32 %v2125_v46, 0.0  ;;  %v2596_v0 = vmax.f32 %v1774_v56, 0.0 }
 0x2d4   :  { %v3299_v14 = vadd.f32 %v3298_v35, %v2588_v59  ;;  %v3189_v21 = vadd.f32 %v3188_v58, %v2595_v61  ;;  %v2598_v25 = vmax.f32 %v2127_v62, 0.0  ;;  %v5559_v46 = vrot.slane %v3331_v39, %v5098_v53 }
 0x2d5   :  { %v3263_v50 = vadd.f32 %v3262_v31, %v2597_v11  ;;  %v3226_v10 = vadd.f32 %v3225_v63, %v2596_v0  ;;  %v1777_v12 = vpop.f32.mrb[252].mxu1  ;;  %v5565_v59 = vrot.slane %v3361_v6, %v5098_v53 }
 0x2d6   :  { %v3300_v13 = vadd.f32 %v3299_v14, %v2598_v25  ;;  %v1778_v16 = vadd.f32 %v1777_v12, %v5353_v42  ;;  %v2130_v18 = vpop.f32.mrb[252].mxu0  ;;  %v1779_v20 = vpop.f32.mrb[253].mxu1 }
 0x2d7   :  { %v2131_v22 = vadd.f32 %v2130_v18, %v5357_v43  ;;  %v1780_v24 = vadd.f32 %v1779_v20, %v5361_v51  ;;  %v2132_v27 = vpop.f32.mrb[253].mxu0  ;;  %v1781_v30 = vpop.f32.mrb[254].mxu1 }
 0x2d8   :  { %v2605_v60 = vmax.f32 %v1778_v16, 0.0  ;;  %v2133_v1 = vadd.f32 %v2132_v27, %v5382_v23  ;;  %v1782_v15 = vadd.f32 %v1781_v30, %v5353_v42  ;;  %v2134_v48 = vpop.f32.mrb[254].mxu0  ;;  %v1783_v33 = vpop.f32.mrb[255].mxu1 }
 0x2d9   :  { %v2607_v34 = vmax.f32 %v2131_v22, 0.0  ;;  %v2606_v35 = vmax.f32 %v1780_v24, 0.0  ;;  %v2135_v17 = vadd.f32 %v2134_v48, %v5357_v43  ;;  %v1784_v36 = vadd.f32 %v1783_v33, %v5361_v51  ;;  %v2136_v37 = vpop.f32.mrb[255].mxu0 }
 0x2da   :  { %v3190_v4 = vadd.f32 %v3189_v21, %v2605_v60  ;;  %v2608_v7 = vmax.f32 %v2133_v1, 0.0  ;;  %v2615_v28 = vmax.f32 %v1782_v15, 0.0  ;;  %v2137_v41 = vadd.f32 %v2136_v37, %v5382_v23 }
 0x2db   :  { %v3264_v8 = vadd.f32 %v3263_v50, %v2607_v34  ;;  %v3227_v29 = vadd.f32 %v3226_v10, %v2606_v35  ;;  %v2617_v9 = vmax.f32 %v2135_v17, 0.0  ;;  %v2616_v3 = vmax.f32 %v1784_v36, 0.0 }
 0x2dc   :  { %v3301_v44 = vadd.f32 %v3300_v13, %v2608_v7  ;;  %v3191_v52 = vadd.f32 %v3190_v4, %v2615_v28  ;;  %v2618_v45 = vmax.f32 %v2137_v41, 0.0 }
 0x2dd   :  { %v3265_v56 = vadd.f32 %v3264_v8, %v2617_v9  ;;  %v3228_v57 = vadd.f32 %v3227_v29, %v2616_v3  ;;  %v1787_v58 = vpop.f32.mrb[0].mxu1 }
 0x2de   :  { %v3192_v61 = vrot.slane %v3191_v52, 4  ;;  %v3302_v62 = vadd.f32 %v3301_v44, %v2618_v45  ;;  %v1788_v31 = vadd.f32 %v1787_v58, %v5353_v42  ;;  %v1789_v63 = vpop.f32.mrb[1].mxu1  ;;  %v2140_v11 = vpop.f32.mrb[0].mxu0 }
 0x2df   :  { %v3266_v0 = vrot.slane %v3265_v56, 4  ;;  %v3229_v14 = vrot.slane %v3228_v57, 4  ;;  %v1790_v54 = vadd.f32 %v1789_v63, %v5361_v51  ;;  %v1791_v32 = vpop.f32.mrb[2].mxu1  ;;  %v2141_v39 = vadd.f32 %v2140_v11, %v5357_v43  ;;  %v2142_v21 = vpop.f32.mrb[1].mxu0 }
 0x2e0   :  { %v3193_v25 = vadd.f32 %v3192_v61, %v3191_v52  ;;  %v3303_v50 = vrot.slane %v3302_v62, 4  ;;  %v2625_v10 = vmax.f32 %v1788_v31, 0.0  ;;  %v1792_v47 = vadd.f32 %v1791_v32, %v5353_v42  ;;  %v1793_v49 = vpop.f32.mrb[3].mxu1  ;;  %v2144_v6 = vpop.f32.mrb[2].mxu0 }
 0x2e1   :  { %v3267_v12 = vadd.f32 %v3266_v0, %v3265_v56  ;;  %v3230_v13 = vadd.f32 %v3229_v14, %v3228_v57  ;;  %v2626_v16 = vmax.f32 %v1790_v54, 0.0  ;;  %v2627_v18 = vmax.f32 %v2141_v39, 0.0  ;;  %v2146_v20 = vpop.f32.mrb[3].mxu0 }
 0x2e2   :  { %v3194_v22 = vrot.slane %v3193_v25, 2  ;;  %v3304_v24 = vadd.f32 %v3303_v50, %v3302_v62  ;;  %v2635_v27 = vmax.f32 %v1792_v47, 0.0  ;;  %v1794_v30 = vadd.f32 %v1793_v49, %v5361_v51 }
 0x2e3   :  { %v3268_v60 = vrot.slane %v3267_v12, 2  ;;  %v3231_v1 = vrot.slane %v3230_v13, 2  ;;  %v2143_v15 = vadd.f32 %v2142_v21, %v5382_v23  ;;  %v2145_v48 = vadd.f32 %v2144_v6, %v5357_v43 }
 0x2e4   :  { %v3195_v33 = vadd.f32 %v3194_v22, %v3193_v25  ;;  %v3305_v34 = vrot.slane %v3304_v24, 2  ;;  %v3624_v35 = vadd.f32 %v2635_v27, %v2625_v10  ;;  %v2636_v17 = vmax.f32 %v1794_v30, 0.0 }
 0x2e5   :  { %v3269_v36 = vadd.f32 %v3268_v60, %v3267_v12  ;;  %v3232_v37 = vadd.f32 %v3231_v1, %v3230_v13  ;;  %v2628_v4 = vmax.f32 %v2143_v15, 0.0  ;;  %v2637_v7 = vmax.f32 %v2145_v48, 0.0  ;;  %v1797_v28 = vpop.f32.mrb[4].mxu1 }
 0x2e6   :  { %v3196_v41 = vrot.slane %v3195_v33, 1  ;;  %v3306_v8 = vadd.f32 %v3305_v34, %v3304_v24  ;;  %v3661_v29 = vadd.f32 %v2636_v17, %v2626_v16  ;;  %v2147_v9 = vadd.f32 %v2146_v20, %v5382_v23  ;;  %v2150_v3 = vpop.f32.mrb[4].mxu0  ;;  %v1799_v44 = vpop.f32.mrb[5].mxu1 }
 0x2e7   :  { %v3270_v52 = vrot.slane %v3269_v36, 1  ;;  %v3233_v45 = vrot.slane %v3232_v37, 1  ;;  %v3698_v56 = vadd.f32 %v2637_v7, %v2627_v18  ;;  %v1798_v57 = vadd.f32 %v1797_v28, %v5353_v42  ;;  %v2152_v58 = vpop.f32.mrb[5].mxu0  ;;  %v1801_v61 = vpop.f32.mrb[6].mxu1 }
 0x2e8   :  { %v3197_v62 = vadd.f32 %v3196_v41, %v3195_v33  ;;  %v3307_v31 = vrot.slane %v3306_v8, 1  ;;  %v2638_v63 = vmax.f32 %v2147_v9, 0.0  ;;  %v2151_v11 = vadd.f32 %v2150_v3, %v5357_v43  ;;  %v2154_v0 = vpop.f32.mrb[6].mxu0  ;;  %v1803_v14 = vpop.f32.mrb[7].mxu1 }
 0x2e9   :  { %v3271_v54 = vadd.f32 %v3270_v52, %v3269_v36  ;;  %v3234_v32 = vadd.f32 %v3233_v45, %v3232_v37  ;;  %v2645_v21 = vmax.f32 %v1798_v57, 0.0  ;;  %v1800_v25 = vadd.f32 %v1799_v44, %v5361_v51  ;;  %v2156_v50 = vpop.f32.mrb[7].mxu0 }
 0x2ea   :  { %v3315_v10 = vmul.f32 0.00390625, %v3197_v62  ;;  %v3308_v47 = vadd.f32 %v3307_v31, %v3306_v8  ;;  %v3735_v49 = vadd.f32 %v2638_v63, %v2628_v4  ;;  %v2647_v6 = vmax.f32 %v2151_v11, 0.0 }
 0x2eb   :  { %v3317_v12 = vmul.f32 0.00390625, %v3271_v54  ;;  %v3316_v13 = vmul.f32 0.00390625, %v3234_v32  ;;  %v3625_v16 = vadd.f32 %v3624_v35, %v2645_v21  ;;  %v2646_v18 = vmax.f32 %v1800_v25, 0.0 }
 0x2ec   :  { %v3318_v20 = vmul.f32 0.00390625, %v3308_v47  ;;  %v3699_v22 = vadd.f32 %v3698_v56, %v2647_v6  ;;  %v2153_v24 = vadd.f32 %v2152_v58, %v5382_v23  ;;  %v1802_v2 = vadd.f32 %v1801_v61, %v5353_v42 }
 0x2ed   :  { %v3332_v27 = vcombine.low %v3315_v10, %v3316_v13  ;;  %v3662_v30 = vadd.f32 %v3661_v29, %v2646_v18  ;;  %v2155_v60 = vadd.f32 %v2154_v0, %v5357_v43  ;;  %v1804_v1 = vadd.f32 %v1803_v14, %v5361_v51  ;;  %v1807_v15 = vpop.f32.mrb[8].mxu1 }
 0x2ee   :  { %v3378_v48 = vcombine.low %v3317_v12, %v3318_v20  ;;  %v2648_v33 = vmax.f32 %v2153_v24, 0.0  ;;  %v2655_v34 = vmax.f32 %v1802_v2, 0.0  ;;  %v2157_v17 = vadd.f32 %v2156_v50, %v5382_v23  ;;  %v2160_v35 = vpop.f32.mrb[8].mxu0  ;;  %v1809_v36 = vpop.f32.mrb[9].mxu1 }
 0x2ef   :  { %v3360_v37 = vrot.slane %v3332_v27, %v5098_v53  ;;  %v2657_v4 = vmax.f32 %v2155_v60, 0.0  ;;  %v2656_v7 = vmax.f32 %v1804_v1, 0.0  ;;  %v1808_v28 = vadd.f32 %v1807_v15, %v5353_v42  ;;  %v2162_v41 = vpop.f32.mrb[9].mxu0  ;;  %v1811_v8 = vpop.f32.mrb[10].mxu1 }
 0x2f0   :  { %v3385_v29 = vrot.slane %v3378_v48, %v5098_v53  ;;  %v3736_v9 = vadd.f32 %v3735_v49, %v2648_v33  ;;  %v3626_v3 = vadd.f32 %v3625_v16, %v2655_v34  ;;  %v2658_v44 = vmax.f32 %v2157_v17, 0.0  ;;  %v2164_v52 = vpop.f32.mrb[10].mxu0  ;;  %v1813_v45 = vpop.f32.mrb[11].mxu1 }
 0x2f1   :  { %v3362_v56 = vcombine.low %v5559_v46, %v3360_v37  ;;  %v3700_v57 = vadd.f32 %v3699_v22, %v2657_v4  ;;  %v3663_v58 = vadd.f32 %v3662_v30, %v2656_v7  ;;  %v2665_v61 = vmax.f32 %v1808_v28, 0.0  ;;  %v2166_v62 = vpop.f32.mrb[11].mxu0 }
 0x2f2   :  { %v3392_v31 = vrot.slane %v3385_v29, %v5098_v53  ;;  %v3737_v63 = vadd.f32 %v3736_v9, %v2658_v44  ;;  %v2161_v11 = vadd.f32 %v2160_v35, %v5357_v43  ;;  %v1810_v0 = vadd.f32 %v1809_v36, %v5361_v51 }
 0x2f3   :  { %v3376_v14 = vrot.slane %v3362_v56, %v5098_v53  ;;  %v3627_v54 = vadd.f32 %v3626_v3, %v2665_v61  ;;  %v2163_v32 = vadd.f32 %v2162_v41, %v5382_v23  ;;  %v1812_v21 = vadd.f32 %v1811_v8, %v5353_v42 }
 0x2f4   :  { %4078 = vst.msk [vmem:[%s5737_s3 + $0x10] ss:$2 sm:$0x3] %vm5578_vm3, %v3392_v31  ;;  %v2667_v46 = vmax.f32 %v2161_v11, 0.0  ;;  %v2666_v25 = vmax.f32 %v1810_v0, 0.0  ;;  %v2165_v50 = vadd.f32 %v2164_v52, %v5357_v43  ;;  %v1814_v10 = vadd.f32 %v1813_v45, %v5361_v51 }
 0x2f5   :  { %v3377_v47 = vcombine.low %v5565_v59, %v3376_v14  ;;  %v2668_v49 = vmax.f32 %v2163_v32, 0.0  ;;  %v2675_v6 = vmax.f32 %v1812_v21, 0.0  ;;  %v2167_v12 = vadd.f32 %v2166_v62, %v5382_v23  ;;  %v1817_v13 = vpop.f32.mrb[12].mxu1 }
 0x2f6   :  { %v3701_v16 = vadd.f32 %v3700_v57, %v2667_v46  ;;  %v3664_v18 = vadd.f32 %v3663_v58, %v2666_v25  ;;  %v2677_v20 = vmax.f32 %v2165_v50, 0.0  ;;  %v2676_v22 = vmax.f32 %v1814_v10, 0.0  ;;  %v2170_v24 = vpop.f32.mrb[12].mxu0  ;;  %v1819_v2 = vpop.f32.mrb[13].mxu1 }
 0x2f7   :  { %3395 = vst [vmem:[%s5737_s3] ss:$2 sm:$0xff] %v3377_v47  ;;  %v3738_v27 = vadd.f32 %v3737_v63, %v2668_v49  ;;  %v3628_v30 = vadd.f32 %v3627_v54, %v2675_v6  ;;  %v2678_v60 = vmax.f32 %v2167_v12, 0.0  ;;  %v1818_v59 = vadd.f32 %v1817_v13, %v5353_v42  ;;  %v2172_v1 = vpop.f32.mrb[13].mxu0  ;;  %v1821_v15 = vpop.f32.mrb[14].mxu1 }
 0x2f8   :  { %v3702_v48 = vadd.f32 %v3701_v16, %v2677_v20  ;;  %v3665_v33 = vadd.f32 %v3664_v18, %v2676_v22  ;;  %v2171_v34 = vadd.f32 %v2170_v24, %v5357_v43  ;;  %v1820_v17 = vadd.f32 %v1819_v2, %v5361_v51  ;;  %v2174_v35 = vpop.f32.mrb[14].mxu0  ;;  %v1823_v36 = vpop.f32.mrb[15].mxu1 }
 0x2f9   :  { %v3739_v37 = vadd.f32 %v3738_v27, %v2678_v60  ;;  %v2685_v4 = vmax.f32 %v1818_v59, 0.0  ;;  %v2173_v7 = vadd.f32 %v2172_v1, %v5382_v23  ;;  %v1822_v28 = vadd.f32 %v1821_v15, %v5353_v42  ;;  %v2176_v41 = vpop.f32.mrb[15].mxu0 }
 0x2fa   :  { %v2687_v8 = vmax.f32 %v2171_v34, 0.0  ;;  %v2686_v29 = vmax.f32 %v1820_v17, 0.0  ;;  %v2175_v9 = vadd.f32 %v2174_v35, %v5357_v43  ;;  %v1824_v3 = vadd.f32 %v1823_v36, %v5361_v51 }
 0x2fb   :  { %v3629_v44 = vadd.f32 %v3628_v30, %v2685_v4  ;;  %v2688_v52 = vmax.f32 %v2173_v7, 0.0  ;;  %v2695_v45 = vmax.f32 %v1822_v28, 0.0  ;;  %v2177_v56 = vadd.f32 %v2176_v41, %v5382_v23 }
 0x2fc   :  { %v3703_v57 = vadd.f32 %v3702_v48, %v2687_v8  ;;  %v3666_v58 = vadd.f32 %v3665_v33, %v2686_v29  ;;  %v2697_v61 = vmax.f32 %v2175_v9, 0.0  ;;  %v2696_v62 = vmax.f32 %v1824_v3, 0.0 }
 0x2fd   :  { %v3740_v31 = vadd.f32 %v3739_v37, %v2688_v52  ;;  %v3630_v63 = vadd.f32 %v3629_v44, %v2695_v45  ;;  %v2698_v11 = vmax.f32 %v2177_v56, 0.0  ;;  %v1827_v0 = vpop.f32.mrb[16].mxu1 }
 0x2fe   :  { %v3704_v14 = vadd.f32 %v3703_v57, %v2697_v61  ;;  %v3667_v54 = vadd.f32 %v3666_v58, %v2696_v62  ;;  %v1828_v32 = vadd.f32 %v1827_v0, %v5353_v42  ;;  %v2180_v21 = vpop.f32.mrb[16].mxu0  ;;  %v1829_v46 = vpop.f32.mrb[17].mxu1 }
 0x2ff   :  { %v3741_v25 = vadd.f32 %v3740_v31, %v2698_v11  ;;  %v2181_v50 = vadd.f32 %v2180_v21, %v5357_v43  ;;  %v1830_v10 = vadd.f32 %v1829_v46, %v5361_v51  ;;  %v2182_v47 = vpop.f32.mrb[17].mxu0  ;;  %v1831_v49 = vpop.f32.mrb[18].mxu1 }
 0x300   :  { %v2705_v6 = vmax.f32 %v1828_v32, 0.0  ;;  %v2183_v12 = vadd.f32 %v2182_v47, %v5382_v23  ;;  %v1832_v13 = vadd.f32 %v1831_v49, %v5353_v42  ;;  %v2184_v16 = vpop.f32.mrb[18].mxu0  ;;  %v1833_v18 = vpop.f32.mrb[19].mxu1 }
 0x301   :  { %v2707_v20 = vmax.f32 %v2181_v50, 0.0  ;;  %v2706_v22 = vmax.f32 %v1830_v10, 0.0  ;;  %v2185_v24 = vadd.f32 %v2184_v16, %v5357_v43  ;;  %v1834_v2 = vadd.f32 %v1833_v18, %v5361_v51  ;;  %v2186_v27 = vpop.f32.mrb[19].mxu0 }
 0x302   :  { %v3631_v30 = vadd.f32 %v3630_v63, %v2705_v6  ;;  %v2708_v60 = vmax.f32 %v2183_v12, 0.0  ;;  %v2715_v59 = vmax.f32 %v1832_v13, 0.0  ;;  %v2187_v1 = vadd.f32 %v2186_v27, %v5382_v23 }
 0x303   :  { %v3705_v15 = vadd.f32 %v3704_v14, %v2707_v20  ;;  %v3668_v48 = vadd.f32 %v3667_v54, %v2706_v22  ;;  %v2717_v33 = vmax.f32 %v2185_v24, 0.0  ;;  %v2716_v34 = vmax.f32 %v1834_v2, 0.0 }
 0x304   :  { %v3742_v17 = vadd.f32 %v3741_v25, %v2708_v60  ;;  %v3632_v35 = vadd.f32 %v3631_v30, %v2715_v59  ;;  %v2718_v36 = vmax.f32 %v2187_v1, 0.0 }
 0x305   :  { %v3706_v37 = vadd.f32 %v3705_v15, %v2717_v33  ;;  %v3669_v4 = vadd.f32 %v3668_v48, %v2716_v34  ;;  %v1837_v7 = vpop.f32.mrb[20].mxu1 }
 0x306   :  { %v3743_v28 = vadd.f32 %v3742_v17, %v2718_v36  ;;  %v1838_v41 = vadd.f32 %v1837_v7, %v5353_v42  ;;  %v2190_v8 = vpop.f32.mrb[20].mxu0  ;;  %v1839_v29 = vpop.f32.mrb[21].mxu1 }
 0x307   :  { %v2191_v9 = vadd.f32 %v2190_v8, %v5357_v43  ;;  %v1840_v3 = vadd.f32 %v1839_v29, %v5361_v51  ;;  %v2192_v44 = vpop.f32.mrb[21].mxu0  ;;  %v1841_v52 = vpop.f32.mrb[22].mxu1 }
 0x308   :  { %v2725_v45 = vmax.f32 %v1838_v41, 0.0  ;;  %v2193_v56 = vadd.f32 %v2192_v44, %v5382_v23  ;;  %v1842_v57 = vadd.f32 %v1841_v52, %v5353_v42  ;;  %v2194_v58 = vpop.f32.mrb[22].mxu0  ;;  %v1843_v61 = vpop.f32.mrb[23].mxu1 }
 0x309   :  { %v2727_v62 = vmax.f32 %v2191_v9, 0.0  ;;  %v2726_v31 = vmax.f32 %v1840_v3, 0.0  ;;  %v2195_v63 = vadd.f32 %v2194_v58, %v5357_v43  ;;  %v1844_v11 = vadd.f32 %v1843_v61, %v5361_v51  ;;  %v2196_v0 = vpop.f32.mrb[23].mxu0 }
 0x30a   :  { %v3633_v14 = vadd.f32 %v3632_v35, %v2725_v45  ;;  %v2728_v54 = vmax.f32 %v2193_v56, 0.0  ;;  %v2735_v32 = vmax.f32 %v1842_v57, 0.0  ;;  %v2197_v21 = vadd.f32 %v2196_v0, %v5382_v23 }
 0x30b   :  { %v3707_v46 = vadd.f32 %v3706_v37, %v2727_v62  ;;  %v3670_v25 = vadd.f32 %v3669_v4, %v2726_v31  ;;  %v2737_v50 = vmax.f32 %v2195_v63, 0.0  ;;  %v2736_v10 = vmax.f32 %v1844_v11, 0.0 }
 0x30c   :  { %v3744_v47 = vadd.f32 %v3743_v28, %v2728_v54  ;;  %v3634_v49 = vadd.f32 %v3633_v14, %v2735_v32  ;;  %v2738_v6 = vmax.f32 %v2197_v21, 0.0 }
 0x30d   :  { %v3708_v12 = vadd.f32 %v3707_v46, %v2737_v50  ;;  %v3671_v13 = vadd.f32 %v3670_v25, %v2736_v10  ;;  %v1847_v16 = vpop.f32.mrb[24].mxu1 }
 0x30e   :  { %v3745_v18 = vadd.f32 %v3744_v47, %v2738_v6  ;;  %v1848_v20 = vadd.f32 %v1847_v16, %v5353_v42  ;;  %v2200_v22 = vpop.f32.mrb[24].mxu0  ;;  %v1849_v24 = vpop.f32.mrb[25].mxu1 }
 0x30f   :  { %v2201_v2 = vadd.f32 %v2200_v22, %v5357_v43  ;;  %v1850_v27 = vadd.f32 %v1849_v24, %v5361_v51  ;;  %v2202_v30 = vpop.f32.mrb[25].mxu0  ;;  %v1851_v60 = vpop.f32.mrb[26].mxu1 }
 0x310   :  { %v2745_v59 = vmax.f32 %v1848_v20, 0.0  ;;  %v2203_v1 = vadd.f32 %v2202_v30, %v5382_v23  ;;  %v1852_v15 = vadd.f32 %v1851_v60, %v5353_v42  ;;  %v2204_v48 = vpop.f32.mrb[26].mxu0  ;;  %v1853_v33 = vpop.f32.mrb[27].mxu1 }
 0x311   :  { %v2747_v34 = vmax.f32 %v2201_v2, 0.0  ;;  %v2746_v17 = vmax.f32 %v1850_v27, 0.0  ;;  %v2205_v35 = vadd.f32 %v2204_v48, %v5357_v43  ;;  %v1854_v36 = vadd.f32 %v1853_v33, %v5361_v51  ;;  %v2206_v37 = vpop.f32.mrb[27].mxu0 }
 0x312   :  { %v3635_v4 = vadd.f32 %v3634_v49, %v2745_v59  ;;  %v2748_v7 = vmax.f32 %v2203_v1, 0.0  ;;  %v2755_v28 = vmax.f32 %v1852_v15, 0.0  ;;  %v2207_v41 = vadd.f32 %v2206_v37, %v5382_v23 }
 0x313   :  { %v3709_v8 = vadd.f32 %v3708_v12, %v2747_v34  ;;  %v3672_v29 = vadd.f32 %v3671_v13, %v2746_v17  ;;  %v2757_v9 = vmax.f32 %v2205_v35, 0.0  ;;  %v2756_v3 = vmax.f32 %v1854_v36, 0.0 }
 0x314   :  { %v3746_v44 = vadd.f32 %v3745_v18, %v2748_v7  ;;  %v3636_v52 = vadd.f32 %v3635_v4, %v2755_v28  ;;  %v2758_v45 = vmax.f32 %v2207_v41, 0.0 }
 0x315   :  { %v3710_v56 = vadd.f32 %v3709_v8, %v2757_v9  ;;  %v3673_v57 = vadd.f32 %v3672_v29, %v2756_v3  ;;  %v1857_v58 = vpop.f32.mrb[28].mxu1 }
 0x316   :  { %v3747_v61 = vadd.f32 %v3746_v44, %v2758_v45  ;;  %v1858_v62 = vadd.f32 %v1857_v58, %v5353_v42  ;;  %v2210_v31 = vpop.f32.mrb[28].mxu0  ;;  %v1859_v63 = vpop.f32.mrb[29].mxu1 }
 0x317   :  { %v2211_v11 = vadd.f32 %v2210_v31, %v5357_v43  ;;  %v1860_v0 = vadd.f32 %v1859_v63, %v5361_v51  ;;  %v2212_v14 = vpop.f32.mrb[29].mxu0  ;;  %v1861_v54 = vpop.f32.mrb[30].mxu1 }
 0x318   :  { %v2765_v32 = vmax.f32 %v1858_v62, 0.0  ;;  %v2213_v21 = vadd.f32 %v2212_v14, %v5382_v23  ;;  %v1862_v46 = vadd.f32 %v1861_v54, %v5353_v42  ;;  %v2214_v25 = vpop.f32.mrb[30].mxu0  ;;  %v1863_v50 = vpop.f32.mrb[31].mxu1 }
 0x319   :  { %v2767_v10 = vmax.f32 %v2211_v11, 0.0  ;;  %v2766_v47 = vmax.f32 %v1860_v0, 0.0  ;;  %v2215_v49 = vadd.f32 %v2214_v25, %v5357_v43  ;;  %v1864_v6 = vadd.f32 %v1863_v50, %v5361_v51  ;;  %v2216_v12 = vpop.f32.mrb[31].mxu0 }
 0x31a   :  { %v3637_v13 = vadd.f32 %v3636_v52, %v2765_v32  ;;  %v2768_v16 = vmax.f32 %v2213_v21, 0.0  ;;  %v2775_v18 = vmax.f32 %v1862_v46, 0.0  ;;  %v2217_v20 = vadd.f32 %v2216_v12, %v5382_v23 }
 0x31b   :  { %v3711_v22 = vadd.f32 %v3710_v56, %v2767_v10  ;;  %v3674_v24 = vadd.f32 %v3673_v57, %v2766_v47  ;;  %v2777_v2 = vmax.f32 %v2215_v49, 0.0  ;;  %v2776_v27 = vmax.f32 %v1864_v6, 0.0 }
 0x31c   :  { %v3748_v30 = vadd.f32 %v3747_v61, %v2768_v16  ;;  %v3638_v60 = vadd.f32 %v3637_v13, %v2775_v18  ;;  %v2778_v59 = vmax.f32 %v2217_v20, 0.0 }
 0x31d   :  { %v3712_v1 = vadd.f32 %v3711_v22, %v2777_v2  ;;  %v3675_v15 = vadd.f32 %v3674_v24, %v2776_v27  ;;  %v1867_v48 = vpop.f32.mrb[32].mxu1 }
 0x31e   :  { %v3749_v33 = vadd.f32 %v3748_v30, %v2778_v59  ;;  %v1868_v34 = vadd.f32 %v1867_v48, %v5353_v42  ;;  %v2220_v17 = vpop.f32.mrb[32].mxu0  ;;  %v1869_v35 = vpop.f32.mrb[33].mxu1 }
 0x31f   :  { %v2221_v36 = vadd.f32 %v2220_v17, %v5357_v43  ;;  %v1870_v37 = vadd.f32 %v1869_v35, %v5361_v51  ;;  %v2222_v4 = vpop.f32.mrb[33].mxu0  ;;  %v1871_v7 = vpop.f32.mrb[34].mxu1 }
 0x320   :  { %v2785_v28 = vmax.f32 %v1868_v34, 0.0  ;;  %v2223_v41 = vadd.f32 %v2222_v4, %v5382_v23  ;;  %v1872_v8 = vadd.f32 %v1871_v7, %v5353_v42  ;;  %v2224_v29 = vpop.f32.mrb[34].mxu0  ;;  %v1873_v9 = vpop.f32.mrb[35].mxu1 }
 0x321   :  { %v2787_v3 = vmax.f32 %v2221_v36, 0.0  ;;  %v2786_v44 = vmax.f32 %v1870_v37, 0.0  ;;  %v2225_v52 = vadd.f32 %v2224_v29, %v5357_v43  ;;  %v1874_v45 = vadd.f32 %v1873_v9, %v5361_v51  ;;  %v2226_v56 = vpop.f32.mrb[35].mxu0 }
 0x322   :  { %v3639_v57 = vadd.f32 %v3638_v60, %v2785_v28  ;;  %v2788_v58 = vmax.f32 %v2223_v41, 0.0  ;;  %v2795_v61 = vmax.f32 %v1872_v8, 0.0  ;;  %v2227_v62 = vadd.f32 %v2226_v56, %v5382_v23 }
 0x323   :  { %v3713_v31 = vadd.f32 %v3712_v1, %v2787_v3  ;;  %v3676_v63 = vadd.f32 %v3675_v15, %v2786_v44  ;;  %v2797_v11 = vmax.f32 %v2225_v52, 0.0  ;;  %v2796_v0 = vmax.f32 %v1874_v45, 0.0 }
 0x324   :  { %v3750_v14 = vadd.f32 %v3749_v33, %v2788_v58  ;;  %v3640_v54 = vadd.f32 %v3639_v57, %v2795_v61  ;;  %v2798_v32 = vmax.f32 %v2227_v62, 0.0 }
 0x325   :  { %v3714_v21 = vadd.f32 %v3713_v31, %v2797_v11  ;;  %v3677_v46 = vadd.f32 %v3676_v63, %v2796_v0  ;;  %v1877_v25 = vpop.f32.mrb[36].mxu1 }
 0x326   :  { %v3751_v50 = vadd.f32 %v3750_v14, %v2798_v32  ;;  %v1878_v10 = vadd.f32 %v1877_v25, %v5353_v42  ;;  %v2230_v47 = vpop.f32.mrb[36].mxu0  ;;  %v1879_v49 = vpop.f32.mrb[37].mxu1 }
 0x327   :  { %v2231_v6 = vadd.f32 %v2230_v47, %v5357_v43  ;;  %v1880_v12 = vadd.f32 %v1879_v49, %v5361_v51  ;;  %v2232_v13 = vpop.f32.mrb[37].mxu0  ;;  %v1881_v16 = vpop.f32.mrb[38].mxu1 }
 0x328   :  { %v2805_v18 = vmax.f32 %v1878_v10, 0.0  ;;  %v2233_v20 = vadd.f32 %v2232_v13, %v5382_v23  ;;  %v1882_v22 = vadd.f32 %v1881_v16, %v5353_v42  ;;  %v2234_v24 = vpop.f32.mrb[38].mxu0  ;;  %v1883_v2 = vpop.f32.mrb[39].mxu1 }
 0x329   :  { %v2807_v27 = vmax.f32 %v2231_v6, 0.0  ;;  %v2806_v30 = vmax.f32 %v1880_v12, 0.0  ;;  %v2235_v60 = vadd.f32 %v2234_v24, %v5357_v43  ;;  %v1884_v59 = vadd.f32 %v1883_v2, %v5361_v51  ;;  %v2236_v1 = vpop.f32.mrb[39].mxu0 }
 0x32a   :  { %v3641_v15 = vadd.f32 %v3640_v54, %v2805_v18  ;;  %v2808_v48 = vmax.f32 %v2233_v20, 0.0  ;;  %v2815_v33 = vmax.f32 %v1882_v22, 0.0  ;;  %v2237_v34 = vadd.f32 %v2236_v1, %v5382_v23 }
 0x32b   :  { %v3715_v17 = vadd.f32 %v3714_v21, %v2807_v27  ;;  %v3678_v35 = vadd.f32 %v3677_v46, %v2806_v30  ;;  %v2817_v36 = vmax.f32 %v2235_v60, 0.0  ;;  %v2816_v37 = vmax.f32 %v1884_v59, 0.0 }
 0x32c   :  { %v3752_v4 = vadd.f32 %v3751_v50, %v2808_v48  ;;  %v3642_v7 = vadd.f32 %v3641_v15, %v2815_v33  ;;  %v2818_v28 = vmax.f32 %v2237_v34, 0.0 }
 0x32d   :  { %v3716_v41 = vadd.f32 %v3715_v17, %v2817_v36  ;;  %v3679_v8 = vadd.f32 %v3678_v35, %v2816_v37  ;;  %v1887_v29 = vpop.f32.mrb[40].mxu1 }
 0x32e   :  { %v3753_v9 = vadd.f32 %v3752_v4, %v2818_v28  ;;  %v1888_v3 = vadd.f32 %v1887_v29, %v5353_v42  ;;  %v2240_v44 = vpop.f32.mrb[40].mxu0  ;;  %v1889_v52 = vpop.f32.mrb[41].mxu1 }
 0x32f   :  { %v2241_v45 = vadd.f32 %v2240_v44, %v5357_v43  ;;  %v1890_v56 = vadd.f32 %v1889_v52, %v5361_v51  ;;  %v2242_v57 = vpop.f32.mrb[41].mxu0  ;;  %v1891_v58 = vpop.f32.mrb[42].mxu1 }
 0x330   :  { %v2825_v61 = vmax.f32 %v1888_v3, 0.0  ;;  %v2243_v62 = vadd.f32 %v2242_v57, %v5382_v23  ;;  %v1892_v31 = vadd.f32 %v1891_v58, %v5353_v42  ;;  %v2244_v63 = vpop.f32.mrb[42].mxu0  ;;  %v1893_v11 = vpop.f32.mrb[43].mxu1 }
 0x331   :  { %v2827_v0 = vmax.f32 %v2241_v45, 0.0  ;;  %v2826_v14 = vmax.f32 %v1890_v56, 0.0  ;;  %v2245_v54 = vadd.f32 %v2244_v63, %v5357_v43  ;;  %v1894_v32 = vadd.f32 %v1893_v11, %v5361_v51  ;;  %v2246_v21 = vpop.f32.mrb[43].mxu0 }
 0x332   :  { %v3643_v46 = vadd.f32 %v3642_v7, %v2825_v61  ;;  %v2828_v25 = vmax.f32 %v2243_v62, 0.0  ;;  %v2835_v50 = vmax.f32 %v1892_v31, 0.0  ;;  %v2247_v10 = vadd.f32 %v2246_v21, %v5382_v23 }
 0x333   :  { %v3717_v47 = vadd.f32 %v3716_v41, %v2827_v0  ;;  %v3680_v49 = vadd.f32 %v3679_v8, %v2826_v14  ;;  %v2837_v6 = vmax.f32 %v2245_v54, 0.0  ;;  %v2836_v12 = vmax.f32 %v1894_v32, 0.0 }
 0x334   :  { %v3754_v13 = vadd.f32 %v3753_v9, %v2828_v25  ;;  %v3644_v16 = vadd.f32 %v3643_v46, %v2835_v50  ;;  %v2838_v18 = vmax.f32 %v2247_v10, 0.0 }
 0x335   :  { %v3718_v20 = vadd.f32 %v3717_v47, %v2837_v6  ;;  %v3681_v22 = vadd.f32 %v3680_v49, %v2836_v12  ;;  %v1897_v24 = vpop.f32.mrb[44].mxu1 }
 0x336   :  { %v3755_v2 = vadd.f32 %v3754_v13, %v2838_v18  ;;  %v1898_v27 = vadd.f32 %v1897_v24, %v5353_v42  ;;  %v2250_v30 = vpop.f32.mrb[44].mxu0  ;;  %v1899_v60 = vpop.f32.mrb[45].mxu1 }
 0x337   :  { %v2251_v59 = vadd.f32 %v2250_v30, %v5357_v43  ;;  %v1900_v1 = vadd.f32 %v1899_v60, %v5361_v51  ;;  %v2252_v15 = vpop.f32.mrb[45].mxu0  ;;  %v1901_v48 = vpop.f32.mrb[46].mxu1 }
 0x338   :  { %v2845_v33 = vmax.f32 %v1898_v27, 0.0  ;;  %v2253_v34 = vadd.f32 %v2252_v15, %v5382_v23  ;;  %v1902_v17 = vadd.f32 %v1901_v48, %v5353_v42  ;;  %v2254_v35 = vpop.f32.mrb[46].mxu0  ;;  %v1903_v36 = vpop.f32.mrb[47].mxu1 }
 0x339   :  { %v2847_v37 = vmax.f32 %v2251_v59, 0.0  ;;  %v2846_v4 = vmax.f32 %v1900_v1, 0.0  ;;  %v2255_v7 = vadd.f32 %v2254_v35, %v5357_v43  ;;  %v1904_v28 = vadd.f32 %v1903_v36, %v5361_v51  ;;  %v2256_v41 = vpop.f32.mrb[47].mxu0 }
 0x33a   :  { %v3645_v8 = vadd.f32 %v3644_v16, %v2845_v33  ;;  %v2848_v29 = vmax.f32 %v2253_v34, 0.0  ;;  %v2855_v9 = vmax.f32 %v1902_v17, 0.0  ;;  %v2257_v3 = vadd.f32 %v2256_v41, %v5382_v23 }
 0x33b   :  { %v3719_v44 = vadd.f32 %v3718_v20, %v2847_v37  ;;  %v3682_v52 = vadd.f32 %v3681_v22, %v2846_v4  ;;  %v2857_v45 = vmax.f32 %v2255_v7, 0.0  ;;  %v2856_v56 = vmax.f32 %v1904_v28, 0.0 }
 0x33c   :  { %v3756_v57 = vadd.f32 %v3755_v2, %v2848_v29  ;;  %v3646_v58 = vadd.f32 %v3645_v8, %v2855_v9  ;;  %v2858_v61 = vmax.f32 %v2257_v3, 0.0 }
 0x33d   :  { %v3720_v62 = vadd.f32 %v3719_v44, %v2857_v45  ;;  %v3683_v31 = vadd.f32 %v3682_v52, %v2856_v56  ;;  %v1907_v63 = vpop.f32.mrb[48].mxu1 }
 0x33e   :  { %v3757_v11 = vadd.f32 %v3756_v57, %v2858_v61  ;;  %v1908_v0 = vadd.f32 %v1907_v63, %v5353_v42  ;;  %v2260_v14 = vpop.f32.mrb[48].mxu0  ;;  %v1909_v54 = vpop.f32.mrb[49].mxu1 }
 0x33f   :  { %v2261_v32 = vadd.f32 %v2260_v14, %v5357_v43  ;;  %v1910_v21 = vadd.f32 %v1909_v54, %v5361_v51  ;;  %v2262_v46 = vpop.f32.mrb[49].mxu0  ;;  %v1911_v25 = vpop.f32.mrb[50].mxu1 }
 0x340   :  { %v2865_v50 = vmax.f32 %v1908_v0, 0.0  ;;  %v2263_v10 = vadd.f32 %v2262_v46, %v5382_v23  ;;  %v1912_v47 = vadd.f32 %v1911_v25, %v5353_v42  ;;  %v2264_v49 = vpop.f32.mrb[50].mxu0  ;;  %v1913_v6 = vpop.f32.mrb[51].mxu1 }
 0x341   :  { %v2867_v12 = vmax.f32 %v2261_v32, 0.0  ;;  %v2866_v13 = vmax.f32 %v1910_v21, 0.0  ;;  %v2265_v16 = vadd.f32 %v2264_v49, %v5357_v43  ;;  %v1914_v18 = vadd.f32 %v1913_v6, %v5361_v51  ;;  %v2266_v20 = vpop.f32.mrb[51].mxu0 }
 0x342   :  { %v3647_v22 = vadd.f32 %v3646_v58, %v2865_v50  ;;  %v2868_v24 = vmax.f32 %v2263_v10, 0.0  ;;  %v2875_v2 = vmax.f32 %v1912_v47, 0.0  ;;  %v2267_v27 = vadd.f32 %v2266_v20, %v5382_v23 }
 0x343   :  { %v3721_v30 = vadd.f32 %v3720_v62, %v2867_v12  ;;  %v3684_v60 = vadd.f32 %v3683_v31, %v2866_v13  ;;  %v2877_v59 = vmax.f32 %v2265_v16, 0.0  ;;  %v2876_v1 = vmax.f32 %v1914_v18, 0.0 }
 0x344   :  { %v3758_v15 = vadd.f32 %v3757_v11, %v2868_v24  ;;  %v3648_v48 = vadd.f32 %v3647_v22, %v2875_v2  ;;  %v2878_v33 = vmax.f32 %v2267_v27, 0.0 }
 0x345   :  { %v3722_v34 = vadd.f32 %v3721_v30, %v2877_v59  ;;  %v3685_v17 = vadd.f32 %v3684_v60, %v2876_v1  ;;  %v1917_v35 = vpop.f32.mrb[52].mxu1 }
 0x346   :  { %v3759_v36 = vadd.f32 %v3758_v15, %v2878_v33  ;;  %v1918_v37 = vadd.f32 %v1917_v35, %v5353_v42  ;;  %v2270_v4 = vpop.f32.mrb[52].mxu0  ;;  %v1919_v7 = vpop.f32.mrb[53].mxu1 }
 0x347   :  { %v2271_v28 = vadd.f32 %v2270_v4, %v5357_v43  ;;  %v1920_v41 = vadd.f32 %v1919_v7, %v5361_v51  ;;  %v2272_v8 = vpop.f32.mrb[53].mxu0  ;;  %v1921_v29 = vpop.f32.mrb[54].mxu1 }
 0x348   :  { %v2885_v9 = vmax.f32 %v1918_v37, 0.0  ;;  %v2273_v3 = vadd.f32 %v2272_v8, %v5382_v23  ;;  %v1922_v44 = vadd.f32 %v1921_v29, %v5353_v42  ;;  %v2274_v52 = vpop.f32.mrb[54].mxu0  ;;  %v1923_v45 = vpop.f32.mrb[55].mxu1 }
 0x349   :  { %v2887_v56 = vmax.f32 %v2271_v28, 0.0  ;;  %v2886_v57 = vmax.f32 %v1920_v41, 0.0  ;;  %v2275_v58 = vadd.f32 %v2274_v52, %v5357_v43  ;;  %v1924_v61 = vadd.f32 %v1923_v45, %v5361_v51  ;;  %v2276_v62 = vpop.f32.mrb[55].mxu0 }
 0x34a   :  { %v3649_v31 = vadd.f32 %v3648_v48, %v2885_v9  ;;  %v2888_v63 = vmax.f32 %v2273_v3, 0.0  ;;  %v2895_v11 = vmax.f32 %v1922_v44, 0.0  ;;  %v2277_v0 = vadd.f32 %v2276_v62, %v5382_v23 }
 0x34b   :  { %v3723_v14 = vadd.f32 %v3722_v34, %v2887_v56  ;;  %v3686_v54 = vadd.f32 %v3685_v17, %v2886_v57  ;;  %v2897_v32 = vmax.f32 %v2275_v58, 0.0  ;;  %v2896_v21 = vmax.f32 %v1924_v61, 0.0 }
 0x34c   :  { %v3760_v46 = vadd.f32 %v3759_v36, %v2888_v63  ;;  %v3650_v25 = vadd.f32 %v3649_v31, %v2895_v11  ;;  %v2898_v50 = vmax.f32 %v2277_v0, 0.0 }
 0x34d   :  { %v3724_v10 = vadd.f32 %v3723_v14, %v2897_v32  ;;  %v3687_v47 = vadd.f32 %v3686_v54, %v2896_v21  ;;  %v1927_v49 = vpop.f32.mrb[56].mxu1 }
 0x34e   :  { %v3761_v6 = vadd.f32 %v3760_v46, %v2898_v50  ;;  %v1928_v12 = vadd.f32 %v1927_v49, %v5353_v42  ;;  %v2280_v13 = vpop.f32.mrb[56].mxu0  ;;  %v1929_v16 = vpop.f32.mrb[57].mxu1 }
 0x34f   :  { %v2281_v18 = vadd.f32 %v2280_v13, %v5357_v43  ;;  %v1930_v20 = vadd.f32 %v1929_v16, %v5361_v51  ;;  %v2282_v22 = vpop.f32.mrb[57].mxu0  ;;  %v1931_v24 = vpop.f32.mrb[58].mxu1 }
 0x350   :  { %v2905_v2 = vmax.f32 %v1928_v12, 0.0  ;;  %v2283_v27 = vadd.f32 %v2282_v22, %v5382_v23  ;;  %v1932_v30 = vadd.f32 %v1931_v24, %v5353_v42  ;;  %v2284_v60 = vpop.f32.mrb[58].mxu0  ;;  %v1933_v59 = vpop.f32.mrb[59].mxu1 }
 0x351   :  { %v2907_v1 = vmax.f32 %v2281_v18, 0.0  ;;  %v2906_v15 = vmax.f32 %v1930_v20, 0.0  ;;  %v2285_v48 = vadd.f32 %v2284_v60, %v5357_v43  ;;  %v1934_v33 = vadd.f32 %v1933_v59, %v5361_v51  ;;  %v2286_v34 = vpop.f32.mrb[59].mxu0 }
 0x352   :  { %v3651_v17 = vadd.f32 %v3650_v25, %v2905_v2  ;;  %v2908_v35 = vmax.f32 %v2283_v27, 0.0  ;;  %v2915_v36 = vmax.f32 %v1932_v30, 0.0  ;;  %v2287_v37 = vadd.f32 %v2286_v34, %v5382_v23 }
 0x353   :  { %v3725_v4 = vadd.f32 %v3724_v10, %v2907_v1  ;;  %v3688_v7 = vadd.f32 %v3687_v47, %v2906_v15  ;;  %v2917_v28 = vmax.f32 %v2285_v48, 0.0  ;;  %v2916_v41 = vmax.f32 %v1934_v33, 0.0 }
 0x354   :  { %v3762_v8 = vadd.f32 %v3761_v6, %v2908_v35  ;;  %v3652_v29 = vadd.f32 %v3651_v17, %v2915_v36  ;;  %v2918_v9 = vmax.f32 %v2287_v37, 0.0 }
 0x355   :  { %v3726_v3 = vadd.f32 %v3725_v4, %v2917_v28  ;;  %v3689_v44 = vadd.f32 %v3688_v7, %v2916_v41  ;;  %v1937_v52 = vpop.f32.mrb[60].mxu1 }
 0x356   :  { %v3763_v45 = vadd.f32 %v3762_v8, %v2918_v9  ;;  %v1938_v56 = vadd.f32 %v1937_v52, %v5353_v42  ;;  %v2290_v57 = vpop.f32.mrb[60].mxu0  ;;  %v1939_v58 = vpop.f32.mrb[61].mxu1 }
 0x357   :  { %v2291_v61 = vadd.f32 %v2290_v57, %v5357_v43  ;;  %v1940_v62 = vadd.f32 %v1939_v58, %v5361_v51  ;;  %v2292_v31 = vpop.f32.mrb[61].mxu0  ;;  %v1941_v63 = vpop.f32.mrb[62].mxu1 }
 0x358   :  { %v2925_v11 = vmax.f32 %v1938_v56, 0.0  ;;  %v2293_v0 = vadd.f32 %v2292_v31, %v5382_v23  ;;  %v1942_v14 = vadd.f32 %v1941_v63, %v5353_v42  ;;  %v2294_v54 = vpop.f32.mrb[62].mxu0  ;;  %v1943_v32 = vpop.f32.mrb[63].mxu1  ;;  %v3816_v31 = vrot.slane %v3794_v55, %v5098_v53 }
 0x359   :  { %v2927_v21 = vmax.f32 %v2291_v61, 0.0  ;;  %v2926_v46 = vmax.f32 %v1940_v62, 0.0  ;;  %v2295_v25 = vadd.f32 %v2294_v54, %v5357_v43  ;;  %v1944_v50 = vadd.f32 %v1943_v32, %v5361_v51  ;;  %v2296_v10 = vpop.f32.mrb[63].mxu0 }
 0x35a   :  { %v3653_v47 = vadd.f32 %v3652_v29, %v2925_v11  ;;  %v2928_v49 = vmax.f32 %v2293_v0, 0.0  ;;  %v2935_v6 = vmax.f32 %v1942_v14, 0.0  ;;  %v2297_v12 = vadd.f32 %v2296_v10, %v5382_v23 }
 0x35b   :  { %v3727_v13 = vadd.f32 %v3726_v3, %v2927_v21  ;;  %v3690_v16 = vadd.f32 %v3689_v44, %v2926_v46  ;;  %v2937_v18 = vmax.f32 %v2295_v25, 0.0  ;;  %v2936_v20 = vmax.f32 %v1944_v50, 0.0 }
 0x35c   :  { %v3764_v22 = vadd.f32 %v3763_v45, %v2928_v49  ;;  %v3654_v42 = vadd.f32 %v3653_v47, %v2935_v6  ;;  %v2938_v24 = vmax.f32 %v2297_v12, 0.0  ;;  %v3832_v54 = vrot.slane %v3824_v19, %v5098_v53 }
 0x35d   :  { %v3728_v2 = vadd.f32 %v3727_v13, %v2937_v18  ;;  %v3691_v27 = vadd.f32 %v3690_v16, %v2936_v20 }
 0x35e   :  { %v3655_v30 = vrot.slane %v3654_v42, 4  ;;  %v3765_v60 = vadd.f32 %v3764_v22, %v2938_v24 }
 0x35f   :  { %v3729_v43 = vrot.slane %v3728_v2, 4  ;;  %v3692_v59 = vrot.slane %v3691_v27, 4 }
 0x360   :  { %v3656_v51 = vadd.f32 %v3655_v30, %v3654_v42  ;;  %v3766_v1 = vrot.slane %v3765_v60, 4 }
 0x361   :  { %v3730_v15 = vadd.f32 %v3729_v43, %v3728_v2  ;;  %v3693_v48 = vadd.f32 %v3692_v59, %v3691_v27 }
 0x362   :  { %v3657_v33 = vrot.slane %v3656_v51, 2  ;;  %v3767_v34 = vadd.f32 %v3766_v1, %v3765_v60 }
 0x363   :  { %v3731_v23 = vrot.slane %v3730_v15, 2  ;;  %v3694_v17 = vrot.slane %v3693_v48, 2 }
 0x364   :  { %v3658_v35 = vadd.f32 %v3657_v33, %v3656_v51  ;;  %v3768_v36 = vrot.slane %v3767_v34, 2 }
 0x365   :  { %v3732_v37 = vadd.f32 %v3731_v23, %v3730_v15  ;;  %v3695_v4 = vadd.f32 %v3694_v17, %v3693_v48 }
 0x366   :  { %v3659_v7 = vrot.slane %v3658_v35, 1  ;;  %v3769_v28 = vadd.f32 %v3768_v36, %v3767_v34 }
 0x367   :  { %v3733_v41 = vrot.slane %v3732_v37, 1  ;;  %v3696_v8 = vrot.slane %v3695_v4, 1 }
 0x368   :  { %v3660_v29 = vadd.f32 %v3659_v7, %v3658_v35  ;;  %v3770_v9 = vrot.slane %v3769_v28, 1 }
 0x369   :  { %v3734_v3 = vadd.f32 %v3733_v41, %v3732_v37  ;;  %v3697_v44 = vadd.f32 %v3696_v8, %v3695_v4 }
 0x36a   :  { %v3778_v52 = vmul.f32 0.00390625, %v3660_v29  ;;  %v3771_v45 = vadd.f32 %v3770_v9, %v3769_v28 }
 0x36b   :  { %v3780_v56 = vmul.f32 0.00390625, %v3734_v3  ;;  %v3779_v57 = vmul.f32 0.00390625, %v3697_v44 }
 0x36c   :  { %v3781_v58 = vmul.f32 0.00390625, %v3771_v45 }
 0x36d   :  { %v3795_v61 = vcombine.low %v3778_v52, %v3779_v57 }
 0x36e   :  { %v3841_v62 = vcombine.low %v3780_v56, %v3781_v58 }
 0x36f   :  { %v3823_v63 = vrot.slane %v3795_v61, %v5098_v53 }
 0x370   :  { %v3848_v11 = vrot.slane %v3841_v62, %v5098_v53 }
 0x371   :  { %v3825_v0 = vcombine.low %v3816_v31, %v3823_v63 }
 0x372   :  { %v3855_v14 = vrot.slane %v3848_v11, %v5098_v53 }
 0x373   :  { %v3839_v32 = vrot.slane %v3825_v0, %v5098_v53 }
 0x374   :  { %4080 = vst.msk [vmem:[%s5737_s3 + $0x11] ss:$2 sm:$0x3] %vm5578_vm3, %v3855_v14 }
 0x375   :  { %v3840_v38 = vcombine.low %v3832_v54, %v3839_v32 }
 0x377   :  { %4079 = vst [vmem:[%s5737_s3 + $0x1] ss:$2 sm:$0xff] %v3840_v38 }

// kernel: policy_forward.9
= control target key start
LH: loop header
LB: loop body
LE: loop exit
PB: predicated region body
PF: predicated region fallthrough
CT: control target
= control target key end

     0   :  { %s10509_s0 = inlined_call_operand.vmem [shape: f32[2,1280], index: 0, kind: input, shape index: {}]   ;;  %s10510_s1 = inlined_call_operand.vmem [shape: f32[2,64], index: 1, kind: input, shape index: {}]   ;;  %s10511_s2 = inlined_call_operand.vmem [shape: bf16[1280,512], index: 2, kind: input, shape index: {}]   ;;  %s10512_s3 = inlined_call_operand.vmem [shape: bf16[64,512], index: 3, kind: input, shape index: {}]   ;;  %s10513_s4 = inlined_call_operand.vmem [shape: f32[1,512], index: 4, kind: input, shape index: {}]   ;;  %s10514_s5 = inlined_call_operand.vmem [shape: bf16[512,512], index: 5, kind: input, shape index: {}]   ;;  %s10515_s6 = inlined_call_operand.vmem [shape: f32[1,512], index: 6, kind: input, shape index: {}]   ;;  %s10516_s7 = inlined_call_operand.vmem [shape: bf16[512,512], index: 7, kind: input, shape index: {}]   ;;  %s10517_s8 = inlined_call_operand.vmem [shape: f32[1,512], index: 8, kind: input, shape index: {}]   ;;  %s10518_s9 = inlined_call_operand.vmem [shape: bf16[512,256], index: 9, kind: input, shape index: {}]   ;;  %s10519_s10 = inlined_call_operand.vmem [shape: f32[1,256], index: 10, kind: input, shape index: {}]   ;;  %s10520_s11 = inlined_call_operand.vmem [shape: bf16[256,1], index: 11, kind: input, shape index: {}]   ;;  %s10521_s12 = inlined_call_operand.<no memory space> [shape: f32[1,1], index: 12, kind: input, shape index: {}]   ;;  %s10522_s13 = inlined_call_operand.vmem [shape: bf16[512,256], index: 13, kind: input, shape index: {}]   ;;  %s10523_s14 = inlined_call_operand.vmem [shape: f32[1,256], index: 14, kind: input, shape index: {}]   ;;  %s10524_s15 = inlined_call_operand.vmem [shape: bf16[256,8], index: 15, kind: input, shape index: {}]   ;;  %s10525_s16 = inlined_call_operand.vmem [shape: f32[1,8], index: 16, kind: input, shape index: {}]   ;;  %s10526_s17 = inlined_call_operand.vmem [shape: f32[2,1], index: 17, kind: output, shape index: {0}]   ;;  %s10527_s18 = inlined_call_operand.hbm [shape: f32[2,8], index: 18, kind: output, shape index: {1}]  }
   0x1   :  { %10530 = sst [smem:[#allocation6_spill]] %s10509_s0  ;;  %v24_v0 = vstv %s10521_s12 }
   0x2   :  { %10531 = sst [smem:[#allocation7_spill]] %s10510_s1  ;;  %25 = vst [vmem:[#allocation2] sm:$0x1] %v24_v0 }
   0x3   :  { %10532 = sst [smem:[#allocation8_spill]] %s10511_s2 }
   0x4   :  { %v6781_v1 = vld [vmem:[%s10512_s3 + $0x4] ss:$16 sps:$4 sm:$0xff]   ;;  %v6783_v2 = vld [vmem:[%s10512_s3 + $0xc] ss:$16 sps:$4 sm:$0xff]   ;;  %v7923_v3 = vmov 0   ;;  %s10533_s0 = sld [smem:[#allocation7_spill]]  ;;  %v72_v52 = vlaneseq }
   0x5   :  { %584 = vmatprep.mubr.bf16.mxu0 %v7923_v3  ;;  %625 = vmatprep.mubr.bf16.mxu1 %v7923_v3  ;;  %v6785_v4 = vld [vmem:[%s10512_s3] ss:$16 sps:$4 sm:$0xff]   ;;  %v6786_v5 = vld [vmem:[%s10512_s3 + $0x8] ss:$16 sps:$4 sm:$0xff]   ;;  %v6787_v6 = vld [vmem:[%s10512_s3 + $0x24] ss:$16 sps:$4 sm:$0xff]  }
   0x6   :  { %552 = vmatprep.subr.bf16.mxu0 %v6781_v1  ;;  %593 = vmatprep.subr.bf16.mxu1 %v6783_v2  ;;  %v6789_v7 = vld [vmem:[%s10512_s3 + $0x2c] ss:$16 sps:$4 sm:$0xff]   ;;  %v6791_v8 = vld [vmem:[%s10512_s3 + $0x20] ss:$16 sps:$4 sm:$0xff]   ;;  %v6792_v9 = vld [vmem:[%s10512_s3 + $0x28] ss:$16 sps:$4 sm:$0xff]  }
   0x7   :  { %553 = vmatpush1.bf16.msra.mxu0 %v6785_v4  ;;  %594 = vmatpush1.bf16.msra.mxu1 %v6786_v5  ;;  %v6793_v10 = vld [vmem:[%s10512_s3 + $0x44] ss:$16 sps:$4 sm:$0xff]   ;;  %v6795_v11 = vld [vmem:[%s10512_s3 + $0x4c] ss:$16 sps:$4 sm:$0xff]   ;;  %v6797_v12 = vld [vmem:[%s10512_s3 + $0x40] ss:$16 sps:$4 sm:$0xff]  }
   0x8   :  { %554 = vmatprep.subr.bf16.mxu0 %v6787_v6  ;;  %595 = vmatprep.subr.bf16.mxu1 %v6789_v7  ;;  %v6798_v13 = vld [vmem:[%s10512_s3 + $0x48] ss:$16 sps:$4 sm:$0xff]   ;;  %v6799_v14 = vld [vmem:[%s10512_s3 + $0x64] ss:$16 sps:$4 sm:$0xff]   ;;  %v6801_v15 = vld [vmem:[%s10512_s3 + $0x6c] ss:$16 sps:$4 sm:$0xff]  }
   0x9   :  { %v6803_v16 = vld [vmem:[%s10512_s3 + $0x60] ss:$16 sps:$4 sm:$0xff]   ;;  %v6804_v17 = vld [vmem:[%s10512_s3 + $0x68] ss:$16 sps:$4 sm:$0xff]   ;;  %s10534_s20 = sld [smem:[#allocation8_spill]]  ;;  %vm548_vm0 = vcmask 523264  }
   0xa   :  { %v130_v18 = vld [vmem:[%s10533_s0] sm:$0x3]  ;;  %v7924_v50 = vmov 1983009808   ;;  %v8177_v58 = vshrl.u32 %v72_v52, 7  ;;  %s10535_s3 = sld [smem:[#allocation6_spill]] }
   0xb   :  { %555 = vmatpush1.bf16.msra.mxu0 %v6791_v8  ;;  %596 = vmatpush1.bf16.msra.mxu1 %v6792_v9  ;;  %v131_v21 = vpack.c.bf16 %v130_v18, %v130_v18  ;;  %v70_v51 = vunpack.c.l.s4 %v7924_v50 }
   0xc   :  { %556 = vmatprep.subr.bf16.mxu0 %v6793_v10  ;;  %597 = vmatprep.subr.bf16.mxu1 %v6795_v11 }
   0xd   :  { %v71_v57 = vunpack.c.0.s8 %v70_v51 }
   0xf   :  { %557 = vmatpush1.bf16.msra.mxu0 %v6797_v12  ;;  %598 = vmatpush1.bf16.msra.mxu1 %v6798_v13  ;;  %v6807_v19 = vld [vmem:[%s10534_s20 + $0x4] ss:$16 sps:$4 sm:$0xff]   ;;  %v6805_v22 = vld [vmem:[%s10534_s20] ss:$16 sps:$4 sm:$0xff]   ;;  %v8192_v63 = vsub.s32 %v71_v57, %v8177_v58 }
  0x10   :  { %558 = vmatprep.subr.bf16.mxu0 %v6799_v14  ;;  %599 = vmatprep.subr.bf16.mxu1 %v6801_v15  ;;  %v6810_v20 = vld [vmem:[%s10534_s20 + $0x204] ss:$16 sps:$4 sm:$0xff]   ;;  %v6808_v23 = vld [vmem:[%s10534_s20 + $0x200] ss:$16 sps:$4 sm:$0xff]   ;;  %v63_v57 = vld [vmem:[%s10535_s3 + $0x8] sm:$0xff] }
  0x11   :  { %v6813_v24 = vld [vmem:[%s10534_s20 + $0x24] ss:$16 sps:$4 sm:$0xff]   ;;  %v6811_v26 = vld [vmem:[%s10534_s20 + $0x20] ss:$16 sps:$4 sm:$0xff]  }
  0x12   :  { %v6816_v25 = vld [vmem:[%s10534_s20 + $0x224] ss:$16 sps:$4 sm:$0xff]   ;;  %v6814_v27 = vld [vmem:[%s10534_s20 + $0x220] ss:$16 sps:$4 sm:$0xff]  }
  0x13   :  { %559 = vmatpush1.bf16.msra.mxu0 %v6803_v16  ;;  %600 = vmatpush1.bf16.msra.mxu1 %v6804_v17  ;;  %v6819_v28 = vld [vmem:[%s10534_s20 + $0x44] ss:$16 sps:$4 sm:$0xff]   ;;  %v6817_v30 = vld [vmem:[%s10534_s20 + $0x40] ss:$16 sps:$4 sm:$0xff]  }
  0x14   :  { %2234 = vmatprep.subr.bf16.mxu0 %v6807_v19  ;;  %2275 = vmatprep.subr.bf16.mxu1 %v6810_v20  ;;  %v6822_v29 = vld [vmem:[%s10534_s20 + $0x244] ss:$16 sps:$4 sm:$0xff]   ;;  %v6820_v31 = vld [vmem:[%s10534_s20 + $0x240] ss:$16 sps:$4 sm:$0xff]  }
  0x15   :  { %v6825_v32 = vld [vmem:[%s10534_s20 + $0x64] ss:$16 sps:$4 sm:$0xff]   ;;  %v6823_v34 = vld [vmem:[%s10534_s20 + $0x60] ss:$16 sps:$4 sm:$0xff]  }
  0x16   :  { %5970 = vmatmul.mubr.msk.bf16.vlgmr.msra.gmra.mrb[0].mxu0 %vm548_vm0, %v131_v21  ;;  %5971 = vmatmul.mubr.msk.bf16.vlgmr.msra.gmra.mrb[0].mxu1 %vm548_vm0, %v131_v21  ;;  %v6828_v33 = vld [vmem:[%s10534_s20 + $0x264] ss:$16 sps:$4 sm:$0xff]   ;;  %v6826_v35 = vld [vmem:[%s10534_s20 + $0x260] ss:$16 sps:$4 sm:$0xff]  }
  0x17   :  { %2235 = vmatpush1.bf16.msra.mxu0 %v6805_v22  ;;  %2276 = vmatpush1.bf16.msra.mxu1 %v6808_v23  ;;  %v6831_v36 = vld [vmem:[%s10534_s20 + $0x84] ss:$16 sps:$4 sm:$0xff]   ;;  %v6829_v38 = vld [vmem:[%s10534_s20 + $0x80] ss:$16 sps:$4 sm:$0xff]  }
  0x18   :  { %2236 = vmatprep.subr.bf16.mxu0 %v6813_v24  ;;  %2277 = vmatprep.subr.bf16.mxu1 %v6816_v25  ;;  %v6834_v37 = vld [vmem:[%s10534_s20 + $0x284] ss:$16 sps:$4 sm:$0xff]   ;;  %v6832_v39 = vld [vmem:[%s10534_s20 + $0x280] ss:$16 sps:$4 sm:$0xff]  }
  0x19   :  { %v6837_v40 = vld [vmem:[%s10534_s20 + $0xa4] ss:$16 sps:$4 sm:$0xff]   ;;  %v6835_v42 = vld [vmem:[%s10534_s20 + $0xa0] ss:$16 sps:$4 sm:$0xff]  }
  0x1a   :  { %v6840_v41 = vld [vmem:[%s10534_s20 + $0x2a4] ss:$16 sps:$4 sm:$0xff]   ;;  %v6838_v43 = vld [vmem:[%s10534_s20 + $0x2a0] ss:$16 sps:$4 sm:$0xff]  }
  0x1b   :  { %2237 = vmatpush1.bf16.msra.mxu0 %v6811_v26  ;;  %2278 = vmatpush1.bf16.msra.mxu1 %v6814_v27  ;;  %v6843_v44 = vld [vmem:[%s10534_s20 + $0xc4] ss:$16 sps:$4 sm:$0xff]   ;;  %v6841_v46 = vld [vmem:[%s10534_s20 + $0xc0] ss:$16 sps:$4 sm:$0xff]  }
  0x1c   :  { %2238 = vmatprep.subr.bf16.mxu0 %v6819_v28  ;;  %2279 = vmatprep.subr.bf16.mxu1 %v6822_v29  ;;  %v6846_v45 = vld [vmem:[%s10534_s20 + $0x2c4] ss:$16 sps:$4 sm:$0xff]   ;;  %v6844_v47 = vld [vmem:[%s10534_s20 + $0x2c0] ss:$16 sps:$4 sm:$0xff]  }
  0x1d   :  { %v6849_v48 = vld [vmem:[%s10534_s20 + $0xe4] ss:$16 sps:$4 sm:$0xff]   ;;  %v6847_v53 = vld [vmem:[%s10534_s20 + $0xe0] ss:$16 sps:$4 sm:$0xff]  }
  0x1e   :  { %v6852_v49 = vld [vmem:[%s10534_s20 + $0x2e4] ss:$16 sps:$4 sm:$0xff]   ;;  %v6850_v54 = vld [vmem:[%s10534_s20 + $0x2e0] ss:$16 sps:$4 sm:$0xff]  }
  0x1f   :  { %2239 = vmatpush1.bf16.msra.mxu0 %v6817_v30  ;;  %2280 = vmatpush1.bf16.msra.mxu1 %v6820_v31  ;;  %v6855_v55 = vld [vmem:[%s10534_s20 + $0x104] ss:$16 sps:$4 sm:$0xff]   ;;  %v6853_v59 = vld [vmem:[%s10534_s20 + $0x100] ss:$16 sps:$4 sm:$0xff]  }
  0x20   :  { %2240 = vmatprep.subr.bf16.mxu0 %v6825_v32  ;;  %2281 = vmatprep.subr.bf16.mxu1 %v6828_v33  ;;  %v6858_v56 = vld [vmem:[%s10534_s20 + $0x304] ss:$16 sps:$4 sm:$0xff]   ;;  %v6856_v60 = vld [vmem:[%s10534_s20 + $0x300] ss:$16 sps:$4 sm:$0xff]  }
  0x21   :  { %v6861_v61 = vld [vmem:[%s10534_s20 + $0x124] ss:$16 sps:$4 sm:$0xff]   ;;  %v6859_v0 = vld [vmem:[%s10534_s20 + $0x120] ss:$16 sps:$4 sm:$0xff]  }
  0x22   :  { %v6864_v62 = vld [vmem:[%s10534_s20 + $0x324] ss:$16 sps:$4 sm:$0xff]   ;;  %v6862_v1 = vld [vmem:[%s10534_s20 + $0x320] ss:$16 sps:$4 sm:$0xff]  }
  0x23   :  { %2241 = vmatpush1.bf16.msra.mxu0 %v6823_v34  ;;  %2282 = vmatpush1.bf16.msra.mxu1 %v6826_v35  ;;  %v6867_v2 = vld [vmem:[%s10534_s20 + $0x144] ss:$16 sps:$4 sm:$0xff]   ;;  %v6865_v7 = vld [vmem:[%s10534_s20 + $0x140] ss:$16 sps:$4 sm:$0xff]  }
  0x24   :  { %2242 = vmatprep.subr.bf16.mxu0 %v6831_v36  ;;  %2283 = vmatprep.subr.bf16.mxu1 %v6834_v37  ;;  %v6870_v3 = vld [vmem:[%s10534_s20 + $0x344] ss:$16 sps:$4 sm:$0xff]   ;;  %v6868_v8 = vld [vmem:[%s10534_s20 + $0x340] ss:$16 sps:$4 sm:$0xff]  }
  0x25   :  { %v62_v4 = vld [vmem:[%s10535_s3] sm:$0xff] }
  0x26   :  { %v75_v5 = vrot.slane %v62_v4, %v8192_v63  ;;  %v68_v6 = vcombine.high %v62_v4, %v62_v4  ;;  %v6873_v11 = vld [vmem:[%s10534_s20 + $0x164] ss:$16 sps:$4 sm:$0xff]   ;;  %v6871_v15 = vld [vmem:[%s10534_s20 + $0x160] ss:$16 sps:$4 sm:$0xff]  }
  0x27   :  { %2243 = vmatpush1.bf16.msra.mxu0 %v6829_v38  ;;  %2284 = vmatpush1.bf16.msra.mxu1 %v6832_v39  ;;  %v6876_v12 = vld [vmem:[%s10534_s20 + $0x364] ss:$16 sps:$4 sm:$0xff]   ;;  %v6874_v16 = vld [vmem:[%s10534_s20 + $0x360] ss:$16 sps:$4 sm:$0xff]  }
  0x28   :  { %2244 = vmatprep.subr.bf16.mxu0 %v6837_v40  ;;  %2285 = vmatprep.subr.bf16.mxu1 %v6840_v41  ;;  %v83_v9 = vcombine.high %v75_v5, %v75_v5  ;;  %v82_v10 = vrot.slane %v68_v6, %v8192_v63  ;;  %v6879_v18 = vld [vmem:[%s10534_s20 + $0x184] ss:$16 sps:$4 sm:$0xff]   ;;  %v6877_v20 = vld [vmem:[%s10534_s20 + $0x180] ss:$16 sps:$4 sm:$0xff]   ;;  %v8289_v36 = vpack.c.bf16 %v75_v5, %v75_v5 }
  0x29   :  { %v6882_v19 = vld [vmem:[%s10534_s20 + $0x384] ss:$16 sps:$4 sm:$0xff]   ;;  %v6880_v21 = vld [vmem:[%s10534_s20 + $0x380] ss:$16 sps:$4 sm:$0xff]  }
  0x2a   :  { %v8223_v13 = vpack.c.bf16 %v83_v9, %v83_v9  ;;  %v84_v14 = vcombine.high %v82_v10, %v82_v10  ;;  %v6885_v22 = vld [vmem:[%s10534_s20 + $0x1a4] ss:$16 sps:$4 sm:$0xff]   ;;  %v6883_v24 = vld [vmem:[%s10534_s20 + $0x1a0] ss:$16 sps:$4 sm:$0xff]   ;;  %v8291_v37 = vpack.c.bf16 %v82_v10, %v82_v10 }
  0x2b   :  { %2245 = vmatpush1.bf16.msra.mxu0 %v6835_v42  ;;  %2286 = vmatpush1.bf16.msra.mxu1 %v6838_v43  ;;  %v6888_v23 = vld [vmem:[%s10534_s20 + $0x3a4] ss:$16 sps:$4 sm:$0xff]   ;;  %v6886_v25 = vld [vmem:[%s10534_s20 + $0x3a0] ss:$16 sps:$4 sm:$0xff]  }
  0x2c   :  { %2246 = vmatprep.subr.bf16.mxu0 %v6843_v44  ;;  %2287 = vmatprep.subr.bf16.mxu1 %v6846_v45  ;;  %v8231_v17 = vpack.c.bf16 %v84_v14, %v84_v14  ;;  %v6891_v26 = vld [vmem:[%s10534_s20 + $0x1c4] ss:$16 sps:$4 sm:$0xff]   ;;  %v6889_v28 = vld [vmem:[%s10534_s20 + $0x1c0] ss:$16 sps:$4 sm:$0xff]  }
  0x2d   :  { %2266 = vmatprep.mubr.bf16.mxu0 %v8223_v13  ;;  %v6894_v27 = vld [vmem:[%s10534_s20 + $0x3c4] ss:$16 sps:$4 sm:$0xff]   ;;  %v6892_v29 = vld [vmem:[%s10534_s20 + $0x3c0] ss:$16 sps:$4 sm:$0xff]  }
  0x2e   :  { %2307 = vmatprep.mubr.bf16.mxu1 %v8231_v17  ;;  %v6897_v30 = vld [vmem:[%s10534_s20 + $0x1e4] ss:$16 sps:$4 sm:$0xff]   ;;  %v6895_v32 = vld [vmem:[%s10534_s20 + $0x1e0] ss:$16 sps:$4 sm:$0xff]  }
  0x2f   :  { %2247 = vmatpush1.bf16.msra.mxu0 %v6841_v46  ;;  %2288 = vmatpush1.bf16.msra.mxu1 %v6844_v47  ;;  %v6900_v31 = vld [vmem:[%s10534_s20 + $0x3e4] ss:$16 sps:$4 sm:$0xff]   ;;  %v6898_v33 = vld [vmem:[%s10534_s20 + $0x3e0] ss:$16 sps:$4 sm:$0xff]  }
  0x30   :  { %2248 = vmatprep.subr.bf16.mxu0 %v6849_v48  ;;  %2289 = vmatprep.subr.bf16.mxu1 %v6852_v49  ;;  %v6904_v34 = vld [vmem:[%s10534_s20 + $0x404] ss:$16 sps:$4 sm:$0xff]   ;;  %v6902_v38 = vld [vmem:[%s10534_s20 + $0x400] ss:$16 sps:$4 sm:$0xff]  }
  0x31   :  { %v6907_v35 = vld [vmem:[%s10534_s20 + $0x604] ss:$16 sps:$4 sm:$0xff]   ;;  %v6905_v39 = vld [vmem:[%s10534_s20 + $0x600] ss:$16 sps:$4 sm:$0xff]  }
  0x32   :  { %v6910_v40 = vld [vmem:[%s10534_s20 + $0x424] ss:$16 sps:$4 sm:$0xff]   ;;  %v6908_v42 = vld [vmem:[%s10534_s20 + $0x420] ss:$16 sps:$4 sm:$0xff]  }
  0x33   :  { %2249 = vmatpush1.bf16.msra.mxu0 %v6847_v53  ;;  %2290 = vmatpush1.bf16.msra.mxu1 %v6850_v54  ;;  %v6913_v41 = vld [vmem:[%s10534_s20 + $0x624] ss:$16 sps:$4 sm:$0xff]   ;;  %v6911_v43 = vld [vmem:[%s10534_s20 + $0x620] ss:$16 sps:$4 sm:$0xff]  }
  0x34   :  { %2250 = vmatprep.subr.bf16.mxu0 %v6855_v55  ;;  %2291 = vmatprep.subr.bf16.mxu1 %v6858_v56  ;;  %v6916_v44 = vld [vmem:[%s10534_s20 + $0x444] ss:$16 sps:$4 sm:$0xff]   ;;  %v6914_v46 = vld [vmem:[%s10534_s20 + $0x440] ss:$16 sps:$4 sm:$0xff]  }
  0x35   :  { %v6919_v45 = vld [vmem:[%s10534_s20 + $0x644] ss:$16 sps:$4 sm:$0xff]   ;;  %v6917_v47 = vld [vmem:[%s10534_s20 + $0x640] ss:$16 sps:$4 sm:$0xff]  }
  0x36   :  { %v6922_v48 = vld [vmem:[%s10534_s20 + $0x464] ss:$16 sps:$4 sm:$0xff]   ;;  %v6920_v50 = vld [vmem:[%s10534_s20 + $0x460] ss:$16 sps:$4 sm:$0xff]  }
  0x37   :  { %2251 = vmatpush1.bf16.msra.mxu0 %v6853_v59  ;;  %2292 = vmatpush1.bf16.msra.mxu1 %v6856_v60  ;;  %v6925_v49 = vld [vmem:[%s10534_s20 + $0x664] ss:$16 sps:$4 sm:$0xff]   ;;  %v6923_v51 = vld [vmem:[%s10534_s20 + $0x660] ss:$16 sps:$4 sm:$0xff]   ;;  %v8359_v60 = vrot.slane %v63_v57, %v8192_v63 }
  0x38   :  { %2252 = vmatprep.subr.bf16.mxu0 %v6861_v61  ;;  %2293 = vmatprep.subr.bf16.mxu1 %v6864_v62  ;;  %v6928_v52 = vld [vmem:[%s10534_s20 + $0x484] ss:$16 sps:$4 sm:$0xff]   ;;  %v6926_v54 = vld [vmem:[%s10534_s20 + $0x480] ss:$16 sps:$4 sm:$0xff]   ;;  %v85_v61 = vcombine.high %v63_v57, %v63_v57 }
  0x39   :  { %v6931_v53 = vld [vmem:[%s10534_s20 + $0x684] ss:$16 sps:$4 sm:$0xff]   ;;  %v6929_v55 = vld [vmem:[%s10534_s20 + $0x680] ss:$16 sps:$4 sm:$0xff]  }
  0x3a   :  { %v6934_v56 = vld [vmem:[%s10534_s20 + $0x4a4] ss:$16 sps:$4 sm:$0xff]   ;;  %v6932_v62 = vld [vmem:[%s10534_s20 + $0x4a0] ss:$16 sps:$4 sm:$0xff]  }
  0x3b   :  { %2253 = vmatpush1.bf16.msra.mxu0 %v6859_v0  ;;  %2294 = vmatpush1.bf16.msra.mxu1 %v6862_v1  ;;  %v6937_v59 = vld [vmem:[%s10534_s20 + $0x6a4] ss:$16 sps:$4 sm:$0xff]   ;;  %v100_v0 = vcombine.high %v8359_v60, %v8359_v60  ;;  %v8367_v1 = vrot.slane %v85_v61, %v8192_v63  ;;  %v6938_v6 = vld [vmem:[%s10534_s20 + $0x4c0] ss:$16 sps:$4 sm:$0xff]  }
  0x3c   :  { %2254 = vmatprep.subr.bf16.mxu0 %v6867_v2  ;;  %2295 = vmatprep.subr.bf16.mxu1 %v6870_v3  ;;  %v6935_v2 = vld [vmem:[%s10534_s20 + $0x6a0] ss:$16 sps:$4 sm:$0xff]   ;;  %v6940_v3 = vld [vmem:[%s10534_s20 + $0x4c4] ss:$16 sps:$4 sm:$0xff]  }
  0x3d   :  { %v6943_v4 = vld [vmem:[%s10534_s20 + $0x6c4] ss:$16 sps:$4 sm:$0xff]   ;;  %v8378_v5 = vpack.c.bf16 %v100_v0, %v100_v0  ;;  %v101_v63 = vcombine.high %v8367_v1, %v8367_v1  ;;  %v7005_v61 = vld [vmem:[%s10534_s20 + $0x820] ss:$16 sps:$4 sm:$0xff]  }
  0x3e   :  { %v6946_v9 = vld [vmem:[%s10534_s20 + $0x4e4] ss:$16 sps:$4 sm:$0xff]  }
  0x3f   :  { %2255 = vmatpush1.bf16.msra.mxu0 %v6865_v7  ;;  %2296 = vmatpush1.bf16.msra.mxu1 %v6868_v8  ;;  %v8386_v7 = vpack.c.bf16 %v101_v63, %v101_v63  ;;  %v6941_v8 = vld [vmem:[%s10534_s20 + $0x6c0] ss:$16 sps:$4 sm:$0xff]   ;;  %v6949_v10 = vld [vmem:[%s10534_s20 + $0x6e4] ss:$16 sps:$4 sm:$0xff]  }
  0x40   :  { %2256 = vmatprep.subr.bf16.mxu0 %v6873_v11  ;;  %2297 = vmatprep.subr.bf16.mxu1 %v6876_v12  ;;  %v6944_v11 = vld [vmem:[%s10534_s20 + $0x4e0] ss:$16 sps:$4 sm:$0xff]   ;;  %v6952_v14 = vld [vmem:[%s10534_s20 + $0x504] ss:$16 sps:$4 sm:$0xff]  }
  0x41   :  { %v6947_v12 = vld [vmem:[%s10534_s20 + $0x6e0] ss:$16 sps:$4 sm:$0xff]   ;;  %v7007_v57 = vld [vmem:[%s10534_s20 + $0x824] ss:$16 sps:$4 sm:$0xff]  }
  0x42   :  { %v7013_v0 = vld [vmem:[%s10534_s20 + $0x844] ss:$16 sps:$4 sm:$0xff]   ;;  %v7017_v63 = vld [vmem:[%s10534_s20 + $0x860] ss:$16 sps:$4 sm:$0xff]  }
  0x43   :  { %2257 = vmatpush1.bf16.msra.mxu0 %v6871_v15  ;;  %2298 = vmatpush1.bf16.msra.mxu1 %v6874_v16  ;;  %v6955_v15 = vld [vmem:[%s10534_s20 + $0x704] ss:$16 sps:$4 sm:$0xff]   ;;  %v6950_v16 = vld [vmem:[%s10534_s20 + $0x500] ss:$16 sps:$4 sm:$0xff]  }
  0x44   :  { %2258 = vmatprep.subr.bf16.mxu0 %v6879_v18  ;;  %2299 = vmatprep.subr.bf16.mxu1 %v6882_v19  ;;  %v6953_v18 = vld [vmem:[%s10534_s20 + $0x700] ss:$16 sps:$4 sm:$0xff]   ;;  %v6958_v19 = vld [vmem:[%s10534_s20 + $0x524] ss:$16 sps:$4 sm:$0xff]  }
  0x47   :  { %2259 = vmatpush1.bf16.msra.mxu0 %v6877_v20  ;;  %2300 = vmatpush1.bf16.msra.mxu1 %v6880_v21  ;;  %v6961_v20 = vld [vmem:[%s10534_s20 + $0x724] ss:$16 sps:$4 sm:$0xff]   ;;  %v6956_v21 = vld [vmem:[%s10534_s20 + $0x520] ss:$16 sps:$4 sm:$0xff]  }
  0x48   :  { %2260 = vmatprep.subr.bf16.mxu0 %v6885_v22  ;;  %2301 = vmatprep.subr.bf16.mxu1 %v6888_v23  ;;  %v6959_v22 = vld [vmem:[%s10534_s20 + $0x720] ss:$16 sps:$4 sm:$0xff]   ;;  %v6964_v23 = vld [vmem:[%s10534_s20 + $0x544] ss:$16 sps:$4 sm:$0xff]  }
  0x4b   :  { %2261 = vmatpush1.bf16.msra.mxu0 %v6883_v24  ;;  %2302 = vmatpush1.bf16.msra.mxu1 %v6886_v25  ;;  %v6967_v24 = vld [vmem:[%s10534_s20 + $0x744] ss:$16 sps:$4 sm:$0xff]   ;;  %v6962_v25 = vld [vmem:[%s10534_s20 + $0x540] ss:$16 sps:$4 sm:$0xff]  }
  0x4c   :  { %2262 = vmatprep.subr.bf16.mxu0 %v6891_v26  ;;  %2303 = vmatprep.subr.bf16.mxu1 %v6894_v27  ;;  %v6965_v26 = vld [vmem:[%s10534_s20 + $0x740] ss:$16 sps:$4 sm:$0xff]   ;;  %v6970_v27 = vld [vmem:[%s10534_s20 + $0x564] ss:$16 sps:$4 sm:$0xff]  }
  0x4f   :  { %2263 = vmatpush1.bf16.msra.mxu0 %v6889_v28  ;;  %2304 = vmatpush1.bf16.msra.mxu1 %v6892_v29  ;;  %v6973_v28 = vld [vmem:[%s10534_s20 + $0x764] ss:$16 sps:$4 sm:$0xff]   ;;  %v6968_v29 = vld [vmem:[%s10534_s20 + $0x560] ss:$16 sps:$4 sm:$0xff]  }
  0x50   :  { %2264 = vmatprep.subr.bf16.mxu0 %v6897_v30  ;;  %2305 = vmatprep.subr.bf16.mxu1 %v6900_v31  ;;  %v6971_v30 = vld [vmem:[%s10534_s20 + $0x760] ss:$16 sps:$4 sm:$0xff]   ;;  %v6976_v31 = vld [vmem:[%s10534_s20 + $0x584] ss:$16 sps:$4 sm:$0xff]  }
  0x53   :  { %2265 = vmatpush1.bf16.msra.mxu0 %v6895_v32  ;;  %2306 = vmatpush1.bf16.msra.mxu1 %v6898_v33  ;;  %v6979_v32 = vld [vmem:[%s10534_s20 + $0x784] ss:$16 sps:$4 sm:$0xff]   ;;  %v6974_v33 = vld [vmem:[%s10534_s20 + $0x580] ss:$16 sps:$4 sm:$0xff]  }
  0x54   :  { %2316 = vmatprep.subr.bf16.mxu0 %v6904_v34  ;;  %2357 = vmatprep.subr.bf16.mxu1 %v6907_v35  ;;  %v6977_v34 = vld [vmem:[%s10534_s20 + $0x780] ss:$16 sps:$4 sm:$0xff]   ;;  %v6982_v35 = vld [vmem:[%s10534_s20 + $0x5a4] ss:$16 sps:$4 sm:$0xff]  }
  0x56   :  { %2267 = vmatmul.mubr.bf16.vlgmr.msra.gmra.mrb[4].mxu0 %v8289_v36  ;;  %2308 = vmatmul.mubr.bf16.vlgmr.msra.gmra.mrb[4].mxu1 %v8291_v37 }
  0x57   :  { %2317 = vmatpush1.bf16.msra.mxu0 %v6902_v38  ;;  %2358 = vmatpush1.bf16.msra.mxu1 %v6905_v39  ;;  %v6985_v38 = vld [vmem:[%s10534_s20 + $0x7a4] ss:$16 sps:$4 sm:$0xff]   ;;  %v6980_v39 = vld [vmem:[%s10534_s20 + $0x5a0] ss:$16 sps:$4 sm:$0xff]  }
  0x58   :  { %2318 = vmatprep.subr.bf16.mxu0 %v6910_v40  ;;  %2359 = vmatprep.subr.bf16.mxu1 %v6913_v41  ;;  %v6983_v40 = vld [vmem:[%s10534_s20 + $0x7a0] ss:$16 sps:$4 sm:$0xff]   ;;  %v6988_v41 = vld [vmem:[%s10534_s20 + $0x5c4] ss:$16 sps:$4 sm:$0xff]  }
  0x59   :  { %2348 = vmatprep.mubr.bf16.mxu0 %v8378_v5  ;;  %2389 = vmatprep.mubr.bf16.mxu1 %v8386_v7 }
  0x5b   :  { %2319 = vmatpush1.bf16.msra.mxu0 %v6908_v42  ;;  %2360 = vmatpush1.bf16.msra.mxu1 %v6911_v43  ;;  %v6991_v42 = vld [vmem:[%s10534_s20 + $0x7c4] ss:$16 sps:$4 sm:$0xff]   ;;  %v6986_v43 = vld [vmem:[%s10534_s20 + $0x5c0] ss:$16 sps:$4 sm:$0xff]  }
  0x5c   :  { %2320 = vmatprep.subr.bf16.mxu0 %v6916_v44  ;;  %2361 = vmatprep.subr.bf16.mxu1 %v6919_v45  ;;  %v6989_v44 = vld [vmem:[%s10534_s20 + $0x7c0] ss:$16 sps:$4 sm:$0xff]   ;;  %v6994_v45 = vld [vmem:[%s10534_s20 + $0x5e4] ss:$16 sps:$4 sm:$0xff]  }
  0x5f   :  { %2321 = vmatpush1.bf16.msra.mxu0 %v6914_v46  ;;  %2362 = vmatpush1.bf16.msra.mxu1 %v6917_v47  ;;  %v6997_v46 = vld [vmem:[%s10534_s20 + $0x7e4] ss:$16 sps:$4 sm:$0xff]   ;;  %v6992_v47 = vld [vmem:[%s10534_s20 + $0x5e0] ss:$16 sps:$4 sm:$0xff]  }
  0x60   :  { %2322 = vmatprep.subr.bf16.mxu0 %v6922_v48  ;;  %2363 = vmatprep.subr.bf16.mxu1 %v6925_v49  ;;  %v6995_v48 = vld [vmem:[%s10534_s20 + $0x7e0] ss:$16 sps:$4 sm:$0xff]  }
  0x61   :  { %v8503_v49 = vld.sshfl [vmem:[%s10535_s3 + $0x10] sm:$0x33 pattern:$0x76325410] }
  0x63   :  { %2323 = vmatpush1.bf16.msra.mxu0 %v6920_v50  ;;  %2364 = vmatpush1.bf16.msra.mxu1 %v6923_v51  ;;  %v7001_v50 = vld [vmem:[%s10534_s20 + $0x804] ss:$16 sps:$4 sm:$0xff]   ;;  %v7004_v51 = vld [vmem:[%s10534_s20 + $0xc] ss:$16 sps:$4 sm:$0xff]  }
  0x64   :  { %2324 = vmatprep.subr.bf16.mxu0 %v6928_v52  ;;  %2365 = vmatprep.subr.bf16.mxu1 %v6931_v53  ;;  %v109_v52 = vcombine.high %v8503_v49, %v8503_v49  ;;  %v8515_v53 = vpack.c.bf16 %v8359_v60, %v8359_v60 }
  0x66   :  { %v8533_v60 = vpack.c.bf16 %v109_v52, %v109_v52  ;;  %v7080_v52 = vld [vmem:[%s10534_s20 + $0x1a8] ss:$16 sps:$4 sm:$0xff]  }
  0x67   :  { %2325 = vmatpush1.bf16.msra.mxu0 %v6926_v54  ;;  %2366 = vmatpush1.bf16.msra.mxu1 %v6929_v55  ;;  %v8519_v54 = vpack.c.bf16 %v8367_v1, %v8367_v1  ;;  %v6999_v55 = vld [vmem:[%s10534_s20 + $0x800] ss:$16 sps:$4 sm:$0xff]   ;;  %v7016_v1 = vld [vmem:[%s10534_s20 + $0x4c] ss:$16 sps:$4 sm:$0xff]  }
  0x68   :  { %2326 = vmatprep.subr.bf16.mxu0 %v6934_v56  ;;  %2367 = vmatprep.subr.bf16.mxu1 %v6937_v59  ;;  %v7002_v56 = vld [vmem:[%s10534_s20 + $0x8] ss:$16 sps:$4 sm:$0xff]   ;;  %v7010_v59 = vld [vmem:[%s10534_s20 + $0x2c] ss:$16 sps:$4 sm:$0xff]  }
  0x6b   :  { %2327 = vmatpush1.bf16.msra.mxu0 %v6932_v62  ;;  %2368 = vmatpush1.bf16.msra.mxu1 %v6935_v2  ;;  %v7008_v62 = vld [vmem:[%s10534_s20 + $0x28] ss:$16 sps:$4 sm:$0xff]   ;;  %v7011_v2 = vld [vmem:[%s10534_s20 + $0x840] ss:$16 sps:$4 sm:$0xff]  }
  0x6c   :  { %2328 = vmatprep.subr.bf16.mxu0 %v6940_v3  ;;  %2369 = vmatprep.subr.bf16.mxu1 %v6943_v4  ;;  %v7014_v3 = vld [vmem:[%s10534_s20 + $0x48] ss:$16 sps:$4 sm:$0xff]   ;;  %v7019_v4 = vld [vmem:[%s10534_s20 + $0x864] ss:$16 sps:$4 sm:$0xff]  }
  0x6f   :  { %2329 = vmatpush1.bf16.msra.mxu0 %v6938_v6  ;;  %2370 = vmatpush1.bf16.msra.mxu1 %v6941_v8  ;;  %v7020_v6 = vld [vmem:[%s10534_s20 + $0x68] ss:$16 sps:$4 sm:$0xff]   ;;  %v7025_v8 = vld [vmem:[%s10534_s20 + $0x884] ss:$16 sps:$4 sm:$0xff]  }
  0x70   :  { %2330 = vmatprep.subr.bf16.mxu0 %v6946_v9  ;;  %2371 = vmatprep.subr.bf16.mxu1 %v6949_v10  ;;  %v7028_v9 = vld [vmem:[%s10534_s20 + $0x8c] ss:$16 sps:$4 sm:$0xff]   ;;  %v7023_v10 = vld [vmem:[%s10534_s20 + $0x880] ss:$16 sps:$4 sm:$0xff]  }
  0x73   :  { %2331 = vmatpush1.bf16.msra.mxu0 %v6944_v11  ;;  %2372 = vmatpush1.bf16.msra.mxu1 %v6947_v12  ;;  %v7026_v11 = vld [vmem:[%s10534_s20 + $0x88] ss:$16 sps:$4 sm:$0xff]   ;;  %v7031_v12 = vld [vmem:[%s10534_s20 + $0x8a4] ss:$16 sps:$4 sm:$0xff]  }
  0x74   :  { %2332 = vmatprep.subr.bf16.mxu0 %v6952_v14  ;;  %2373 = vmatprep.subr.bf16.mxu1 %v6955_v15  ;;  %v7034_v14 = vld [vmem:[%s10534_s20 + $0xac] ss:$16 sps:$4 sm:$0xff]   ;;  %v7029_v15 = vld [vmem:[%s10534_s20 + $0x8a0] ss:$16 sps:$4 sm:$0xff]  }
  0x77   :  { %2333 = vmatpush1.bf16.msra.mxu0 %v6950_v16  ;;  %2374 = vmatpush1.bf16.msra.mxu1 %v6953_v18  ;;  %v7032_v16 = vld [vmem:[%s10534_s20 + $0xa8] ss:$16 sps:$4 sm:$0xff]   ;;  %v7037_v18 = vld [vmem:[%s10534_s20 + $0x8c4] ss:$16 sps:$4 sm:$0xff]  }
  0x78   :  { %2334 = vmatprep.subr.bf16.mxu0 %v6958_v19  ;;  %2375 = vmatprep.subr.bf16.mxu1 %v6961_v20  ;;  %v7040_v19 = vld [vmem:[%s10534_s20 + $0xcc] ss:$16 sps:$4 sm:$0xff]   ;;  %v7035_v20 = vld [vmem:[%s10534_s20 + $0x8c0] ss:$16 sps:$4 sm:$0xff]  }
  0x7b   :  { %2335 = vmatpush1.bf16.msra.mxu0 %v6956_v21  ;;  %2376 = vmatpush1.bf16.msra.mxu1 %v6959_v22  ;;  %v7038_v21 = vld [vmem:[%s10534_s20 + $0xc8] ss:$16 sps:$4 sm:$0xff]   ;;  %v7043_v22 = vld [vmem:[%s10534_s20 + $0x8e4] ss:$16 sps:$4 sm:$0xff]  }
  0x7c   :  { %2336 = vmatprep.subr.bf16.mxu0 %v6964_v23  ;;  %2377 = vmatprep.subr.bf16.mxu1 %v6967_v24  ;;  %v7046_v23 = vld [vmem:[%s10534_s20 + $0xec] ss:$16 sps:$4 sm:$0xff]   ;;  %v7041_v24 = vld [vmem:[%s10534_s20 + $0x8e0] ss:$16 sps:$4 sm:$0xff]  }
  0x7f   :  { %2337 = vmatpush1.bf16.msra.mxu0 %v6962_v25  ;;  %2378 = vmatpush1.bf16.msra.mxu1 %v6965_v26  ;;  %v7044_v25 = vld [vmem:[%s10534_s20 + $0xe8] ss:$16 sps:$4 sm:$0xff]   ;;  %v7049_v26 = vld [vmem:[%s10534_s20 + $0x904] ss:$16 sps:$4 sm:$0xff]  }
  0x80   :  { %2338 = vmatprep.subr.bf16.mxu0 %v6970_v27  ;;  %2379 = vmatprep.subr.bf16.mxu1 %v6973_v28  ;;  %v7052_v27 = vld [vmem:[%s10534_s20 + $0x10c] ss:$16 sps:$4 sm:$0xff]   ;;  %v7047_v28 = vld [vmem:[%s10534_s20 + $0x900] ss:$16 sps:$4 sm:$0xff]  }
  0x83   :  { %2339 = vmatpush1.bf16.msra.mxu0 %v6968_v29  ;;  %2380 = vmatpush1.bf16.msra.mxu1 %v6971_v30  ;;  %v7050_v29 = vld [vmem:[%s10534_s20 + $0x108] ss:$16 sps:$4 sm:$0xff]   ;;  %v7055_v30 = vld [vmem:[%s10534_s20 + $0x924] ss:$16 sps:$4 sm:$0xff]  }
  0x84   :  { %2340 = vmatprep.subr.bf16.mxu0 %v6976_v31  ;;  %2381 = vmatprep.subr.bf16.mxu1 %v6979_v32  ;;  %v7058_v31 = vld [vmem:[%s10534_s20 + $0x12c] ss:$16 sps:$4 sm:$0xff]   ;;  %v7053_v32 = vld [vmem:[%s10534_s20 + $0x920] ss:$16 sps:$4 sm:$0xff]  }
  0x87   :  { %2341 = vmatpush1.bf16.msra.mxu0 %v6974_v33  ;;  %2382 = vmatpush1.bf16.msra.mxu1 %v6977_v34  ;;  %v7056_v33 = vld [vmem:[%s10534_s20 + $0x128] ss:$16 sps:$4 sm:$0xff]   ;;  %v7061_v34 = vld [vmem:[%s10534_s20 + $0x944] ss:$16 sps:$4 sm:$0xff]  }
  0x88   :  { %2342 = vmatprep.subr.bf16.mxu0 %v6982_v35  ;;  %2383 = vmatprep.subr.bf16.mxu1 %v6985_v38  ;;  %v7064_v35 = vld [vmem:[%s10534_s20 + $0x14c] ss:$16 sps:$4 sm:$0xff]   ;;  %v7059_v38 = vld [vmem:[%s10534_s20 + $0x940] ss:$16 sps:$4 sm:$0xff]  }
  0x8b   :  { %2343 = vmatpush1.bf16.msra.mxu0 %v6980_v39  ;;  %2384 = vmatpush1.bf16.msra.mxu1 %v6983_v40  ;;  %v7062_v39 = vld [vmem:[%s10534_s20 + $0x148] ss:$16 sps:$4 sm:$0xff]   ;;  %v7067_v40 = vld [vmem:[%s10534_s20 + $0x964] ss:$16 sps:$4 sm:$0xff]  }
  0x8c   :  { %2344 = vmatprep.subr.bf16.mxu0 %v6988_v41  ;;  %2385 = vmatprep.subr.bf16.mxu1 %v6991_v42  ;;  %v7070_v41 = vld [vmem:[%s10534_s20 + $0x16c] ss:$16 sps:$4 sm:$0xff]   ;;  %v7065_v42 = vld [vmem:[%s10534_s20 + $0x960] ss:$16 sps:$4 sm:$0xff]  }
  0x8f   :  { %2345 = vmatpush1.bf16.msra.mxu0 %v6986_v43  ;;  %2386 = vmatpush1.bf16.msra.mxu1 %v6989_v44  ;;  %v7068_v43 = vld [vmem:[%s10534_s20 + $0x168] ss:$16 sps:$4 sm:$0xff]   ;;  %v7073_v44 = vld [vmem:[%s10534_s20 + $0x984] ss:$16 sps:$4 sm:$0xff]  }
  0x90   :  { %2346 = vmatprep.subr.bf16.mxu0 %v6994_v45  ;;  %2387 = vmatprep.subr.bf16.mxu1 %v6997_v46  ;;  %v7076_v45 = vld [vmem:[%s10534_s20 + $0x18c] ss:$16 sps:$4 sm:$0xff]   ;;  %v7071_v46 = vld [vmem:[%s10534_s20 + $0x980] ss:$16 sps:$4 sm:$0xff]  }
  0x93   :  { %2347 = vmatpush1.bf16.msra.mxu0 %v6992_v47  ;;  %2388 = vmatpush1.bf16.msra.mxu1 %v6995_v48  ;;  %v7074_v47 = vld [vmem:[%s10534_s20 + $0x188] ss:$16 sps:$4 sm:$0xff]   ;;  %v7079_v48 = vld [vmem:[%s10534_s20 + $0x9a4] ss:$16 sps:$4 sm:$0xff]  }
  0x94   :  { %2398 = vmatprep.subr.bf16.mxu0 %v7001_v50  ;;  %2439 = vmatprep.subr.bf16.mxu1 %v7004_v51  ;;  %v7082_v50 = vld [vmem:[%s10534_s20 + $0x1ac] ss:$16 sps:$4 sm:$0xff]   ;;  %v7077_v51 = vld [vmem:[%s10534_s20 + $0x9a0] ss:$16 sps:$4 sm:$0xff]  }
  0x96   :  { %2349 = vmatmul.mubr.bf16.vlgmr.msra.gmra.mrb[8].mxu0 %v8515_v53  ;;  %2390 = vmatmul.mubr.bf16.vlgmr.msra.gmra.mrb[8].mxu1 %v8519_v54 }
  0x97   :  { %2399 = vmatpush1.bf16.msra.mxu0 %v6999_v55  ;;  %2440 = vmatpush1.bf16.msra.mxu1 %v7002_v56  ;;  %v7085_v55 = vld [vmem:[%s10534_s20 + $0x9c4] ss:$16 sps:$4 sm:$0xff]   ;;  %v7088_v56 = vld [vmem:[%s10534_s20 + $0x1cc] ss:$16 sps:$4 sm:$0xff]  }
  0x98   :  { %2400 = vmatprep.subr.bf16.mxu0 %v7007_v57  ;;  %2441 = vmatprep.subr.bf16.mxu1 %v7010_v59  ;;  %v7083_v57 = vld [vmem:[%s10534_s20 + $0x9c0] ss:$16 sps:$4 sm:$0xff]   ;;  %v7086_v59 = vld [vmem:[%s10534_s20 + $0x1c8] ss:$16 sps:$4 sm:$0xff]  }
  0x99   :  { %2430 = vmatprep.mubr.bf16.mxu0 %v8533_v60  ;;  %2471 = vmatprep.mubr.bf16.mxu1 %v8223_v13  ;;  %v7022_v13 = vld [vmem:[%s10534_s20 + $0x6c] ss:$16 sps:$4 sm:$0xff]  }
  0x9b   :  { %2401 = vmatpush1.bf16.msra.mxu0 %v7005_v61  ;;  %2442 = vmatpush1.bf16.msra.mxu1 %v7008_v62  ;;  %v7091_v61 = vld [vmem:[%s10534_s20 + $0x9e4] ss:$16 sps:$4 sm:$0xff]   ;;  %v7094_v62 = vld [vmem:[%s10534_s20 + $0x1ec] ss:$16 sps:$4 sm:$0xff]  }
  0x9c   :  { %2402 = vmatprep.subr.bf16.mxu0 %v7013_v0  ;;  %2443 = vmatprep.subr.bf16.mxu1 %v7016_v1  ;;  %v7089_v0 = vld [vmem:[%s10534_s20 + $0x9e0] ss:$16 sps:$4 sm:$0xff]   ;;  %v7092_v1 = vld [vmem:[%s10534_s20 + $0x1e8] ss:$16 sps:$4 sm:$0xff]  }
  0x9f   :  { %2403 = vmatpush1.bf16.msra.mxu0 %v7011_v2  ;;  %2444 = vmatpush1.bf16.msra.mxu1 %v7014_v3  ;;  %v7097_v2 = vld [vmem:[%s10534_s20 + $0x20c] ss:$16 sps:$4 sm:$0xff]  }
  0xa0   :  { %2404 = vmatprep.subr.bf16.mxu0 %v7019_v4  ;;  %2445 = vmatprep.subr.bf16.mxu1 %v7022_v13  ;;  %v7100_v3 = vld [vmem:[%s10534_s20 + $0x40c] ss:$16 sps:$4 sm:$0xff]   ;;  %v8721_v4 = vpack.c.bf16 %v8503_v49, %v8503_v49  ;;  %v7095_v13 = vld [vmem:[%s10534_s20 + $0x208] ss:$16 sps:$4 sm:$0xff]  }
  0xa1   :  { %v7106_v49 = vld [vmem:[%s10534_s20 + $0x42c] ss:$16 sps:$4 sm:$0xff]  }
  0xa3   :  { %2405 = vmatpush1.bf16.msra.mxu0 %v7017_v63  ;;  %2446 = vmatpush1.bf16.msra.mxu1 %v7020_v6  ;;  %v7098_v63 = vld [vmem:[%s10534_s20 + $0x408] ss:$16 sps:$4 sm:$0xff]   ;;  %v7103_v6 = vld [vmem:[%s10534_s20 + $0x22c] ss:$16 sps:$4 sm:$0xff]  }
  0xa4   :  { %2406 = vmatprep.subr.bf16.mxu0 %v7025_v8  ;;  %2447 = vmatprep.subr.bf16.mxu1 %v7028_v9  ;;  %v7101_v8 = vld [vmem:[%s10534_s20 + $0x228] ss:$16 sps:$4 sm:$0xff]  }
  0xa5   :  { %v7104_v9 = vld [vmem:[%s10534_s20 + $0x428] ss:$16 sps:$4 sm:$0xff]  }
  0xa7   :  { %2407 = vmatpush1.bf16.msra.mxu0 %v7023_v10  ;;  %2448 = vmatpush1.bf16.msra.mxu1 %v7026_v11  ;;  %v7109_v10 = vld [vmem:[%s10534_s20 + $0x24c] ss:$16 sps:$4 sm:$0xff]   ;;  %v7107_v11 = vld [vmem:[%s10534_s20 + $0x248] ss:$16 sps:$4 sm:$0xff]  }
  0xa8   :  { %2408 = vmatprep.subr.bf16.mxu0 %v7031_v12  ;;  %2449 = vmatprep.subr.bf16.mxu1 %v7034_v14  ;;  %v7110_v12 = vld [vmem:[%s10534_s20 + $0x448] ss:$16 sps:$4 sm:$0xff]   ;;  %v7115_v14 = vld [vmem:[%s10534_s20 + $0x26c] ss:$16 sps:$4 sm:$0xff]  }
  0xab   :  { %2409 = vmatpush1.bf16.msra.mxu0 %v7029_v15  ;;  %2450 = vmatpush1.bf16.msra.mxu1 %v7032_v16  ;;  %v7116_v15 = vld [vmem:[%s10534_s20 + $0x468] ss:$16 sps:$4 sm:$0xff]   ;;  %v7121_v16 = vld [vmem:[%s10534_s20 + $0x28c] ss:$16 sps:$4 sm:$0xff]  }
  0xac   :  { %2410 = vmatprep.subr.bf16.mxu0 %v7037_v18  ;;  %2451 = vmatprep.subr.bf16.mxu1 %v7040_v19  ;;  %v7124_v18 = vld [vmem:[%s10534_s20 + $0x48c] ss:$16 sps:$4 sm:$0xff]   ;;  %v7119_v19 = vld [vmem:[%s10534_s20 + $0x288] ss:$16 sps:$4 sm:$0xff]  }
  0xaf   :  { %2411 = vmatpush1.bf16.msra.mxu0 %v7035_v20  ;;  %2452 = vmatpush1.bf16.msra.mxu1 %v7038_v21  ;;  %v7122_v20 = vld [vmem:[%s10534_s20 + $0x488] ss:$16 sps:$4 sm:$0xff]   ;;  %v7127_v21 = vld [vmem:[%s10534_s20 + $0x2ac] ss:$16 sps:$4 sm:$0xff]  }
  0xb0   :  { %2412 = vmatprep.subr.bf16.mxu0 %v7043_v22  ;;  %2453 = vmatprep.subr.bf16.mxu1 %v7046_v23  ;;  %v7130_v22 = vld [vmem:[%s10534_s20 + $0x4ac] ss:$16 sps:$4 sm:$0xff]   ;;  %v7125_v23 = vld [vmem:[%s10534_s20 + $0x2a8] ss:$16 sps:$4 sm:$0xff]  }
  0xb3   :  { %2413 = vmatpush1.bf16.msra.mxu0 %v7041_v24  ;;  %2454 = vmatpush1.bf16.msra.mxu1 %v7044_v25  ;;  %v7128_v24 = vld [vmem:[%s10534_s20 + $0x4a8] ss:$16 sps:$4 sm:$0xff]   ;;  %v7133_v25 = vld [vmem:[%s10534_s20 + $0x2cc] ss:$16 sps:$4 sm:$0xff]  }
  0xb4   :  { %2414 = vmatprep.subr.bf16.mxu0 %v7049_v26  ;;  %2455 = vmatprep.subr.bf16.mxu1 %v7052_v27  ;;  %v7136_v26 = vld [vmem:[%s10534_s20 + $0x4cc] ss:$16 sps:$4 sm:$0xff]  }
  0xb7   :  { %2415 = vmatpush1.bf16.msra.mxu0 %v7047_v28  ;;  %2456 = vmatpush1.bf16.msra.mxu1 %v7050_v29  ;;  %v7131_v29 = vld [vmem:[%s10534_s20 + $0x2c8] ss:$16 sps:$4 sm:$0xff]  }
  0xb8   :  { %2416 = vmatprep.subr.bf16.mxu0 %v7055_v30  ;;  %2457 = vmatprep.subr.bf16.mxu1 %v7058_v31  ;;  %v7134_v30 = vld [vmem:[%s10534_s20 + $0x4c8] ss:$16 sps:$4 sm:$0xff]  }
  0xbb   :  { %2417 = vmatpush1.bf16.msra.mxu0 %v7053_v32  ;;  %2458 = vmatpush1.bf16.msra.mxu1 %v7056_v33  ;;  %v7139_v33 = vld [vmem:[%s10534_s20 + $0x2ec] ss:$16 sps:$4 sm:$0xff]  }
  0xbc   :  { %2418 = vmatprep.subr.bf16.mxu0 %v7061_v34  ;;  %2459 = vmatprep.subr.bf16.mxu1 %v7064_v35  ;;  %v7142_v34 = vld [vmem:[%s10534_s20 + $0x4ec] ss:$16 sps:$4 sm:$0xff]  }
  0xbf   :  { %2419 = vmatpush1.bf16.msra.mxu0 %v7059_v38  ;;  %2460 = vmatpush1.bf16.msra.mxu1 %v7062_v39 }
  0xc0   :  { %2420 = vmatprep.subr.bf16.mxu0 %v7067_v40  ;;  %2461 = vmatprep.subr.bf16.mxu1 %v7070_v41  ;;  %v7137_v41 = vld [vmem:[%s10534_s20 + $0x2e8] ss:$16 sps:$4 sm:$0xff]  }
  0xc3   :  { %2421 = vmatpush1.bf16.msra.mxu0 %v7065_v42  ;;  %2462 = vmatpush1.bf16.msra.mxu1 %v7068_v43  ;;  %v7140_v42 = vld [vmem:[%s10534_s20 + $0x4e8] ss:$16 sps:$4 sm:$0xff]   ;;  %v7145_v43 = vld [vmem:[%s10534_s20 + $0x30c] ss:$16 sps:$4 sm:$0xff]  }
  0xc4   :  { %2422 = vmatprep.subr.bf16.mxu0 %v7073_v44  ;;  %2463 = vmatprep.subr.bf16.mxu1 %v7076_v45  ;;  %v7148_v44 = vld [vmem:[%s10534_s20 + $0x50c] ss:$16 sps:$4 sm:$0xff]   ;;  %v7143_v45 = vld [vmem:[%s10534_s20 + $0x308] ss:$16 sps:$4 sm:$0xff]  }
  0xc7   :  { %2423 = vmatpush1.bf16.msra.mxu0 %v7071_v46  ;;  %2464 = vmatpush1.bf16.msra.mxu1 %v7074_v47  ;;  %v7146_v46 = vld [vmem:[%s10534_s20 + $0x508] ss:$16 sps:$4 sm:$0xff]   ;;  %v7151_v47 = vld [vmem:[%s10534_s20 + $0x32c] ss:$16 sps:$4 sm:$0xff]  }
  0xc8   :  { %2424 = vmatprep.subr.bf16.mxu0 %v7079_v48  ;;  %2465 = vmatprep.subr.bf16.mxu1 %v7082_v50  ;;  %v7154_v48 = vld [vmem:[%s10534_s20 + $0x52c] ss:$16 sps:$4 sm:$0xff]   ;;  %v7149_v50 = vld [vmem:[%s10534_s20 + $0x328] ss:$16 sps:$4 sm:$0xff]  }
  0xcb   :  { %2425 = vmatpush1.bf16.msra.mxu0 %v7077_v51  ;;  %2466 = vmatpush1.bf16.msra.mxu1 %v7080_v52  ;;  %v7152_v51 = vld [vmem:[%s10534_s20 + $0x528] ss:$16 sps:$4 sm:$0xff]   ;;  %v7157_v52 = vld [vmem:[%s10534_s20 + $0x34c] ss:$16 sps:$4 sm:$0xff]  }
  0xcc   :  { %2426 = vmatprep.subr.bf16.mxu0 %v7085_v55  ;;  %2467 = vmatprep.subr.bf16.mxu1 %v7088_v56  ;;  %v7160_v55 = vld [vmem:[%s10534_s20 + $0x54c] ss:$16 sps:$4 sm:$0xff]   ;;  %v7155_v56 = vld [vmem:[%s10534_s20 + $0x348] ss:$16 sps:$4 sm:$0xff]  }
  0xcf   :  { %2427 = vmatpush1.bf16.msra.mxu0 %v7083_v57  ;;  %2468 = vmatpush1.bf16.msra.mxu1 %v7086_v59  ;;  %v7158_v57 = vld [vmem:[%s10534_s20 + $0x548] ss:$16 sps:$4 sm:$0xff]   ;;  %v7163_v59 = vld [vmem:[%s10534_s20 + $0x36c] ss:$16 sps:$4 sm:$0xff]  }
  0xd0   :  { %2428 = vmatprep.subr.bf16.mxu0 %v7091_v61  ;;  %2469 = vmatprep.subr.bf16.mxu1 %v7094_v62  ;;  %v7166_v61 = vld [vmem:[%s10534_s20 + $0x56c] ss:$16 sps:$4 sm:$0xff]   ;;  %v7161_v62 = vld [vmem:[%s10534_s20 + $0x368] ss:$16 sps:$4 sm:$0xff]  }
  0xd3   :  { %2429 = vmatpush1.bf16.msra.mxu0 %v7089_v0  ;;  %2470 = vmatpush1.bf16.msra.mxu1 %v7092_v1  ;;  %v7164_v0 = vld [vmem:[%s10534_s20 + $0x568] ss:$16 sps:$4 sm:$0xff]   ;;  %v7169_v1 = vld [vmem:[%s10534_s20 + $0x38c] ss:$16 sps:$4 sm:$0xff]  }
  0xd4   :  { %2480 = vmatprep.subr.bf16.mxu0 %v7097_v2  ;;  %2521 = vmatprep.subr.bf16.mxu1 %v7100_v3  ;;  %v7172_v2 = vld [vmem:[%s10534_s20 + $0x58c] ss:$16 sps:$4 sm:$0xff]   ;;  %v7167_v3 = vld [vmem:[%s10534_s20 + $0x388] ss:$16 sps:$4 sm:$0xff]  }
  0xd6   :  { %2431 = vmatmul.mubr.bf16.vlgmr.msra.gmra.mrb[12].mxu0 %v8721_v4  ;;  %2472 = vmatmul.mubr.bf16.vlgmr.msra.gmra.mrb[12].mxu1 %v8289_v36  ;;  %v7112_v36 = vld [vmem:[%s10534_s20 + $0x44c] ss:$16 sps:$4 sm:$0xff]  }
  0xd7   :  { %2481 = vmatpush1.bf16.msra.mxu0 %v7095_v13  ;;  %2522 = vmatpush1.bf16.msra.mxu1 %v7098_v63  ;;  %v7170_v13 = vld [vmem:[%s10534_s20 + $0x588] ss:$16 sps:$4 sm:$0xff]   ;;  %v7175_v63 = vld [vmem:[%s10534_s20 + $0x3ac] ss:$16 sps:$4 sm:$0xff]  }
  0xd8   :  { %2482 = vmatprep.subr.bf16.mxu0 %v7103_v6  ;;  %2523 = vmatprep.subr.bf16.mxu1 %v7106_v49  ;;  %v7178_v6 = vld [vmem:[%s10534_s20 + $0x5ac] ss:$16 sps:$4 sm:$0xff]   ;;  %v7173_v49 = vld [vmem:[%s10534_s20 + $0x3a8] ss:$16 sps:$4 sm:$0xff]  }
  0xd9   :  { %2512 = vmatprep.mubr.bf16.mxu0 %v8231_v17  ;;  %2553 = vmatprep.mubr.bf16.mxu1 %v8378_v5  ;;  %v7118_v17 = vld [vmem:[%s10534_s20 + $0x46c] ss:$16 sps:$4 sm:$0xff]   ;;  %v7113_v5 = vld [vmem:[%s10534_s20 + $0x268] ss:$16 sps:$4 sm:$0xff]  }
  0xdb   :  { %2483 = vmatpush1.bf16.msra.mxu0 %v7101_v8  ;;  %2524 = vmatpush1.bf16.msra.mxu1 %v7104_v9  ;;  %v7176_v8 = vld [vmem:[%s10534_s20 + $0x5a8] ss:$16 sps:$4 sm:$0xff]   ;;  %v7181_v9 = vld [vmem:[%s10534_s20 + $0x3cc] ss:$16 sps:$4 sm:$0xff]  }
  0xdc   :  { %2484 = vmatprep.subr.bf16.mxu0 %v7109_v10  ;;  %2525 = vmatprep.subr.bf16.mxu1 %v7112_v36  ;;  %v7184_v10 = vld [vmem:[%s10534_s20 + $0x5cc] ss:$16 sps:$4 sm:$0xff]   ;;  %v7179_v36 = vld [vmem:[%s10534_s20 + $0x3c8] ss:$16 sps:$4 sm:$0xff]  }
  0xdf   :  { %2485 = vmatpush1.bf16.msra.mxu0 %v7107_v11  ;;  %2526 = vmatpush1.bf16.msra.mxu1 %v7110_v12  ;;  %v7182_v11 = vld [vmem:[%s10534_s20 + $0x5c8] ss:$16 sps:$4 sm:$0xff]   ;;  %v7187_v12 = vld [vmem:[%s10534_s20 + $0x3ec] ss:$16 sps:$4 sm:$0xff]  }
  0xe0   :  { %2486 = vmatprep.subr.bf16.mxu0 %v7115_v14  ;;  %2527 = vmatprep.subr.bf16.mxu1 %v7118_v17  ;;  %v7190_v14 = vld [vmem:[%s10534_s20 + $0x5ec] ss:$16 sps:$4 sm:$0xff]   ;;  %v7185_v17 = vld [vmem:[%s10534_s20 + $0x3e8] ss:$16 sps:$4 sm:$0xff]  }
  0xe3   :  { %2487 = vmatpush1.bf16.msra.mxu0 %v7113_v5  ;;  %2528 = vmatpush1.bf16.msra.mxu1 %v7116_v15  ;;  %v7188_v5 = vld [vmem:[%s10534_s20 + $0x5e8] ss:$16 sps:$4 sm:$0xff]   ;;  %v7193_v15 = vld [vmem:[%s10534_s20 + $0x60c] ss:$16 sps:$4 sm:$0xff]  }
  0xe4   :  { %2488 = vmatprep.subr.bf16.mxu0 %v7121_v16  ;;  %2529 = vmatprep.subr.bf16.mxu1 %v7124_v18  ;;  %v7196_v16 = vld [vmem:[%s10534_s20 + $0x80c] ss:$16 sps:$4 sm:$0xff]   ;;  %v7191_v18 = vld [vmem:[%s10534_s20 + $0x608] ss:$16 sps:$4 sm:$0xff]  }
  0xe7   :  { %2489 = vmatpush1.bf16.msra.mxu0 %v7119_v19  ;;  %2530 = vmatpush1.bf16.msra.mxu1 %v7122_v20  ;;  %v7194_v19 = vld [vmem:[%s10534_s20 + $0x808] ss:$16 sps:$4 sm:$0xff]   ;;  %v7199_v20 = vld [vmem:[%s10534_s20 + $0x62c] ss:$16 sps:$4 sm:$0xff]  }
  0xe8   :  { %2490 = vmatprep.subr.bf16.mxu0 %v7127_v21  ;;  %2531 = vmatprep.subr.bf16.mxu1 %v7130_v22  ;;  %v7202_v21 = vld [vmem:[%s10534_s20 + $0x82c] ss:$16 sps:$4 sm:$0xff]   ;;  %v7197_v22 = vld [vmem:[%s10534_s20 + $0x628] ss:$16 sps:$4 sm:$0xff]  }
  0xe9   :  { %v8799_v27 = vpop.f32.mrb[0].mxu0  ;;  %v8801_v28 = vpop.f32.mrb[0].mxu1 }
  0xea   :  { %v8809_v31 = vpop.f32.mrb[1].mxu0  ;;  %v8811_v32 = vpop.f32.mrb[1].mxu1 }
  0xeb   :  { %v590_v35 = vpop.f32.mrb[2].mxu0  ;;  %v631_v38 = vpop.f32.mrb[2].mxu1  ;;  %2491 = vmatpush1.bf16.msra.mxu0 %v7125_v23  ;;  %2532 = vmatpush1.bf16.msra.mxu1 %v7128_v24  ;;  %v7200_v23 = vld [vmem:[%s10534_s20 + $0x828] ss:$16 sps:$4 sm:$0xff]   ;;  %v7205_v24 = vld [vmem:[%s10534_s20 + $0x64c] ss:$16 sps:$4 sm:$0xff]  }
  0xec   :  { %v591_v39 = vpop.f32.mrb[3].mxu0  ;;  %v632_v40 = vpop.f32.mrb[3].mxu1  ;;  %2492 = vmatprep.subr.bf16.mxu0 %v7133_v25  ;;  %2533 = vmatprep.subr.bf16.mxu1 %v7136_v26  ;;  %v7208_v25 = vld [vmem:[%s10534_s20 + $0x84c] ss:$16 sps:$4 sm:$0xff]   ;;  %v7203_v26 = vld [vmem:[%s10534_s20 + $0x648] ss:$16 sps:$4 sm:$0xff]  }
  0xed   :  { %v7218_v35 = vld [vmem:[%s10534_s20 + $0x888] ss:$16 sps:$4 sm:$0xff]   ;;  %v7223_v38 = vld [vmem:[%s10534_s20 + $0x6ac] ss:$16 sps:$4 sm:$0xff]  }
  0xee   :  { %v7226_v39 = vld [vmem:[%s10534_s20 + $0x8ac] ss:$16 sps:$4 sm:$0xff]   ;;  %v7221_v40 = vld [vmem:[%s10534_s20 + $0x6a8] ss:$16 sps:$4 sm:$0xff]  }
  0xef   :  { %2493 = vmatpush1.bf16.msra.mxu0 %v7131_v29  ;;  %2534 = vmatpush1.bf16.msra.mxu1 %v7134_v30  ;;  %v7214_v29 = vld [vmem:[%s10534_s20 + $0x86c] ss:$16 sps:$4 sm:$0xff]   ;;  %v7209_v30 = vld [vmem:[%s10534_s20 + $0x668] ss:$16 sps:$4 sm:$0xff]  }
  0xf0   :  { %2494 = vmatprep.subr.bf16.mxu0 %v7139_v33  ;;  %2535 = vmatprep.subr.bf16.mxu1 %v7142_v34  ;;  %v7220_v33 = vld [vmem:[%s10534_s20 + $0x88c] ss:$16 sps:$4 sm:$0xff]   ;;  %v7215_v34 = vld [vmem:[%s10534_s20 + $0x688] ss:$16 sps:$4 sm:$0xff]  }
  0xf3   :  { %2495 = vmatpush1.bf16.msra.mxu0 %v7137_v41  ;;  %2536 = vmatpush1.bf16.msra.mxu1 %v7140_v42  ;;  %v7224_v41 = vld [vmem:[%s10534_s20 + $0x8a8] ss:$16 sps:$4 sm:$0xff]   ;;  %v7229_v42 = vld [vmem:[%s10534_s20 + $0x6cc] ss:$16 sps:$4 sm:$0xff]  }
  0xf4   :  { %2496 = vmatprep.subr.bf16.mxu0 %v7145_v43  ;;  %2537 = vmatprep.subr.bf16.mxu1 %v7148_v44  ;;  %v7232_v43 = vld [vmem:[%s10534_s20 + $0x8cc] ss:$16 sps:$4 sm:$0xff]  }
  0xf7   :  { %2497 = vmatpush1.bf16.msra.mxu0 %v7143_v45  ;;  %2538 = vmatpush1.bf16.msra.mxu1 %v7146_v46 }
  0xf8   :  { %2498 = vmatprep.subr.bf16.mxu0 %v7151_v47  ;;  %2539 = vmatprep.subr.bf16.mxu1 %v7154_v48 }
  0xfb   :  { %2499 = vmatpush1.bf16.msra.mxu0 %v7149_v50  ;;  %2540 = vmatpush1.bf16.msra.mxu1 %v7152_v51  ;;  %v7227_v50 = vld [vmem:[%s10534_s20 + $0x6c8] ss:$16 sps:$4 sm:$0xff]  }
  0xfc   :  { %2500 = vmatprep.subr.bf16.mxu0 %v7157_v52  ;;  %2541 = vmatprep.subr.bf16.mxu1 %v7160_v55  ;;  %v7230_v51 = vld [vmem:[%s10534_s20 + $0x8c8] ss:$16 sps:$4 sm:$0xff]  }
  0xff   :  { %2501 = vmatpush1.bf16.msra.mxu0 %v7155_v56  ;;  %2542 = vmatpush1.bf16.msra.mxu1 %v7158_v57  ;;  %v7238_v57 = vld [vmem:[%s10534_s20 + $0x8ec] ss:$16 sps:$4 sm:$0xff]  }
 0x100   :  { %2502 = vmatprep.subr.bf16.mxu0 %v7163_v59  ;;  %2543 = vmatprep.subr.bf16.mxu1 %v7166_v61 }
 0x103   :  { %2503 = vmatpush1.bf16.msra.mxu0 %v7161_v62  ;;  %2544 = vmatpush1.bf16.msra.mxu1 %v7164_v0 }
 0x104   :  { %2504 = vmatprep.subr.bf16.mxu0 %v7169_v1  ;;  %2545 = vmatprep.subr.bf16.mxu1 %v7172_v2  ;;  %v7236_v1 = vld [vmem:[%s10534_s20 + $0x8e8] ss:$16 sps:$4 sm:$0xff]   ;;  %v7241_v2 = vld [vmem:[%s10534_s20 + $0x70c] ss:$16 sps:$4 sm:$0xff]  }
 0x107   :  { %2505 = vmatpush1.bf16.msra.mxu0 %v7167_v3  ;;  %2546 = vmatpush1.bf16.msra.mxu1 %v7170_v13  ;;  %v7244_v3 = vld [vmem:[%s10534_s20 + $0x90c] ss:$16 sps:$4 sm:$0xff]   ;;  %v7239_v13 = vld [vmem:[%s10534_s20 + $0x708] ss:$16 sps:$4 sm:$0xff]  }
 0x108   :  { %2506 = vmatprep.subr.bf16.mxu0 %v7175_v63  ;;  %2547 = vmatprep.subr.bf16.mxu1 %v7178_v6  ;;  %v7242_v63 = vld [vmem:[%s10534_s20 + $0x908] ss:$16 sps:$4 sm:$0xff]   ;;  %v7247_v6 = vld [vmem:[%s10534_s20 + $0x72c] ss:$16 sps:$4 sm:$0xff]  }
 0x10b   :  { %2507 = vmatpush1.bf16.msra.mxu0 %v7173_v49  ;;  %2548 = vmatpush1.bf16.msra.mxu1 %v7176_v8  ;;  %v7250_v49 = vld [vmem:[%s10534_s20 + $0x92c] ss:$16 sps:$4 sm:$0xff]   ;;  %v7245_v8 = vld [vmem:[%s10534_s20 + $0x728] ss:$16 sps:$4 sm:$0xff]  }
 0x10c   :  { %2508 = vmatprep.subr.bf16.mxu0 %v7181_v9  ;;  %2549 = vmatprep.subr.bf16.mxu1 %v7184_v10  ;;  %v7248_v9 = vld [vmem:[%s10534_s20 + $0x928] ss:$16 sps:$4 sm:$0xff]   ;;  %v7253_v10 = vld [vmem:[%s10534_s20 + $0x74c] ss:$16 sps:$4 sm:$0xff]  }
 0x10f   :  { %2509 = vmatpush1.bf16.msra.mxu0 %v7179_v36  ;;  %2550 = vmatpush1.bf16.msra.mxu1 %v7182_v11  ;;  %v7256_v36 = vld [vmem:[%s10534_s20 + $0x94c] ss:$16 sps:$4 sm:$0xff]   ;;  %v7251_v11 = vld [vmem:[%s10534_s20 + $0x748] ss:$16 sps:$4 sm:$0xff]  }
 0x110   :  { %2510 = vmatprep.subr.bf16.mxu0 %v7187_v12  ;;  %2551 = vmatprep.subr.bf16.mxu1 %v7190_v14  ;;  %v7254_v12 = vld [vmem:[%s10534_s20 + $0x948] ss:$16 sps:$4 sm:$0xff]   ;;  %v7259_v14 = vld [vmem:[%s10534_s20 + $0x76c] ss:$16 sps:$4 sm:$0xff]  }
 0x113   :  { %2511 = vmatpush1.bf16.msra.mxu0 %v7185_v17  ;;  %2552 = vmatpush1.bf16.msra.mxu1 %v7188_v5  ;;  %v7262_v17 = vld [vmem:[%s10534_s20 + $0x96c] ss:$16 sps:$4 sm:$0xff]   ;;  %v7257_v5 = vld [vmem:[%s10534_s20 + $0x768] ss:$16 sps:$4 sm:$0xff]  }
 0x114   :  { %2562 = vmatprep.subr.bf16.mxu0 %v7193_v15  ;;  %2603 = vmatprep.subr.bf16.mxu1 %v7196_v16  ;;  %v7260_v15 = vld [vmem:[%s10534_s20 + $0x968] ss:$16 sps:$4 sm:$0xff]   ;;  %v7265_v16 = vld [vmem:[%s10534_s20 + $0x78c] ss:$16 sps:$4 sm:$0xff]  }
 0x116   :  { %2513 = vmatmul.mubr.bf16.vlgmr.msra.gmra.mrb[16].mxu0 %v8291_v37  ;;  %2554 = vmatmul.mubr.bf16.vlgmr.msra.gmra.mrb[16].mxu1 %v8515_v53  ;;  %v7206_v37 = vld [vmem:[%s10534_s20 + $0x848] ss:$16 sps:$4 sm:$0xff]   ;;  %v7211_v53 = vld [vmem:[%s10534_s20 + $0x66c] ss:$16 sps:$4 sm:$0xff]  }
 0x117   :  { %2563 = vmatpush1.bf16.msra.mxu0 %v7191_v18  ;;  %2604 = vmatpush1.bf16.msra.mxu1 %v7194_v19  ;;  %v7268_v18 = vld [vmem:[%s10534_s20 + $0x98c] ss:$16 sps:$4 sm:$0xff]   ;;  %v7263_v19 = vld [vmem:[%s10534_s20 + $0x788] ss:$16 sps:$4 sm:$0xff]  }
 0x118   :  { %2564 = vmatprep.subr.bf16.mxu0 %v7199_v20  ;;  %2605 = vmatprep.subr.bf16.mxu1 %v7202_v21  ;;  %v7266_v20 = vld [vmem:[%s10534_s20 + $0x988] ss:$16 sps:$4 sm:$0xff]   ;;  %v7271_v21 = vld [vmem:[%s10534_s20 + $0x7ac] ss:$16 sps:$4 sm:$0xff]  }
 0x119   :  { %2594 = vmatprep.mubr.bf16.mxu0 %v8386_v7  ;;  %2635 = vmatprep.mubr.bf16.mxu1 %v8533_v60  ;;  %v7212_v7 = vld [vmem:[%s10534_s20 + $0x868] ss:$16 sps:$4 sm:$0xff]   ;;  %v7217_v60 = vld [vmem:[%s10534_s20 + $0x68c] ss:$16 sps:$4 sm:$0xff]  }
 0x11b   :  { %2565 = vmatpush1.bf16.msra.mxu0 %v7197_v22  ;;  %2606 = vmatpush1.bf16.msra.mxu1 %v7200_v23  ;;  %v7274_v22 = vld [vmem:[%s10534_s20 + $0x9ac] ss:$16 sps:$4 sm:$0xff]   ;;  %v7269_v23 = vld [vmem:[%s10534_s20 + $0x7a8] ss:$16 sps:$4 sm:$0xff]  }
 0x11c   :  { %2566 = vmatprep.subr.bf16.mxu0 %v7205_v24  ;;  %2607 = vmatprep.subr.bf16.mxu1 %v7208_v25  ;;  %v7272_v24 = vld [vmem:[%s10534_s20 + $0x9a8] ss:$16 sps:$4 sm:$0xff]   ;;  %v7277_v25 = vld [vmem:[%s10534_s20 + $0x7cc] ss:$16 sps:$4 sm:$0xff]  }
 0x11f   :  { %2567 = vmatpush1.bf16.msra.mxu0 %v7203_v26  ;;  %2608 = vmatpush1.bf16.msra.mxu1 %v7206_v37  ;;  %v7280_v26 = vld [vmem:[%s10534_s20 + $0x9cc] ss:$16 sps:$4 sm:$0xff]   ;;  %v7275_v37 = vld [vmem:[%s10534_s20 + $0x7c8] ss:$16 sps:$4 sm:$0xff]  }
 0x120   :  { %2568 = vmatprep.subr.bf16.mxu0 %v7211_v53  ;;  %2609 = vmatprep.subr.bf16.mxu1 %v7214_v29  ;;  %v7278_v53 = vld [vmem:[%s10534_s20 + $0x9c8] ss:$16 sps:$4 sm:$0xff]   ;;  %v7283_v29 = vld [vmem:[%s10534_s20 + $0x7ec] ss:$16 sps:$4 sm:$0xff]  }
 0x123   :  { %2569 = vmatpush1.bf16.msra.mxu0 %v7209_v30  ;;  %2610 = vmatpush1.bf16.msra.mxu1 %v7212_v7  ;;  %v7286_v30 = vld [vmem:[%s10534_s20 + $0x9ec] ss:$16 sps:$4 sm:$0xff]   ;;  %v7281_v7 = vld [vmem:[%s10534_s20 + $0x7e8] ss:$16 sps:$4 sm:$0xff]  }
 0x124   :  { %2570 = vmatprep.subr.bf16.mxu0 %v7217_v60  ;;  %2611 = vmatprep.subr.bf16.mxu1 %v7220_v33  ;;  %v7284_v60 = vld [vmem:[%s10534_s20 + $0x9e8] ss:$16 sps:$4 sm:$0xff]   ;;  %v7289_v33 = vld [vmem:[%s10514_s5 + $0x4] ss:$16 sps:$4 sm:$0xff]  }
 0x127   :  { %2571 = vmatpush1.bf16.msra.mxu0 %v7215_v34  ;;  %2612 = vmatpush1.bf16.msra.mxu1 %v7218_v35  ;;  %v7292_v34 = vld [vmem:[%s10514_s5 + $0xc] ss:$16 sps:$4 sm:$0xff]   ;;  %v7287_v35 = vld [vmem:[%s10514_s5] ss:$16 sps:$4 sm:$0xff]  }
 0x128   :  { %2572 = vmatprep.subr.bf16.mxu0 %v7223_v38  ;;  %2613 = vmatprep.subr.bf16.mxu1 %v7226_v39  ;;  %v7290_v38 = vld [vmem:[%s10514_s5 + $0x8] ss:$16 sps:$4 sm:$0xff]   ;;  %v7295_v39 = vld [vmem:[%s10514_s5 + $0x24] ss:$16 sps:$4 sm:$0xff]  }
 0x129   :  { %v2268_v44 = vpop.f32.mrb[4].mxu0  ;;  %v2309_v45 = vpop.f32.mrb[4].mxu1 }
 0x12a   :  { %v2269_v46 = vadd.f32 %v2268_v44, %v8799_v27  ;;  %v2270_v47 = vpop.f32.mrb[5].mxu0  ;;  %v2311_v48 = vpop.f32.mrb[5].mxu1  ;;  %v7235_v27 = vld [vmem:[%s10534_s20 + $0x6ec] ss:$16 sps:$4 sm:$0xff]  }
 0x12b   :  { %v2271_v52 = vadd.f32 %v2270_v47, %v8809_v31  ;;  %v2272_v55 = vpop.f32.mrb[6].mxu0  ;;  %v2313_v56 = vpop.f32.mrb[6].mxu1  ;;  %2573 = vmatpush1.bf16.msra.mxu0 %v7221_v40  ;;  %2614 = vmatpush1.bf16.msra.mxu1 %v7224_v41  ;;  %v7233_v31 = vld [vmem:[%s10534_s20 + $0x6e8] ss:$16 sps:$4 sm:$0xff]   ;;  %v7298_v40 = vld [vmem:[%s10514_s5 + $0x2c] ss:$16 sps:$4 sm:$0xff]  }
 0x12c   :  { %v9017_v59 = vadd.f32 %v2309_v45, %v2269_v46  ;;  %v2273_v61 = vpop.f32.mrb[7].mxu0  ;;  %v2314_v62 = vpop.f32.mrb[7].mxu1  ;;  %2574 = vmatprep.subr.bf16.mxu0 %v7229_v42  ;;  %2615 = vmatprep.subr.bf16.mxu1 %v7232_v43  ;;  %v7293_v41 = vld [vmem:[%s10514_s5 + $0x20] ss:$16 sps:$4 sm:$0xff]   ;;  %v7296_v42 = vld [vmem:[%s10514_s5 + $0x28] ss:$16 sps:$4 sm:$0xff]  }
 0x12d   :  { %v9019_v0 = vadd.f32 %v2311_v48, %v2271_v52  ;;  %v7301_v43 = vld [vmem:[%s10514_s5 + $0x44] ss:$16 sps:$4 sm:$0xff]   ;;  %v7304_v44 = vld [vmem:[%s10514_s5 + $0x4c] ss:$16 sps:$4 sm:$0xff]   ;;  %v7299_v45 = vld [vmem:[%s10514_s5 + $0x40] ss:$16 sps:$4 sm:$0xff]  }
 0x12e   :  { %v7310_v46 = vld [vmem:[%s10514_s5 + $0x6c] ss:$16 sps:$4 sm:$0xff]   ;;  %v7305_v47 = vld [vmem:[%s10514_s5 + $0x60] ss:$16 sps:$4 sm:$0xff]   ;;  %v7308_v48 = vld [vmem:[%s10514_s5 + $0x68] ss:$16 sps:$4 sm:$0xff]  }
 0x12f   :  { %2575 = vmatpush1.bf16.msra.mxu0 %v7227_v50  ;;  %2616 = vmatpush1.bf16.msra.mxu1 %v7230_v51  ;;  %v7313_v50 = vld [vmem:[%s10514_s5 + $0x84] ss:$16 sps:$4 sm:$0xff]   ;;  %v7316_v51 = vld [vmem:[%s10514_s5 + $0x8c] ss:$16 sps:$4 sm:$0xff]   ;;  %v7311_v52 = vld [vmem:[%s10514_s5 + $0x80] ss:$16 sps:$4 sm:$0xff]  }
 0x130   :  { %2576 = vmatprep.subr.bf16.mxu0 %v7235_v27  ;;  %2617 = vmatprep.subr.bf16.mxu1 %v7238_v57  ;;  %v7314_v55 = vld [vmem:[%s10514_s5 + $0x88] ss:$16 sps:$4 sm:$0xff]   ;;  %v7319_v56 = vld [vmem:[%s10514_s5 + $0xa4] ss:$16 sps:$4 sm:$0xff]   ;;  %v7322_v27 = vld [vmem:[%s10514_s5 + $0xac] ss:$16 sps:$4 sm:$0xff]  }
 0x131   :  { %v7317_v57 = vld [vmem:[%s10514_s5 + $0xa0] ss:$16 sps:$4 sm:$0xff]   ;;  %v7320_v61 = vld [vmem:[%s10514_s5 + $0xa8] ss:$16 sps:$4 sm:$0xff]   ;;  %v7325_v62 = vld [vmem:[%s10514_s5 + $0xc4] ss:$16 sps:$4 sm:$0xff]  }
 0x133   :  { %2577 = vmatpush1.bf16.msra.mxu0 %v7233_v31  ;;  %2618 = vmatpush1.bf16.msra.mxu1 %v7236_v1  ;;  %v7328_v31 = vld [vmem:[%s10514_s5 + $0xcc] ss:$16 sps:$4 sm:$0xff]  }
 0x134   :  { %2578 = vmatprep.subr.bf16.mxu0 %v7241_v2  ;;  %2619 = vmatprep.subr.bf16.mxu1 %v7244_v3  ;;  %v7323_v3 = vld [vmem:[%s10514_s5 + $0xc0] ss:$16 sps:$4 sm:$0xff]  }
 0x137   :  { %2579 = vmatpush1.bf16.msra.mxu0 %v7239_v13  ;;  %2620 = vmatpush1.bf16.msra.mxu1 %v7242_v63  ;;  %v7326_v13 = vld [vmem:[%s10514_s5 + $0xc8] ss:$16 sps:$4 sm:$0xff]  }
 0x138   :  { %2580 = vmatprep.subr.bf16.mxu0 %v7247_v6  ;;  %2621 = vmatprep.subr.bf16.mxu1 %v7250_v49 }
 0x13b   :  { %2581 = vmatpush1.bf16.msra.mxu0 %v7245_v8  ;;  %2622 = vmatpush1.bf16.msra.mxu1 %v7248_v9  ;;  %v7331_v8 = vld [vmem:[%s10514_s5 + $0xe4] ss:$16 sps:$4 sm:$0xff]   ;;  %v7334_v9 = vld [vmem:[%s10514_s5 + $0xec] ss:$16 sps:$4 sm:$0xff]  }
 0x13c   :  { %2582 = vmatprep.subr.bf16.mxu0 %v7253_v10  ;;  %2623 = vmatprep.subr.bf16.mxu1 %v7256_v36 }
 0x13f   :  { %2583 = vmatpush1.bf16.msra.mxu0 %v7251_v11  ;;  %2624 = vmatpush1.bf16.msra.mxu1 %v7254_v12 }
 0x140   :  { %2584 = vmatprep.subr.bf16.mxu0 %v7259_v14  ;;  %2625 = vmatprep.subr.bf16.mxu1 %v7262_v17 }
 0x143   :  { %2585 = vmatpush1.bf16.msra.mxu0 %v7257_v5  ;;  %2626 = vmatpush1.bf16.msra.mxu1 %v7260_v15  ;;  %v7329_v5 = vld [vmem:[%s10514_s5 + $0xe0] ss:$16 sps:$4 sm:$0xff]   ;;  %v7337_v15 = vld [vmem:[%s10514_s5 + $0x104] ss:$16 sps:$4 sm:$0xff]  }
 0x144   :  { %2586 = vmatprep.subr.bf16.mxu0 %v7265_v16  ;;  %2627 = vmatprep.subr.bf16.mxu1 %v7268_v18  ;;  %v7340_v16 = vld [vmem:[%s10514_s5 + $0x10c] ss:$16 sps:$4 sm:$0xff]   ;;  %v7335_v18 = vld [vmem:[%s10514_s5 + $0x100] ss:$16 sps:$4 sm:$0xff]  }
 0x147   :  { %2587 = vmatpush1.bf16.msra.mxu0 %v7263_v19  ;;  %2628 = vmatpush1.bf16.msra.mxu1 %v7266_v20  ;;  %v7338_v19 = vld [vmem:[%s10514_s5 + $0x108] ss:$16 sps:$4 sm:$0xff]   ;;  %v7343_v20 = vld [vmem:[%s10514_s5 + $0x124] ss:$16 sps:$4 sm:$0xff]  }
 0x148   :  { %2588 = vmatprep.subr.bf16.mxu0 %v7271_v21  ;;  %2629 = vmatprep.subr.bf16.mxu1 %v7274_v22  ;;  %v7346_v21 = vld [vmem:[%s10514_s5 + $0x12c] ss:$16 sps:$4 sm:$0xff]   ;;  %v7341_v22 = vld [vmem:[%s10514_s5 + $0x120] ss:$16 sps:$4 sm:$0xff]  }
 0x14b   :  { %2589 = vmatpush1.bf16.msra.mxu0 %v7269_v23  ;;  %2630 = vmatpush1.bf16.msra.mxu1 %v7272_v24  ;;  %v7344_v23 = vld [vmem:[%s10514_s5 + $0x128] ss:$16 sps:$4 sm:$0xff]   ;;  %v7349_v24 = vld [vmem:[%s10514_s5 + $0x144] ss:$16 sps:$4 sm:$0xff]  }
 0x14c   :  { %2590 = vmatprep.subr.bf16.mxu0 %v7277_v25  ;;  %2631 = vmatprep.subr.bf16.mxu1 %v7280_v26  ;;  %v7352_v25 = vld [vmem:[%s10514_s5 + $0x14c] ss:$16 sps:$4 sm:$0xff]   ;;  %v7347_v26 = vld [vmem:[%s10514_s5 + $0x140] ss:$16 sps:$4 sm:$0xff]  }
 0x14f   :  { %2591 = vmatpush1.bf16.msra.mxu0 %v7275_v37  ;;  %2632 = vmatpush1.bf16.msra.mxu1 %v7278_v53  ;;  %v7350_v37 = vld [vmem:[%s10514_s5 + $0x148] ss:$16 sps:$4 sm:$0xff]   ;;  %v7355_v53 = vld [vmem:[%s10514_s5 + $0x164] ss:$16 sps:$4 sm:$0xff]  }
 0x150   :  { %2592 = vmatprep.subr.bf16.mxu0 %v7283_v29  ;;  %2633 = vmatprep.subr.bf16.mxu1 %v7286_v30  ;;  %v7358_v29 = vld [vmem:[%s10514_s5 + $0x16c] ss:$16 sps:$4 sm:$0xff]   ;;  %v7353_v30 = vld [vmem:[%s10514_s5 + $0x160] ss:$16 sps:$4 sm:$0xff]  }
 0x153   :  { %2593 = vmatpush1.bf16.msra.mxu0 %v7281_v7  ;;  %2634 = vmatpush1.bf16.msra.mxu1 %v7284_v60  ;;  %v7356_v7 = vld [vmem:[%s10514_s5 + $0x168] ss:$16 sps:$4 sm:$0xff]   ;;  %v7361_v60 = vld [vmem:[%s10514_s5 + $0x184] ss:$16 sps:$4 sm:$0xff]  }
 0x154   :  { %3468 = vmatprep.subr.bf16.mxu0 %v7289_v33  ;;  %3550 = vmatprep.subr.bf16.mxu1 %v7292_v34  ;;  %v7364_v33 = vld [vmem:[%s10514_s5 + $0x18c] ss:$16 sps:$4 sm:$0xff]   ;;  %v7359_v34 = vld [vmem:[%s10514_s5 + $0x180] ss:$16 sps:$4 sm:$0xff]  }
 0x156   :  { %2595 = vmatmul.mubr.bf16.vlgmr.msra.gmra.mrb[20].mxu0 %v8519_v54  ;;  %2636 = vmatmul.mubr.bf16.vlgmr.msra.gmra.mrb[20].mxu1 %v8721_v4  ;;  %v7302_v54 = vld [vmem:[%s10514_s5 + $0x48] ss:$16 sps:$4 sm:$0xff]   ;;  %v7307_v4 = vld [vmem:[%s10514_s5 + $0x64] ss:$16 sps:$4 sm:$0xff]  }
 0x157   :  { %3469 = vmatpush1.bf16.msra.mxu0 %v7287_v35  ;;  %3551 = vmatpush1.bf16.msra.mxu1 %v7290_v38  ;;  %v7362_v35 = vld [vmem:[%s10514_s5 + $0x188] ss:$16 sps:$4 sm:$0xff]   ;;  %v7367_v38 = vld [vmem:[%s10514_s5 + $0x1a4] ss:$16 sps:$4 sm:$0xff]  }
 0x158   :  { %3470 = vmatprep.subr.bf16.mxu0 %v7295_v39  ;;  %3552 = vmatprep.subr.bf16.mxu1 %v7298_v40  ;;  %v7370_v39 = vld [vmem:[%s10514_s5 + $0x1ac] ss:$16 sps:$4 sm:$0xff]   ;;  %v7365_v40 = vld [vmem:[%s10514_s5 + $0x1a0] ss:$16 sps:$4 sm:$0xff]  }
 0x15b   :  { %3471 = vmatpush1.bf16.msra.mxu0 %v7293_v41  ;;  %3553 = vmatpush1.bf16.msra.mxu1 %v7296_v42  ;;  %v7368_v41 = vld [vmem:[%s10514_s5 + $0x1a8] ss:$16 sps:$4 sm:$0xff]   ;;  %v7373_v42 = vld [vmem:[%s10514_s5 + $0x1c4] ss:$16 sps:$4 sm:$0xff]  }
 0x15c   :  { %3472 = vmatprep.subr.bf16.mxu0 %v7301_v43  ;;  %3554 = vmatprep.subr.bf16.mxu1 %v7304_v44  ;;  %v7376_v43 = vld [vmem:[%s10514_s5 + $0x1cc] ss:$16 sps:$4 sm:$0xff]   ;;  %v7371_v44 = vld [vmem:[%s10514_s5 + $0x1c0] ss:$16 sps:$4 sm:$0xff]  }
 0x15f   :  { %3473 = vmatpush1.bf16.msra.mxu0 %v7299_v45  ;;  %3555 = vmatpush1.bf16.msra.mxu1 %v7302_v54  ;;  %v7374_v45 = vld [vmem:[%s10514_s5 + $0x1c8] ss:$16 sps:$4 sm:$0xff]   ;;  %v7379_v54 = vld [vmem:[%s10514_s5 + $0x1e4] ss:$16 sps:$4 sm:$0xff]  }
 0x160   :  { %3474 = vmatprep.subr.bf16.mxu0 %v7307_v4  ;;  %3556 = vmatprep.subr.bf16.mxu1 %v7310_v46  ;;  %v7382_v4 = vld [vmem:[%s10514_s5 + $0x1ec] ss:$16 sps:$4 sm:$0xff]   ;;  %v7377_v46 = vld [vmem:[%s10514_s5 + $0x1e0] ss:$16 sps:$4 sm:$0xff]  }
 0x163   :  { %3475 = vmatpush1.bf16.msra.mxu0 %v7305_v47  ;;  %3557 = vmatpush1.bf16.msra.mxu1 %v7308_v48  ;;  %v7380_v47 = vld [vmem:[%s10514_s5 + $0x1e8] ss:$16 sps:$4 sm:$0xff]   ;;  %v7385_v48 = vld [vmem:[%s10514_s5 + $0x204] ss:$16 sps:$4 sm:$0xff]  }
 0x164   :  { %3476 = vmatprep.subr.bf16.mxu0 %v7313_v50  ;;  %3558 = vmatprep.subr.bf16.mxu1 %v7316_v51  ;;  %v7388_v50 = vld [vmem:[%s10514_s5 + $0x20c] ss:$16 sps:$4 sm:$0xff]  }
 0x167   :  { %3477 = vmatpush1.bf16.msra.mxu0 %v7311_v52  ;;  %3559 = vmatpush1.bf16.msra.mxu1 %v7314_v55 }
 0x168   :  { %3478 = vmatprep.subr.bf16.mxu0 %v7319_v56  ;;  %3560 = vmatprep.subr.bf16.mxu1 %v7322_v27 }
 0x169   :  { %v2350_v1 = vpop.f32.mrb[8].mxu0  ;;  %v2391_v2 = vpop.f32.mrb[8].mxu1 }
 0x16a   :  { %v2351_v63 = vadd.f32 %v2350_v1, %v9017_v59  ;;  %v2352_v6 = vpop.f32.mrb[9].mxu0  ;;  %v2393_v49 = vpop.f32.mrb[9].mxu1 }
 0x16b   :  { %v2353_v10 = vadd.f32 %v2352_v6, %v9019_v0  ;;  %v2354_v36 = vpop.f32.mrb[10].mxu0  ;;  %v2395_v11 = vpop.f32.mrb[10].mxu1  ;;  %3479 = vmatpush1.bf16.msra.mxu0 %v7317_v57  ;;  %3561 = vmatpush1.bf16.msra.mxu1 %v7320_v61  ;;  %v7332_v0 = vld [vmem:[%s10514_s5 + $0xe8] ss:$16 sps:$4 sm:$0xff]  }
 0x16c   :  { %v9217_v12 = vadd.f32 %v2391_v2, %v2351_v63  ;;  %v2355_v14 = vpop.f32.mrb[11].mxu0  ;;  %v2396_v59 = vpop.f32.mrb[11].mxu1  ;;  %3480 = vmatprep.subr.bf16.mxu0 %v7325_v62  ;;  %3562 = vmatprep.subr.bf16.mxu1 %v7328_v31 }
 0x16d   :  { %v9219_v17 = vadd.f32 %v2393_v49, %v2353_v10 }
 0x16f   :  { %3481 = vmatpush1.bf16.msra.mxu0 %v7323_v3  ;;  %3563 = vmatpush1.bf16.msra.mxu1 %v7326_v13 }
 0x170   :  { %3482 = vmatprep.subr.bf16.mxu0 %v7331_v8  ;;  %3564 = vmatprep.subr.bf16.mxu1 %v7334_v9 }
 0x173   :  { %3483 = vmatpush1.bf16.msra.mxu0 %v7329_v5  ;;  %3565 = vmatpush1.bf16.msra.mxu1 %v7332_v0 }
 0x174   :  { %3484 = vmatprep.subr.bf16.mxu0 %v7337_v15  ;;  %3566 = vmatprep.subr.bf16.mxu1 %v7340_v16 }
 0x177   :  { %3485 = vmatpush1.bf16.msra.mxu0 %v7335_v18  ;;  %3567 = vmatpush1.bf16.msra.mxu1 %v7338_v19 }
 0x178   :  { %3486 = vmatprep.subr.bf16.mxu0 %v7343_v20  ;;  %3568 = vmatprep.subr.bf16.mxu1 %v7346_v21 }
 0x17b   :  { %3487 = vmatpush1.bf16.msra.mxu0 %v7341_v22  ;;  %3569 = vmatpush1.bf16.msra.mxu1 %v7344_v23 }
 0x17c   :  { %3488 = vmatprep.subr.bf16.mxu0 %v7349_v24  ;;  %3570 = vmatprep.subr.bf16.mxu1 %v7352_v25 }
 0x17f   :  { %3489 = vmatpush1.bf16.msra.mxu0 %v7347_v26  ;;  %3571 = vmatpush1.bf16.msra.mxu1 %v7350_v37 }
 0x180   :  { %3490 = vmatprep.subr.bf16.mxu0 %v7355_v53  ;;  %3572 = vmatprep.subr.bf16.mxu1 %v7358_v29 }
 0x183   :  { %3491 = vmatpush1.bf16.msra.mxu0 %v7353_v30  ;;  %3573 = vmatpush1.bf16.msra.mxu1 %v7356_v7 }
 0x184   :  { %3492 = vmatprep.subr.bf16.mxu0 %v7361_v60  ;;  %3574 = vmatprep.subr.bf16.mxu1 %v7364_v33 }
 0x187   :  { %3493 = vmatpush1.bf16.msra.mxu0 %v7359_v34  ;;  %3575 = vmatpush1.bf16.msra.mxu1 %v7362_v35 }
 0x188   :  { %3494 = vmatprep.subr.bf16.mxu0 %v7367_v38  ;;  %3576 = vmatprep.subr.bf16.mxu1 %v7370_v39 }
 0x18b   :  { %3495 = vmatpush1.bf16.msra.mxu0 %v7365_v40  ;;  %3577 = vmatpush1.bf16.msra.mxu1 %v7368_v41 }
 0x18c   :  { %3496 = vmatprep.subr.bf16.mxu0 %v7373_v42  ;;  %3578 = vmatprep.subr.bf16.mxu1 %v7376_v43 }
 0x18f   :  { %3497 = vmatpush1.bf16.msra.mxu0 %v7371_v44  ;;  %3579 = vmatpush1.bf16.msra.mxu1 %v7374_v45 }
 0x190   :  { %3498 = vmatprep.subr.bf16.mxu0 %v7379_v54  ;;  %3580 = vmatprep.subr.bf16.mxu1 %v7382_v4 }
 0x193   :  { %3499 = vmatpush1.bf16.msra.mxu0 %v7377_v46  ;;  %3581 = vmatpush1.bf16.msra.mxu1 %v7380_v47 }
 0x194   :  { %3509 = vmatprep.subr.bf16.mxu0 %v7385_v48  ;;  %3591 = vmatprep.subr.bf16.mxu1 %v7388_v50 }
 0x195   :  { %26 = vsyncpa [#allocation4], 0  ;;  %v9330_v51 = vsub.s32 0, %v8177_v58  ;;  %v9335_v52 = vld [vmem:[%s10513_s4] sm:$0xf]  ;;  %v9338_v55 = vsub.s32 1, %v8177_v58 }
 0x196   :  { %v7391_v59 = vld [vmem:[%s10514_s5 + $0x224] ss:$16 sps:$4 sm:$0xff]   ;;  %v7389_v5 = vld [vmem:[%s10514_s5 + $0x220] ss:$16 sps:$4 sm:$0xff]   ;;  %v7392_v0 = vld [vmem:[%s10514_s5 + $0x228] ss:$16 sps:$4 sm:$0xff]  }
 0x197   :  { %v2649_v56 = vrot.slane %v9335_v52, %v9330_v51  ;;  %v2653_v61 = vrot.slane %v9335_v52, %v9338_v55  ;;  %v7397_v15 = vld [vmem:[%s10514_s5 + $0x244] ss:$16 sps:$4 sm:$0xff]   ;;  %v7400_v16 = vld [vmem:[%s10514_s5 + $0x24c] ss:$16 sps:$4 sm:$0xff]   ;;  %v7395_v18 = vld [vmem:[%s10514_s5 + $0x240] ss:$16 sps:$4 sm:$0xff]  }
 0x198   :  { %v7398_v19 = vld [vmem:[%s10514_s5 + $0x248] ss:$16 sps:$4 sm:$0xff]   ;;  %v7403_v20 = vld [vmem:[%s10514_s5 + $0x264] ss:$16 sps:$4 sm:$0xff]   ;;  %v7406_v21 = vld [vmem:[%s10514_s5 + $0x26c] ss:$16 sps:$4 sm:$0xff]  }
 0x199   :  { %v7401_v22 = vld [vmem:[%s10514_s5 + $0x260] ss:$16 sps:$4 sm:$0xff]   ;;  %v7404_v23 = vld [vmem:[%s10514_s5 + $0x268] ss:$16 sps:$4 sm:$0xff]   ;;  %v7409_v24 = vld [vmem:[%s10514_s5 + $0x284] ss:$16 sps:$4 sm:$0xff]  }
 0x19a   :  { %v7412_v25 = vld [vmem:[%s10514_s5 + $0x28c] ss:$16 sps:$4 sm:$0xff]   ;;  %v7407_v26 = vld [vmem:[%s10514_s5 + $0x280] ss:$16 sps:$4 sm:$0xff]   ;;  %v7410_v37 = vld [vmem:[%s10514_s5 + $0x288] ss:$16 sps:$4 sm:$0xff]  }
 0x19b   :  { %v7415_v53 = vld [vmem:[%s10514_s5 + $0x2a4] ss:$16 sps:$4 sm:$0xff]   ;;  %v7418_v29 = vld [vmem:[%s10514_s5 + $0x2ac] ss:$16 sps:$4 sm:$0xff]   ;;  %v7413_v30 = vld [vmem:[%s10514_s5 + $0x2a0] ss:$16 sps:$4 sm:$0xff]  }
 0x19c   :  { %v7416_v7 = vld [vmem:[%s10514_s5 + $0x2a8] ss:$16 sps:$4 sm:$0xff]   ;;  %v7421_v60 = vld [vmem:[%s10514_s5 + $0x2c4] ss:$16 sps:$4 sm:$0xff]   ;;  %v7424_v33 = vld [vmem:[%s10514_s5 + $0x2cc] ss:$16 sps:$4 sm:$0xff]  }
 0x19d   :  { %v7419_v34 = vld [vmem:[%s10514_s5 + $0x2c0] ss:$16 sps:$4 sm:$0xff]   ;;  %v7422_v35 = vld [vmem:[%s10514_s5 + $0x2c8] ss:$16 sps:$4 sm:$0xff]   ;;  %v7427_v38 = vld [vmem:[%s10514_s5 + $0x2e4] ss:$16 sps:$4 sm:$0xff]  }
 0x19e   :  { %v7430_v39 = vld [vmem:[%s10514_s5 + $0x2ec] ss:$16 sps:$4 sm:$0xff]   ;;  %v7425_v40 = vld [vmem:[%s10514_s5 + $0x2e0] ss:$16 sps:$4 sm:$0xff]   ;;  %v7428_v41 = vld [vmem:[%s10514_s5 + $0x2e8] ss:$16 sps:$4 sm:$0xff]  }
 0x19f   :  { %v7433_v42 = vld [vmem:[%s10514_s5 + $0x304] ss:$16 sps:$4 sm:$0xff]   ;;  %v7436_v43 = vld [vmem:[%s10514_s5 + $0x30c] ss:$16 sps:$4 sm:$0xff]   ;;  %v7431_v44 = vld [vmem:[%s10514_s5 + $0x300] ss:$16 sps:$4 sm:$0xff]  }
 0x1a0   :  { %v7434_v45 = vld [vmem:[%s10514_s5 + $0x308] ss:$16 sps:$4 sm:$0xff]   ;;  %v7439_v54 = vld [vmem:[%s10514_s5 + $0x324] ss:$16 sps:$4 sm:$0xff]   ;;  %v7442_v4 = vld [vmem:[%s10514_s5 + $0x32c] ss:$16 sps:$4 sm:$0xff]  }
 0x1a1   :  { %v7437_v46 = vld [vmem:[%s10514_s5 + $0x320] ss:$16 sps:$4 sm:$0xff]   ;;  %v7440_v47 = vld [vmem:[%s10514_s5 + $0x328] ss:$16 sps:$4 sm:$0xff]   ;;  %v7445_v48 = vld [vmem:[%s10514_s5 + $0x344] ss:$16 sps:$4 sm:$0xff]  }
 0x1a2   :  { %v7448_v50 = vld [vmem:[%s10514_s5 + $0x34c] ss:$16 sps:$4 sm:$0xff]   ;;  %vm5263_vm1 = vcmask 1024   ;;  %vm5922_vm2 = vcmask 58368  }
 0x1a9   :  { %v2432_v27 = vpop.f32.mrb[12].mxu0  ;;  %v2473_v57 = vpop.f32.mrb[12].mxu1 }
 0x1aa   :  { %v2433_v62 = vadd.f32 %v2432_v27, %v9217_v12  ;;  %v9346_v31 = vadd.f32 %v2473_v57, %v8801_v28  ;;  %v2434_v1 = vpop.f32.mrb[13].mxu0  ;;  %v2475_v2 = vpop.f32.mrb[13].mxu1  ;;  %v7383_v12 = vld [vmem:[%s10514_s5 + $0x200] ss:$16 sps:$4 sm:$0xff]   ;;  %v7446_v27 = vld [vmem:[%s10514_s5 + $0x348] ss:$16 sps:$4 sm:$0xff]  }
 0x1ab   :  { %v2435_v3 = vadd.f32 %v2434_v1, %v9219_v17  ;;  %v9350_v13 = vadd.f32 %v2475_v2, %v8811_v32  ;;  %v2436_v63 = vpop.f32.mrb[14].mxu0  ;;  %v2477_v6 = vpop.f32.mrb[14].mxu1  ;;  %v7386_v32 = vld [vmem:[%s10514_s5 + $0x208] ss:$16 sps:$4 sm:$0xff]   ;;  %v7394_v17 = vld [vmem:[%s10514_s5 + $0x22c] ss:$16 sps:$4 sm:$0xff]  }
 0x1ac   :  { %v2666_v49 = vadd.f32 %v2649_v56, %v2433_v62  ;;  %v2437_v8 = vpop.f32.mrb[15].mxu0  ;;  %v2478_v9 = vpop.f32.mrb[15].mxu1  ;;  %v7443_v56 = vld [vmem:[%s10514_s5 + $0x340] ss:$16 sps:$4 sm:$0xff]   ;;  %v7451_v57 = vld [vmem:[%s10514_s5 + $0x364] ss:$16 sps:$4 sm:$0xff]  }
 0x1ad   :  { %v2667_v10 = vadd.f32 %v2653_v61, %v2435_v3  ;;  %v7454_v61 = vld [vmem:[%s10514_s5 + $0x36c] ss:$16 sps:$4 sm:$0xff]   ;;  %v7449_v62 = vld [vmem:[%s10514_s5 + $0x360] ss:$16 sps:$4 sm:$0xff]   ;;  %v7452_v1 = vld [vmem:[%s10514_s5 + $0x368] ss:$16 sps:$4 sm:$0xff]  }
 0x1ae   :  { %v9352_v36 = vmax.f32 %v2666_v49, 0.0  ;;  %v7457_v2 = vld [vmem:[%s10514_s5 + $0x384] ss:$16 sps:$4 sm:$0xff]   ;;  %v7460_v3 = vld [vmem:[%s10514_s5 + $0x38c] ss:$16 sps:$4 sm:$0xff]  }
 0x1af   :  { %v9354_v11 = vmax.f32 %v2667_v10, 0.0  ;;  %v7455_v63 = vld [vmem:[%s10514_s5 + $0x380] ss:$16 sps:$4 sm:$0xff]   ;;  %v7458_v6 = vld [vmem:[%s10514_s5 + $0x388] ss:$16 sps:$4 sm:$0xff]  }
 0x1b0   :  { %v2674_v14 = vpack.c.bf16 %v9352_v36, %v9352_v36  ;;  %v7463_v49 = vld [vmem:[%s10514_s5 + $0x3a4] ss:$16 sps:$4 sm:$0xff]   ;;  %v7466_v8 = vld [vmem:[%s10514_s5 + $0x3ac] ss:$16 sps:$4 sm:$0xff]   ;;  %v7461_v9 = vld [vmem:[%s10514_s5 + $0x3a0] ss:$16 sps:$4 sm:$0xff]  }
 0x1b1   :  { %v2675_v28 = vpack.c.bf16 %v9354_v11, %v9354_v11  ;;  %v7464_v10 = vld [vmem:[%s10514_s5 + $0x3a8] ss:$16 sps:$4 sm:$0xff]  }
 0x1b3   :  { %3500 = vmatprep.mubr.bf16.mxu0 %v2675_v28  ;;  %3582 = vmatprep.mubr.bf16.mxu1 %v2675_v28  ;;  %v7469_v28 = vld [vmem:[%s10514_s5 + $0x3c4] ss:$16 sps:$4 sm:$0xff]  }
 0x1b4   :  { %3501 = vmatmul.mubr.bf16.vlgmr.msra.gmra.mrb[24].mxu0 %v2674_v14  ;;  %3583 = vmatmul.mubr.bf16.vlgmr.msra.gmra.mrb[24].mxu1 %v2674_v14 }
 0x1b5   :  { %3510 = vmatpush1.bf16.msra.mxu0 %v7383_v12  ;;  %3592 = vmatpush1.bf16.msra.mxu1 %v7386_v32  ;;  %v7472_v12 = vld [vmem:[%s10514_s5 + $0x3cc] ss:$16 sps:$4 sm:$0xff]  }
 0x1b6   :  { %3511 = vmatprep.subr.bf16.mxu0 %v7391_v59  ;;  %3593 = vmatprep.subr.bf16.mxu1 %v7394_v17  ;;  %v7467_v59 = vld [vmem:[%s10514_s5 + $0x3c0] ss:$16 sps:$4 sm:$0xff]   ;;  %v7470_v17 = vld [vmem:[%s10514_s5 + $0x3c8] ss:$16 sps:$4 sm:$0xff]  }
 0x1b9   :  { %3512 = vmatpush1.bf16.msra.mxu0 %v7389_v5  ;;  %3594 = vmatpush1.bf16.msra.mxu1 %v7392_v0 }
 0x1ba   :  { %3513 = vmatprep.subr.bf16.mxu0 %v7397_v15  ;;  %3595 = vmatprep.subr.bf16.mxu1 %v7400_v16  ;;  %v7475_v16 = vld [vmem:[%s10514_s5 + $0x3e4] ss:$16 sps:$4 sm:$0xff]  }
 0x1bd   :  { %3514 = vmatpush1.bf16.msra.mxu0 %v7395_v18  ;;  %3596 = vmatpush1.bf16.msra.mxu1 %v7398_v19  ;;  %v7478_v18 = vld [vmem:[%s10514_s5 + $0x3ec] ss:$16 sps:$4 sm:$0xff]  }
 0x1be   :  { %3515 = vmatprep.subr.bf16.mxu0 %v7403_v20  ;;  %3597 = vmatprep.subr.bf16.mxu1 %v7406_v21 }
 0x1c1   :  { %3516 = vmatpush1.bf16.msra.mxu0 %v7401_v22  ;;  %3598 = vmatpush1.bf16.msra.mxu1 %v7404_v23 }
 0x1c2   :  { %3517 = vmatprep.subr.bf16.mxu0 %v7409_v24  ;;  %3599 = vmatprep.subr.bf16.mxu1 %v7412_v25  ;;  %v7473_v25 = vld [vmem:[%s10514_s5 + $0x3e0] ss:$16 sps:$4 sm:$0xff]  }
 0x1c5   :  { %3518 = vmatpush1.bf16.msra.mxu0 %v7407_v26  ;;  %3600 = vmatpush1.bf16.msra.mxu1 %v7410_v37  ;;  %v7476_v26 = vld [vmem:[%s10514_s5 + $0x3e8] ss:$16 sps:$4 sm:$0xff]   ;;  %v7484_v37 = vld [vmem:[%s10516_s7 + $0x204] ss:$16 sps:$4 sm:$0xff]  }
 0x1c6   :  { %3519 = vmatprep.subr.bf16.mxu0 %v7415_v53  ;;  %3601 = vmatprep.subr.bf16.mxu1 %v7418_v29  ;;  %v9555_v53 = vsub.s32 2, %v8177_v58  ;;  %v9558_v29 = vsub.s32 3, %v8177_v58 }
 0x1c9   :  { %3520 = vmatpush1.bf16.msra.mxu0 %v7413_v30  ;;  %3602 = vmatpush1.bf16.msra.mxu1 %v7416_v7 }
 0x1ca   :  { %3521 = vmatprep.subr.bf16.mxu0 %v7421_v60  ;;  %3603 = vmatprep.subr.bf16.mxu1 %v7424_v33  ;;  %v2657_v33 = vrot.slane %v9335_v52, %v9555_v53 }
 0x1cd   :  { %3522 = vmatpush1.bf16.msra.mxu0 %v7419_v34  ;;  %3604 = vmatpush1.bf16.msra.mxu1 %v7422_v35 }
 0x1ce   :  { %3523 = vmatprep.subr.bf16.mxu0 %v7427_v38  ;;  %3605 = vmatprep.subr.bf16.mxu1 %v7430_v39  ;;  %v2661_v39 = vrot.slane %v9335_v52, %v9558_v29  ;;  %v7482_v52 = vld [vmem:[%s10516_s7 + $0x200] ss:$16 sps:$4 sm:$0xff]  }
 0x1d1   :  { %3524 = vmatpush1.bf16.msra.mxu0 %v7425_v40  ;;  %3606 = vmatpush1.bf16.msra.mxu1 %v7428_v41 }
 0x1d2   :  { %3525 = vmatprep.subr.bf16.mxu0 %v7433_v42  ;;  %3607 = vmatprep.subr.bf16.mxu1 %v7436_v43 }
 0x1d5   :  { %3526 = vmatpush1.bf16.msra.mxu0 %v7431_v44  ;;  %3608 = vmatpush1.bf16.msra.mxu1 %v7434_v45 }
 0x1d6   :  { %3527 = vmatprep.subr.bf16.mxu0 %v7439_v54  ;;  %3609 = vmatprep.subr.bf16.mxu1 %v7442_v4 }
 0x1d9   :  { %3528 = vmatpush1.bf16.msra.mxu0 %v7437_v46  ;;  %3610 = vmatpush1.bf16.msra.mxu1 %v7440_v47 }
 0x1da   :  { %3529 = vmatprep.subr.bf16.mxu0 %v7445_v48  ;;  %3611 = vmatprep.subr.bf16.mxu1 %v7448_v50  ;;  %v7479_v48 = vld [vmem:[%s10516_s7] ss:$16 sps:$4 sm:$0xff]  }
 0x1dd   :  { %3530 = vmatpush1.bf16.msra.mxu0 %v7443_v56  ;;  %3612 = vmatpush1.bf16.msra.mxu1 %v7446_v27  ;;  %v7487_v56 = vld [vmem:[%s10516_s7 + $0x24] ss:$16 sps:$4 sm:$0xff]  }
 0x1de   :  { %3531 = vmatprep.subr.bf16.mxu0 %v7451_v57  ;;  %3613 = vmatprep.subr.bf16.mxu1 %v7454_v61  ;;  %v7490_v27 = vld [vmem:[%s10516_s7 + $0x224] ss:$16 sps:$4 sm:$0xff]   ;;  %v7485_v57 = vld [vmem:[%s10516_s7 + $0x20] ss:$16 sps:$4 sm:$0xff]  }
 0x1df   :  { %v7488_v61 = vld [vmem:[%s10516_s7 + $0x220] ss:$16 sps:$4 sm:$0xff]  }
 0x1e1   :  { %3532 = vmatpush1.bf16.msra.mxu0 %v7449_v62  ;;  %3614 = vmatpush1.bf16.msra.mxu1 %v7452_v1  ;;  %v7493_v62 = vld [vmem:[%s10516_s7 + $0x44] ss:$16 sps:$4 sm:$0xff]  }
 0x1e2   :  { %3533 = vmatprep.subr.bf16.mxu0 %v7457_v2  ;;  %3615 = vmatprep.subr.bf16.mxu1 %v7460_v3  ;;  %v7496_v1 = vld [vmem:[%s10516_s7 + $0x244] ss:$16 sps:$4 sm:$0xff]   ;;  %v7491_v2 = vld [vmem:[%s10516_s7 + $0x40] ss:$16 sps:$4 sm:$0xff]  }
 0x1e3   :  { %v7494_v3 = vld [vmem:[%s10516_s7 + $0x240] ss:$16 sps:$4 sm:$0xff]  }
 0x1e5   :  { %3534 = vmatpush1.bf16.msra.mxu0 %v7455_v63  ;;  %3616 = vmatpush1.bf16.msra.mxu1 %v7458_v6  ;;  %v7499_v63 = vld [vmem:[%s10516_s7 + $0x64] ss:$16 sps:$4 sm:$0xff]  }
 0x1e6   :  { %3535 = vmatprep.subr.bf16.mxu0 %v7463_v49  ;;  %3617 = vmatprep.subr.bf16.mxu1 %v7466_v8  ;;  %v7502_v6 = vld [vmem:[%s10516_s7 + $0x264] ss:$16 sps:$4 sm:$0xff]   ;;  %v7497_v49 = vld [vmem:[%s10516_s7 + $0x60] ss:$16 sps:$4 sm:$0xff]  }
 0x1e7   :  { %v7500_v8 = vld [vmem:[%s10516_s7 + $0x260] ss:$16 sps:$4 sm:$0xff]  }
 0x1e9   :  { %v2514_v32 = vpop.f32.mrb[16].mxu0  ;;  %v2555_v14 = vpop.f32.mrb[16].mxu1  ;;  %3536 = vmatpush1.bf16.msra.mxu0 %v7461_v9  ;;  %3618 = vmatpush1.bf16.msra.mxu1 %v7464_v10  ;;  %v7505_v9 = vld [vmem:[%s10516_s7 + $0x84] ss:$16 sps:$4 sm:$0xff]  }
 0x1ea   :  { %v2515_v5 = vadd.f32 %v2514_v32, %v9346_v31  ;;  %v2516_v0 = vpop.f32.mrb[17].mxu0  ;;  %v2557_v15 = vpop.f32.mrb[17].mxu1  ;;  %3537 = vmatprep.subr.bf16.mxu0 %v7469_v28  ;;  %3619 = vmatprep.subr.bf16.mxu1 %v7472_v12  ;;  %v7508_v10 = vld [vmem:[%s10516_s7 + $0x284] ss:$16 sps:$4 sm:$0xff]   ;;  %v7503_v28 = vld [vmem:[%s10516_s7 + $0x80] ss:$16 sps:$4 sm:$0xff]  }
 0x1eb   :  { %v2517_v19 = vadd.f32 %v2516_v0, %v9350_v13  ;;  %v2518_v20 = vpop.f32.mrb[18].mxu0  ;;  %v2559_v21 = vpop.f32.mrb[18].mxu1  ;;  %v7481_v13 = vld [vmem:[%s10516_s7 + $0x4] ss:$16 sps:$4 sm:$0xff]   ;;  %v7506_v12 = vld [vmem:[%s10516_s7 + $0x280] ss:$16 sps:$4 sm:$0xff]  }
 0x1ec   :  { %v2556_v22 = vadd.f32 %v2555_v14, %v2515_v5  ;;  %v2519_v23 = vpop.f32.mrb[19].mxu0  ;;  %v2560_v24 = vpop.f32.mrb[19].mxu1  ;;  %v7511_v32 = vld [vmem:[%s10516_s7 + $0xa4] ss:$16 sps:$4 sm:$0xff]   ;;  %v7521_v20 = vld [vmem:[%s10516_s7 + $0xe0] ss:$16 sps:$4 sm:$0xff]  }
 0x1ed   :  { %v2558_v31 = vadd.f32 %v2557_v15, %v2517_v19  ;;  %3538 = vmatpush1.bf16.msra.mxu0 %v7467_v59  ;;  %3620 = vmatpush1.bf16.msra.mxu1 %v7470_v17  ;;  %v7514_v14 = vld [vmem:[%s10516_s7 + $0x2a4] ss:$16 sps:$4 sm:$0xff]   ;;  %v7509_v59 = vld [vmem:[%s10516_s7 + $0xa0] ss:$16 sps:$4 sm:$0xff]  }
 0x1ee   :  { %3539 = vmatprep.subr.bf16.mxu0 %v7475_v16  ;;  %3621 = vmatprep.subr.bf16.mxu1 %v7478_v18  ;;  %v7512_v17 = vld [vmem:[%s10516_s7 + $0x2a0] ss:$16 sps:$4 sm:$0xff]   ;;  %v7517_v5 = vld [vmem:[%s10516_s7 + $0xc4] ss:$16 sps:$4 sm:$0xff]  }
 0x1ef   :  { %v7520_v0 = vld [vmem:[%s10516_s7 + $0x2c4] ss:$16 sps:$4 sm:$0xff]   ;;  %v7515_v15 = vld [vmem:[%s10516_s7 + $0xc0] ss:$16 sps:$4 sm:$0xff]  }
 0x1f0   :  { %v7518_v16 = vld [vmem:[%s10516_s7 + $0x2c0] ss:$16 sps:$4 sm:$0xff]   ;;  %v7523_v18 = vld [vmem:[%s10516_s7 + $0xe4] ss:$16 sps:$4 sm:$0xff]  }
 0x1f1   :  { %3540 = vmatpush1.bf16.msra.mxu0 %v7473_v25  ;;  %3622 = vmatpush1.bf16.msra.mxu1 %v7476_v26  ;;  %v7526_v19 = vld [vmem:[%s10516_s7 + $0x2e4] ss:$16 sps:$4 sm:$0xff]   ;;  %v7524_v21 = vld [vmem:[%s10516_s7 + $0x2e0] ss:$16 sps:$4 sm:$0xff]  }
 0x1f2   :  { %4430 = vmatprep.subr.bf16.mxu0 %v7481_v13  ;;  %4471 = vmatprep.subr.bf16.mxu1 %v7484_v37  ;;  %v7532_v23 = vld [vmem:[%s10516_s7 + $0x304] ss:$16 sps:$4 sm:$0xff]   ;;  %v7527_v24 = vld [vmem:[%s10516_s7 + $0x100] ss:$16 sps:$4 sm:$0xff]  }
 0x1f3   :  { %v7535_v25 = vld [vmem:[%s10516_s7 + $0x124] ss:$16 sps:$4 sm:$0xff]   ;;  %v7533_v13 = vld [vmem:[%s10516_s7 + $0x120] ss:$16 sps:$4 sm:$0xff]  }
 0x1f4   :  { %v7538_v26 = vld [vmem:[%s10516_s7 + $0x324] ss:$16 sps:$4 sm:$0xff]   ;;  %v7536_v37 = vld [vmem:[%s10516_s7 + $0x320] ss:$16 sps:$4 sm:$0xff]  }
 0x229   :  { %v2596_v30 = vpop.f32.mrb[20].mxu0  ;;  %v2637_v7 = vpop.f32.mrb[20].mxu1 }
 0x22a   :  { %v2597_v60 = vadd.f32 %v2596_v30, %v2556_v22  ;;  %v2598_v34 = vpop.f32.mrb[21].mxu0  ;;  %v2639_v35 = vpop.f32.mrb[21].mxu1  ;;  %v7529_v22 = vld [vmem:[%s10516_s7 + $0x104] ss:$16 sps:$4 sm:$0xff]  }
 0x22b   :  { %v2599_v38 = vadd.f32 %v2598_v34, %v2558_v31  ;;  %v2600_v40 = vpop.f32.mrb[22].mxu0  ;;  %v2641_v41 = vpop.f32.mrb[22].mxu1  ;;  %v7530_v31 = vld [vmem:[%s10516_s7 + $0x300] ss:$16 sps:$4 sm:$0xff]   ;;  %v7541_v30 = vld [vmem:[%s10516_s7 + $0x144] ss:$16 sps:$4 sm:$0xff]  }
 0x22c   :  { %v2638_v42 = vadd.f32 %v2637_v7, %v2597_v60  ;;  %v2601_v43 = vpop.f32.mrb[23].mxu0  ;;  %v2642_v44 = vpop.f32.mrb[23].mxu1  ;;  %v7544_v7 = vld [vmem:[%s10516_s7 + $0x344] ss:$16 sps:$4 sm:$0xff]   ;;  %v7539_v60 = vld [vmem:[%s10516_s7 + $0x140] ss:$16 sps:$4 sm:$0xff]  }
 0x22d   :  { %v2640_v45 = vadd.f32 %v2639_v35, %v2599_v38  ;;  %v7547_v34 = vld [vmem:[%s10516_s7 + $0x164] ss:$16 sps:$4 sm:$0xff]   ;;  %v7545_v38 = vld [vmem:[%s10516_s7 + $0x160] ss:$16 sps:$4 sm:$0xff]  }
 0x22e   :  { %v2668_v58 = vadd.f32 %v2657_v33, %v2638_v42  ;;  %v7542_v33 = vld [vmem:[%s10516_s7 + $0x340] ss:$16 sps:$4 sm:$0xff]   ;;  %v7550_v35 = vld [vmem:[%s10516_s7 + $0x364] ss:$16 sps:$4 sm:$0xff]  }
 0x22f   :  { %v2669_v54 = vadd.f32 %v2661_v39, %v2640_v45  ;;  %v7548_v39 = vld [vmem:[%s10516_s7 + $0x360] ss:$16 sps:$4 sm:$0xff]   ;;  %v7553_v40 = vld [vmem:[%s10516_s7 + $0x184] ss:$16 sps:$4 sm:$0xff]  }
 0x230   :  { %v9564_v4 = vmax.f32 %v2668_v58, 0.0  ;;  %v7556_v41 = vld [vmem:[%s10516_s7 + $0x384] ss:$16 sps:$4 sm:$0xff]   ;;  %v7551_v42 = vld [vmem:[%s10516_s7 + $0x180] ss:$16 sps:$4 sm:$0xff]  }
 0x231   :  { %v9566_v46 = vmax.f32 %v2669_v54, 0.0  ;;  %v7554_v43 = vld [vmem:[%s10516_s7 + $0x380] ss:$16 sps:$4 sm:$0xff]   ;;  %v7559_v44 = vld [vmem:[%s10516_s7 + $0x1a4] ss:$16 sps:$4 sm:$0xff]  }
 0x232   :  { %v2676_v50 = vpack.c.bf16 %v9564_v4, %v9564_v4  ;;  %v7562_v45 = vld [vmem:[%s10516_s7 + $0x3a4] ss:$16 sps:$4 sm:$0xff]   ;;  %v7557_v58 = vld [vmem:[%s10516_s7 + $0x1a0] ss:$16 sps:$4 sm:$0xff]  }
 0x233   :  { %v2677_v47 = vpack.c.bf16 %v9566_v46, %v9566_v46  ;;  %v7560_v54 = vld [vmem:[%s10516_s7 + $0x3a0] ss:$16 sps:$4 sm:$0xff]  }
 0x235   :  { %3541 = vmatprep.mubr.bf16.mxu0 %v2677_v47  ;;  %3623 = vmatprep.mubr.bf16.mxu1 %v2677_v47  ;;  %v7565_v47 = vld [vmem:[%s10516_s7 + $0x1c4] ss:$16 sps:$4 sm:$0xff]  }
 0x236   :  { %3542 = vmatmul.mubr.bf16.vlgmr.msra.gmra.mrb[24].mxu0 %v2676_v50  ;;  %3624 = vmatmul.mubr.bf16.vlgmr.msra.gmra.mrb[24].mxu1 %v2676_v50  ;;  %v7566_v50 = vld [vmem:[%s10516_s7 + $0x3c0] ss:$16 sps:$4 sm:$0xff]  }
 0x237   :  { %4431 = vmatpush1.bf16.msra.mxu0 %v7479_v48  ;;  %4472 = vmatpush1.bf16.msra.mxu1 %v7482_v52  ;;  %v7568_v48 = vld [vmem:[%s10516_s7 + $0x3c4] ss:$16 sps:$4 sm:$0xff]   ;;  %v7563_v52 = vld [vmem:[%s10516_s7 + $0x1c0] ss:$16 sps:$4 sm:$0xff]  }
 0x238   :  { %4432 = vmatprep.subr.bf16.mxu0 %v7487_v56  ;;  %4473 = vmatprep.subr.bf16.mxu1 %v7490_v27  ;;  %v7571_v56 = vld [vmem:[%s10516_s7 + $0x1e4] ss:$16 sps:$4 sm:$0xff]  }
 0x239   :  { %v7574_v27 = vld [vmem:[%s10516_s7 + $0x3e4] ss:$16 sps:$4 sm:$0xff]  }
 0x23b   :  { %4433 = vmatpush1.bf16.msra.mxu0 %v7485_v57  ;;  %4474 = vmatpush1.bf16.msra.mxu1 %v7488_v61  ;;  %v7569_v57 = vld [vmem:[%s10516_s7 + $0x1e0] ss:$16 sps:$4 sm:$0xff]  }
 0x23c   :  { %4434 = vmatprep.subr.bf16.mxu0 %v7493_v62  ;;  %4475 = vmatprep.subr.bf16.mxu1 %v7496_v1  ;;  %v7572_v61 = vld [vmem:[%s10516_s7 + $0x3e0] ss:$16 sps:$4 sm:$0xff]   ;;  %v7577_v62 = vld [vmem:[%s10516_s7 + $0xc] ss:$16 sps:$4 sm:$0xff]  }
 0x23d   :  { %v7580_v1 = vld [vmem:[%s10516_s7 + $0x20c] ss:$16 sps:$4 sm:$0xff]  }
 0x23f   :  { %4435 = vmatpush1.bf16.msra.mxu0 %v7491_v2  ;;  %4476 = vmatpush1.bf16.msra.mxu1 %v7494_v3  ;;  %v2806_v2 = vld [vmem:[%s10515_s6] sm:$0xf] }
 0x240   :  { %4436 = vmatprep.subr.bf16.mxu0 %v7499_v63  ;;  %4477 = vmatprep.subr.bf16.mxu1 %v7502_v6  ;;  %v2811_v3 = vrot.slane %v2806_v2, %v9330_v51  ;;  %v2819_v63 = vrot.slane %v2806_v2, %v9555_v53  ;;  %v2815_v6 = vrot.slane %v2806_v2, %v9338_v55 }
 0x243   :  { %4437 = vmatpush1.bf16.msra.mxu0 %v7497_v49  ;;  %4478 = vmatpush1.bf16.msra.mxu1 %v7500_v8  ;;  %v2823_v49 = vrot.slane %v2806_v2, %v9558_v29  ;;  %v7628_v2 = vld [vmem:[%s10516_s7 + $0x30c] ss:$16 sps:$4 sm:$0xff]  }
 0x244   :  { %4438 = vmatprep.subr.bf16.mxu0 %v7505_v9  ;;  %4479 = vmatprep.subr.bf16.mxu1 %v7508_v10 }
 0x247   :  { %4439 = vmatpush1.bf16.msra.mxu0 %v7503_v28  ;;  %4480 = vmatpush1.bf16.msra.mxu1 %v7506_v12 }
 0x248   :  { %4440 = vmatprep.subr.bf16.mxu0 %v7511_v32  ;;  %4481 = vmatprep.subr.bf16.mxu1 %v7514_v14 }
 0x24b   :  { %4441 = vmatpush1.bf16.msra.mxu0 %v7509_v59  ;;  %4482 = vmatpush1.bf16.msra.mxu1 %v7512_v17 }
 0x24c   :  { %4442 = vmatprep.subr.bf16.mxu0 %v7517_v5  ;;  %4483 = vmatprep.subr.bf16.mxu1 %v7520_v0 }
 0x24f   :  { %4443 = vmatpush1.bf16.msra.mxu0 %v7515_v15  ;;  %4484 = vmatpush1.bf16.msra.mxu1 %v7518_v16 }
 0x250   :  { %4444 = vmatprep.subr.bf16.mxu0 %v7523_v18  ;;  %4485 = vmatprep.subr.bf16.mxu1 %v7526_v19 }
 0x253   :  { %4445 = vmatpush1.bf16.msra.mxu0 %v7521_v20  ;;  %4486 = vmatpush1.bf16.msra.mxu1 %v7524_v21 }
 0x254   :  { %4446 = vmatprep.subr.bf16.mxu0 %v7529_v22  ;;  %4487 = vmatprep.subr.bf16.mxu1 %v7532_v23  ;;  %v7575_v23 = vld [vmem:[%s10516_s7 + $0x8] ss:$16 sps:$4 sm:$0xff]  }
 0x257   :  { %4447 = vmatpush1.bf16.msra.mxu0 %v7527_v24  ;;  %4488 = vmatpush1.bf16.msra.mxu1 %v7530_v31  ;;  %v7578_v24 = vld [vmem:[%s10516_s7 + $0x208] ss:$16 sps:$4 sm:$0xff]  }
 0x258   :  { %4448 = vmatprep.subr.bf16.mxu0 %v7535_v25  ;;  %4489 = vmatprep.subr.bf16.mxu1 %v7538_v26  ;;  %v7583_v26 = vld [vmem:[%s10516_s7 + $0x2c] ss:$16 sps:$4 sm:$0xff]  }
 0x25b   :  { %4449 = vmatpush1.bf16.msra.mxu0 %v7533_v13  ;;  %4490 = vmatpush1.bf16.msra.mxu1 %v7536_v37  ;;  %v7586_v13 = vld [vmem:[%s10516_s7 + $0x22c] ss:$16 sps:$4 sm:$0xff]   ;;  %v7581_v37 = vld [vmem:[%s10516_s7 + $0x28] ss:$16 sps:$4 sm:$0xff]  }
 0x25c   :  { %4450 = vmatprep.subr.bf16.mxu0 %v7541_v30  ;;  %4491 = vmatprep.subr.bf16.mxu1 %v7544_v7  ;;  %v7584_v30 = vld [vmem:[%s10516_s7 + $0x228] ss:$16 sps:$4 sm:$0xff]   ;;  %v7589_v7 = vld [vmem:[%s10516_s7 + $0x4c] ss:$16 sps:$4 sm:$0xff]  }
 0x25f   :  { %4451 = vmatpush1.bf16.msra.mxu0 %v7539_v60  ;;  %4492 = vmatpush1.bf16.msra.mxu1 %v7542_v33  ;;  %v7592_v60 = vld [vmem:[%s10516_s7 + $0x24c] ss:$16 sps:$4 sm:$0xff]   ;;  %v7587_v33 = vld [vmem:[%s10516_s7 + $0x48] ss:$16 sps:$4 sm:$0xff]  }
 0x260   :  { %4452 = vmatprep.subr.bf16.mxu0 %v7547_v34  ;;  %4493 = vmatprep.subr.bf16.mxu1 %v7550_v35  ;;  %v7590_v34 = vld [vmem:[%s10516_s7 + $0x248] ss:$16 sps:$4 sm:$0xff]   ;;  %v7595_v35 = vld [vmem:[%s10516_s7 + $0x6c] ss:$16 sps:$4 sm:$0xff]  }
 0x263   :  { %4453 = vmatpush1.bf16.msra.mxu0 %v7545_v38  ;;  %4494 = vmatpush1.bf16.msra.mxu1 %v7548_v39  ;;  %v7598_v38 = vld [vmem:[%s10516_s7 + $0x26c] ss:$16 sps:$4 sm:$0xff]   ;;  %v7593_v39 = vld [vmem:[%s10516_s7 + $0x68] ss:$16 sps:$4 sm:$0xff]  }
 0x264   :  { %4454 = vmatprep.subr.bf16.mxu0 %v7553_v40  ;;  %4495 = vmatprep.subr.bf16.mxu1 %v7556_v41  ;;  %v7596_v40 = vld [vmem:[%s10516_s7 + $0x268] ss:$16 sps:$4 sm:$0xff]   ;;  %v7601_v41 = vld [vmem:[%s10516_s7 + $0x8c] ss:$16 sps:$4 sm:$0xff]  }
 0x267   :  { %4455 = vmatpush1.bf16.msra.mxu0 %v7551_v42  ;;  %4496 = vmatpush1.bf16.msra.mxu1 %v7554_v43  ;;  %v7604_v42 = vld [vmem:[%s10516_s7 + $0x28c] ss:$16 sps:$4 sm:$0xff]   ;;  %v7599_v43 = vld [vmem:[%s10516_s7 + $0x88] ss:$16 sps:$4 sm:$0xff]  }
 0x268   :  { %4456 = vmatprep.subr.bf16.mxu0 %v7559_v44  ;;  %4497 = vmatprep.subr.bf16.mxu1 %v7562_v45  ;;  %v7602_v44 = vld [vmem:[%s10516_s7 + $0x288] ss:$16 sps:$4 sm:$0xff]   ;;  %v7607_v45 = vld [vmem:[%s10516_s7 + $0xac] ss:$16 sps:$4 sm:$0xff]  }
 0x26b   :  { %4457 = vmatpush1.bf16.msra.mxu0 %v7557_v58  ;;  %4498 = vmatpush1.bf16.msra.mxu1 %v7560_v54  ;;  %v7610_v58 = vld [vmem:[%s10516_s7 + $0x2ac] ss:$16 sps:$4 sm:$0xff]   ;;  %v7605_v54 = vld [vmem:[%s10516_s7 + $0xa8] ss:$16 sps:$4 sm:$0xff]  }
 0x26c   :  { %4458 = vmatprep.subr.bf16.mxu0 %v7565_v47  ;;  %4499 = vmatprep.subr.bf16.mxu1 %v7568_v48  ;;  %v7608_v47 = vld [vmem:[%s10516_s7 + $0x2a8] ss:$16 sps:$4 sm:$0xff]   ;;  %v7613_v48 = vld [vmem:[%s10516_s7 + $0xcc] ss:$16 sps:$4 sm:$0xff]  }
 0x26f   :  { %4459 = vmatpush1.bf16.msra.mxu0 %v7563_v52  ;;  %4500 = vmatpush1.bf16.msra.mxu1 %v7566_v50  ;;  %v7616_v52 = vld [vmem:[%s10516_s7 + $0x2cc] ss:$16 sps:$4 sm:$0xff]   ;;  %v7611_v50 = vld [vmem:[%s10516_s7 + $0xc8] ss:$16 sps:$4 sm:$0xff]  }
 0x270   :  { %4460 = vmatprep.subr.bf16.mxu0 %v7571_v56  ;;  %4501 = vmatprep.subr.bf16.mxu1 %v7574_v27  ;;  %v7614_v56 = vld [vmem:[%s10516_s7 + $0x2c8] ss:$16 sps:$4 sm:$0xff]   ;;  %v7619_v27 = vld [vmem:[%s10516_s7 + $0xec] ss:$16 sps:$4 sm:$0xff]  }
 0x273   :  { %4461 = vmatpush1.bf16.msra.mxu0 %v7569_v57  ;;  %4502 = vmatpush1.bf16.msra.mxu1 %v7572_v61  ;;  %v7622_v57 = vld [vmem:[%s10516_s7 + $0x2ec] ss:$16 sps:$4 sm:$0xff]   ;;  %v7617_v61 = vld [vmem:[%s10516_s7 + $0xe8] ss:$16 sps:$4 sm:$0xff]  }
 0x274   :  { %4512 = vmatprep.subr.bf16.mxu0 %v7577_v62  ;;  %4553 = vmatprep.subr.bf16.mxu1 %v7580_v1  ;;  %v7620_v62 = vld [vmem:[%s10516_s7 + $0x2e8] ss:$16 sps:$4 sm:$0xff]   ;;  %v7625_v1 = vld [vmem:[%s10516_s7 + $0x10c] ss:$16 sps:$4 sm:$0xff]  }
 0x309   :  { %v3543_v8 = vpop.f32.mrb[24].mxu0  ;;  %v3625_v9 = vpop.f32.mrb[24].mxu1 }
 0x30a   :  { %v6754_v10 = vadd.f32 %v3543_v8, %v2811_v3  ;;  %v6756_v28 = vadd.f32 %v3625_v9, %v2819_v63  ;;  %v3545_v12 = vpop.f32.mrb[25].mxu0  ;;  %v3627_v32 = vpop.f32.mrb[25].mxu1  ;;  %v7623_v3 = vld [vmem:[%s10516_s7 + $0x108] ss:$16 sps:$4 sm:$0xff]  }
 0x30b   :  { %v6755_v14 = vadd.f32 %v3545_v12, %v2815_v6  ;;  %v6757_v59 = vadd.f32 %v3627_v32, %v2823_v49  ;;  %v3547_v17 = vpop.f32.mrb[26].mxu0  ;;  %v3629_v5 = vpop.f32.mrb[26].mxu1  ;;  %v7626_v63 = vld [vmem:[%s10516_s7 + $0x308] ss:$16 sps:$4 sm:$0xff]   ;;  %v7631_v6 = vld [vmem:[%s10516_s7 + $0x12c] ss:$16 sps:$4 sm:$0xff]  }
 0x30c   :  { %v3632_v0 = vmax.f32 %v6754_v10, 0.0  ;;  %v3634_v15 = vmax.f32 %v6756_v28, 0.0  ;;  %v3548_v16 = vpop.f32.mrb[27].mxu0  ;;  %v3630_v18 = vpop.f32.mrb[27].mxu1  ;;  %v7634_v49 = vld [vmem:[%s10516_s7 + $0x32c] ss:$16 sps:$4 sm:$0xff]  }
 0x30d   :  { %v3633_v19 = vmax.f32 %v6755_v14, 0.0  ;;  %v3635_v20 = vmax.f32 %v6757_v59, 0.0  ;;  %v7629_v8 = vld [vmem:[%s10516_s7 + $0x128] ss:$16 sps:$4 sm:$0xff]   ;;  %v7637_v10 = vld [vmem:[%s10516_s7 + $0x14c] ss:$16 sps:$4 sm:$0xff]  }
 0x30e   :  { %v9777_v31 = vpack.c.bf16 %v3632_v0, %v3632_v0  ;;  %v9779_v25 = vpack.c.bf16 %v3634_v15, %v3634_v15  ;;  %v7632_v9 = vld [vmem:[%s10516_s7 + $0x328] ss:$16 sps:$4 sm:$0xff]   ;;  %v7640_v28 = vld [vmem:[%s10516_s7 + $0x34c] ss:$16 sps:$4 sm:$0xff]  }
 0x30f   :  { %v3637_v21 = vpack.c.bf16 %v3633_v19, %v3633_v19  ;;  %v3639_v22 = vpack.c.bf16 %v3635_v20, %v3635_v20  ;;  %v7635_v12 = vld [vmem:[%s10516_s7 + $0x148] ss:$16 sps:$4 sm:$0xff]   ;;  %v7643_v14 = vld [vmem:[%s10516_s7 + $0x16c] ss:$16 sps:$4 sm:$0xff]  }
 0x310   :  { %v7638_v32 = vld [vmem:[%s10516_s7 + $0x348] ss:$16 sps:$4 sm:$0xff]   ;;  %v7646_v59 = vld [vmem:[%s10516_s7 + $0x36c] ss:$16 sps:$4 sm:$0xff]  }
 0x311   :  { %4462 = vmatprep.mubr.bf16.mxu0 %v3637_v21  ;;  %4503 = vmatprep.mubr.bf16.mxu1 %v3639_v22  ;;  %v7641_v17 = vld [vmem:[%s10516_s7 + $0x168] ss:$16 sps:$4 sm:$0xff]   ;;  %v7649_v0 = vld [vmem:[%s10516_s7 + $0x18c] ss:$16 sps:$4 sm:$0xff]  }
 0x312   :  { %4463 = vmatmul.mubr.bf16.vlgmr.msra.gmra.mrb[28].mxu0 %v9777_v31  ;;  %4504 = vmatmul.mubr.bf16.vlgmr.msra.gmra.mrb[28].mxu1 %v9779_v25  ;;  %v7644_v5 = vld [vmem:[%s10516_s7 + $0x368] ss:$16 sps:$4 sm:$0xff]   ;;  %v7652_v15 = vld [vmem:[%s10516_s7 + $0x38c] ss:$16 sps:$4 sm:$0xff]  }
 0x313   :  { %4513 = vmatpush1.bf16.msra.mxu0 %v7575_v23  ;;  %4554 = vmatpush1.bf16.msra.mxu1 %v7578_v24  ;;  %v7647_v16 = vld [vmem:[%s10516_s7 + $0x188] ss:$16 sps:$4 sm:$0xff]   ;;  %v7655_v19 = vld [vmem:[%s10516_s7 + $0x1ac] ss:$16 sps:$4 sm:$0xff]  }
 0x314   :  { %4544 = vmatprep.mubr.bf16.mxu0 %v3637_v21  ;;  %4585 = vmatprep.mubr.bf16.mxu1 %v3639_v22  ;;  %v7650_v18 = vld [vmem:[%s10516_s7 + $0x388] ss:$16 sps:$4 sm:$0xff]   ;;  %v7658_v20 = vld [vmem:[%s10516_s7 + $0x3ac] ss:$16 sps:$4 sm:$0xff]  }
 0x315   :  { %4514 = vmatprep.subr.bf16.mxu0 %v7583_v26  ;;  %4555 = vmatprep.subr.bf16.mxu1 %v7586_v13  ;;  %v7653_v21 = vld [vmem:[%s10516_s7 + $0x1a8] ss:$16 sps:$4 sm:$0xff]   ;;  %v7661_v23 = vld [vmem:[%s10516_s7 + $0x1cc] ss:$16 sps:$4 sm:$0xff]  }
 0x316   :  { %v7656_v22 = vld [vmem:[%s10516_s7 + $0x3a8] ss:$16 sps:$4 sm:$0xff]   ;;  %v7664_v24 = vld [vmem:[%s10516_s7 + $0x3cc] ss:$16 sps:$4 sm:$0xff]  }
 0x317   :  { %4515 = vmatpush1.bf16.msra.mxu0 %v7581_v37  ;;  %4556 = vmatpush1.bf16.msra.mxu1 %v7584_v30  ;;  %v7659_v26 = vld [vmem:[%s10516_s7 + $0x1c8] ss:$16 sps:$4 sm:$0xff]   ;;  %v7667_v37 = vld [vmem:[%s10516_s7 + $0x1ec] ss:$16 sps:$4 sm:$0xff]  }
 0x318   :  { %4516 = vmatprep.subr.bf16.mxu0 %v7589_v7  ;;  %4557 = vmatprep.subr.bf16.mxu1 %v7592_v60  ;;  %v7662_v13 = vld [vmem:[%s10516_s7 + $0x3c8] ss:$16 sps:$4 sm:$0xff]   ;;  %v7670_v30 = vld [vmem:[%s10516_s7 + $0x3ec] ss:$16 sps:$4 sm:$0xff]  }
 0x319   :  { %v7665_v7 = vld [vmem:[%s10516_s7 + $0x1e8] ss:$16 sps:$4 sm:$0xff]  }
 0x31a   :  { %v7668_v60 = vld [vmem:[%s10516_s7 + $0x3e8] ss:$16 sps:$4 sm:$0xff]  }
 0x31b   :  { %4517 = vmatpush1.bf16.msra.mxu0 %v7587_v33  ;;  %4558 = vmatpush1.bf16.msra.mxu1 %v7590_v34  ;;  %v7673_v33 = vld [vmem:[%s10518_s9 + $0x4] ss:$8 sps:$4 sm:$0xff]   ;;  %v7671_v34 = vld [vmem:[%s10518_s9] ss:$8 sps:$4 sm:$0xff]  }
 0x31c   :  { %4518 = vmatprep.subr.bf16.mxu0 %v7595_v35  ;;  %4559 = vmatprep.subr.bf16.mxu1 %v7598_v38  ;;  %v7676_v35 = vld [vmem:[%s10518_s9 + $0x14] ss:$8 sps:$4 sm:$0xff]   ;;  %v7674_v38 = vld [vmem:[%s10518_s9 + $0x10] ss:$8 sps:$4 sm:$0xff]  }
 0x31f   :  { %4519 = vmatpush1.bf16.msra.mxu0 %v7593_v39  ;;  %4560 = vmatpush1.bf16.msra.mxu1 %v7596_v40  ;;  %v7679_v39 = vld [vmem:[%s10518_s9 + $0x24] ss:$8 sps:$4 sm:$0xff]   ;;  %v7677_v40 = vld [vmem:[%s10518_s9 + $0x20] ss:$8 sps:$4 sm:$0xff]  }
 0x320   :  { %4520 = vmatprep.subr.bf16.mxu0 %v7601_v41  ;;  %4561 = vmatprep.subr.bf16.mxu1 %v7604_v42  ;;  %v7685_v41 = vld [vmem:[%s10518_s9 + $0x44] ss:$8 sps:$4 sm:$0xff]   ;;  %v7683_v42 = vld [vmem:[%s10518_s9 + $0x40] ss:$8 sps:$4 sm:$0xff]  }
 0x323   :  { %4521 = vmatpush1.bf16.msra.mxu0 %v7599_v43  ;;  %4562 = vmatpush1.bf16.msra.mxu1 %v7602_v44  ;;  %v7688_v43 = vld [vmem:[%s10518_s9 + $0x54] ss:$8 sps:$4 sm:$0xff]   ;;  %v7686_v44 = vld [vmem:[%s10518_s9 + $0x50] ss:$8 sps:$4 sm:$0xff]  }
 0x324   :  { %4522 = vmatprep.subr.bf16.mxu0 %v7607_v45  ;;  %4563 = vmatprep.subr.bf16.mxu1 %v7610_v58  ;;  %v7691_v45 = vld [vmem:[%s10518_s9 + $0x64] ss:$8 sps:$4 sm:$0xff]   ;;  %v7689_v58 = vld [vmem:[%s10518_s9 + $0x60] ss:$8 sps:$4 sm:$0xff]  }
 0x327   :  { %4523 = vmatpush1.bf16.msra.mxu0 %v7605_v54  ;;  %4564 = vmatpush1.bf16.msra.mxu1 %v7608_v47  ;;  %v7694_v54 = vld [vmem:[%s10518_s9 + $0x74] ss:$8 sps:$4 sm:$0xff]   ;;  %v7692_v47 = vld [vmem:[%s10518_s9 + $0x70] ss:$8 sps:$4 sm:$0xff]  }
 0x328   :  { %4524 = vmatprep.subr.bf16.mxu0 %v7613_v48  ;;  %4565 = vmatprep.subr.bf16.mxu1 %v7616_v52  ;;  %v7697_v48 = vld [vmem:[%s10518_s9 + $0x84] ss:$8 sps:$4 sm:$0xff]   ;;  %v7695_v52 = vld [vmem:[%s10518_s9 + $0x80] ss:$8 sps:$4 sm:$0xff]  }
 0x32b   :  { %4525 = vmatpush1.bf16.msra.mxu0 %v7611_v50  ;;  %4566 = vmatpush1.bf16.msra.mxu1 %v7614_v56  ;;  %v7700_v50 = vld [vmem:[%s10518_s9 + $0x94] ss:$8 sps:$4 sm:$0xff]   ;;  %v7698_v56 = vld [vmem:[%s10518_s9 + $0x90] ss:$8 sps:$4 sm:$0xff]  }
 0x32c   :  { %4526 = vmatprep.subr.bf16.mxu0 %v7619_v27  ;;  %4567 = vmatprep.subr.bf16.mxu1 %v7622_v57  ;;  %v7703_v27 = vld [vmem:[%s10518_s9 + $0xa4] ss:$8 sps:$4 sm:$0xff]   ;;  %v7701_v57 = vld [vmem:[%s10518_s9 + $0xa0] ss:$8 sps:$4 sm:$0xff]  }
 0x32f   :  { %4527 = vmatpush1.bf16.msra.mxu0 %v7617_v61  ;;  %4568 = vmatpush1.bf16.msra.mxu1 %v7620_v62  ;;  %v7706_v61 = vld [vmem:[%s10518_s9 + $0xb4] ss:$8 sps:$4 sm:$0xff]   ;;  %v7704_v62 = vld [vmem:[%s10518_s9 + $0xb0] ss:$8 sps:$4 sm:$0xff]  }
 0x330   :  { %4528 = vmatprep.subr.bf16.mxu0 %v7625_v1  ;;  %4569 = vmatprep.subr.bf16.mxu1 %v7628_v2  ;;  %v7709_v1 = vld [vmem:[%s10518_s9 + $0xc4] ss:$8 sps:$4 sm:$0xff]   ;;  %v7707_v2 = vld [vmem:[%s10518_s9 + $0xc0] ss:$8 sps:$4 sm:$0xff]  }
 0x333   :  { %4529 = vmatpush1.bf16.msra.mxu0 %v7623_v3  ;;  %4570 = vmatpush1.bf16.msra.mxu1 %v7626_v63  ;;  %v7712_v3 = vld [vmem:[%s10518_s9 + $0xd4] ss:$8 sps:$4 sm:$0xff]   ;;  %v7710_v63 = vld [vmem:[%s10518_s9 + $0xd0] ss:$8 sps:$4 sm:$0xff]  }
 0x334   :  { %4530 = vmatprep.subr.bf16.mxu0 %v7631_v6  ;;  %4571 = vmatprep.subr.bf16.mxu1 %v7634_v49  ;;  %v7715_v6 = vld [vmem:[%s10518_s9 + $0xe4] ss:$8 sps:$4 sm:$0xff]   ;;  %v7713_v49 = vld [vmem:[%s10518_s9 + $0xe0] ss:$8 sps:$4 sm:$0xff]  }
 0x337   :  { %4531 = vmatpush1.bf16.msra.mxu0 %v7629_v8  ;;  %4572 = vmatpush1.bf16.msra.mxu1 %v7632_v9  ;;  %v7718_v8 = vld [vmem:[%s10518_s9 + $0xf4] ss:$8 sps:$4 sm:$0xff]   ;;  %v7716_v9 = vld [vmem:[%s10518_s9 + $0xf0] ss:$8 sps:$4 sm:$0xff]  }
 0x338   :  { %4532 = vmatprep.subr.bf16.mxu0 %v7637_v10  ;;  %4573 = vmatprep.subr.bf16.mxu1 %v7640_v28  ;;  %v7721_v10 = vld [vmem:[%s10518_s9 + $0x104] ss:$8 sps:$4 sm:$0xff]  }
 0x339   :  { %v7767_v28 = vld [vmem:[%s10520_s11 + $0x40] sm:$0xff]  }
 0x33b   :  { %4533 = vmatpush1.bf16.msra.mxu0 %v7635_v12  ;;  %4574 = vmatpush1.bf16.msra.mxu1 %v7638_v32  ;;  %v7768_v12 = vld [vmem:[%s10520_s11] sm:$0xff]   ;;  %v7769_v32 = vld [vmem:[%s10520_s11 + $0x48] sm:$0xff]  }
 0x33c   :  { %4534 = vmatprep.subr.bf16.mxu0 %v7643_v14  ;;  %4575 = vmatprep.subr.bf16.mxu1 %v7646_v59  ;;  %v7770_v14 = vld [vmem:[%s10520_s11 + $0x8] sm:$0xff]   ;;  %v7771_v59 = vld [vmem:[%s10520_s11 + $0x50] sm:$0xff]  }
 0x33f   :  { %4535 = vmatpush1.bf16.msra.mxu0 %v7641_v17  ;;  %4576 = vmatpush1.bf16.msra.mxu1 %v7644_v5  ;;  %v7772_v17 = vld [vmem:[%s10520_s11 + $0x10] sm:$0xff]   ;;  %v7773_v5 = vld [vmem:[%s10520_s11 + $0x58] sm:$0xff]  }
 0x340   :  { %4536 = vmatprep.subr.bf16.mxu0 %v7649_v0  ;;  %4577 = vmatprep.subr.bf16.mxu1 %v7652_v15  ;;  %v7774_v0 = vld [vmem:[%s10520_s11 + $0x18] sm:$0xff]   ;;  %v7775_v15 = vld [vmem:[%s10520_s11 + $0x60] sm:$0xff]  }
 0x343   :  { %4537 = vmatpush1.bf16.msra.mxu0 %v7647_v16  ;;  %4578 = vmatpush1.bf16.msra.mxu1 %v7650_v18  ;;  %v7776_v16 = vld [vmem:[%s10520_s11 + $0x20] sm:$0xff]   ;;  %v7777_v18 = vld [vmem:[%s10520_s11 + $0x68] sm:$0xff]  }
 0x344   :  { %4538 = vmatprep.subr.bf16.mxu0 %v7655_v19  ;;  %4579 = vmatprep.subr.bf16.mxu1 %v7658_v20  ;;  %v7778_v19 = vld [vmem:[%s10520_s11 + $0x28] sm:$0xff]   ;;  %v10103_v20 = vld [vmem:[%s10517_s8] sm:$0xf] }
 0x347   :  { %4539 = vmatpush1.bf16.msra.mxu0 %v7653_v21  ;;  %4580 = vmatpush1.bf16.msra.mxu1 %v7656_v22  ;;  %v3773_v21 = vrot.slane %v10103_v20, %v9330_v51  ;;  %v3777_v22 = vrot.slane %v10103_v20, %v9338_v55 }
 0x348   :  { %4540 = vmatprep.subr.bf16.mxu0 %v7661_v23  ;;  %4581 = vmatprep.subr.bf16.mxu1 %v7664_v24 }
 0x34b   :  { %4541 = vmatpush1.bf16.msra.mxu0 %v7659_v26  ;;  %4582 = vmatpush1.bf16.msra.mxu1 %v7662_v13 }
 0x34c   :  { %4542 = vmatprep.subr.bf16.mxu0 %v7667_v37  ;;  %4583 = vmatprep.subr.bf16.mxu1 %v7670_v30 }
 0x34f   :  { %4543 = vmatpush1.bf16.msra.mxu0 %v7665_v7  ;;  %4584 = vmatpush1.bf16.msra.mxu1 %v7668_v60 }
 0x350   :  { %5002 = vmatprep.subr.bf16.mxu0 %v7673_v33  ;;  %6710 = vmatprep.subr.bf16.mxu1 %v7767_v28  ;;  %v7760_v28 = vld [vmem:[%s10518_s9 + $0x1d4] ss:$8 sps:$4 sm:$0xff]  }
 0x352   :  { %4545 = vmatmul.mubr.bf16.vlgmr.msra.gmra.mrb[32].mxu0 %v9777_v31  ;;  %4586 = vmatmul.mubr.bf16.vlgmr.msra.gmra.mrb[32].mxu1 %v9779_v25  ;;  %v7682_v31 = vld [vmem:[%s10518_s9 + $0x34] ss:$8 sps:$4 sm:$0xff]   ;;  %v7680_v25 = vld [vmem:[%s10518_s9 + $0x30] ss:$8 sps:$4 sm:$0xff]  }
 0x353   :  { %5003 = vmatpush1.bf16.msra.mxu0 %v7671_v34  ;;  %6711 = vmatpush3.bf16.msra.mxu1 %v7768_v12  ;;  %v3781_v12 = vrot.slane %v10103_v20, %v9555_v53 }
 0x354   :  { %5004 = vmatprep.subr.bf16.mxu0 %v7676_v35  ;;  %6712 = vmatprep.subr.bf16.mxu1 %v7769_v32  ;;  %v3785_v32 = vrot.slane %v10103_v20, %v9558_v29  ;;  %v7761_v29 = vld [vmem:[%s10518_s9 + $0x1e0] ss:$8 sps:$4 sm:$0xff]  }
 0x357   :  { %5005 = vmatpush1.bf16.msra.mxu0 %v7674_v38  ;;  %6713 = vmatpush3.bf16.msra.mxu1 %v7770_v14  ;;  %v7758_v14 = vld [vmem:[%s10518_s9 + $0x1d0] ss:$8 sps:$4 sm:$0xff]  }
 0x358   :  { %5006 = vmatprep.subr.bf16.mxu0 %v7679_v39  ;;  %6714 = vmatprep.subr.bf16.mxu1 %v7771_v59  ;;  %v7763_v59 = vld [vmem:[%s10518_s9 + $0x1e4] ss:$8 sps:$4 sm:$0xff]  }
 0x35b   :  { %5007 = vmatpush1.bf16.msra.mxu0 %v7677_v40  ;;  %6715 = vmatpush3.bf16.msra.mxu1 %v7772_v17 }
 0x35c   :  { %5008 = vmatprep.subr.bf16.mxu0 %v7682_v31  ;;  %6716 = vmatprep.subr.bf16.mxu1 %v7773_v5 }
 0x35f   :  { %5009 = vmatpush1.bf16.msra.mxu0 %v7680_v25  ;;  %6717 = vmatpush3.bf16.msra.mxu1 %v7774_v0 }
 0x360   :  { %5010 = vmatprep.subr.bf16.mxu0 %v7685_v41  ;;  %6718 = vmatprep.subr.bf16.mxu1 %v7775_v15 }
 0x363   :  { %5011 = vmatpush1.bf16.msra.mxu0 %v7683_v42  ;;  %6719 = vmatpush3.bf16.msra.mxu1 %v7776_v16  ;;  %v7719_v42 = vld [vmem:[%s10518_s9 + $0x100] ss:$8 sps:$4 sm:$0xff]  }
 0x364   :  { %5012 = vmatprep.subr.bf16.mxu0 %v7688_v43  ;;  %6720 = vmatprep.subr.bf16.mxu1 %v7777_v18 }
 0x367   :  { %5013 = vmatpush1.bf16.msra.mxu0 %v7686_v44  ;;  %6721 = vmatpush3.bf16.msra.mxu1 %v7778_v19  ;;  %v7724_v44 = vld [vmem:[%s10518_s9 + $0x114] ss:$8 sps:$4 sm:$0xff]  }
 0x368   :  { %5014 = vmatprep.subr.bf16.mxu0 %v7691_v45  ;;  %v7725_v45 = vld [vmem:[%s10518_s9 + $0x120] ss:$8 sps:$4 sm:$0xff]  }
 0x36b   :  { %5015 = vmatpush1.bf16.msra.mxu0 %v7689_v58  ;;  %v7730_v58 = vld [vmem:[%s10518_s9 + $0x134] ss:$8 sps:$4 sm:$0xff]  }
 0x36c   :  { %5016 = vmatprep.subr.bf16.mxu0 %v7694_v54  ;;  %v7728_v54 = vld [vmem:[%s10518_s9 + $0x130] ss:$8 sps:$4 sm:$0xff]  }
 0x36f   :  { %5017 = vmatpush1.bf16.msra.mxu0 %v7692_v47  ;;  %v7733_v47 = vld [vmem:[%s10518_s9 + $0x144] ss:$8 sps:$4 sm:$0xff]  }
 0x370   :  { %5018 = vmatprep.subr.bf16.mxu0 %v7697_v48  ;;  %v7731_v48 = vld [vmem:[%s10518_s9 + $0x140] ss:$8 sps:$4 sm:$0xff]  }
 0x373   :  { %5019 = vmatpush1.bf16.msra.mxu0 %v7695_v52  ;;  %v7736_v52 = vld [vmem:[%s10518_s9 + $0x154] ss:$8 sps:$4 sm:$0xff]  }
 0x374   :  { %5020 = vmatprep.subr.bf16.mxu0 %v7700_v50  ;;  %v7734_v50 = vld [vmem:[%s10518_s9 + $0x150] ss:$8 sps:$4 sm:$0xff]  }
 0x377   :  { %5021 = vmatpush1.bf16.msra.mxu0 %v7698_v56  ;;  %v7739_v56 = vld [vmem:[%s10518_s9 + $0x164] ss:$8 sps:$4 sm:$0xff]  }
 0x378   :  { %5022 = vmatprep.subr.bf16.mxu0 %v7703_v27  ;;  %v7737_v27 = vld [vmem:[%s10518_s9 + $0x160] ss:$8 sps:$4 sm:$0xff]  }
 0x37b   :  { %5023 = vmatpush1.bf16.msra.mxu0 %v7701_v57  ;;  %v7742_v57 = vld [vmem:[%s10518_s9 + $0x174] ss:$8 sps:$4 sm:$0xff]  }
 0x37c   :  { %5024 = vmatprep.subr.bf16.mxu0 %v7706_v61  ;;  %v7740_v61 = vld [vmem:[%s10518_s9 + $0x170] ss:$8 sps:$4 sm:$0xff]  }
 0x37f   :  { %5025 = vmatpush1.bf16.msra.mxu0 %v7704_v62  ;;  %v7745_v62 = vld [vmem:[%s10518_s9 + $0x184] ss:$8 sps:$4 sm:$0xff]  }
 0x380   :  { %5026 = vmatprep.subr.bf16.mxu0 %v7709_v1  ;;  %v7743_v1 = vld [vmem:[%s10518_s9 + $0x180] ss:$8 sps:$4 sm:$0xff]  }
 0x383   :  { %5027 = vmatpush1.bf16.msra.mxu0 %v7707_v2  ;;  %v7748_v2 = vld [vmem:[%s10518_s9 + $0x194] ss:$8 sps:$4 sm:$0xff]  }
 0x384   :  { %5028 = vmatprep.subr.bf16.mxu0 %v7712_v3  ;;  %v7746_v3 = vld [vmem:[%s10518_s9 + $0x190] ss:$8 sps:$4 sm:$0xff]  }
 0x387   :  { %5029 = vmatpush1.bf16.msra.mxu0 %v7710_v63  ;;  %v7751_v63 = vld [vmem:[%s10518_s9 + $0x1a4] ss:$8 sps:$4 sm:$0xff]  }
 0x388   :  { %5030 = vmatprep.subr.bf16.mxu0 %v7715_v6  ;;  %v7749_v6 = vld [vmem:[%s10518_s9 + $0x1a0] ss:$8 sps:$4 sm:$0xff]  }
 0x38b   :  { %5031 = vmatpush1.bf16.msra.mxu0 %v7713_v49  ;;  %v7754_v49 = vld [vmem:[%s10518_s9 + $0x1b4] ss:$8 sps:$4 sm:$0xff]  }
 0x38c   :  { %5032 = vmatprep.subr.bf16.mxu0 %v7718_v8  ;;  %v7752_v8 = vld [vmem:[%s10518_s9 + $0x1b0] ss:$8 sps:$4 sm:$0xff]  }
 0x38f   :  { %5033 = vmatpush1.bf16.msra.mxu0 %v7716_v9  ;;  %v7757_v9 = vld [vmem:[%s10518_s9 + $0x1c4] ss:$8 sps:$4 sm:$0xff]  }
 0x390   :  { %5043 = vmatprep.subr.bf16.mxu0 %v7721_v10  ;;  %v7755_v10 = vld [vmem:[%s10518_s9 + $0x1c0] ss:$8 sps:$4 sm:$0xff]  }
 0x3e5   :  { %v4464_v23 = vpop.f32.mrb[28].mxu0  ;;  %v4505_v24 = vpop.f32.mrb[28].mxu1 }
 0x3e6   :  { %v4465_v26 = vadd.f32 %v4464_v23, %v3773_v21  ;;  %v4466_v13 = vpop.f32.mrb[29].mxu0  ;;  %v4507_v37 = vpop.f32.mrb[29].mxu1  ;;  %v7766_v23 = vld [vmem:[%s10518_s9 + $0x1f4] ss:$8 sps:$4 sm:$0xff]  }
 0x3e7   :  { %v4467_v30 = vadd.f32 %v4466_v13, %v3777_v22  ;;  %v4468_v7 = vpop.f32.mrb[30].mxu0  ;;  %v4509_v60 = vpop.f32.mrb[30].mxu1 }
 0x3e8   :  { %v4506_v33 = vadd.f32 %v4505_v24, %v4465_v26  ;;  %v4469_v34 = vpop.f32.mrb[31].mxu0  ;;  %v4510_v35 = vpop.f32.mrb[31].mxu1 }
 0x3e9   :  { %v4508_v38 = vadd.f32 %v4507_v37, %v4467_v30  ;;  %v7764_v37 = vld [vmem:[%s10518_s9 + $0x1f0] ss:$8 sps:$4 sm:$0xff]  }
 0x3ea   :  { %v4594_v39 = vadd.f32 %v4506_v33, %v9352_v36  ;;  %v7722_v36 = vld [vmem:[%s10518_s9 + $0x110] ss:$8 sps:$4 sm:$0xff]  }
 0x3eb   :  { %v4595_v40 = vadd.f32 %v4508_v38, %v9354_v11  ;;  %v7727_v11 = vld [vmem:[%s10518_s9 + $0x124] ss:$8 sps:$4 sm:$0xff]   ;;  %v7781_v34 = vld [vmem:[%s10520_s11 + $0x78] sm:$0xff]  }
 0x3ec   :  { %v4598_v31 = vmax.f32 %v4594_v39, 0.0  ;;  %v7782_v35 = vld [vmem:[%s10520_s11 + $0x38] sm:$0xff]   ;;  %v7785_v38 = vld [vmem:[%s10522_s13 + $0x4] ss:$8 sps:$4 sm:$0xff]   ;;  %v4670_v39 = vld [vmem:[%s10519_s10] sm:$0x3] }
 0x3ed   :  { %v4599_v25 = vmax.f32 %v4595_v40, 0.0  ;;  %v4675_v40 = vrot.slane %v4670_v39, %v9330_v51 }
 0x3ee   :  { %v10116_v43 = vpack.c.bf16 %v4598_v31, %v4598_v31  ;;  %v4679_v31 = vrot.slane %v4670_v39, %v9338_v55  ;;  %v7880_v39 = vld [vmem:[%s10524_s15] sm:$0xff]  }
 0x3ef   :  { %v10111_v41 = vpack.c.bf16 %v4599_v25, %v4599_v25 }
 0x3f1   :  { %5034 = vmatprep.mubr.bf16.mxu0 %v10111_v41 }
 0x3f2   :  { %5035 = vmatmul.mubr.bf16.vlgmr.msra.gmra.mrb[36].mxu0 %v10116_v43 }
 0x3f3   :  { %5044 = vmatpush1.bf16.msra.mxu0 %v7719_v42 }
 0x3f4   :  { %5045 = vmatprep.subr.bf16.mxu0 %v7724_v44 }
 0x3f7   :  { %5046 = vmatpush1.bf16.msra.mxu0 %v7722_v36 }
 0x3f8   :  { %5047 = vmatprep.subr.bf16.mxu0 %v7727_v11 }
 0x3fb   :  { %5048 = vmatpush1.bf16.msra.mxu0 %v7725_v45 }
 0x3fc   :  { %5049 = vmatprep.subr.bf16.mxu0 %v7730_v58 }
 0x3ff   :  { %5050 = vmatpush1.bf16.msra.mxu0 %v7728_v54 }
 0x400   :  { %5051 = vmatprep.subr.bf16.mxu0 %v7733_v47 }
 0x403   :  { %5052 = vmatpush1.bf16.msra.mxu0 %v7731_v48  ;;  %v7783_v48 = vld [vmem:[%s10522_s13] ss:$8 sps:$4 sm:$0xff]  }
 0x404   :  { %5053 = vmatprep.subr.bf16.mxu0 %v7736_v52 }
 0x407   :  { %5054 = vmatpush1.bf16.msra.mxu0 %v7734_v50  ;;  %v7788_v50 = vld [vmem:[%s10522_s13 + $0x14] ss:$8 sps:$4 sm:$0xff]  }
 0x408   :  { %5055 = vmatprep.subr.bf16.mxu0 %v7739_v56  ;;  %v7786_v56 = vld [vmem:[%s10522_s13 + $0x10] ss:$8 sps:$4 sm:$0xff]  }
 0x40b   :  { %5056 = vmatpush1.bf16.msra.mxu0 %v7737_v27  ;;  %v7791_v27 = vld [vmem:[%s10522_s13 + $0x24] ss:$8 sps:$4 sm:$0xff]  }
 0x40c   :  { %5057 = vmatprep.subr.bf16.mxu0 %v7742_v57  ;;  %v7789_v57 = vld [vmem:[%s10522_s13 + $0x20] ss:$8 sps:$4 sm:$0xff]  }
 0x40f   :  { %5058 = vmatpush1.bf16.msra.mxu0 %v7740_v61  ;;  %v7794_v61 = vld [vmem:[%s10522_s13 + $0x34] ss:$8 sps:$4 sm:$0xff]  }
 0x410   :  { %5059 = vmatprep.subr.bf16.mxu0 %v7745_v62  ;;  %v7797_v62 = vld [vmem:[%s10522_s13 + $0x44] ss:$8 sps:$4 sm:$0xff]  }
 0x413   :  { %5060 = vmatpush1.bf16.msra.mxu0 %v7743_v1  ;;  %v7795_v1 = vld [vmem:[%s10522_s13 + $0x40] ss:$8 sps:$4 sm:$0xff]  }
 0x414   :  { %5061 = vmatprep.subr.bf16.mxu0 %v7748_v2  ;;  %v7800_v2 = vld [vmem:[%s10522_s13 + $0x54] ss:$8 sps:$4 sm:$0xff]  }
 0x417   :  { %5062 = vmatpush1.bf16.msra.mxu0 %v7746_v3  ;;  %v7798_v3 = vld [vmem:[%s10522_s13 + $0x50] ss:$8 sps:$4 sm:$0xff]  }
 0x418   :  { %5063 = vmatprep.subr.bf16.mxu0 %v7751_v63  ;;  %v7803_v63 = vld [vmem:[%s10522_s13 + $0x64] ss:$8 sps:$4 sm:$0xff]  }
 0x41b   :  { %5064 = vmatpush1.bf16.msra.mxu0 %v7749_v6  ;;  %v7801_v6 = vld [vmem:[%s10522_s13 + $0x60] ss:$8 sps:$4 sm:$0xff]  }
 0x41c   :  { %5065 = vmatprep.subr.bf16.mxu0 %v7754_v49  ;;  %v7806_v49 = vld [vmem:[%s10522_s13 + $0x74] ss:$8 sps:$4 sm:$0xff]  }
 0x41f   :  { %5066 = vmatpush1.bf16.msra.mxu0 %v7752_v8  ;;  %v7804_v8 = vld [vmem:[%s10522_s13 + $0x70] ss:$8 sps:$4 sm:$0xff]  }
 0x420   :  { %5067 = vmatprep.subr.bf16.mxu0 %v7757_v9  ;;  %v7809_v9 = vld [vmem:[%s10522_s13 + $0x84] ss:$8 sps:$4 sm:$0xff]  }
 0x423   :  { %5068 = vmatpush1.bf16.msra.mxu0 %v7755_v10  ;;  %v7807_v10 = vld [vmem:[%s10522_s13 + $0x80] ss:$8 sps:$4 sm:$0xff]  }
 0x424   :  { %5069 = vmatprep.subr.bf16.mxu0 %v7760_v28  ;;  %v7812_v28 = vld [vmem:[%s10522_s13 + $0x94] ss:$8 sps:$4 sm:$0xff]  }
 0x425   :  { %v4546_v17 = vpop.f32.mrb[32].mxu0  ;;  %v4587_v5 = vpop.f32.mrb[32].mxu1 }
 0x426   :  { %v4547_v0 = vadd.f32 %v4546_v17, %v3781_v12  ;;  %v4548_v15 = vpop.f32.mrb[33].mxu0  ;;  %v4589_v16 = vpop.f32.mrb[33].mxu1  ;;  %v7810_v12 = vld [vmem:[%s10522_s13 + $0x90] ss:$8 sps:$4 sm:$0xff]  }
 0x427   :  { %v4549_v18 = vadd.f32 %v4548_v15, %v3785_v32  ;;  %v4550_v53 = vpop.f32.mrb[34].mxu0  ;;  %v4591_v19 = vpop.f32.mrb[34].mxu1  ;;  %5070 = vmatpush1.bf16.msra.mxu0 %v7758_v14  ;;  %v7815_v32 = vld [vmem:[%s10522_s13 + $0xa4] ss:$8 sps:$4 sm:$0xff]   ;;  %v7813_v14 = vld [vmem:[%s10522_s13 + $0xa0] ss:$8 sps:$4 sm:$0xff]  }
 0x428   :  { %v4588_v20 = vadd.f32 %v4587_v5, %v4547_v0  ;;  %v4551_v21 = vpop.f32.mrb[35].mxu0  ;;  %v4592_v22 = vpop.f32.mrb[35].mxu1  ;;  %5071 = vmatprep.subr.bf16.mxu0 %v7763_v59  ;;  %v7818_v59 = vld [vmem:[%s10522_s13 + $0xb4] ss:$8 sps:$4 sm:$0xff]   ;;  %v7816_v17 = vld [vmem:[%s10522_s13 + $0xb0] ss:$8 sps:$4 sm:$0xff]  }
 0x429   :  { %v4590_v24 = vadd.f32 %v4589_v16, %v4549_v18  ;;  %v7821_v5 = vld [vmem:[%s10522_s13 + $0xc4] ss:$8 sps:$4 sm:$0xff]   ;;  %v7819_v0 = vld [vmem:[%s10522_s13 + $0xc0] ss:$8 sps:$4 sm:$0xff]   ;;  %v7824_v15 = vld [vmem:[%s10522_s13 + $0xd4] ss:$8 sps:$4 sm:$0xff]  }
 0x42a   :  { %v4596_v26 = vadd.f32 %v4588_v20, %v9564_v4  ;;  %v7779_v4 = vld [vmem:[%s10520_s11 + $0x70] sm:$0xff]   ;;  %v7827_v18 = vld [vmem:[%s10522_s13 + $0xe4] ss:$8 sps:$4 sm:$0xff]   ;;  %v7825_v53 = vld [vmem:[%s10522_s13 + $0xe0] ss:$8 sps:$4 sm:$0xff]  }
 0x42b   :  { %v4597_v13 = vadd.f32 %v4590_v24, %v9566_v46  ;;  %5072 = vmatpush1.bf16.msra.mxu0 %v7761_v29  ;;  %v7780_v46 = vld [vmem:[%s10520_s11 + $0x30] sm:$0xff]   ;;  %6722 = vmatprep.subr.bf16.mxu1 %v7779_v4  ;;  %v7833_v20 = vld [vmem:[%s10522_s13 + $0x104] ss:$8 sps:$4 sm:$0xff]   ;;  %v7831_v21 = vld [vmem:[%s10522_s13 + $0x100] ss:$8 sps:$4 sm:$0xff]  }
 0x42c   :  { %v4600_v30 = vmax.f32 %v4596_v26, 0.0  ;;  %5073 = vmatprep.subr.bf16.mxu0 %v7766_v23  ;;  %6723 = vmatpush3.bf16.msra.mxu1 %v7780_v46  ;;  %v7822_v16 = vld [vmem:[%s10522_s13 + $0xd0] ss:$8 sps:$4 sm:$0xff]   ;;  %v7830_v19 = vld [vmem:[%s10522_s13 + $0xf4] ss:$8 sps:$4 sm:$0xff]  }
 0x42d   :  { %v4601_v7 = vmax.f32 %v4597_v13, 0.0  ;;  %6724 = vmatprep.subr.bf16.mxu1 %v7781_v34  ;;  %v7828_v29 = vld [vmem:[%s10522_s13 + $0xf0] ss:$8 sps:$4 sm:$0xff]   ;;  %v7836_v22 = vld [vmem:[%s10522_s13 + $0x114] ss:$8 sps:$4 sm:$0xff]  }
 0x42e   :  { %v10218_v33 = vpack.c.bf16 %v4600_v30, %v4600_v30  ;;  %v7834_v23 = vld [vmem:[%s10522_s13 + $0x110] ss:$8 sps:$4 sm:$0xff]   ;;  %v7839_v24 = vld [vmem:[%s10522_s13 + $0x124] ss:$8 sps:$4 sm:$0xff]   ;;  %v7837_v26 = vld [vmem:[%s10522_s13 + $0x120] ss:$8 sps:$4 sm:$0xff]  }
 0x42f   :  { %v10216_v60 = vpack.c.bf16 %v4601_v7, %v4601_v7  ;;  %5074 = vmatpush1.bf16.msra.mxu0 %v7764_v37  ;;  %v7840_v13 = vld [vmem:[%s10522_s13 + $0x130] ss:$8 sps:$4 sm:$0xff]   ;;  %v7845_v37 = vld [vmem:[%s10522_s13 + $0x144] ss:$8 sps:$4 sm:$0xff]   ;;  %v7843_v30 = vld [vmem:[%s10522_s13 + $0x140] ss:$8 sps:$4 sm:$0xff]  }
 0x430   :  { %6725 = vmatpush3.bf16.msra.mxu1 %v7782_v35  ;;  %v7848_v7 = vld [vmem:[%s10522_s13 + $0x154] ss:$8 sps:$4 sm:$0xff]   ;;  %v7851_v4 = vld [vmem:[%s10522_s13 + $0x164] ss:$8 sps:$4 sm:$0xff]   ;;  %v7849_v46 = vld [vmem:[%s10522_s13 + $0x160] ss:$8 sps:$4 sm:$0xff]  }
 0x431   :  { %5075 = vmatprep.mubr.bf16.mxu0 %v10216_v60  ;;  %5661 = vmatprep.subr.bf16.mxu1 %v7785_v38  ;;  %v7854_v34 = vld [vmem:[%s10522_s13 + $0x174] ss:$8 sps:$4 sm:$0xff]   ;;  %v7852_v35 = vld [vmem:[%s10522_s13 + $0x170] ss:$8 sps:$4 sm:$0xff]   ;;  %v7879_v38 = vld [vmem:[%s10524_s15 + $0x40] sm:$0xff]  }
 0x432   :  { %5076 = vmatmul.mubr.bf16.vlgmr.msra.gmra.mrb[36].mxu0 %v10218_v33  ;;  %6732 = vmatprep.subr.bf16.mxu0 %v7879_v38 }
 0x433   :  { %6733 = vmatpush3.bf16.msra.mxu0 %v7880_v39 }
 0x505   :  { %v5077_v25 = vpop.f32.mrb[36].mxu0 }
 0x506   :  { %v6758_v42 = vadd.f32 %v5077_v25, %v4675_v40  ;;  %v5079_v44 = vpop.f32.mrb[37].mxu0  ;;  %v7881_v40 = vld [vmem:[%s10524_s15 + $0x48] sm:$0xff]  }
 0x507   :  { %v6759_v36 = vadd.f32 %v5079_v44, %v4679_v31  ;;  %v5081_v11 = vpop.f32.mrb[38].mxu0  ;;  %v7857_v31 = vld [vmem:[%s10522_s13 + $0x184] ss:$8 sps:$4 sm:$0xff]   ;;  %6734 = vmatprep.subr.bf16.mxu0 %v7881_v40  ;;  %v7883_v44 = vld [vmem:[%s10524_s15 + $0x50] sm:$0xff]  }
 0x508   :  { %v5084_v45 = vmax.f32 %v6758_v42, 0.0  ;;  %v5082_v58 = vpop.f32.mrb[39].mxu0  ;;  %v7882_v25 = vld [vmem:[%s10524_s15 + $0x8] sm:$0xff]   ;;  %v7884_v11 = vld [vmem:[%s10524_s15 + $0x10] sm:$0xff]  }
 0x509   :  { %v5085_v54 = vmax.f32 %v6759_v36, 0.0  ;;  %v7855_v42 = vld [vmem:[%s10522_s13 + $0x180] ss:$8 sps:$4 sm:$0xff]   ;;  %v7860_v36 = vld [vmem:[%s10522_s13 + $0x194] ss:$8 sps:$4 sm:$0xff]   ;;  %6735 = vmatpush3.bf16.msra.mxu0 %v7882_v25 }
 0x50a   :  { %v5086_v52 = vpack.c.bf16 %v5084_v45, %v5084_v45  ;;  %v7858_v45 = vld [vmem:[%s10522_s13 + $0x190] ss:$8 sps:$4 sm:$0xff]   ;;  %6736 = vmatprep.subr.bf16.mxu0 %v7883_v44 }
 0x50b   :  { %v5087_v47 = vpack.c.bf16 %v5085_v54, %v5085_v54  ;;  %v7885_v58 = vld [vmem:[%s10524_s15 + $0x58] sm:$0xff]   ;;  %v7863_v54 = vld [vmem:[%s10522_s13 + $0x1a4] ss:$8 sps:$4 sm:$0xff]  }
 0x50d   :  { %5255 = vmatprep.mubr.bf16.mxu1 %v5087_v47  ;;  %6737 = vmatpush3.bf16.msra.mxu0 %v7884_v11  ;;  %v7886_v47 = vld [vmem:[%s10524_s15 + $0x18] sm:$0xff]  }
 0x50e   :  { %5256 = vmatmul.mubr.bf16.vlgmr.msra.gmra.mrb[36].mxu1 %v5086_v52  ;;  %6738 = vmatprep.subr.bf16.mxu0 %v7885_v58  ;;  %v7887_v52 = vld [vmem:[%s10524_s15 + $0x60] sm:$0xff]  }
 0x50f   :  { %5662 = vmatpush1.bf16.msra.mxu1 %v7783_v48  ;;  %5693 = vmatprep.mubr.bf16.mxu1 %v10111_v41  ;;  %v7792_v41 = vld [vmem:[%s10522_s13 + $0x30] ss:$8 sps:$4 sm:$0xff]   ;;  %v7861_v48 = vld [vmem:[%s10522_s13 + $0x1a0] ss:$8 sps:$4 sm:$0xff]  }
 0x510   :  { %5663 = vmatprep.subr.bf16.mxu1 %v7788_v50  ;;  %v7866_v50 = vld [vmem:[%s10522_s13 + $0x1b4] ss:$8 sps:$4 sm:$0xff]  }
 0x511   :  { %6739 = vmatpush3.bf16.msra.mxu0 %v7886_v47 }
 0x512   :  { %6740 = vmatprep.subr.bf16.mxu0 %v7887_v52 }
 0x513   :  { %5664 = vmatpush1.bf16.msra.mxu1 %v7786_v56  ;;  %v7888_v56 = vld [vmem:[%s10524_s15 + $0x20] sm:$0xff]  }
 0x514   :  { %5665 = vmatprep.subr.bf16.mxu1 %v7791_v27  ;;  %v7864_v27 = vld [vmem:[%s10522_s13 + $0x1b0] ss:$8 sps:$4 sm:$0xff]  }
 0x515   :  { %6741 = vmatpush3.bf16.msra.mxu0 %v7888_v56 }
 0x517   :  { %5666 = vmatpush1.bf16.msra.mxu1 %v7789_v57  ;;  %v7889_v57 = vld [vmem:[%s10524_s15 + $0x68] sm:$0xff]  }
 0x518   :  { %5667 = vmatprep.subr.bf16.mxu1 %v7794_v61  ;;  %v7869_v61 = vld [vmem:[%s10522_s13 + $0x1c4] ss:$8 sps:$4 sm:$0xff]   ;;  %6742 = vmatprep.subr.bf16.mxu0 %v7889_v57 }
 0x51b   :  { %5668 = vmatpush1.bf16.msra.mxu1 %v7792_v41  ;;  %v7890_v41 = vld [vmem:[%s10524_s15 + $0x28] sm:$0xff]  }
 0x51c   :  { %5669 = vmatprep.subr.bf16.mxu1 %v7797_v62  ;;  %v7867_v62 = vld [vmem:[%s10522_s13 + $0x1c0] ss:$8 sps:$4 sm:$0xff]   ;;  %6743 = vmatpush3.bf16.msra.mxu0 %v7890_v41 }
 0x51f   :  { %5670 = vmatpush1.bf16.msra.mxu1 %v7795_v1  ;;  %v7872_v1 = vld [vmem:[%s10522_s13 + $0x1d4] ss:$8 sps:$4 sm:$0xff]  }
 0x520   :  { %5671 = vmatprep.subr.bf16.mxu1 %v7800_v2  ;;  %v7870_v2 = vld [vmem:[%s10522_s13 + $0x1d0] ss:$8 sps:$4 sm:$0xff]  }
 0x523   :  { %5672 = vmatpush1.bf16.msra.mxu1 %v7798_v3  ;;  %v7875_v3 = vld [vmem:[%s10522_s13 + $0x1e4] ss:$8 sps:$4 sm:$0xff]  }
 0x524   :  { %5673 = vmatprep.subr.bf16.mxu1 %v7803_v63  ;;  %v7873_v63 = vld [vmem:[%s10522_s13 + $0x1e0] ss:$8 sps:$4 sm:$0xff]  }
 0x527   :  { %5674 = vmatpush1.bf16.msra.mxu1 %v7801_v6  ;;  %v7878_v6 = vld [vmem:[%s10522_s13 + $0x1f4] ss:$8 sps:$4 sm:$0xff]  }
 0x528   :  { %5675 = vmatprep.subr.bf16.mxu1 %v7806_v49  ;;  %v7876_v49 = vld [vmem:[%s10522_s13 + $0x1f0] ss:$8 sps:$4 sm:$0xff]  }
 0x52b   :  { %5676 = vmatpush1.bf16.msra.mxu1 %v7804_v8  ;;  %v7891_v8 = vld [vmem:[%s10524_s15 + $0x70] sm:$0xff]  }
 0x52c   :  { %5677 = vmatprep.subr.bf16.mxu1 %v7809_v9  ;;  %6744 = vmatprep.subr.bf16.mxu0 %v7891_v8 }
 0x52f   :  { %5678 = vmatpush1.bf16.msra.mxu1 %v7807_v10  ;;  %v7892_v10 = vld [vmem:[%s10524_s15 + $0x30] sm:$0xff]  }
 0x530   :  { %5679 = vmatprep.subr.bf16.mxu1 %v7812_v28  ;;  %v6612_v28 = vld [vmem:[#allocation2] ss:$0 sm:$0xff]  ;;  %6745 = vmatpush3.bf16.msra.mxu0 %v7892_v10 }
 0x533   :  { %5680 = vmatpush1.bf16.msra.mxu1 %v7810_v12 }
 0x534   :  { %5681 = vmatprep.subr.bf16.mxu1 %v7815_v32 }
 0x537   :  { %5682 = vmatpush1.bf16.msra.mxu1 %v7813_v14 }
 0x538   :  { %5683 = vmatprep.subr.bf16.mxu1 %v7818_v59 }
 0x53b   :  { %5684 = vmatpush1.bf16.msra.mxu1 %v7816_v17 }
 0x53c   :  { %5685 = vmatprep.subr.bf16.mxu1 %v7821_v5  ;;  %v7894_v5 = vld [vmem:[%s10524_s15 + $0x38] sm:$0xff]  }
 0x53f   :  { %5686 = vmatpush1.bf16.msra.mxu1 %v7819_v0  ;;  %v5329_v0 = vld [vmem:[%s10523_s14] sm:$0x3] }
 0x540   :  { %5687 = vmatprep.subr.bf16.mxu1 %v7824_v15  ;;  %v5334_v15 = vrot.slane %v5329_v0, %v9330_v51  ;;  %v6693_v51 = vld [vmem:[%s10525_s16] ss:$0 sm:$0xff] }
 0x543   :  { %5688 = vmatpush1.bf16.msra.mxu1 %v7822_v16  ;;  %v5338_v16 = vrot.slane %v5329_v0, %v9338_v55 }
 0x544   :  { %5689 = vmatprep.subr.bf16.mxu1 %v7827_v18 }
 0x547   :  { %5690 = vmatpush1.bf16.msra.mxu1 %v7825_v53 }
 0x548   :  { %5691 = vmatprep.subr.bf16.mxu1 %v7830_v19 }
 0x54b   :  { %5692 = vmatpush1.bf16.msra.mxu1 %v7828_v29 }
 0x54c   :  { %5702 = vmatprep.subr.bf16.mxu1 %v7833_v20 }
 0x54e   :  { %5694 = vmatmul.mubr.bf16.vlgmr.msra.gmra.mrb[40].mxu1 %v10116_v43  ;;  %v7842_v43 = vld [vmem:[%s10522_s13 + $0x134] ss:$8 sps:$4 sm:$0xff]  }
 0x54f   :  { %5703 = vmatpush1.bf16.msra.mxu1 %v7831_v21  ;;  %5734 = vmatprep.mubr.bf16.mxu1 %v10216_v60  ;;  %v7846_v60 = vld [vmem:[%s10522_s13 + $0x150] ss:$8 sps:$4 sm:$0xff]  }
 0x550   :  { %5704 = vmatprep.subr.bf16.mxu1 %v7836_v22 }
 0x553   :  { %5705 = vmatpush1.bf16.msra.mxu1 %v7834_v23 }
 0x554   :  { %5706 = vmatprep.subr.bf16.mxu1 %v7839_v24 }
 0x557   :  { %5707 = vmatpush1.bf16.msra.mxu1 %v7837_v26 }
 0x558   :  { %5708 = vmatprep.subr.bf16.mxu1 %v7842_v43 }
 0x55b   :  { %5709 = vmatpush1.bf16.msra.mxu1 %v7840_v13 }
 0x55c   :  { %5710 = vmatprep.subr.bf16.mxu1 %v7845_v37 }
 0x55f   :  { %5711 = vmatpush1.bf16.msra.mxu1 %v7843_v30 }
 0x560   :  { %5712 = vmatprep.subr.bf16.mxu1 %v7848_v7 }
 0x563   :  { %5713 = vmatpush1.bf16.msra.mxu1 %v7846_v60 }
 0x564   :  { %5714 = vmatprep.subr.bf16.mxu1 %v7851_v4 }
 0x567   :  { %5715 = vmatpush1.bf16.msra.mxu1 %v7849_v46 }
 0x568   :  { %5716 = vmatprep.subr.bf16.mxu1 %v7854_v34 }
 0x56b   :  { %5717 = vmatpush1.bf16.msra.mxu1 %v7852_v35 }
 0x56c   :  { %5718 = vmatprep.subr.bf16.mxu1 %v7857_v31 }
 0x56f   :  { %5719 = vmatpush1.bf16.msra.mxu1 %v7855_v42 }
 0x570   :  { %5720 = vmatprep.subr.bf16.mxu1 %v7860_v36 }
 0x573   :  { %5721 = vmatpush1.bf16.msra.mxu1 %v7858_v45 }
 0x574   :  { %5722 = vmatprep.subr.bf16.mxu1 %v7863_v54 }
 0x577   :  { %5723 = vmatpush1.bf16.msra.mxu1 %v7861_v48 }
 0x578   :  { %5724 = vmatprep.subr.bf16.mxu1 %v7866_v50 }
 0x57b   :  { %5725 = vmatpush1.bf16.msra.mxu1 %v7864_v27 }
 0x57c   :  { %5726 = vmatprep.subr.bf16.mxu1 %v7869_v61 }
 0x57f   :  { %5727 = vmatpush1.bf16.msra.mxu1 %v7867_v62 }
 0x580   :  { %5728 = vmatprep.subr.bf16.mxu1 %v7872_v1 }
 0x583   :  { %5729 = vmatpush1.bf16.msra.mxu1 %v7870_v2 }
 0x584   :  { %5730 = vmatprep.subr.bf16.mxu1 %v7875_v3 }
 0x587   :  { %5731 = vmatpush1.bf16.msra.mxu1 %v7873_v63 }
 0x588   :  { %5732 = vmatprep.subr.bf16.mxu1 %v7878_v6 }
 0x58b   :  { %5733 = vmatpush1.bf16.msra.mxu1 %v7876_v49 }
 0x58e   :  { %5735 = vmatmul.mubr.bf16.vlgmr.msra.gmra.mrb[40].mxu1 %v10218_v33  ;;  %v7893_v33 = vld [vmem:[%s10524_s15 + $0x78] sm:$0xff]  }
 0x58f   :  { %6746 = vmatprep.subr.bf16.mxu0 %v7893_v33 }
 0x590   :  { %6747 = vmatpush3.bf16.msra.mxu0 %v7894_v5 }
 0x5e1   :  { %v6726_v9 = vpop.f32.mrb[36].mxu1 }
 0x5e2   :  { %v6727_v12 = vpop.f32.mrb[37].mxu1 }
 0x5e3   :  { %v6728_v32 = vadd.f32 %v6727_v12, %v6726_v9  ;;  %v6729_v14 = vpop.f32.mrb[38].mxu1 }
 0x5e4   :  { %v6730_v59 = vpop.f32.mrb[39].mxu1 }
 0x5e5   :  { %v5258_v17 = vadd.f32 %v6728_v32, %v6612_v28 }
 0x5e7   :  { %5264 = vst.msk [vmem:[%s10526_s17] sm:$0x3] %vm5263_vm1, %v5258_v17  ;;  %s7925_s17 = smov [#allocation3]  }
 0x5e8   :  { %s5943_s16 = sshll.u32 %s7925_s17, 4  ;;  %s5944_s16 = int_to_ptr.vmem [resolvable:$true] %s5943_s16 }
 0x5e9   :  { %s7899_s21 = scalar_lea.vmem %s5944_s16, 32  ;;  %p7904_p1 = scmp.lt.s32.totalorder %s5944_s16, %s5944_s16 }
 0x5ea   :  { %p7900_p0 = scmp.ne.s32.totalorder %s5944_s16, %s7899_s21  ;;  %p7905_p2 = scmp.lt.s32.totalorder %s7899_s21, %s7899_s21 }
 0x5ec   :  { %p7906_p3 = por %p7905_p2, %p7904_p1 }
 0x5ee   :  { %p7907_p4 = pnand %p7906_p3, %p7900_p0 }
 0x661   :  { %v5736_v18 = vpop.f32.mrb[40].mxu1 }
 0x662   :  { %v6760_v53 = vadd.f32 %v5736_v18, %v5334_v15  ;;  %v5738_v19 = vpop.f32.mrb[41].mxu1 }
 0x663   :  { %v6761_v29 = vadd.f32 %v5738_v19, %v5338_v16  ;;  %v5740_v20 = vpop.f32.mrb[42].mxu1 }
 0x664   :  { %v5743_v21 = vmax.f32 %v6760_v53, 0.0  ;;  %v5741_v22 = vpop.f32.mrb[43].mxu1 }
 0x665   :  { %v5744_v23 = vmax.f32 %v6761_v29, 0.0 }
 0x666   :  { %v5745_v26 = vpack.c.bf16 %v5743_v21, %v5743_v21 }
 0x667   :  { %v5746_v24 = vpack.c.bf16 %v5744_v23, %v5744_v23 }
 0x669   :  { %5914 = vmatprep.mubr.bf16.mxu0 %v5746_v24 }
 0x66a   :  { %5915 = vmatmul.mubr.bf16.vlgmr.msra.gmra.mrb[40].mxu0 %v5745_v26 }
 0x73d   :  { %v6748_v43 = vpop.f32.mrb[40].mxu0 }
 0x73e   :  { %v6749_v13 = vpop.f32.mrb[41].mxu0 }
 0x73f   :  { %v6750_v37 = vadd.f32 %v6749_v13, %v6748_v43  ;;  %v6751_v55 = vpop.f32.mrb[42].mxu0 }
 0x740   :  { %v6752_v30 = vpop.f32.mrb[43].mxu0 }
 0x741   :  { %v5917_v7 = vadd.f32 %v6750_v37, %v6693_v51 }
 0x743   :  { %v5923_v60 = vsel %vm5922_vm2, %v5917_v7, -inf }
 0x744   :  { %5924 = vmax.xlane.f32.xlu0 %v5923_v60 }
 0x7d1   :  { %v5925_v4 = vpop.xlane.xlu0 %5924 }
 0x7d2   :  { %v5926_v46 = vsub.f32 %v5917_v7, %v5925_v4 }
 0x7d4   :  { %v5927_v34 = vmul.f32 1.442695, %v5926_v46 }
 0x7d6   :  { %7895 = vpow2.f32 %v5927_v34 }
 0x7e0   :  { %v7896_v35 = vpop.eup %7895 }
 0x7e1   :  { %v5929_v38 = vsel %vm5922_vm2, %v7896_v35, 0.0 }
 0x7e2   :  { %5930 = vadd.xlane.f32.xlu0 %v5929_v38 }
 0x86f   :  { %v5931_v39 = vpop.xlane.xlu0 %5930 }
 0x870   :  { %7897 = vrcp.f32 %v5931_v39 }
 0x87a   :  { %v7898_v40 = vpop.eup %7897 }
 0x87b   :  { %v5933_v31 = vmul.f32 %v7898_v40, %v7896_v35 }
 0x87d   :  { %5934 = vst.msk [vmem:[#allocation3] sm:$0x3] %vm5922_vm2, %v5933_v31 }
 0x87e   :  { %7910 = shalt.err (!%p7907_p4)
}
 0x87f   :  { %s7911_s2 = scalar_lea.hbm %s10527_s18, 32 }
 0x880   :  { %p7912_p5 = scmp.ne.s32.totalorder %s10527_s18, %s7911_s2  ;;  %p7915_p6 = scmp.lt.u32.totalorder %s7911_s2, %s10527_s18 }
 0x882   :  { %p7917_p7 = pnand %p7915_p6, %p7912_p5 }
 0x884   :  { %7920 = shalt.err (!%p7917_p7)
}
 0x885   :  { %5946 = dma.vmem_to_hbm [thread:$0]  %s5944_s16, 32, %s10527_s18, [#allocation4]  }
 0x886   :  { %7921 = dma.done.wait [#allocation4], 32  }
 0x887   :  { %7922 = vsyncadd [#allocation4], 4294967264 }
 0x888   :  { %5952 = vsyncpa [#allocation4], 1 }

</bundles_post_ra>
